<compile_context>
chip_gen: v6e
topology: v6e:2x2x1
jax: 0.10.0
libtpu: 0.0.40
codegen_flags: <defaults>
</compile_context>

<pallas_src>
import functools

import jax
import jax.numpy as jnp
from jax.experimental import pallas as pl
from jax.experimental.pallas import tpu as pltpu

# ---- config (mirrors cfg.*) ----
MEL_DIM = 64
VAE_EMB_DIM = 128          # gru_units
VAE_LATENT_DIM = 32
CONV_CHANNELS = [32, 32, 64, 64, 128, 128]
KERNEL = 3
STRIDE = 2
PAD = 1
BN_EPS = 1e-5
LANE = 128                 # lane-dense store width / head packing stride


def _round_up(x, m):
    return (x + m - 1) // m * m


# ---------------------------------------------------------------------------
# Pallas kernel 1: fused matmul + bias (+ optional ReLU)   — conv hot path
# ---------------------------------------------------------------------------
def _matmul_bias_kernel(a_ref, b_ref, bias_ref, o_ref, *, relu):
    acc = jnp.dot(a_ref[...], b_ref[...], preferred_element_type=jnp.float32)
    acc = acc + bias_ref[...]
    if relu:
        acc = jnp.maximum(acc, 0.0)
    o_ref[...] = acc.astype(o_ref.dtype)


def matmul_bias_act(a, b, bias, *, relu=True, out_dtype=jnp.bfloat16, tile_m=512):
    """a: [M, K] (bf16), b: [K, N] (bf16), bias: [1, N] (f32) -> [M, N]."""
    M, K = a.shape
    _, N = b.shape

    if M <= tile_m:
        tm, Mp = M, M                       # single block == full dim
    else:
        tm = next((c for c in (tile_m, 256, 128, 64, 32, 16, 8) if M % c == 0),
                  None)
        if tm is None:                      # fallback (never hit for this model)
            tm = tile_m
            Mp = _round_up(M, tm)
            a = jnp.pad(a, ((0, Mp - M), (0, 0)))
        else:
            Mp = M

    out = pl.pallas_call(
        functools.partial(_matmul_bias_kernel, relu=relu),
        out_shape=jax.ShapeDtypeStruct((Mp, N), out_dtype),
        grid=(Mp // tm,),
        in_specs=[
            pl.BlockSpec((tm, K), lambda i: (i, 0)),
            pl.BlockSpec((K, N), lambda i: (0, 0)),
            pl.BlockSpec((1, N), lambda i: (0, 0)),
        ],
        out_specs=pl.BlockSpec((tm, N), lambda i: (i, 0)),
        compiler_params=pltpu.CompilerParams(
            dimension_semantics=("parallel",)),
    )(a, b, bias)
    return out if Mp == M else out[:M]


# ---------------------------------------------------------------------------
# Pallas kernel 2: fused GRU (hoisted input projection) + VAE head + reparam
# ---------------------------------------------------------------------------
def _gru_head_kernel(x_ref, wih_ref, whh_ref, bih_ref, bhh_ref,
                     wmv_ref, bmv_ref, eps_ref,
                     z_ref, mean_ref, logvar_ref,
                     *, seq_len, batch, batch_pad, hidden, latent):
    H, B, Bp, L = hidden, batch, batch_pad, latent
    x = x_ref[...].astype(jnp.float32)                         # [T*Bp, I]

    # Hoisted GRU input projection: one matmul for all timesteps.
    gi_all = jnp.dot(x, wih_ref[...],
                     preferred_element_type=jnp.float32) + bih_ref[...]

    w_hh = whh_ref[...]
    b_hh = bhh_ref[...]
    h = jnp.zeros((Bp, H), jnp.float32)
    for t in range(seq_len):                                   # short static unroll
        gi = gi_all[t * Bp:(t + 1) * Bp, :]                    # sublane-tile aligned
        gh = jnp.dot(h, w_hh, preferred_element_type=jnp.float32) + b_hh
        r = jax.nn.sigmoid(gi[:, 0:H] + gh[:, 0:H])
        u = jax.nn.sigmoid(gi[:, H:2 * H] + gh[:, H:2 * H])
        n = jnp.tanh(gi[:, 2 * H:3 * H] + r * gh[:, 2 * H:3 * H])
        h = (1.0 - u) * n + u * h

    # Fused VAE head: packed [mean | logvar] linear + reparameterization (f32).
    mv = jnp.dot(h, wmv_ref[...], preferred_element_type=jnp.float32) + bmv_ref[...]
    mean = mv[:B, 0:L]
    logvar = mv[:B, LANE:LANE + L]
    std = jnp.exp(0.5 * logvar)
    z_ref[...] = eps_ref[...] * std + mean
    mean_ref[...] = mean
    logvar_ref[...] = logvar


def gru_head(x, gru, head, eps, *, batch, batch_pad):
    """x: [T'*batch_pad, I] (time-major, batch padded to 8) -> (z, mean, logvar)."""
    TBp, I = x.shape
    T = TBp // batch_pad
    H = gru["w_hh"].shape[0]
    GN = 3 * H
    HW = head["w"].shape[1]
    L = eps.shape[1]

    kernel = functools.partial(
        _gru_head_kernel, seq_len=T, batch=batch, batch_pad=batch_pad,
        hidden=H, latent=L)
    z, mean, logvar = pl.pallas_call(
        kernel,
        out_shape=tuple(jax.ShapeDtypeStruct((batch, L), jnp.float32)
                        for _ in range(3)),
        grid=(1,),
        in_specs=[
            pl.BlockSpec((TBp, I), lambda i: (0, 0)),
            pl.BlockSpec((I, GN), lambda i: (0, 0)),
            pl.BlockSpec((H, GN), lambda i: (0, 0)),
            pl.BlockSpec((1, GN), lambda i: (0, 0)),
            pl.BlockSpec((1, GN), lambda i: (0, 0)),
            pl.BlockSpec((H, HW), lambda i: (0, 0)),
            pl.BlockSpec((1, HW), lambda i: (0, 0)),
            pl.BlockSpec((batch, L), lambda i: (0, 0)),
        ],
        out_specs=tuple(pl.BlockSpec((batch, L), lambda i: (0, 0))
                        for _ in range(3)),
        compiler_params=pltpu.CompilerParams(
            dimension_semantics=("arbitrary",)),
    )(x, gru["w_ih"], gru["w_hh"], gru["b_ih"], gru["b_hh"],
      head["w"], head["b"], eps)
    return z, mean, logvar


# ---------------------------------------------------------------------------
# Glue: NHWC im2col (slice+concat only), conv layer, param prep, full forward
# ---------------------------------------------------------------------------
def conv_layer(x, w2, b2):
    """Conv2d(k=3,s=2,p=1)+folded-BN+ReLU.  x: [B,H,W,C] NHWC (bf16)."""
    B, H, W, C = x.shape
    Ho = (H + 2 * PAD - KERNEL) // STRIDE + 1
    Wo = (W + 2 * PAD - KERNEL) // STRIDE + 1
    xp = jnp.pad(x, ((0, 0), (PAD, PAD), (PAD, PAD), (0, 0)))
    taps = [xp[:, ki:ki + STRIDE * Ho:STRIDE, kj:kj + STRIDE * Wo:STRIDE, :]
            for ki in range(KERNEL) for kj in range(KERNEL)]
    cols = jnp.concatenate(taps, axis=-1)                    # [B,Ho,Wo,k*k*C]
    cols = cols.reshape(B * Ho * Wo, KERNEL * KERNEL * C)
    out = matmul_bias_act(cols, w2, b2, relu=True)
    return out.reshape(B, Ho, Wo, w2.shape[1])


def init_params(key):
    keys = jax.random.split(key, 40)
    it = iter(keys)
    params = {"convs": []}
    cin = 1
    for cout in CONV_CHANNELS:
        w = 0.1 * jax.random.normal(next(it), (cout, cin, KERNEL, KERNEL), jnp.float32)
        b = 0.05 * jax.random.normal(next(it), (cout,), jnp.float32)
        gamma = 1.0 + 0.1 * jax.random.normal(next(it), (cout,), jnp.float32)
        beta = 0.05 * jax.random.normal(next(it), (cout,), jnp.float32)
        running_mean = jnp.zeros((cout,), jnp.float32)
        running_var = jnp.ones((cout,), jnp.float32)
        scale = gamma / jnp.sqrt(running_var + BN_EPS)
        shift = beta - running_mean * scale
        params["convs"].append(dict(w=w, b=b, bn_scale=scale, bn_shift=shift))
        cin = cout

    # GRU input size = C_last * (mel_dim downsampled by the stride-2 convs)
    mel_out = MEL_DIM
    for _ in CONV_CHANNELS:
        mel_out = (mel_out + 2 * PAD - KERNEL) // STRIDE + 1
    I = CONV_CHANNELS[-1] * mel_out
    H = VAE_EMB_DIM
    params["gru"] = dict(
        w_ih=0.1 * jax.random.normal(next(it), (I, 3 * H), jnp.float32),
        w_hh=0.1 * jax.random.normal(next(it), (H, 3 * H), jnp.float32),
        b_ih=0.05 * jax.random.normal(next(it), (3 * H,), jnp.float32),
        b_hh=0.05 * jax.random.normal(next(it), (3 * H,), jnp.float32),
    )
    params["mean"] = dict(
        w=0.1 * jax.random.normal(next(it), (H, VAE_LATENT_DIM), jnp.float32),
        b=0.05 * jax.random.normal(next(it), (VAE_LATENT_DIM,), jnp.float32),
    )
    params["logvar"] = dict(
        w=0.05 * jax.random.normal(next(it), (H, VAE_LATENT_DIM), jnp.float32),
        b=0.02 * jax.random.normal(next(it), (VAE_LATENT_DIM,), jnp.float32),
    )
    return params


def prepare_params(params):
    """Fold BN, reorder weights for NHWC im2col, pad to 128 lanes, cast to bf16."""
    prepped = {"convs": []}
    n_layers = len(params["convs"])
    cin_pad = 1                                   # first layer input channels
    for li, layer in enumerate(params["convs"]):
        w, b = layer["w"], layer["b"]                         # [Cout,Cin,k,k], [Cout]
        cout, cin = w.shape[0], w.shape[1]
        # eval-mode BatchNorm folded into conv
        w = w * layer["bn_scale"].reshape(cout, 1, 1, 1)
        b = b * layer["bn_scale"] + layer["bn_shift"]
        # zero weight rows for the (zero) padded input channels of the prev layer
        if cin_pad > cin:
            w = jnp.pad(w, ((0, 0), (0, cin_pad - cin), (0, 0), (0, 0)))
        # [Cout,Cin_pad,k,k] -> [k,k,Cin_pad,Cout] -> [k*k*Cin_pad, Cout]
        w2 = w.transpose(2, 3, 1, 0).reshape(KERNEL * KERNEL * cin_pad, cout)
        # lane-dense output channels (not on the last layer: it feeds the GRU)
        is_last = (li == n_layers - 1)
        cout_pad = cout if is_last else max(LANE, _round_up(cout, LANE))
        if cout_pad > cout:
            w2 = jnp.pad(w2, ((0, 0), (0, cout_pad - cout)))
            b = jnp.pad(b, (0, cout_pad - cout))
        prepped["convs"].append(dict(w=w2.astype(jnp.bfloat16),
                                     b=b.reshape(1, cout_pad).astype(jnp.float32)))
        cin_pad = cout_pad

    g = params["gru"]
    GN = g["b_ih"].shape[0]
    prepped["gru"] = dict(w_ih=g["w_ih"], w_hh=g["w_hh"],
                          b_ih=g["b_ih"].reshape(1, GN),
                          b_hh=g["b_hh"].reshape(1, GN))

    # pack mean/logvar linears into one lane-tile-aligned [H, 2*LANE] weight
    H, L = params["mean"]["w"].shape
    assert L <= LANE
    wmv = jnp.zeros((H, 2 * LANE), jnp.float32)
    wmv = wmv.at[:, :L].set(params["mean"]["w"])
    wmv = wmv.at[:, LANE:LANE + L].set(params["logvar"]["w"])
    bmv = jnp.zeros((1, 2 * LANE), jnp.float32)
    bmv = bmv.at[0, :L].set(params["mean"]["b"])
    bmv = bmv.at[0, LANE:LANE + L].set(params["logvar"]["b"])
    prepped["head"] = dict(w=wmv, b=bmv)
    return prepped


def vae_forward(prepped, inputs, eps):
    """inputs: [B, T, mel_dim] -> (z [B,1,latent], (mean, logvar))."""
    # TODO(synk): input_lengths masking path of ReferenceEncoder not implemented
    # (this forward corresponds to input_lengths=None).
    B, T, M = inputs.shape
    x = inputs.astype(jnp.bfloat16).reshape(B, T, M, 1)        # NHWC, C=1
    for layer in prepped["convs"]:
        x = conv_layer(x, layer["w"], layer["b"])
    Bc, To, Mo, C = x.shape
    if Mo != 1:
        x = x.transpose(0, 1, 3, 2)            # match [C, M'] feature ordering
    x = x.reshape(Bc, To, C * Mo)              # [B, T', I]
    x = jnp.transpose(x, (1, 0, 2))            # [T', B, I]  (time-major)
    Bp = _round_up(Bc, 8)                      # pad batch -> aligned slices
    if Bp != Bc:
        x = jnp.pad(x, ((0, 0), (0, Bp - Bc), (0, 0)))
    x = x.reshape(To * Bp, C * Mo)

    z, mean, logvar = gru_head(x, prepped["gru"], prepped["head"], eps,
                               batch=Bc, batch_pad=Bp)
    return z[:, None, :], (mean, logvar)


if __name__ == "__main__":
    key = jax.random.PRNGKey(0)
    pkey, xkey, ekey = jax.random.split(key, 3)
    params = init_params(pkey)
    prepped = prepare_params(params)

    B, T = 2, 128
    inputs = jax.random.normal(xkey, (B, T, MEL_DIM), dtype=jnp.float32)
    eps = jax.random.normal(ekey, (B, VAE_LATENT_DIM), dtype=jnp.float32)

    fwd = jax.jit(vae_forward)
    z, (mean, logvar) = fwd(prepped, inputs, eps)
    jax.block_until_ready(z)
    assert z.shape == (B, 1, VAE_LATENT_DIM)
    assert mean.shape == (B, VAE_LATENT_DIM) and logvar.shape == (B, VAE_LATENT_DIM)
    print("KERNEL_OK")
</pallas_src>

<mosaic_0001>
module attributes {stable_mosaic.version = 11 : i64} {
  func.func @_matmul_bias_kernel(%arg0: i32, %arg1: memref<512x9xbf16, #tpu.memory_space<vmem>>, %arg2: memref<9x128xbf16, #tpu.memory_space<vmem>>, %arg3: memref<1x128xf32, #tpu.memory_space<vmem>>, %arg4: memref<512x128xbf16, #tpu.memory_space<vmem>>) attributes {dimension_semantics = [#tpu.dimension_semantics<parallel>], iteration_bounds = array<i64: 8>, scalar_prefetch = 0 : i64, scratch_operands = 0 : i64, tpu.core_type = #tpu.core_type<tc>, window_params = [{transform_indices = @transform_0, window_bounds = array<i64: 512, 9>}, {pipeline_mode = #tpu.pipeline_mode<synchronous>, transform_indices = @transform_1, window_bounds = array<i64: 9, 128>}, {pipeline_mode = #tpu.pipeline_mode<synchronous>, transform_indices = @transform_2, window_bounds = array<i64: 1, 128>}, {transform_indices = @transform_3, window_bounds = array<i64: 512, 128>}]} {
    %c0 = arith.constant 0 : index
    %c0_0 = arith.constant 0 : index
    %0 = vector.load %arg1[%c0, %c0_0] : memref<512x9xbf16, #tpu.memory_space<vmem>>, vector<512x9xbf16>
    %c0_1 = arith.constant 0 : index
    %c0_2 = arith.constant 0 : index
    %1 = vector.load %arg2[%c0_1, %c0_2] : memref<9x128xbf16, #tpu.memory_space<vmem>>, vector<9x128xbf16>
    %cst = arith.constant dense<0.000000e+00> : vector<512x128xf32>
    %2 = tpu.matmul %0, %1, %cst {dimension_numbers = #tpu.dot_dimension_numbers<[1], [0], [0], [1], [0, 0, 1, 1], [], []>} : vector<512x9xbf16>, vector<9x128xbf16>, vector<512x128xf32> -> vector<512x128xf32>
    %c0_3 = arith.constant 0 : index
    %c0_4 = arith.constant 0 : index
    %3 = vector.load %arg3[%c0_3, %c0_4] : memref<1x128xf32, #tpu.memory_space<vmem>>, vector<1x128xf32>
    %4 = vector.broadcast %3 : vector<1x128xf32> to vector<512x128xf32>
    %5 = arith.addf %2, %4 : vector<512x128xf32>
    %cst_5 = arith.constant 0.000000e+00 : f32
    %6 = vector.broadcast %cst_5 : f32 to vector<512x128xf32>
    %7 = arith.maximumf %5, %6 : vector<512x128xf32>
    %8 = arith.truncf %7 : vector<512x128xf32> to vector<512x128xbf16>
    %c0_6 = arith.constant 0 : index
    %c0_7 = arith.constant 0 : index
    %9 = vector.load %arg4[%c0_6, %c0_7] : memref<512x128xbf16, #tpu.memory_space<vmem>>, vector<512x128xbf16>
    tpu.vector_store %arg4[%c0_6, %c0_7], %8 {strides = array<i32>} : memref<512x128xbf16, #tpu.memory_space<vmem>>, vector<512x128xbf16>,
    return
  }
  func.func @transform_0(%arg0: i32) -> (i32, i32) {
    %c0_i32 = arith.constant 0 : i32
    %c0_i32_0 = arith.constant 0 : i32
    return %arg0, %c0_i32 : i32, i32
  }
  func.func @transform_1(%arg0: i32) -> (i32, i32) {
    %c0_i32 = arith.constant 0 : i32
    %c0_i32_0 = arith.constant 0 : i32
    %c0_i32_1 = arith.constant 0 : i32
    return %c0_i32, %c0_i32_0 : i32, i32
  }
  func.func @transform_2(%arg0: i32) -> (i32, i32) {
    %c0_i32 = arith.constant 0 : i32
    %c0_i32_0 = arith.constant 0 : i32
    %c0_i32_1 = arith.constant 0 : i32
    return %c0_i32, %c0_i32_0 : i32, i32
  }
  func.func @transform_3(%arg0: i32) -> (i32, i32) {
    %c0_i32 = arith.constant 0 : i32
    %c0_i32_0 = arith.constant 0 : i32
    return %arg0, %c0_i32 : i32, i32
  }
}

module attributes {stable_mosaic.version = 11 : i64} {
  func.func @_matmul_bias_kernel(%arg0: i32, %arg1: memref<512x1152xbf16, #tpu.memory_space<vmem>>, %arg2: memref<1152x128xbf16, #tpu.memory_space<vmem>>, %arg3: memref<1x128xf32, #tpu.memory_space<vmem>>, %arg4: memref<512x128xbf16, #tpu.memory_space<vmem>>) attributes {dimension_semantics = [#tpu.dimension_semantics<parallel>], iteration_bounds = array<i64: 2>, scalar_prefetch = 0 : i64, scratch_operands = 0 : i64, tpu.core_type = #tpu.core_type<tc>, window_params = [{transform_indices = @transform_0, window_bounds = array<i64: 512, 1152>}, {pipeline_mode = #tpu.pipeline_mode<synchronous>, transform_indices = @transform_1, window_bounds = array<i64: 1152, 128>}, {pipeline_mode = #tpu.pipeline_mode<synchronous>, transform_indices = @transform_2, window_bounds = array<i64: 1, 128>}, {transform_indices = @transform_3, window_bounds = array<i64: 512, 128>}]} {
    %c0 = arith.constant 0 : index
    %c0_0 = arith.constant 0 : index
    %0 = vector.load %arg1[%c0, %c0_0] : memref<512x1152xbf16, #tpu.memory_space<vmem>>, vector<512x1152xbf16>
    %c0_1 = arith.constant 0 : index
    %c0_2 = arith.constant 0 : index
    %1 = vector.load %arg2[%c0_1, %c0_2] : memref<1152x128xbf16, #tpu.memory_space<vmem>>, vector<1152x128xbf16>
    %cst = arith.constant dense<0.000000e+00> : vector<512x128xf32>
    %2 = tpu.matmul %0, %1, %cst {dimension_numbers = #tpu.dot_dimension_numbers<[1], [0], [0], [1], [0, 0, 1, 1], [], []>} : vector<512x1152xbf16>, vector<1152x128xbf16>, vector<512x128xf32> -> vector<512x128xf32>
    %c0_3 = arith.constant 0 : index
    %c0_4 = arith.constant 0 : index
    %3 = vector.load %arg3[%c0_3, %c0_4] : memref<1x128xf32, #tpu.memory_space<vmem>>, vector<1x128xf32>
    %4 = vector.broadcast %3 : vector<1x128xf32> to vector<512x128xf32>
    %5 = arith.addf %2, %4 : vector<512x128xf32>
    %cst_5 = arith.constant 0.000000e+00 : f32
    %6 = vector.broadcast %cst_5 : f32 to vector<512x128xf32>
    %7 = arith.maximumf %5, %6 : vector<512x128xf32>
    %8 = arith.truncf %7 : vector<512x128xf32> to vector<512x128xbf16>
    %c0_6 = arith.constant 0 : index
    %c0_7 = arith.constant 0 : index
    %9 = vector.load %arg4[%c0_6, %c0_7] : memref<512x128xbf16, #tpu.memory_space<vmem>>, vector<512x128xbf16>
    tpu.vector_store %arg4[%c0_6, %c0_7], %8 {strides = array<i32>} : memref<512x128xbf16, #tpu.memory_space<vmem>>, vector<512x128xbf16>,
    return
  }
  func.func @transform_0(%arg0: i32) -> (i32, i32) {
    %c0_i32 = arith.constant 0 : i32
    %c0_i32_0 = arith.constant 0 : i32
    return %arg0, %c0_i32 : i32, i32
  }
  func.func @transform_1(%arg0: i32) -> (i32, i32) {
    %c0_i32 = arith.constant 0 : i32
    %c0_i32_0 = arith.constant 0 : i32
    %c0_i32_1 = arith.constant 0 : i32
    return %c0_i32, %c0_i32_0 : i32, i32
  }
  func.func @transform_2(%arg0: i32) -> (i32, i32) {
    %c0_i32 = arith.constant 0 : i32
    %c0_i32_0 = arith.constant 0 : i32
    %c0_i32_1 = arith.constant 0 : i32
    return %c0_i32, %c0_i32_0 : i32, i32
  }
  func.func @transform_3(%arg0: i32) -> (i32, i32) {
    %c0_i32 = arith.constant 0 : i32
    %c0_i32_0 = arith.constant 0 : i32
    return %arg0, %c0_i32 : i32, i32
  }
}

module attributes {stable_mosaic.version = 11 : i64} {
  func.func @_matmul_bias_kernel(%arg0: i32, %arg1: memref<256x1152xbf16, #tpu.memory_space<vmem>>, %arg2: memref<1152x128xbf16, #tpu.memory_space<vmem>>, %arg3: memref<1x128xf32, #tpu.memory_space<vmem>>, %arg4: memref<256x128xbf16, #tpu.memory_space<vmem>>) attributes {dimension_semantics = [#tpu.dimension_semantics<parallel>], iteration_bounds = array<i64: 1>, scalar_prefetch = 0 : i64, scratch_operands = 0 : i64, tpu.core_type = #tpu.core_type<tc>, window_params = [{transform_indices = @transform_0, window_bounds = array<i64: 256, 1152>}, {pipeline_mode = #tpu.pipeline_mode<synchronous>, transform_indices = @transform_1, window_bounds = array<i64: 1152, 128>}, {pipeline_mode = #tpu.pipeline_mode<synchronous>, transform_indices = @transform_2, window_bounds = array<i64: 1, 128>}, {transform_indices = @transform_3, window_bounds = array<i64: 256, 128>}]} {
    %c0 = arith.constant 0 : index
    %c0_0 = arith.constant 0 : index
    %0 = vector.load %arg1[%c0, %c0_0] : memref<256x1152xbf16, #tpu.memory_space<vmem>>, vector<256x1152xbf16>
    %c0_1 = arith.constant 0 : index
    %c0_2 = arith.constant 0 : index
    %1 = vector.load %arg2[%c0_1, %c0_2] : memref<1152x128xbf16, #tpu.memory_space<vmem>>, vector<1152x128xbf16>
    %cst = arith.constant dense<0.000000e+00> : vector<256x128xf32>
    %2 = tpu.matmul %0, %1, %cst {dimension_numbers = #tpu.dot_dimension_numbers<[1], [0], [0], [1], [0, 0, 1, 1], [], []>} : vector<256x1152xbf16>, vector<1152x128xbf16>, vector<256x128xf32> -> vector<256x128xf32>
    %c0_3 = arith.constant 0 : index
    %c0_4 = arith.constant 0 : index
    %3 = vector.load %arg3[%c0_3, %c0_4] : memref<1x128xf32, #tpu.memory_space<vmem>>, vector<1x128xf32>
    %4 = vector.broadcast %3 : vector<1x128xf32> to vector<256x128xf32>
    %5 = arith.addf %2, %4 : vector<256x128xf32>
    %cst_5 = arith.constant 0.000000e+00 : f32
    %6 = vector.broadcast %cst_5 : f32 to vector<256x128xf32>
    %7 = arith.maximumf %5, %6 : vector<256x128xf32>
    %8 = arith.truncf %7 : vector<256x128xf32> to vector<256x128xbf16>
    %c0_6 = arith.constant 0 : index
    %c0_7 = arith.constant 0 : index
    %9 = vector.load %arg4[%c0_6, %c0_7] : memref<256x128xbf16, #tpu.memory_space<vmem>>, vector<256x128xbf16>
    tpu.vector_store %arg4[%c0_6, %c0_7], %8 {strides = array<i32>} : memref<256x128xbf16, #tpu.memory_space<vmem>>, vector<256x128xbf16>,
    return
  }
  func.func @transform_0(%arg0: i32) -> (i32, i32) {
    %c0_i32 = arith.constant 0 : i32
    %c0_i32_0 = arith.constant 0 : i32
    return %arg0, %c0_i32 : i32, i32
  }
  func.func @transform_1(%arg0: i32) -> (i32, i32) {
    %c0_i32 = arith.constant 0 : i32
    %c0_i32_0 = arith.constant 0 : i32
    %c0_i32_1 = arith.constant 0 : i32
    return %c0_i32, %c0_i32_0 : i32, i32
  }
  func.func @transform_2(%arg0: i32) -> (i32, i32) {
    %c0_i32 = arith.constant 0 : i32
    %c0_i32_0 = arith.constant 0 : i32
    %c0_i32_1 = arith.constant 0 : i32
    return %c0_i32, %c0_i32_0 : i32, i32
  }
  func.func @transform_3(%arg0: i32) -> (i32, i32) {
    %c0_i32 = arith.constant 0 : i32
    %c0_i32_0 = arith.constant 0 : i32
    return %arg0, %c0_i32 : i32, i32
  }
}

module attributes {stable_mosaic.version = 11 : i64} {
  func.func @_matmul_bias_kernel(%arg0: i32, %arg1: memref<64x1152xbf16, #tpu.memory_space<vmem>>, %arg2: memref<1152x128xbf16, #tpu.memory_space<vmem>>, %arg3: memref<1x128xf32, #tpu.memory_space<vmem>>, %arg4: memref<64x128xbf16, #tpu.memory_space<vmem>>) attributes {dimension_semantics = [#tpu.dimension_semantics<parallel>], iteration_bounds = array<i64: 1>, scalar_prefetch = 0 : i64, scratch_operands = 0 : i64, tpu.core_type = #tpu.core_type<tc>, window_params = [{transform_indices = @transform_0, window_bounds = array<i64: 64, 1152>}, {pipeline_mode = #tpu.pipeline_mode<synchronous>, transform_indices = @transform_1, window_bounds = array<i64: 1152, 128>}, {pipeline_mode = #tpu.pipeline_mode<synchronous>, transform_indices = @transform_2, window_bounds = array<i64: 1, 128>}, {transform_indices = @transform_3, window_bounds = array<i64: 64, 128>}]} {
    %c0 = arith.constant 0 : index
    %c0_0 = arith.constant 0 : index
    %0 = vector.load %arg1[%c0, %c0_0] : memref<64x1152xbf16, #tpu.memory_space<vmem>>, vector<64x1152xbf16>
    %c0_1 = arith.constant 0 : index
    %c0_2 = arith.constant 0 : index
    %1 = vector.load %arg2[%c0_1, %c0_2] : memref<1152x128xbf16, #tpu.memory_space<vmem>>, vector<1152x128xbf16>
    %cst = arith.constant dense<0.000000e+00> : vector<64x128xf32>
    %2 = tpu.matmul %0, %1, %cst {dimension_numbers = #tpu.dot_dimension_numbers<[1], [0], [0], [1], [0, 0, 1, 1], [], []>} : vector<64x1152xbf16>, vector<1152x128xbf16>, vector<64x128xf32> -> vector<64x128xf32>
    %c0_3 = arith.constant 0 : index
    %c0_4 = arith.constant 0 : index
    %3 = vector.load %arg3[%c0_3, %c0_4] : memref<1x128xf32, #tpu.memory_space<vmem>>, vector<1x128xf32>
    %4 = vector.broadcast %3 : vector<1x128xf32> to vector<64x128xf32>
    %5 = arith.addf %2, %4 : vector<64x128xf32>
    %cst_5 = arith.constant 0.000000e+00 : f32
    %6 = vector.broadcast %cst_5 : f32 to vector<64x128xf32>
    %7 = arith.maximumf %5, %6 : vector<64x128xf32>
    %8 = arith.truncf %7 : vector<64x128xf32> to vector<64x128xbf16>
    %c0_6 = arith.constant 0 : index
    %c0_7 = arith.constant 0 : index
    %9 = vector.load %arg4[%c0_6, %c0_7] : memref<64x128xbf16, #tpu.memory_space<vmem>>, vector<64x128xbf16>
    tpu.vector_store %arg4[%c0_6, %c0_7], %8 {strides = array<i32>} : memref<64x128xbf16, #tpu.memory_space<vmem>>, vector<64x128xbf16>,
    return
  }
  func.func @transform_0(%arg0: i32) -> (i32, i32) {
    %c0_i32 = arith.constant 0 : i32
    %c0_i32_0 = arith.constant 0 : i32
    return %arg0, %c0_i32 : i32, i32
  }
  func.func @transform_1(%arg0: i32) -> (i32, i32) {
    %c0_i32 = arith.constant 0 : i32
    %c0_i32_0 = arith.constant 0 : i32
    %c0_i32_1 = arith.constant 0 : i32
    return %c0_i32, %c0_i32_0 : i32, i32
  }
  func.func @transform_2(%arg0: i32) -> (i32, i32) {
    %c0_i32 = arith.constant 0 : i32
    %c0_i32_0 = arith.constant 0 : i32
    %c0_i32_1 = arith.constant 0 : i32
    return %c0_i32, %c0_i32_0 : i32, i32
  }
  func.func @transform_3(%arg0: i32) -> (i32, i32) {
    %c0_i32 = arith.constant 0 : i32
    %c0_i32_0 = arith.constant 0 : i32
    return %arg0, %c0_i32 : i32, i32
  }
}

module attributes {stable_mosaic.version = 11 : i64} {
  func.func @_matmul_bias_kernel(%arg0: i32, %arg1: memref<16x1152xbf16, #tpu.memory_space<vmem>>, %arg2: memref<1152x128xbf16, #tpu.memory_space<vmem>>, %arg3: memref<1x128xf32, #tpu.memory_space<vmem>>, %arg4: memref<16x128xbf16, #tpu.memory_space<vmem>>) attributes {dimension_semantics = [#tpu.dimension_semantics<parallel>], iteration_bounds = array<i64: 1>, scalar_prefetch = 0 : i64, scratch_operands = 0 : i64, tpu.core_type = #tpu.core_type<tc>, window_params = [{transform_indices = @transform_0, window_bounds = array<i64: 16, 1152>}, {pipeline_mode = #tpu.pipeline_mode<synchronous>, transform_indices = @transform_1, window_bounds = array<i64: 1152, 128>}, {pipeline_mode = #tpu.pipeline_mode<synchronous>, transform_indices = @transform_2, window_bounds = array<i64: 1, 128>}, {transform_indices = @transform_3, window_bounds = array<i64: 16, 128>}]} {
    %c0 = arith.constant 0 : index
    %c0_0 = arith.constant 0 : index
    %0 = vector.load %arg1[%c0, %c0_0] : memref<16x1152xbf16, #tpu.memory_space<vmem>>, vector<16x1152xbf16>
    %c0_1 = arith.constant 0 : index
    %c0_2 = arith.constant 0 : index
    %1 = vector.load %arg2[%c0_1, %c0_2] : memref<1152x128xbf16, #tpu.memory_space<vmem>>, vector<1152x128xbf16>
    %cst = arith.constant dense<0.000000e+00> : vector<16x128xf32>
    %2 = tpu.matmul %0, %1, %cst {dimension_numbers = #tpu.dot_dimension_numbers<[1], [0], [0], [1], [0, 0, 1, 1], [], []>} : vector<16x1152xbf16>, vector<1152x128xbf16>, vector<16x128xf32> -> vector<16x128xf32>
    %c0_3 = arith.constant 0 : index
    %c0_4 = arith.constant 0 : index
    %3 = vector.load %arg3[%c0_3, %c0_4] : memref<1x128xf32, #tpu.memory_space<vmem>>, vector<1x128xf32>
    %4 = vector.broadcast %3 : vector<1x128xf32> to vector<16x128xf32>
    %5 = arith.addf %2, %4 : vector<16x128xf32>
    %cst_5 = arith.constant 0.000000e+00 : f32
    %6 = vector.broadcast %cst_5 : f32 to vector<16x128xf32>
    %7 = arith.maximumf %5, %6 : vector<16x128xf32>
    %8 = arith.truncf %7 : vector<16x128xf32> to vector<16x128xbf16>
    %c0_6 = arith.constant 0 : index
    %c0_7 = arith.constant 0 : index
    %9 = vector.load %arg4[%c0_6, %c0_7] : memref<16x128xbf16, #tpu.memory_space<vmem>>, vector<16x128xbf16>
    tpu.vector_store %arg4[%c0_6, %c0_7], %8 {strides = array<i32>} : memref<16x128xbf16, #tpu.memory_space<vmem>>, vector<16x128xbf16>,
    return
  }
  func.func @transform_0(%arg0: i32) -> (i32, i32) {
    %c0_i32 = arith.constant 0 : i32
    %c0_i32_0 = arith.constant 0 : i32
    return %arg0, %c0_i32 : i32, i32
  }
  func.func @transform_1(%arg0: i32) -> (i32, i32) {
    %c0_i32 = arith.constant 0 : i32
    %c0_i32_0 = arith.constant 0 : i32
    %c0_i32_1 = arith.constant 0 : i32
    return %c0_i32, %c0_i32_0 : i32, i32
  }
  func.func @transform_2(%arg0: i32) -> (i32, i32) {
    %c0_i32 = arith.constant 0 : i32
    %c0_i32_0 = arith.constant 0 : i32
    %c0_i32_1 = arith.constant 0 : i32
    return %c0_i32, %c0_i32_0 : i32, i32
  }
  func.func @transform_3(%arg0: i32) -> (i32, i32) {
    %c0_i32 = arith.constant 0 : i32
    %c0_i32_0 = arith.constant 0 : i32
    return %arg0, %c0_i32 : i32, i32
  }
}

module attributes {stable_mosaic.version = 11 : i64} {
  func.func @_matmul_bias_kernel(%arg0: i32, %arg1: memref<4x1152xbf16, #tpu.memory_space<vmem>>, %arg2: memref<1152x128xbf16, #tpu.memory_space<vmem>>, %arg3: memref<1x128xf32, #tpu.memory_space<vmem>>, %arg4: memref<4x128xbf16, #tpu.memory_space<vmem>>) attributes {dimension_semantics = [#tpu.dimension_semantics<parallel>], iteration_bounds = array<i64: 1>, scalar_prefetch = 0 : i64, scratch_operands = 0 : i64, tpu.core_type = #tpu.core_type<tc>, window_params = [{transform_indices = @transform_0, window_bounds = array<i64: 4, 1152>}, {pipeline_mode = #tpu.pipeline_mode<synchronous>, transform_indices = @transform_1, window_bounds = array<i64: 1152, 128>}, {pipeline_mode = #tpu.pipeline_mode<synchronous>, transform_indices = @transform_2, window_bounds = array<i64: 1, 128>}, {transform_indices = @transform_3, window_bounds = array<i64: 4, 128>}]} {
    %c0 = arith.constant 0 : index
    %c0_0 = arith.constant 0 : index
    %0 = vector.load %arg1[%c0, %c0_0] : memref<4x1152xbf16, #tpu.memory_space<vmem>>, vector<4x1152xbf16>
    %c0_1 = arith.constant 0 : index
    %c0_2 = arith.constant 0 : index
    %1 = vector.load %arg2[%c0_1, %c0_2] : memref<1152x128xbf16, #tpu.memory_space<vmem>>, vector<1152x128xbf16>
    %cst = arith.constant dense<0.000000e+00> : vector<4x128xf32>
    %2 = tpu.matmul %0, %1, %cst {dimension_numbers = #tpu.dot_dimension_numbers<[1], [0], [0], [1], [0, 0, 1, 1], [], []>} : vector<4x1152xbf16>, vector<1152x128xbf16>, vector<4x128xf32> -> vector<4x128xf32>
    %c0_3 = arith.constant 0 : index
    %c0_4 = arith.constant 0 : index
    %3 = vector.load %arg3[%c0_3, %c0_4] : memref<1x128xf32, #tpu.memory_space<vmem>>, vector<1x128xf32>
    %4 = vector.broadcast %3 : vector<1x128xf32> to vector<4x128xf32>
    %5 = arith.addf %2, %4 : vector<4x128xf32>
    %cst_5 = arith.constant 0.000000e+00 : f32
    %6 = vector.broadcast %cst_5 : f32 to vector<4x128xf32>
    %7 = arith.maximumf %5, %6 : vector<4x128xf32>
    %8 = arith.truncf %7 : vector<4x128xf32> to vector<4x128xbf16>
    %c0_6 = arith.constant 0 : index
    %c0_7 = arith.constant 0 : index
    %9 = vector.load %arg4[%c0_6, %c0_7] : memref<4x128xbf16, #tpu.memory_space<vmem>>, vector<4x128xbf16>
    tpu.vector_store %arg4[%c0_6, %c0_7], %8 {strides = array<i32>} : memref<4x128xbf16, #tpu.memory_space<vmem>>, vector<4x128xbf16>,
    return
  }
  func.func @transform_0(%arg0: i32) -> (i32, i32) {
    %c0_i32 = arith.constant 0 : i32
    %c0_i32_0 = arith.constant 0 : i32
    return %arg0, %c0_i32 : i32, i32
  }
  func.func @transform_1(%arg0: i32) -> (i32, i32) {
    %c0_i32 = arith.constant 0 : i32
    %c0_i32_0 = arith.constant 0 : i32
    %c0_i32_1 = arith.constant 0 : i32
    return %c0_i32, %c0_i32_0 : i32, i32
  }
  func.func @transform_2(%arg0: i32) -> (i32, i32) {
    %c0_i32 = arith.constant 0 : i32
    %c0_i32_0 = arith.constant 0 : i32
    %c0_i32_1 = arith.constant 0 : i32
    return %c0_i32, %c0_i32_0 : i32, i32
  }
  func.func @transform_3(%arg0: i32) -> (i32, i32) {
    %c0_i32 = arith.constant 0 : i32
    %c0_i32_0 = arith.constant 0 : i32
    return %arg0, %c0_i32 : i32, i32
  }
}

module attributes {stable_mosaic.version = 11 : i64} {
  func.func @_gru_head_kernel(%arg0: i32, %arg1: memref<16x128xbf16, #tpu.memory_space<vmem>>, %arg2: memref<128x384xf32, #tpu.memory_space<vmem>>, %arg3: memref<128x384xf32, #tpu.memory_space<vmem>>, %arg4: memref<1x384xf32, #tpu.memory_space<vmem>>, %arg5: memref<1x384xf32, #tpu.memory_space<vmem>>, %arg6: memref<128x256xf32, #tpu.memory_space<vmem>>, %arg7: memref<1x256xf32, #tpu.memory_space<vmem>>, %arg8: memref<2x32xf32, #tpu.memory_space<vmem>>, %arg9: memref<2x32xf32, #tpu.memory_space<vmem>>, %arg10: memref<2x32xf32, #tpu.memory_space<vmem>>, %arg11: memref<2x32xf32, #tpu.memory_space<vmem>>) attributes {dimension_semantics = [#tpu.dimension_semantics<arbitrary>], iteration_bounds = array<i64: 1>, scalar_prefetch = 0 : i64, scratch_operands = 0 : i64, tpu.core_type = #tpu.core_type<tc>, window_params = [{pipeline_mode = #tpu.pipeline_mode<synchronous>, transform_indices = @transform_0, window_bounds = array<i64: 16, 128>}, {pipeline_mode = #tpu.pipeline_mode<synchronous>, transform_indices = @transform_1, window_bounds = array<i64: 128, 384>}, {pipeline_mode = #tpu.pipeline_mode<synchronous>, transform_indices = @transform_2, window_bounds = array<i64: 128, 384>}, {pipeline_mode = #tpu.pipeline_mode<synchronous>, transform_indices = @transform_3, window_bounds = array<i64: 1, 384>}, {pipeline_mode = #tpu.pipeline_mode<synchronous>, transform_indices = @transform_4, window_bounds = array<i64: 1, 384>}, {pipeline_mode = #tpu.pipeline_mode<synchronous>, transform_indices = @transform_5, window_bounds = array<i64: 128, 256>}, {pipeline_mode = #tpu.pipeline_mode<synchronous>, transform_indices = @transform_6, window_bounds = array<i64: 1, 256>}, {pipeline_mode = #tpu.pipeline_mode<synchronous>, transform_indices = @transform_7, window_bounds = array<i64: 2, 32>}, {pipeline_mode = #tpu.pipeline_mode<synchronous>, transform_indices = @transform_8, window_bounds = array<i64: 2, 32>}, {pipeline_mode = #tpu.pipeline_mode<synchronous>, transform_indices = @transform_9, window_bounds = array<i64: 2, 32>}, {pipeline_mode = #tpu.pipeline_mode<synchronous>, transform_indices = @transform_10, window_bounds = array<i64: 2, 32>}]} {
    %c0 = arith.constant 0 : index
    %c0_0 = arith.constant 0 : index
    %0 = vector.load %arg1[%c0, %c0_0] : memref<16x128xbf16, #tpu.memory_space<vmem>>, vector<16x128xbf16>
    %1 = arith.extf %0 : vector<16x128xbf16> to vector<16x128xf32>
    %c0_1 = arith.constant 0 : index
    %c0_2 = arith.constant 0 : index
    %2 = vector.load %arg2[%c0_1, %c0_2] : memref<128x384xf32, #tpu.memory_space<vmem>>, vector<128x384xf32>
    %cst = arith.constant dense<0.000000e+00> : vector<16x384xf32>
    %3 = tpu.matmul %1, %2, %cst {dimension_numbers = #tpu.dot_dimension_numbers<[1], [0], [0], [1], [0, 0, 1, 1], [], []>} : vector<16x128xf32>, vector<128x384xf32>, vector<16x384xf32> -> vector<16x384xf32>
    %c0_3 = arith.constant 0 : index
    %c0_4 = arith.constant 0 : index
    %4 = vector.load %arg4[%c0_3, %c0_4] : memref<1x384xf32, #tpu.memory_space<vmem>>, vector<1x384xf32>
    %5 = vector.broadcast %4 : vector<1x384xf32> to vector<16x384xf32>
    %6 = arith.addf %3, %5 : vector<16x384xf32>
    %c0_5 = arith.constant 0 : index
    %c0_6 = arith.constant 0 : index
    %7 = vector.load %arg3[%c0_5, %c0_6] : memref<128x384xf32, #tpu.memory_space<vmem>>, vector<128x384xf32>
    %c0_7 = arith.constant 0 : index
    %c0_8 = arith.constant 0 : index
    %8 = vector.load %arg5[%c0_7, %c0_8] : memref<1x384xf32, #tpu.memory_space<vmem>>, vector<1x384xf32>
    %cst_9 = arith.constant 0.000000e+00 : f32
    %9 = vector.broadcast %cst_9 : f32 to vector<8x128xf32>
    %10 = vector.extract_strided_slice %6 {offsets = [0, 0], sizes = [8, 384], strides = [1, 1]} : vector<16x384xf32> to vector<8x384xf32>
    %cst_10 = arith.constant dense<0.000000e+00> : vector<8x384xf32>
    %11 = tpu.matmul %9, %7, %cst_10 {dimension_numbers = #tpu.dot_dimension_numbers<[1], [0], [0], [1], [0, 0, 1, 1], [], []>} : vector<8x128xf32>, vector<128x384xf32>, vector<8x384xf32> -> vector<8x384xf32>
    %12 = vector.broadcast %8 : vector<1x384xf32> to vector<8x384xf32>
    %13 = arith.addf %11, %12 : vector<8x384xf32>
    %14 = vector.extract_strided_slice %10 {offsets = [0, 0], sizes = [8, 128], strides = [1, 1]} : vector<8x384xf32> to vector<8x128xf32>
    %15 = vector.extract_strided_slice %13 {offsets = [0, 0], sizes = [8, 128], strides = [1, 1]} : vector<8x384xf32> to vector<8x128xf32>
    %16 = arith.addf %14, %15 : vector<8x128xf32>
    %17 = arith.negf %16 : vector<8x128xf32>
    %18 = math.exp %17 : vector<8x128xf32>
    %cst_11 = arith.constant 1.000000e+00 : f32
    %19 = vector.broadcast %cst_11 : f32 to vector<8x128xf32>
    %20 = arith.addf %19, %18 : vector<8x128xf32>
    %21 = arith.divf %19, %20 : vector<8x128xf32>
    %22 = vector.extract_strided_slice %10 {offsets = [0, 128], sizes = [8, 128], strides = [1, 1]} : vector<8x384xf32> to vector<8x128xf32>
    %23 = vector.extract_strided_slice %13 {offsets = [0, 128], sizes = [8, 128], strides = [1, 1]} : vector<8x384xf32> to vector<8x128xf32>
    %24 = arith.addf %22, %23 : vector<8x128xf32>
    %25 = arith.negf %24 : vector<8x128xf32>
    %26 = math.exp %25 : vector<8x128xf32>
    %cst_12 = arith.constant 1.000000e+00 : f32
    %27 = vector.broadcast %cst_12 : f32 to vector<8x128xf32>
    %28 = arith.addf %27, %26 : vector<8x128xf32>
    %29 = arith.divf %27, %28 : vector<8x128xf32>
    %30 = vector.extract_strided_slice %10 {offsets = [0, 256], sizes = [8, 128], strides = [1, 1]} : vector<8x384xf32> to vector<8x128xf32>
    %31 = vector.extract_strided_slice %13 {offsets = [0, 256], sizes = [8, 128], strides = [1, 1]} : vector<8x384xf32> to vector<8x128xf32>
    %32 = arith.mulf %21, %31 : vector<8x128xf32>
    %33 = arith.addf %30, %32 : vector<8x128xf32>
    %34 = math.tanh %33 : vector<8x128xf32>
    %cst_13 = arith.constant 1.000000e+00 : f32
    %35 = vector.broadcast %cst_13 : f32 to vector<8x128xf32>
    %36 = arith.subf %35, %29 : vector<8x128xf32>
    %37 = arith.mulf %36, %34 : vector<8x128xf32>
    %38 = arith.mulf %29, %9 : vector<8x128xf32>
    %39 = arith.addf %37, %38 : vector<8x128xf32>
    %40 = vector.extract_strided_slice %6 {offsets = [8, 0], sizes = [8, 384], strides = [1, 1]} : vector<16x384xf32> to vector<8x384xf32>
    %cst_14 = arith.constant dense<0.000000e+00> : vector<8x384xf32>
    %41 = tpu.matmul %39, %7, %cst_14 {dimension_numbers = #tpu.dot_dimension_numbers<[1], [0], [0], [1], [0, 0, 1, 1], [], []>} : vector<8x128xf32>, vector<128x384xf32>, vector<8x384xf32> -> vector<8x384xf32>
    %42 = vector.broadcast %8 : vector<1x384xf32> to vector<8x384xf32>
    %43 = arith.addf %41, %42 : vector<8x384xf32>
    %44 = vector.extract_strided_slice %40 {offsets = [0, 0], sizes = [8, 128], strides = [1, 1]} : vector<8x384xf32> to vector<8x128xf32>
    %45 = vector.extract_strided_slice %43 {offsets = [0, 0], sizes = [8, 128], strides = [1, 1]} : vector<8x384xf32> to vector<8x128xf32>
    %46 = arith.addf %44, %45 : vector<8x128xf32>
    %47 = arith.negf %46 : vector<8x128xf32>
    %48 = math.exp %47 : vector<8x128xf32>
    %cst_15 = arith.constant 1.000000e+00 : f32
    %49 = vector.broadcast %cst_15 : f32 to vector<8x128xf32>
    %50 = arith.addf %49, %48 : vector<8x128xf32>
    %51 = arith.divf %49, %50 : vector<8x128xf32>
    %52 = vector.extract_strided_slice %40 {offsets = [0, 128], sizes = [8, 128], strides = [1, 1]} : vector<8x384xf32> to vector<8x128xf32>
    %53 = vector.extract_strided_slice %43 {offsets = [0, 128], sizes = [8, 128], strides = [1, 1]} : vector<8x384xf32> to vector<8x128xf32>
    %54 = arith.addf %52, %53 : vector<8x128xf32>
    %55 = arith.negf %54 : vector<8x128xf32>
    %56 = math.exp %55 : vector<8x128xf32>
    %cst_16 = arith.constant 1.000000e+00 : f32
    %57 = vector.broadcast %cst_16 : f32 to vector<8x128xf32>
    %58 = arith.addf %57, %56 : vector<8x128xf32>
    %59 = arith.divf %57, %58 : vector<8x128xf32>
    %60 = vector.extract_strided_slice %40 {offsets = [0, 256], sizes = [8, 128], strides = [1, 1]} : vector<8x384xf32> to vector<8x128xf32>
    %61 = vector.extract_strided_slice %43 {offsets = [0, 256], sizes = [8, 128], strides = [1, 1]} : vector<8x384xf32> to vector<8x128xf32>
    %62 = arith.mulf %51, %61 : vector<8x128xf32>
    %63 = arith.addf %60, %62 : vector<8x128xf32>
    %64 = math.tanh %63 : vector<8x128xf32>
    %cst_17 = arith.constant 1.000000e+00 : f32
    %65 = vector.broadcast %cst_17 : f32 to vector<8x128xf32>
    %66 = arith.subf %65, %59 : vector<8x128xf32>
    %67 = arith.mulf %66, %64 : vector<8x128xf32>
    %68 = arith.mulf %59, %39 : vector<8x128xf32>
    %69 = arith.addf %67, %68 : vector<8x128xf32>
    %c0_18 = arith.constant 0 : index
    %c0_19 = arith.constant 0 : index
    %70 = vector.load %arg6[%c0_18, %c0_19] : memref<128x256xf32, #tpu.memory_space<vmem>>, vector<128x256xf32>
    %cst_20 = arith.constant dense<0.000000e+00> : vector<8x256xf32>
    %71 = tpu.matmul %69, %70, %cst_20 {dimension_numbers = #tpu.dot_dimension_numbers<[1], [0], [0], [1], [0, 0, 1, 1], [], []>} : vector<8x128xf32>, vector<128x256xf32>, vector<8x256xf32> -> vector<8x256xf32>
    %c0_21 = arith.constant 0 : index
    %c0_22 = arith.constant 0 : index
    %72 = vector.load %arg7[%c0_21, %c0_22] : memref<1x256xf32, #tpu.memory_space<vmem>>, vector<1x256xf32>
    %73 = vector.broadcast %72 : vector<1x256xf32> to vector<8x256xf32>
    %74 = arith.addf %71, %73 : vector<8x256xf32>
    %75 = vector.extract_strided_slice %74 {offsets = [0, 0], sizes = [2, 32], strides = [1, 1]} : vector<8x256xf32> to vector<2x32xf32>
    %76 = vector.extract_strided_slice %74 {offsets = [0, 128], sizes = [2, 32], strides = [1, 1]} : vector<8x256xf32> to vector<2x32xf32>
    %cst_23 = arith.constant 5.000000e-01 : f32
    %77 = vector.broadcast %cst_23 : f32 to vector<2x32xf32>
    %78 = arith.mulf %77, %76 : vector<2x32xf32>
    %79 = math.exp %78 : vector<2x32xf32>
    %c0_24 = arith.constant 0 : index
    %c0_25 = arith.constant 0 : index
    %80 = vector.load %arg8[%c0_24, %c0_25] : memref<2x32xf32, #tpu.memory_space<vmem>>, vector<2x32xf32>
    %81 = arith.mulf %80, %79 : vector<2x32xf32>
    %82 = arith.addf %81, %75 : vector<2x32xf32>
    %c0_26 = arith.constant 0 : index
    %c0_27 = arith.constant 0 : index
    %83 = vector.load %arg9[%c0_26, %c0_27] : memref<2x32xf32, #tpu.memory_space<vmem>>, vector<2x32xf32>
    tpu.vector_store %arg9[%c0_26, %c0_27], %82 {strides = array<i32>} : memref<2x32xf32, #tpu.memory_space<vmem>>, vector<2x32xf32>,
    %c0_28 = arith.constant 0 : index
    %c0_29 = arith.constant 0 : index
    %84 = vector.load %arg10[%c0_28, %c0_29] : memref<2x32xf32, #tpu.memory_space<vmem>>, vector<2x32xf32>
    tpu.vector_store %arg10[%c0_28, %c0_29], %75 {strides = array<i32>} : memref<2x32xf32, #tpu.memory_space<vmem>>, vector<2x32xf32>,
    %c0_30 = arith.constant 0 : index
    %c0_31 = arith.constant 0 : index
    %85 = vector.load %arg11[%c0_30, %c0_31] : memref<2x32xf32, #tpu.memory_space<vmem>>, vector<2x32xf32>
    tpu.vector_store %arg11[%c0_30, %c0_31], %76 {strides = array<i32>} : memref<2x32xf32, #tpu.memory_space<vmem>>, vector<2x32xf32>,
    return
  }
  func.func @transform_0(%arg0: i32) -> (i32, i32) {
    %c0_i32 = arith.constant 0 : i32
    %c0_i32_0 = arith.constant 0 : i32
    %c0_i32_1 = arith.constant 0 : i32
    return %c0_i32, %c0_i32_0 : i32, i32
  }
  func.func @transform_1(%arg0: i32) -> (i32, i32) {
    %c0_i32 = arith.constant 0 : i32
    %c0_i32_0 = arith.constant 0 : i32
    %c0_i32_1 = arith.constant 0 : i32
    return %c0_i32, %c0_i32_0 : i32, i32
  }
  func.func @transform_2(%arg0: i32) -> (i32, i32) {
    %c0_i32 = arith.constant 0 : i32
    %c0_i32_0 = arith.constant 0 : i32
    %c0_i32_1 = arith.constant 0 : i32
    return %c0_i32, %c0_i32_0 : i32, i32
  }
  func.func @transform_3(%arg0: i32) -> (i32, i32) {
    %c0_i32 = arith.constant 0 : i32
    %c0_i32_0 = arith.constant 0 : i32
    %c0_i32_1 = arith.constant 0 : i32
    return %c0_i32, %c0_i32_0 : i32, i32
  }
  func.func @transform_4(%arg0: i32) -> (i32, i32) {
    %c0_i32 = arith.constant 0 : i32
    %c0_i32_0 = arith.constant 0 : i32
    %c0_i32_1 = arith.constant 0 : i32
    return %c0_i32, %c0_i32_0 : i32, i32
  }
  func.func @transform_5(%arg0: i32) -> (i32, i32) {
    %c0_i32 = arith.constant 0 : i32
    %c0_i32_0 = arith.constant 0 : i32
    %c0_i32_1 = arith.constant 0 : i32
    return %c0_i32, %c0_i32_0 : i32, i32
  }
  func.func @transform_6(%arg0: i32) -> (i32, i32) {
    %c0_i32 = arith.constant 0 : i32
    %c0_i32_0 = arith.constant 0 : i32
    %c0_i32_1 = arith.constant 0 : i32
    return %c0_i32, %c0_i32_0 : i32, i32
  }
  func.func @transform_7(%arg0: i32) -> (i32, i32) {
    %c0_i32 = arith.constant 0 : i32
    %c0_i32_0 = arith.constant 0 : i32
    %c0_i32_1 = arith.constant 0 : i32
    return %c0_i32, %c0_i32_0 : i32, i32
  }
  func.func @transform_8(%arg0: i32) -> (i32, i32) {
    %c0_i32 = arith.constant 0 : i32
    %c0_i32_0 = arith.constant 0 : i32
    %c0_i32_1 = arith.constant 0 : i32
    return %c0_i32, %c0_i32_0 : i32, i32
  }
  func.func @transform_9(%arg0: i32) -> (i32, i32) {
    %c0_i32 = arith.constant 0 : i32
    %c0_i32_0 = arith.constant 0 : i32
    %c0_i32_1 = arith.constant 0 : i32
    return %c0_i32, %c0_i32_0 : i32, i32
  }
  func.func @transform_10(%arg0: i32) -> (i32, i32) {
    %c0_i32 = arith.constant 0 : i32
    %c0_i32_0 = arith.constant 0 : i32
    %c0_i32_1 = arith.constant 0 : i32
    return %c0_i32, %c0_i32_0 : i32, i32
  }
}

</mosaic_0001>

<bundles_post_ra>
// kernel: vae_forward.7
= control target key start
LH: loop header
LB: loop body
LE: loop exit
PB: predicated region body
PF: predicated region fallthrough
CT: control target
= control target key end

     0   :  { %8 = vsyncpa [#allocation3], 0  ;;  %s2193_s0 = inlined_call_operand.vmem [shape: bf16[4096,9], index: 0, kind: input, shape index: {}]   ;;  %s2194_s1 = inlined_call_operand.hbm [shape: bf16[9,128], index: 1, kind: input, shape index: {}]   ;;  %s2195_s2 = inlined_call_operand.hbm [shape: f32[1,128], index: 2, kind: input, shape index: {}]   ;;  %s2196_s3 = inlined_call_operand.vmem [shape: bf16[4096,128], index: 3, kind: output, shape index: {}]  }
   0x1   :  { %9 = vsyncpa [#allocation5], 0  ;;  %s1955_s12 = smov 0  }
   0x2 LB: > { %s1296_s13 = sadd.s32 4294967295, %s1928_s12   ;;  %p1298_p0 = scmp.ge.s32.totalorder %s1928_s12, 1  ;;  %s1928_s12 = sphi %s1955_s12, %s15_s12  }
   0x3   : > { %p114_p1 = scmp.lt.s32.totalorder %s1928_s12, 9  ;;  %s1930_s14 = smov [#allocation2]  }
   0x4   : > { %s126_s15 = sshll.u32 %s1930_s14, 4  ;;  %p1969_p3 = scmp.eq.s32.totalorder %s1296_s13, 0  ;;  %s127_s15 = int_to_ptr.vmem [resolvable:$true] %s126_s15 }
   0x5   : > { %p1963_p2 = pnand %p1298_p0, %p114_p1  ;;  %s1931_s18 = smov [#allocation4]  }
   0x6   : > { %s140_s19 = sshll.u32 %s1931_s18, 4  ;;  %s1873_s21 = scalar_lea.vmem %s127_s15, 128  ;;  %s141_s19 = int_to_ptr.vmem [resolvable:$true] %s140_s19 }
   0x7   : > { %p1805_p4 = pneg %p1963_p2  ;;  %p1874_p7 = scmp.ne.s32.totalorder %s127_s15, %s1873_s21 }
   0x8   : > { %p1881_p10 = scmp.lt.s32.totalorder %s127_s15, %s127_s15  ;;  %p1882_p11 = scmp.lt.s32.totalorder %s1873_s21, %s1873_s21 }
   0x9   : > { %p1977_p5 = pnand %p1969_p3, %p1805_p4 }
   0xa   : > { %p1883_p12 = por %p1882_p11, %p1881_p10 }
   0xb   : > { %p1864_p6 = pneg %p1977_p5 }
   0xd   : > { %p1876_p8 = pnand %p1874_p7, %p1864_p6 }
   0xf   : > { %p1877_p9 = pneg %p1876_p8 }
  0x11   : > { %p1884_p13 = pnand %p1883_p12, %p1877_p9 }
  0x13   : > { %1887 = shalt.err (!%p1884_p13)
}
  0x14   : > { %s1932_s22 = smov 64   ;;  %s1933_s23 = smov 4  }
  0x15   : > { %1808 = dma.hbm_to_vmem [thread:$0]  (!%p1977_p5), %s2194_s1, 128, %s127_s15, [#allocation3], %s1932_s22, %s1932_s22, %s1933_s23  }
  0x16   : > { %s1899_s26 = scalar_lea.vmem %s141_s19, 16  ;;  %s1906_s27 = scalar_lea.vmem %s141_s19, 32 }
  0x17   : > { %p1900_p0 = scmp.ne.s32.totalorder %s141_s19, %s1899_s26  ;;  %p1907_p7 = scmp.lt.s32.totalorder %s141_s19, %s141_s19 }
  0x18   : > { %p1908_p8 = scmp.lt.s32.totalorder %s1906_s27, %s1899_s26 }
  0x19   : > { %p1902_p1 = pnand %p1900_p0, %p1864_p6 }
  0x1a   : > { %p1909_p9 = por %p1908_p8, %p1907_p7 }
  0x1b   : > { %p1903_p4 = pneg %p1902_p1 }
  0x1d   : > { %p1910_p10 = pnand %p1909_p9, %p1903_p4 }
  0x1f   : > { %1913 = shalt.err (!%p1910_p10)
}
  0x20   : > { %1811 = dma.hbm_to_vmem [thread:$0]  (!%p1977_p5), %s2195_s2, 16, %s141_s19, [#allocation5]  }
  0x21   : > { %162 = sbr.rel (%p1963_p2) target bundleno = 312 (0x138), region = 32 }
  0x26   : > { %1919 = dma.done.wait (%p1969_p3), [#allocation3], 128  }
  0x27   : > { %1921 = vsyncadd (%p1969_p3), [#allocation3], 4294967168 }
  0x28   : > { %1923 = dma.done.wait (%p1969_p3), [#allocation5], 16  }
  0x29   : > { %1925 = vsyncadd (%p1969_p3), [#allocation5], 4294967280  ;;  %vm538_vm0 = vcmask 1043456   ;;  %s1305_s30 = sshll.u32 %s1296_s13, 6  ;;  %vm539_vm1 = vcmask 1044480   ;;  %v1934_v0 = vmov 65535  }
  0x2a   : > { %p191_p5 = scmp.lt.s32.totalorder %s1305_s30, 511  ;;  %v540_v1 = vsel %vm538_vm0, 4294967295, %v1934_v0  ;;  %vm441_vm2 = vcmask 72704   ;;  %v1829_v3 = vld [vmem:[#allocation2] sm:$0x1f]  }
  0x2b   : > { %v541_v2 = vsel %vm539_vm1, %v540_v1, 0  ;;  %v2085_v37 = vld [vmem:[#allocation4] ss:$0 sm:$0xff] }
  0x2c   : > { %s2201_s30 = smov (!%p191_p5, %s1305_s30), 511  ;;  %v543_v5 = vand.u32 %v1829_v3, %v541_v2 }
  0x2d   : > { %s1306_s4 = sshll.u32 %s2201_s30, 2 }
  0x2e   : > { %s2019_s7 = scalar_lea.vmem %s2193_s0, %s1306_s4  ;;  %1729 = vmatprep.subr.bf16.mxu0 %v543_v5  ;;  %1795 = vmatprep.subr.bf16.mxu1 %v543_v5  ;;  %s2100_s10 = scalar_lea.vmem %s2196_s3, %s1306_s4 }
  0x2f   : > { %v1830_v4 = vld [vmem:[%s2019_s7] sm:$0xff]   ;;  %v1832_v7 = vld [vmem:[%s2019_s7 + $0x8] sm:$0xff]   ;;  %1730 = vmatpush3.bf16.msra.mxu0 %v543_v5  ;;  %1796 = vmatpush3.bf16.msra.mxu1 %v543_v5  ;;  %v1834_v9 = vld [vmem:[%s2019_s7 + $0x10] sm:$0xff]  }
  0x30   : > { %v1831_v6 = vld [vmem:[%s2019_s7 + $0x80] sm:$0xff]   ;;  %1731 = vmatprep.mubr.msk.bf16.mxu0 %vm441_vm2, %v1830_v4  ;;  %v1833_v8 = vld [vmem:[%s2019_s7 + $0x88] sm:$0xff]   ;;  %v1835_v10 = vld [vmem:[%s2019_s7 + $0x90] sm:$0xff]  }
  0x31   : > { %1763 = vmatprep.mubr.msk.bf16.mxu1 %vm441_vm2, %v1831_v6  ;;  %v1836_v11 = vld [vmem:[%s2019_s7 + $0x18] sm:$0xff]   ;;  %v1838_v13 = vld [vmem:[%s2019_s7 + $0x20] sm:$0xff]   ;;  %v1840_v15 = vld [vmem:[%s2019_s7 + $0x28] sm:$0xff]  }
  0x32   : > { %1732 = vmatmul.mubr.msk.bf16.vlgmr.msra.gmra.mxu0 %vm441_vm2, %v1832_v7  ;;  %1764 = vmatmul.mubr.msk.bf16.vlgmr.msra.gmra.mxu1 %vm441_vm2, %v1833_v8  ;;  %v1837_v12 = vld [vmem:[%s2019_s7 + $0x98] sm:$0xff]   ;;  %v1839_v14 = vld [vmem:[%s2019_s7 + $0xa0] sm:$0xff]   ;;  %v1841_v16 = vld [vmem:[%s2019_s7 + $0xa8] sm:$0xff]  }
  0x33   : > { %1735 = vmatprep.mubr.msk.bf16.mxu0 %vm441_vm2, %v1834_v9  ;;  %1767 = vmatprep.mubr.msk.bf16.mxu1 %vm441_vm2, %v1835_v10  ;;  %v1842_v17 = vld [vmem:[%s2019_s7 + $0x30] sm:$0xff]   ;;  %v1844_v19 = vld [vmem:[%s2019_s7 + $0x38] sm:$0xff]   ;;  %v1846_v21 = vld [vmem:[%s2019_s7 + $0x40] sm:$0xff]  }
  0x34   : > { %v1843_v18 = vld [vmem:[%s2019_s7 + $0xb0] sm:$0xff]   ;;  %v1845_v20 = vld [vmem:[%s2019_s7 + $0xb8] sm:$0xff]   ;;  %v1847_v22 = vld [vmem:[%s2019_s7 + $0xc0] sm:$0xff]  }
  0x35   : > { %v1848_v23 = vld [vmem:[%s2019_s7 + $0x48] sm:$0xff]   ;;  %v1850_v25 = vld [vmem:[%s2019_s7 + $0x50] sm:$0xff]   ;;  %v1852_v27 = vld [vmem:[%s2019_s7 + $0x58] sm:$0xff]  }
  0x36   : > { %v1849_v24 = vld [vmem:[%s2019_s7 + $0xc8] sm:$0xff]   ;;  %v1851_v26 = vld [vmem:[%s2019_s7 + $0xd0] sm:$0xff]   ;;  %v1853_v28 = vld [vmem:[%s2019_s7 + $0xd8] sm:$0xff]  }
  0x37   : > { %v1854_v29 = vld [vmem:[%s2019_s7 + $0x60] sm:$0xff]   ;;  %v1856_v31 = vld [vmem:[%s2019_s7 + $0x68] sm:$0xff]   ;;  %v1858_v33 = vld [vmem:[%s2019_s7 + $0x70] sm:$0xff]  }
  0x38   : > { %v1855_v30 = vld [vmem:[%s2019_s7 + $0xe0] sm:$0xff]   ;;  %v1857_v32 = vld [vmem:[%s2019_s7 + $0xe8] sm:$0xff]   ;;  %v1859_v34 = vld [vmem:[%s2019_s7 + $0xf0] sm:$0xff]  }
  0x39   : > { %v1860_v35 = vld [vmem:[%s2019_s7 + $0x78] sm:$0xff]  }
  0x3a   : > { %1736 = vmatmul.mubr.msk.bf16.gmra.mxu0 %vm441_vm2, %v1836_v11  ;;  %1768 = vmatmul.mubr.msk.bf16.gmra.mxu1 %vm441_vm2, %v1837_v12  ;;  %v1861_v36 = vld [vmem:[%s2019_s7 + $0xf8] sm:$0xff]  }
  0x3b   : > { %1739 = vmatprep.mubr.msk.bf16.mxu0 %vm441_vm2, %v1838_v13  ;;  %1771 = vmatprep.mubr.msk.bf16.mxu1 %vm441_vm2, %v1839_v14 }
  0x42   : > { %1740 = vmatmul.mubr.msk.bf16.gmra.mxu0 %vm441_vm2, %v1840_v15  ;;  %1772 = vmatmul.mubr.msk.bf16.gmra.mxu1 %vm441_vm2, %v1841_v16 }
  0x43   : > { %1743 = vmatprep.mubr.msk.bf16.mxu0 %vm441_vm2, %v1842_v17  ;;  %1775 = vmatprep.mubr.msk.bf16.mxu1 %vm441_vm2, %v1843_v18 }
  0x4a   : > { %1744 = vmatmul.mubr.msk.bf16.gmra.mxu0 %vm441_vm2, %v1844_v19  ;;  %1776 = vmatmul.mubr.msk.bf16.gmra.mxu1 %vm441_vm2, %v1845_v20 }
  0x4b   : > { %1747 = vmatprep.mubr.msk.bf16.mxu0 %vm441_vm2, %v1846_v21  ;;  %1779 = vmatprep.mubr.msk.bf16.mxu1 %vm441_vm2, %v1847_v22 }
  0x52   : > { %1748 = vmatmul.mubr.msk.bf16.gmra.mxu0 %vm441_vm2, %v1848_v23  ;;  %1780 = vmatmul.mubr.msk.bf16.gmra.mxu1 %vm441_vm2, %v1849_v24 }
  0x53   : > { %1751 = vmatprep.mubr.msk.bf16.mxu0 %vm441_vm2, %v1850_v25  ;;  %1783 = vmatprep.mubr.msk.bf16.mxu1 %vm441_vm2, %v1851_v26 }
  0x5a   : > { %1752 = vmatmul.mubr.msk.bf16.gmra.mxu0 %vm441_vm2, %v1852_v27  ;;  %1784 = vmatmul.mubr.msk.bf16.gmra.mxu1 %vm441_vm2, %v1853_v28 }
  0x5b   : > { %1755 = vmatprep.mubr.msk.bf16.mxu0 %vm441_vm2, %v1854_v29  ;;  %1787 = vmatprep.mubr.msk.bf16.mxu1 %vm441_vm2, %v1855_v30 }
  0x62   : > { %1756 = vmatmul.mubr.msk.bf16.gmra.mxu0 %vm441_vm2, %v1856_v31  ;;  %1788 = vmatmul.mubr.msk.bf16.gmra.mxu1 %vm441_vm2, %v1857_v32 }
  0x63   : > { %1759 = vmatprep.mubr.msk.bf16.mxu0 %vm441_vm2, %v1858_v33  ;;  %1791 = vmatprep.mubr.msk.bf16.mxu1 %vm441_vm2, %v1859_v34 }
  0x6a   : > { %1760 = vmatmul.mubr.msk.bf16.gmra.mxu0 %vm441_vm2, %v1860_v35  ;;  %1792 = vmatmul.mubr.msk.bf16.gmra.mxu1 %vm441_vm2, %v1861_v36 }
  0xf2   : > { %v1733_v38 = vpop.f32.mrf.mxu0  ;;  %v1765_v39 = vpop.f32.mrf.mxu1 }
  0xf3   : > { %v588_v40 = vadd.f32 %v1733_v38, %v2085_v37  ;;  %v716_v41 = vadd.f32 %v1765_v39, %v2085_v37 }
  0xf4   : > { %v579_v42 = vpop.f32.mrf.mxu0  ;;  %v707_v43 = vpop.f32.mrf.mxu1 }
  0xf5   : > { %v580_v44 = vadd.f32 %v2085_v37, %v579_v42  ;;  %v708_v45 = vadd.f32 %v2085_v37, %v707_v43  ;;  %v836_v50 = vmax.f32 %v588_v40, 0.0  ;;  %v868_v51 = vmax.f32 %v716_v41, 0.0 }
  0xf6   : > { %v1734_v46 = vpop.f32.mrf.mxu0  ;;  %v1766_v47 = vpop.f32.mrf.mxu1 }
  0xf7   : > { %v591_v48 = vadd.f32 %v1734_v46, %v2085_v37  ;;  %v719_v49 = vadd.f32 %v1766_v47, %v2085_v37  ;;  %v834_v58 = vmax.f32 %v580_v44, 0.0  ;;  %v866_v59 = vmax.f32 %v708_v45, 0.0 }
  0xf8   : > { %v582_v52 = vpop.f32.mrf.mxu0  ;;  %v710_v53 = vpop.f32.mrf.mxu1 }
  0xf9   : > { %v837_v54 = vmax.f32 %v591_v48, 0.0  ;;  %v869_v55 = vmax.f32 %v719_v49, 0.0  ;;  %v583_v56 = vadd.f32 %v2085_v37, %v582_v52  ;;  %v711_v57 = vadd.f32 %v2085_v37, %v710_v53 }
  0xfa   : > { %v1737_v60 = vpop.f32.mrf.mxu0  ;;  %v1769_v61 = vpop.f32.mrf.mxu1 }
  0xfb   : > { %v1513_v62 = vpack.c.bf16 %v837_v54, %v836_v50  ;;  %v1593_v63 = vpack.c.bf16 %v869_v55, %v868_v51  ;;  %v835_v0 = vmax.f32 %v583_v56, 0.0  ;;  %v867_v1 = vmax.f32 %v711_v57, 0.0 }
  0xfc   : > { %v604_v2 = vadd.f32 %v1737_v60, %v2085_v37  ;;  %v732_v3 = vadd.f32 %v1769_v61, %v2085_v37  ;;  %v595_v4 = vpop.f32.mrf.mxu0  ;;  %v723_v5 = vpop.f32.mrf.mxu1 }
  0xfd   : > { %1665 = vst [vmem:[%s2100_s10 + $0x8] sm:$0xff] %v1513_v62   ;;  %1681 = vst [vmem:[%s2100_s10 + $0x88] sm:$0xff] %v1593_v63   ;;  %v1508_v6 = vpack.c.bf16 %v835_v0, %v834_v58  ;;  %v1588_v7 = vpack.c.bf16 %v867_v1, %v866_v59  ;;  %v596_v8 = vadd.f32 %v2085_v37, %v595_v4 }
  0xfe   : > { %v724_v9 = vadd.f32 %v2085_v37, %v723_v5  ;;  %v1738_v10 = vpop.f32.mrf.mxu0  ;;  %v1770_v11 = vpop.f32.mrf.mxu1  ;;  %v840_v14 = vmax.f32 %v604_v2, 0.0  ;;  %v872_v15 = vmax.f32 %v732_v3, 0.0 }
  0xff   : > { %1509 = vst [vmem:[%s2100_s10] sm:$0xff] %v1508_v6   ;;  %1680 = vst [vmem:[%s2100_s10 + $0x80] sm:$0xff] %v1588_v7   ;;  %v607_v12 = vadd.f32 %v1738_v10, %v2085_v37  ;;  %v735_v13 = vadd.f32 %v1770_v11, %v2085_v37  ;;  %v838_v22 = vmax.f32 %v596_v8, 0.0 }
 0x100   : > { %v598_v16 = vpop.f32.mrf.mxu0  ;;  %v726_v17 = vpop.f32.mrf.mxu1  ;;  %v870_v23 = vmax.f32 %v724_v9, 0.0 }
 0x101   : > { %v841_v18 = vmax.f32 %v607_v12, 0.0  ;;  %v873_v19 = vmax.f32 %v735_v13, 0.0  ;;  %v599_v20 = vadd.f32 %v2085_v37, %v598_v16  ;;  %v727_v21 = vadd.f32 %v2085_v37, %v726_v17 }
 0x102   : > { %v1741_v24 = vpop.f32.mrf.mxu0  ;;  %v1773_v25 = vpop.f32.mrf.mxu1 }
 0x103   : > { %v1523_v26 = vpack.c.bf16 %v841_v18, %v840_v14  ;;  %v1603_v27 = vpack.c.bf16 %v873_v19, %v872_v15  ;;  %v839_v28 = vmax.f32 %v599_v20, 0.0  ;;  %v871_v29 = vmax.f32 %v727_v21, 0.0 }
 0x104   : > { %v620_v30 = vadd.f32 %v1741_v24, %v2085_v37  ;;  %v748_v31 = vadd.f32 %v1773_v25, %v2085_v37  ;;  %v611_v32 = vpop.f32.mrf.mxu0  ;;  %v739_v33 = vpop.f32.mrf.mxu1 }
 0x105   : > { %1667 = vst [vmem:[%s2100_s10 + $0x18] sm:$0xff] %v1523_v26   ;;  %1683 = vst [vmem:[%s2100_s10 + $0x98] sm:$0xff] %v1603_v27   ;;  %v1518_v34 = vpack.c.bf16 %v839_v28, %v838_v22  ;;  %v1598_v35 = vpack.c.bf16 %v871_v29, %v870_v23  ;;  %v612_v36 = vadd.f32 %v2085_v37, %v611_v32 }
 0x106   : > { %v740_v38 = vadd.f32 %v2085_v37, %v739_v33  ;;  %v1742_v39 = vpop.f32.mrf.mxu0  ;;  %v1774_v40 = vpop.f32.mrf.mxu1  ;;  %v844_v43 = vmax.f32 %v620_v30, 0.0  ;;  %v876_v44 = vmax.f32 %v748_v31, 0.0 }
 0x107   : > { %1666 = vst [vmem:[%s2100_s10 + $0x10] sm:$0xff] %v1518_v34   ;;  %1682 = vst [vmem:[%s2100_s10 + $0x90] sm:$0xff] %v1598_v35   ;;  %v623_v41 = vadd.f32 %v1742_v39, %v2085_v37  ;;  %v751_v42 = vadd.f32 %v1774_v40, %v2085_v37  ;;  %v842_v51 = vmax.f32 %v612_v36, 0.0 }
 0x108   : > { %v614_v45 = vpop.f32.mrf.mxu0  ;;  %v742_v46 = vpop.f32.mrf.mxu1  ;;  %v874_v52 = vmax.f32 %v740_v38, 0.0 }
 0x109   : > { %v845_v47 = vmax.f32 %v623_v41, 0.0  ;;  %v877_v48 = vmax.f32 %v751_v42, 0.0  ;;  %v615_v49 = vadd.f32 %v2085_v37, %v614_v45  ;;  %v743_v50 = vadd.f32 %v2085_v37, %v742_v46 }
 0x10a   : > { %v1745_v53 = vpop.f32.mrf.mxu0  ;;  %v1777_v54 = vpop.f32.mrf.mxu1 }
 0x10b   : > { %v1533_v55 = vpack.c.bf16 %v845_v47, %v844_v43  ;;  %v1613_v56 = vpack.c.bf16 %v877_v48, %v876_v44  ;;  %v843_v57 = vmax.f32 %v615_v49, 0.0  ;;  %v875_v58 = vmax.f32 %v743_v50, 0.0 }
 0x10c   : > { %v636_v59 = vadd.f32 %v1745_v53, %v2085_v37  ;;  %v764_v60 = vadd.f32 %v1777_v54, %v2085_v37  ;;  %v627_v61 = vpop.f32.mrf.mxu0  ;;  %v755_v62 = vpop.f32.mrf.mxu1 }
 0x10d   : > { %1669 = vst [vmem:[%s2100_s10 + $0x28] sm:$0xff] %v1533_v55   ;;  %1685 = vst [vmem:[%s2100_s10 + $0xa8] sm:$0xff] %v1613_v56   ;;  %v1528_v63 = vpack.c.bf16 %v843_v57, %v842_v51  ;;  %v1608_v0 = vpack.c.bf16 %v875_v58, %v874_v52  ;;  %v628_v1 = vadd.f32 %v2085_v37, %v627_v61 }
 0x10e   : > { %v756_v2 = vadd.f32 %v2085_v37, %v755_v62  ;;  %v1746_v3 = vpop.f32.mrf.mxu0  ;;  %v1778_v4 = vpop.f32.mrf.mxu1  ;;  %v848_v7 = vmax.f32 %v636_v59, 0.0  ;;  %v880_v8 = vmax.f32 %v764_v60, 0.0 }
 0x10f   : > { %1668 = vst [vmem:[%s2100_s10 + $0x20] sm:$0xff] %v1528_v63   ;;  %1684 = vst [vmem:[%s2100_s10 + $0xa0] sm:$0xff] %v1608_v0   ;;  %v639_v5 = vadd.f32 %v1746_v3, %v2085_v37  ;;  %v767_v6 = vadd.f32 %v1778_v4, %v2085_v37  ;;  %v846_v15 = vmax.f32 %v628_v1, 0.0 }
 0x110   : > { %v630_v9 = vpop.f32.mrf.mxu0  ;;  %v758_v10 = vpop.f32.mrf.mxu1  ;;  %v878_v16 = vmax.f32 %v756_v2, 0.0 }
 0x111   : > { %v849_v11 = vmax.f32 %v639_v5, 0.0  ;;  %v881_v12 = vmax.f32 %v767_v6, 0.0  ;;  %v631_v13 = vadd.f32 %v2085_v37, %v630_v9  ;;  %v759_v14 = vadd.f32 %v2085_v37, %v758_v10 }
 0x112   : > { %v1749_v17 = vpop.f32.mrf.mxu0  ;;  %v1781_v18 = vpop.f32.mrf.mxu1 }
 0x113   : > { %v1543_v19 = vpack.c.bf16 %v849_v11, %v848_v7  ;;  %v1623_v20 = vpack.c.bf16 %v881_v12, %v880_v8  ;;  %v847_v21 = vmax.f32 %v631_v13, 0.0  ;;  %v879_v22 = vmax.f32 %v759_v14, 0.0 }
 0x114   : > { %v652_v23 = vadd.f32 %v1749_v17, %v2085_v37  ;;  %v780_v24 = vadd.f32 %v1781_v18, %v2085_v37  ;;  %v643_v25 = vpop.f32.mrf.mxu0  ;;  %v771_v26 = vpop.f32.mrf.mxu1 }
 0x115   : > { %1671 = vst [vmem:[%s2100_s10 + $0x38] sm:$0xff] %v1543_v19   ;;  %1687 = vst [vmem:[%s2100_s10 + $0xb8] sm:$0xff] %v1623_v20   ;;  %v1538_v27 = vpack.c.bf16 %v847_v21, %v846_v15  ;;  %v1618_v28 = vpack.c.bf16 %v879_v22, %v878_v16  ;;  %v644_v29 = vadd.f32 %v2085_v37, %v643_v25 }
 0x116   : > { %v772_v30 = vadd.f32 %v2085_v37, %v771_v26  ;;  %v1750_v31 = vpop.f32.mrf.mxu0  ;;  %v1782_v32 = vpop.f32.mrf.mxu1  ;;  %v852_v35 = vmax.f32 %v652_v23, 0.0  ;;  %v884_v36 = vmax.f32 %v780_v24, 0.0 }
 0x117   : > { %1670 = vst [vmem:[%s2100_s10 + $0x30] sm:$0xff] %v1538_v27   ;;  %1686 = vst [vmem:[%s2100_s10 + $0xb0] sm:$0xff] %v1618_v28   ;;  %v655_v33 = vadd.f32 %v1750_v31, %v2085_v37  ;;  %v783_v34 = vadd.f32 %v1782_v32, %v2085_v37  ;;  %v850_v44 = vmax.f32 %v644_v29, 0.0 }
 0x118   : > { %v646_v38 = vpop.f32.mrf.mxu0  ;;  %v774_v39 = vpop.f32.mrf.mxu1  ;;  %v882_v45 = vmax.f32 %v772_v30, 0.0 }
 0x119   : > { %v853_v40 = vmax.f32 %v655_v33, 0.0  ;;  %v885_v41 = vmax.f32 %v783_v34, 0.0  ;;  %v647_v42 = vadd.f32 %v2085_v37, %v646_v38  ;;  %v775_v43 = vadd.f32 %v2085_v37, %v774_v39 }
 0x11a   : > { %v1753_v46 = vpop.f32.mrf.mxu0  ;;  %v1785_v47 = vpop.f32.mrf.mxu1 }
 0x11b   : > { %v1553_v48 = vpack.c.bf16 %v853_v40, %v852_v35  ;;  %v1633_v49 = vpack.c.bf16 %v885_v41, %v884_v36  ;;  %v851_v50 = vmax.f32 %v647_v42, 0.0  ;;  %v883_v51 = vmax.f32 %v775_v43, 0.0 }
 0x11c   : > { %v668_v52 = vadd.f32 %v1753_v46, %v2085_v37  ;;  %v796_v53 = vadd.f32 %v1785_v47, %v2085_v37  ;;  %v659_v54 = vpop.f32.mrf.mxu0  ;;  %v787_v55 = vpop.f32.mrf.mxu1 }
 0x11d   : > { %1673 = vst [vmem:[%s2100_s10 + $0x48] sm:$0xff] %v1553_v48   ;;  %1689 = vst [vmem:[%s2100_s10 + $0xc8] sm:$0xff] %v1633_v49   ;;  %v1548_v56 = vpack.c.bf16 %v851_v50, %v850_v44  ;;  %v1628_v57 = vpack.c.bf16 %v883_v51, %v882_v45  ;;  %v660_v58 = vadd.f32 %v2085_v37, %v659_v54 }
 0x11e   : > { %v788_v59 = vadd.f32 %v2085_v37, %v787_v55  ;;  %v1754_v60 = vpop.f32.mrf.mxu0  ;;  %v1786_v61 = vpop.f32.mrf.mxu1  ;;  %v856_v0 = vmax.f32 %v668_v52, 0.0  ;;  %v888_v1 = vmax.f32 %v796_v53, 0.0 }
 0x11f   : > { %1672 = vst [vmem:[%s2100_s10 + $0x40] sm:$0xff] %v1548_v56   ;;  %1688 = vst [vmem:[%s2100_s10 + $0xc0] sm:$0xff] %v1628_v57   ;;  %v671_v62 = vadd.f32 %v1754_v60, %v2085_v37  ;;  %v799_v63 = vadd.f32 %v1786_v61, %v2085_v37  ;;  %v854_v8 = vmax.f32 %v660_v58, 0.0 }
 0x120   : > { %v662_v2 = vpop.f32.mrf.mxu0  ;;  %v790_v3 = vpop.f32.mrf.mxu1  ;;  %v886_v9 = vmax.f32 %v788_v59, 0.0 }
 0x121   : > { %v857_v4 = vmax.f32 %v671_v62, 0.0  ;;  %v889_v5 = vmax.f32 %v799_v63, 0.0  ;;  %v663_v6 = vadd.f32 %v2085_v37, %v662_v2  ;;  %v791_v7 = vadd.f32 %v2085_v37, %v790_v3 }
 0x122   : > { %v1757_v10 = vpop.f32.mrf.mxu0  ;;  %v1789_v11 = vpop.f32.mrf.mxu1 }
 0x123   : > { %v1563_v12 = vpack.c.bf16 %v857_v4, %v856_v0  ;;  %v1643_v13 = vpack.c.bf16 %v889_v5, %v888_v1  ;;  %v855_v14 = vmax.f32 %v663_v6, 0.0  ;;  %v887_v15 = vmax.f32 %v791_v7, 0.0 }
 0x124   : > { %v684_v16 = vadd.f32 %v1757_v10, %v2085_v37  ;;  %v812_v17 = vadd.f32 %v1789_v11, %v2085_v37  ;;  %v675_v18 = vpop.f32.mrf.mxu0  ;;  %v803_v19 = vpop.f32.mrf.mxu1 }
 0x125   : > { %1675 = vst [vmem:[%s2100_s10 + $0x58] sm:$0xff] %v1563_v12   ;;  %1691 = vst [vmem:[%s2100_s10 + $0xd8] sm:$0xff] %v1643_v13   ;;  %v1558_v20 = vpack.c.bf16 %v855_v14, %v854_v8  ;;  %v1638_v21 = vpack.c.bf16 %v887_v15, %v886_v9  ;;  %v676_v22 = vadd.f32 %v2085_v37, %v675_v18 }
 0x126   : > { %v804_v23 = vadd.f32 %v2085_v37, %v803_v19  ;;  %v1758_v24 = vpop.f32.mrf.mxu0  ;;  %v1790_v25 = vpop.f32.mrf.mxu1  ;;  %v860_v28 = vmax.f32 %v684_v16, 0.0  ;;  %v892_v29 = vmax.f32 %v812_v17, 0.0 }
 0x127   : > { %1674 = vst [vmem:[%s2100_s10 + $0x50] sm:$0xff] %v1558_v20   ;;  %1690 = vst [vmem:[%s2100_s10 + $0xd0] sm:$0xff] %v1638_v21   ;;  %v687_v26 = vadd.f32 %v1758_v24, %v2085_v37  ;;  %v815_v27 = vadd.f32 %v1790_v25, %v2085_v37  ;;  %v858_v36 = vmax.f32 %v676_v22, 0.0 }
 0x128   : > { %v678_v30 = vpop.f32.mrf.mxu0  ;;  %v806_v31 = vpop.f32.mrf.mxu1  ;;  %v890_v38 = vmax.f32 %v804_v23, 0.0 }
 0x129   : > { %v861_v32 = vmax.f32 %v687_v26, 0.0  ;;  %v893_v33 = vmax.f32 %v815_v27, 0.0  ;;  %v679_v34 = vadd.f32 %v2085_v37, %v678_v30  ;;  %v807_v35 = vadd.f32 %v2085_v37, %v806_v31 }
 0x12a   : > { %v1761_v39 = vpop.f32.mrf.mxu0  ;;  %v1793_v40 = vpop.f32.mrf.mxu1 }
 0x12b   : > { %v1573_v41 = vpack.c.bf16 %v861_v32, %v860_v28  ;;  %v1653_v42 = vpack.c.bf16 %v893_v33, %v892_v29  ;;  %v859_v43 = vmax.f32 %v679_v34, 0.0  ;;  %v891_v44 = vmax.f32 %v807_v35, 0.0 }
 0x12c   : > { %v700_v45 = vadd.f32 %v1761_v39, %v2085_v37  ;;  %v828_v46 = vadd.f32 %v1793_v40, %v2085_v37  ;;  %v691_v47 = vpop.f32.mrf.mxu0  ;;  %v819_v48 = vpop.f32.mrf.mxu1 }
 0x12d   : > { %1677 = vst [vmem:[%s2100_s10 + $0x68] sm:$0xff] %v1573_v41   ;;  %1693 = vst [vmem:[%s2100_s10 + $0xe8] sm:$0xff] %v1653_v42   ;;  %v1568_v49 = vpack.c.bf16 %v859_v43, %v858_v36  ;;  %v1648_v50 = vpack.c.bf16 %v891_v44, %v890_v38  ;;  %v692_v51 = vadd.f32 %v2085_v37, %v691_v47 }
 0x12e   : > { %v820_v52 = vadd.f32 %v2085_v37, %v819_v48  ;;  %v1762_v53 = vpop.f32.mrf.mxu0  ;;  %v1794_v54 = vpop.f32.mrf.mxu1  ;;  %v864_v57 = vmax.f32 %v700_v45, 0.0  ;;  %v896_v58 = vmax.f32 %v828_v46, 0.0 }
 0x12f   : > { %1676 = vst [vmem:[%s2100_s10 + $0x60] sm:$0xff] %v1568_v49   ;;  %1692 = vst [vmem:[%s2100_s10 + $0xe0] sm:$0xff] %v1648_v50   ;;  %v703_v55 = vadd.f32 %v1762_v53, %v2085_v37  ;;  %v831_v56 = vadd.f32 %v1794_v54, %v2085_v37  ;;  %v862_v1 = vmax.f32 %v692_v51, 0.0 }
 0x130   : > { %v694_v59 = vpop.f32.mrf.mxu0  ;;  %v822_v60 = vpop.f32.mrf.mxu1  ;;  %v894_v2 = vmax.f32 %v820_v52, 0.0 }
 0x131   : > { %v865_v61 = vmax.f32 %v703_v55, 0.0  ;;  %v897_v62 = vmax.f32 %v831_v56, 0.0  ;;  %v695_v63 = vadd.f32 %v2085_v37, %v694_v59  ;;  %v823_v0 = vadd.f32 %v2085_v37, %v822_v60 }
 0x133   : > { %v1583_v3 = vpack.c.bf16 %v865_v61, %v864_v57  ;;  %v1663_v4 = vpack.c.bf16 %v897_v62, %v896_v58  ;;  %v863_v5 = vmax.f32 %v695_v63, 0.0  ;;  %v895_v6 = vmax.f32 %v823_v0, 0.0 }
 0x135   : > { %1679 = vst [vmem:[%s2100_s10 + $0x78] sm:$0xff] %v1583_v3   ;;  %1695 = vst [vmem:[%s2100_s10 + $0xf8] sm:$0xff] %v1663_v4   ;;  %v1578_v7 = vpack.c.bf16 %v863_v5, %v862_v1  ;;  %v1658_v8 = vpack.c.bf16 %v895_v6, %v894_v2 }
 0x137   : > { %1678 = vst [vmem:[%s2100_s10 + $0x70] sm:$0xff] %v1578_v7   ;;  %1694 = vst [vmem:[%s2100_s10 + $0xf0] sm:$0xff] %v1658_v8  }
 0x138 PF: > { %s15_s12 = sadd.s32 1, %s1928_s12  }
 0x139   : > { %p12_p2 = scmp.ge.s32.totalorder %s15_s12, 10  }
 0x13b   :  { %14 = sbr.rel (!%p12_p2) target bundleno = 2 (0x2), region = 71 }
 0x140   :  { %1240 = vsyncpa [#allocation3], 1 }
 0x141   :  { %1242 = vsyncpa [#allocation3 + $0x1], 1 }
 0x142   :  { %1243 = vsyncpa [#allocation5], 1 }

// kernel: vae_forward.8
= control target key start
LH: loop header
LB: loop body
LE: loop exit
PB: predicated region body
PF: predicated region fallthrough
CT: control target
= control target key end

     0   :  { %s5809_s12 = smov 0   ;;  %s7266_s0 = inlined_call_operand.vmem [shape: bf16[1024,1152], index: 0, kind: input, shape index: {}]   ;;  %s7267_s1 = inlined_call_operand.vmem [shape: bf16[1152,128], index: 1, kind: input, shape index: {}]   ;;  %s7268_s2 = inlined_call_operand.vmem [shape: f32[1,128], index: 2, kind: input, shape index: {}]   ;;  %s7269_s3 = inlined_call_operand.vmem [shape: bf16[1024,128], index: 3, kind: output, shape index: {}]  }
   0x1 LB: > { %s4438_s13 = sadd.s32 4294967295, %s5786_s12   ;;  %p4442_p0 = scmp.ge.s32.totalorder %s5786_s12, 1  ;;  %s5786_s12 = sphi %s5809_s12, %s13_s12  }
   0x2   : > { %p139_p1 = scmp.lt.s32.totalorder %s5786_s12, 3 }
   0x4   : > { %p140_p2 = pnand %p4442_p0, %p139_p1 }
   0x6   : > { %143 = sbr.rel (%p140_p2) target bundleno = 850 (0x352), region = 32 }
   0xb   : > { %v5291_v0 = vld [vmem:[%s7267_s1 + $0x38] sm:$0xff]   ;;  %v5788_v1 = vmov 0   ;;  %s4443_s16 = sshll.u32 %s4438_s13, 6  ;;  %v5292_v2 = vld [vmem:[%s7267_s1 + $0x30] sm:$0xff]   ;;  %v5293_v3 = vld [vmem:[%s7267_s1 + $0x28] sm:$0xff]  }
   0xc   : > { %2553 = vmatprep.subr.bf16.mxu0 %v5788_v1  ;;  %5249 = vmatprep.subr.bf16.mxu1 %v5788_v1  ;;  %p165_p3 = scmp.lt.s32.totalorder %s4443_s16, 127  ;;  %v5294_v4 = vld [vmem:[%s7267_s1 + $0x20] sm:$0xff]   ;;  %v5295_v5 = vld [vmem:[%s7267_s1 + $0x18] sm:$0xff]   ;;  %v5296_v7 = vld [vmem:[%s7267_s1 + $0x10] sm:$0xff]  }
   0xd   : > { %2554 = vmatpush1.bf16.msra.mxu0 %v5291_v0  ;;  %5265 = vmatpush1.bf16.msra.mxu1 %v5291_v0  ;;  %v5297_v9 = vld [vmem:[%s7267_s1 + $0x8] sm:$0xff]   ;;  %v5298_v10 = vld [vmem:[%s7267_s1] sm:$0xff]   ;;  %v5299_v11 = vld [vmem:[%s7267_s1 + $0x78] sm:$0xff]  }
   0xe   : > { %2555 = vmatprep.subr.bf16.mxu0 %v5788_v1  ;;  %5250 = vmatprep.subr.bf16.mxu1 %v5788_v1  ;;  %s7369_s16 = smov (!%p165_p3, %s4443_s16), 127  ;;  %v5300_v12 = vld [vmem:[%s7267_s1 + $0x70] sm:$0xff]   ;;  %v5301_v13 = vld [vmem:[%s7267_s1 + $0x68] sm:$0xff]   ;;  %v5302_v14 = vld [vmem:[%s7267_s1 + $0x60] sm:$0xff]  }
   0xf   : > { %s5281_s23 = smul.u32 36, %s7369_s16  ;;  %v5303_v15 = vld [vmem:[%s7267_s1 + $0x58] sm:$0xff]   ;;  %v5304_v16 = vld [vmem:[%s7267_s1 + $0x50] sm:$0xff]   ;;  %v5305_v17 = vld [vmem:[%s7267_s1 + $0x48] sm:$0xff]  }
  0x10   : > { %v5306_v18 = vld [vmem:[%s7267_s1 + $0x40] sm:$0xff]   ;;  %v5313_v21 = vld [vmem:[%s7267_s1 + $0xb8] sm:$0xff]   ;;  %v5315_v25 = vld [vmem:[%s7267_s1 + $0xb0] sm:$0xff]  }
  0x11   : > { %2556 = vmatpush1.bf16.msra.mxu0 %v5292_v2  ;;  %5266 = vmatpush1.bf16.msra.mxu1 %v5292_v2  ;;  %s5846_s28 = scalar_lea.vmem %s7266_s0, %s5281_s23  ;;  %v5314_v22 = vld [vmem:[%s7267_s1 + $0x138] sm:$0xff]   ;;  %v5324_v26 = vld [vmem:[%s7267_s1 + $0x130] sm:$0xff]   ;;  %v5322_v29 = vld [vmem:[%s7267_s1 + $0xa8] sm:$0xff]  }
  0x12   : > { %2557 = vmatprep.subr.bf16.mxu0 %v5788_v1  ;;  %5251 = vmatprep.subr.bf16.mxu1 %v5788_v1  ;;  %v5309_v6 = vld [vmem:[%s5846_s28 + $0x4] ss:$36 sps:$4 sm:$0xff]   ;;  %v5316_v23 = vld [vmem:[%s5846_s28 + $0x4c] ss:$36 sps:$4 sm:$0xff]   ;;  %v5325_v30 = vld [vmem:[%s5846_s28 + $0x94] ss:$36 sps:$4 sm:$0xff]  }
  0x13   : > { %v5312_v8 = vld [vmem:[%s5846_s28 + $0x6c4] ss:$36 sps:$4 sm:$0xff]   ;;  %2585 = vmatprep.mubr.bf16.mxu0 %v5309_v6  ;;  %v5318_v24 = vld [vmem:[%s5846_s28 + $0x70c] ss:$36 sps:$4 sm:$0xff]   ;;  %v5327_v31 = vld [vmem:[%s5846_s28 + $0x754] ss:$36 sps:$4 sm:$0xff]  }
  0x14   : > { %2777 = vmatprep.mubr.bf16.mxu1 %v5312_v8  ;;  %v5307_v19 = vld [vmem:[%s5846_s28] ss:$36 sps:$4 sm:$0xff]   ;;  %v5320_v27 = vld [vmem:[%s5846_s28 + $0x48] ss:$36 sps:$4 sm:$0xff]   ;;  %v5329_v34 = vld [vmem:[%s5846_s28 + $0x90] ss:$36 sps:$4 sm:$0xff]  }
  0x15   : > { %2558 = vmatpush1.bf16.msra.mxu0 %v5293_v3  ;;  %5267 = vmatpush1.bf16.msra.mxu1 %v5293_v3  ;;  %v5310_v20 = vld [vmem:[%s5846_s28 + $0x6c0] ss:$36 sps:$4 sm:$0xff]   ;;  %v5321_v28 = vld [vmem:[%s5846_s28 + $0x708] ss:$36 sps:$4 sm:$0xff]   ;;  %v5330_v35 = vld [vmem:[%s5846_s28 + $0x750] ss:$36 sps:$4 sm:$0xff]  }
  0x16   : > { %2559 = vmatprep.subr.bf16.mxu0 %v5788_v1  ;;  %5252 = vmatprep.subr.bf16.mxu1 %v5788_v1  ;;  %v5340_v32 = vld [vmem:[%s7267_s1 + $0x128] sm:$0xff]   ;;  %v5323_v33 = vld [vmem:[%s7267_s1 + $0xa0] sm:$0xff]   ;;  %v5331_v37 = vld [vmem:[%s7267_s1 + $0x98] sm:$0xff]  }
  0x17   : > { %v5350_v36 = vld [vmem:[%s7267_s1 + $0x120] sm:$0xff]   ;;  %v5366_v40 = vld [vmem:[%s7267_s1 + $0x118] sm:$0xff]   ;;  %v5332_v41 = vld [vmem:[%s7267_s1 + $0x90] sm:$0xff]  }
  0x18   : > { %v5333_v38 = vld [vmem:[%s5846_s28 + $0xdc] ss:$36 sps:$4 sm:$0xff]   ;;  %v5339_v44 = vld [vmem:[%s7267_s1 + $0x88] sm:$0xff]   ;;  %v5376_v47 = vld [vmem:[%s7267_s1 + $0x110] sm:$0xff]  }
  0x19   : > { %2560 = vmatpush1.bf16.msra.mxu0 %v5294_v4  ;;  %5268 = vmatpush1.bf16.msra.mxu1 %v5294_v4  ;;  %v5335_v39 = vld [vmem:[%s5846_s28 + $0x79c] ss:$36 sps:$4 sm:$0xff]   ;;  %v5342_v45 = vld [vmem:[%s5846_s28 + $0x124] ss:$36 sps:$4 sm:$0xff]   ;;  %v5351_v53 = vld [vmem:[%s5846_s28 + $0x16c] ss:$36 sps:$4 sm:$0xff]  }
  0x1a   : > { %2561 = vmatprep.subr.bf16.mxu0 %v5788_v1  ;;  %5253 = vmatprep.subr.bf16.mxu1 %v5788_v1  ;;  %v5337_v42 = vld [vmem:[%s5846_s28 + $0xd8] ss:$36 sps:$4 sm:$0xff]   ;;  %v5344_v46 = vld [vmem:[%s5846_s28 + $0x7e4] ss:$36 sps:$4 sm:$0xff]   ;;  %v5353_v54 = vld [vmem:[%s5846_s28 + $0x82c] ss:$36 sps:$4 sm:$0xff]  }
  0x1b   : > { %v5338_v43 = vld [vmem:[%s5846_s28 + $0x798] ss:$36 sps:$4 sm:$0xff]   ;;  %v5341_v48 = vld [vmem:[%s7267_s1 + $0x80] sm:$0xff]   ;;  %v5390_v51 = vld [vmem:[%s7267_s1 + $0x108] sm:$0xff]  }
  0x1c   : > { %v5346_v49 = vld [vmem:[%s5846_s28 + $0x120] ss:$36 sps:$4 sm:$0xff]   ;;  %v5348_v52 = vld [vmem:[%s7267_s1 + $0xf8] sm:$0xff]   ;;  %v5349_v56 = vld [vmem:[%s7267_s1 + $0xf0] sm:$0xff]  }
  0x1d   : > { %2562 = vmatpush1.bf16.msra.mxu0 %v5295_v5  ;;  %5269 = vmatpush1.bf16.msra.mxu1 %v5295_v5  ;;  %v5347_v50 = vld [vmem:[%s5846_s28 + $0x7e0] ss:$36 sps:$4 sm:$0xff]   ;;  %v5355_v57 = vld [vmem:[%s5846_s28 + $0x168] ss:$36 sps:$4 sm:$0xff]   ;;  %v5359_v60 = vld [vmem:[%s5846_s28 + $0x1b4] ss:$36 sps:$4 sm:$0xff]  }
  0x1e   : > { %2563 = vmatprep.subr.bf16.mxu0 %v5788_v1  ;;  %5254 = vmatprep.subr.bf16.mxu1 %v5788_v1  ;;  %v5398_v55 = vld [vmem:[%s7267_s1 + $0x100] sm:$0xff]   ;;  %v5356_v58 = vld [vmem:[%s5846_s28 + $0x828] ss:$36 sps:$4 sm:$0xff]   ;;  %v5361_v61 = vld [vmem:[%s5846_s28 + $0x874] ss:$36 sps:$4 sm:$0xff]  }
  0x1f   : > { %v5357_v59 = vld [vmem:[%s7267_s1 + $0xe8] sm:$0xff]   ;;  %v5411_v62 = vld [vmem:[%s7267_s1 + $0x178] sm:$0xff]   ;;  %v5358_v63 = vld [vmem:[%s7267_s1 + $0xe0] sm:$0xff]  }
  0x20   : > { %v5363_v0 = vld [vmem:[%s5846_s28 + $0x1b0] ss:$36 sps:$4 sm:$0xff]   ;;  %v5365_v4 = vld [vmem:[%s7267_s1 + $0xd8] sm:$0xff]  }
  0x21   : > { %2564 = vmatpush1.bf16.msra.mxu0 %v5296_v7  ;;  %5270 = vmatpush1.bf16.msra.mxu1 %v5296_v7  ;;  %v5364_v2 = vld [vmem:[%s5846_s28 + $0x870] ss:$36 sps:$4 sm:$0xff]   ;;  %v5368_v5 = vld [vmem:[%s5846_s28 + $0x1fc] ss:$36 sps:$4 sm:$0xff]   ;;  %v5433_v7 = vld [vmem:[%s7267_s1 + $0x168] sm:$0xff]  }
  0x22   : > { %2565 = vmatprep.subr.bf16.mxu0 %v5788_v1  ;;  %5255 = vmatprep.subr.bf16.mxu1 %v5788_v1  ;;  %v5419_v3 = vld [vmem:[%s7267_s1 + $0x170] sm:$0xff]   ;;  %v5370_v6 = vld [vmem:[%s5846_s28 + $0x8bc] ss:$36 sps:$4 sm:$0xff]  }
  0x23   : > { %v5367_v8 = vld [vmem:[%s7267_s1 + $0xd0] sm:$0xff]  }
  0x25   : > { %2566 = vmatpush1.bf16.msra.mxu0 %v5297_v9  ;;  %5271 = vmatpush1.bf16.msra.mxu1 %v5297_v9  ;;  %v5372_v9 = vld [vmem:[%s5846_s28 + $0x1f8] ss:$36 sps:$4 sm:$0xff]  }
  0x26   : > { %2567 = vmatprep.subr.bf16.mxu0 %v5788_v1  ;;  %5256 = vmatprep.subr.bf16.mxu1 %v5788_v1 }
  0x29   : > { %2568 = vmatpush1.bf16.msra.mxu0 %v5298_v10  ;;  %5272 = vmatpush1.bf16.msra.mxu1 %v5298_v10  ;;  %v5373_v10 = vld [vmem:[%s5846_s28 + $0x8b8] ss:$36 sps:$4 sm:$0xff]  }
  0x2a   : > { %2569 = vmatprep.subr.bf16.mxu0 %v5788_v1  ;;  %5257 = vmatprep.subr.bf16.mxu1 %v5788_v1 }
  0x2d   : > { %2570 = vmatpush2.bf16.msra.mxu0 %v5299_v11  ;;  %5273 = vmatpush2.bf16.msra.mxu1 %v5299_v11  ;;  %v5374_v11 = vld [vmem:[%s7267_s1 + $0xc8] sm:$0xff]  }
  0x2e   : > { %2571 = vmatprep.subr.bf16.mxu0 %v5788_v1  ;;  %5258 = vmatprep.subr.bf16.mxu1 %v5788_v1 }
  0x31   : > { %2572 = vmatpush2.bf16.msra.mxu0 %v5300_v12  ;;  %5274 = vmatpush2.bf16.msra.mxu1 %v5300_v12  ;;  %v5377_v12 = vld [vmem:[%s5846_s28 + $0x244] ss:$36 sps:$4 sm:$0xff]  }
  0x32   : > { %2573 = vmatprep.subr.bf16.mxu0 %v5788_v1  ;;  %5259 = vmatprep.subr.bf16.mxu1 %v5788_v1 }
  0x35   : > { %2574 = vmatpush2.bf16.msra.mxu0 %v5301_v13  ;;  %5275 = vmatpush2.bf16.msra.mxu1 %v5301_v13  ;;  %v5381_v13 = vld [vmem:[%s5846_s28 + $0xc] ss:$36 sps:$4 sm:$0xff]  }
  0x36   : > { %2575 = vmatprep.subr.bf16.mxu0 %v5788_v1  ;;  %5260 = vmatprep.subr.bf16.mxu1 %v5788_v1 }
  0x39   : > { %2576 = vmatpush2.bf16.msra.mxu0 %v5302_v14  ;;  %5276 = vmatpush2.bf16.msra.mxu1 %v5302_v14  ;;  %v5441_v14 = vld [vmem:[%s7267_s1 + $0x160] sm:$0xff]  }
  0x3a   : > { %2577 = vmatprep.subr.bf16.mxu0 %v5788_v1  ;;  %5261 = vmatprep.subr.bf16.mxu1 %v5788_v1 }
  0x3d   : > { %2578 = vmatpush2.bf16.msra.mxu0 %v5303_v15  ;;  %5277 = vmatpush2.bf16.msra.mxu1 %v5303_v15  ;;  %v5375_v15 = vld [vmem:[%s7267_s1 + $0xc0] sm:$0xff]  }
  0x3e   : > { %2579 = vmatprep.subr.bf16.mxu0 %v5788_v1  ;;  %5262 = vmatprep.subr.bf16.mxu1 %v5788_v1 }
  0x41   : > { %2580 = vmatpush2.bf16.msra.mxu0 %v5304_v16  ;;  %5278 = vmatpush2.bf16.msra.mxu1 %v5304_v16  ;;  %v5454_v16 = vld [vmem:[%s7267_s1 + $0x158] sm:$0xff]  }
  0x42   : > { %2581 = vmatprep.subr.bf16.mxu0 %v5788_v1  ;;  %5263 = vmatprep.subr.bf16.mxu1 %v5788_v1 }
  0x45   : > { %2582 = vmatpush2.bf16.msra.mxu0 %v5305_v17  ;;  %5279 = vmatpush2.bf16.msra.mxu1 %v5305_v17  ;;  %v5379_v17 = vld [vmem:[%s5846_s28 + $0x8] ss:$36 sps:$4 sm:$0xff]  }
  0x46   : > { %2583 = vmatprep.subr.bf16.mxu0 %v5788_v1  ;;  %5264 = vmatprep.subr.bf16.mxu1 %v5788_v1 }
  0x49   : > { %2584 = vmatpush2.bf16.msra.mxu0 %v5306_v18  ;;  %5280 = vmatpush2.bf16.msra.mxu1 %v5306_v18  ;;  %v5382_v18 = vld [vmem:[%s5846_s28 + $0x240] ss:$36 sps:$4 sm:$0xff]  }
  0x4a   : > { %2842 = vmatprep.subr.bf16.mxu1 %v5788_v1  ;;  %3131 = vmatprep.subr.bf16.mxu0 %v5788_v1 }
  0x4c   : > { %2586 = vmatmul.mubr.bf16.vlgmr.msra.gmra.mxu0 %v5307_v19  ;;  %2778 = vmatmul.mubr.bf16.vlgmr.msra.gmra.mxu1 %v5310_v20  ;;  %v5383_v19 = vld [vmem:[%s7267_s1 + $0x1b8] sm:$0xff]   ;;  %v5384_v20 = vld [vmem:[%s5846_s28 + $0x28c] ss:$36 sps:$4 sm:$0xff]  }
  0x4d   : > { %2843 = vmatpush1.bf16.msra.mxu1 %v5313_v21  ;;  %3132 = vmatpush1.bf16.msra.mxu0 %v5314_v22  ;;  %v5386_v21 = vld [vmem:[%s5846_s28 + $0x54] ss:$36 sps:$4 sm:$0xff]  }
  0x4e   : > { %2844 = vmatprep.subr.bf16.mxu1 %v5788_v1  ;;  %2593 = vmatprep.mubr.bf16.mxu0 %v5316_v23  ;;  %v5462_v22 = vld [vmem:[%s7267_s1 + $0x150] sm:$0xff]  }
  0x4f   : > { %2785 = vmatprep.mubr.bf16.mxu1 %v5318_v24  ;;  %3133 = vmatprep.subr.bf16.mxu0 %v5788_v1  ;;  %v5397_v23 = vld [vmem:[%s7267_s1 + $0x1b0] sm:$0xff]   ;;  %v5388_v24 = vld [vmem:[%s5846_s28 + $0x288] ss:$36 sps:$4 sm:$0xff]  }
  0x51   : > { %2845 = vmatpush1.bf16.msra.mxu1 %v5315_v25  ;;  %3134 = vmatpush1.bf16.msra.mxu0 %v5324_v26  ;;  %v5389_v25 = vld [vmem:[%s5846_s28 + $0x50] ss:$36 sps:$4 sm:$0xff]  }
  0x52   : > { %2846 = vmatprep.subr.bf16.mxu1 %v5788_v1  ;;  %3135 = vmatprep.subr.bf16.mxu0 %v5788_v1  ;;  %v5391_v26 = vld [vmem:[%s5846_s28 + $0x2d4] ss:$36 sps:$4 sm:$0xff]  }
  0x54   : > { %2594 = vmatmul.mubr.bf16.gmra.mxu0 %v5320_v27  ;;  %2786 = vmatmul.mubr.bf16.gmra.mxu1 %v5321_v28  ;;  %v5393_v27 = vld [vmem:[%s5846_s28 + $0x9c] ss:$36 sps:$4 sm:$0xff]   ;;  %v5412_v28 = vld [vmem:[%s7267_s1 + $0x1a8] sm:$0xff]  }
  0x55   : > { %2847 = vmatpush1.bf16.msra.mxu1 %v5322_v29  ;;  %2601 = vmatprep.mubr.bf16.mxu0 %v5325_v30  ;;  %v5476_v29 = vld [vmem:[%s7267_s1 + $0x148] sm:$0xff]   ;;  %v5426_v30 = vld [vmem:[%s7267_s1 + $0x1a0] sm:$0xff]  }
  0x56   : > { %2848 = vmatprep.subr.bf16.mxu1 %v5788_v1  ;;  %2793 = vmatprep.mubr.bf16.mxu1 %v5327_v31  ;;  %v5484_v31 = vld [vmem:[%s7267_s1 + $0x140] sm:$0xff]  }
  0x57   : > { %3136 = vmatpush1.bf16.msra.mxu0 %v5340_v32  ;;  %v6092_v32 = vld [vmem:[%s7267_s1 + $0x238] sm:$0xff]  }
  0x58   : > { %3137 = vmatprep.subr.bf16.mxu0 %v5788_v1 }
  0x59   : > { %2849 = vmatpush1.bf16.msra.mxu1 %v5323_v33  ;;  %v5395_v33 = vld [vmem:[%s5846_s28 + $0x2d0] ss:$36 sps:$4 sm:$0xff]  }
  0x5a   : > { %2850 = vmatprep.subr.bf16.mxu1 %v5788_v1 }
  0x5b   : > { %3138 = vmatpush1.bf16.msra.mxu0 %v5350_v36  ;;  %v5401_v36 = vld [vmem:[%s5846_s28 + $0xe4] ss:$36 sps:$4 sm:$0xff]  }
  0x5c   : > { %2602 = vmatmul.mubr.bf16.gmra.mxu0 %v5329_v34  ;;  %2794 = vmatmul.mubr.bf16.gmra.mxu1 %v5330_v35  ;;  %v5396_v34 = vld [vmem:[%s5846_s28 + $0x98] ss:$36 sps:$4 sm:$0xff]  }
  0x5d   : > { %2851 = vmatpush1.bf16.msra.mxu1 %v5331_v37  ;;  %2609 = vmatprep.mubr.bf16.mxu0 %v5333_v38  ;;  %v5399_v35 = vld [vmem:[%s5846_s28 + $0x31c] ss:$36 sps:$4 sm:$0xff]   ;;  %v5455_v38 = vld [vmem:[%s7267_s1 + $0x190] sm:$0xff]  }
  0x5e   : > { %2852 = vmatprep.subr.bf16.mxu1 %v5788_v1  ;;  %2801 = vmatprep.mubr.bf16.mxu1 %v5335_v39  ;;  %v5440_v37 = vld [vmem:[%s7267_s1 + $0x198] sm:$0xff]  }
  0x5f   : > { %3139 = vmatprep.subr.bf16.mxu0 %v5788_v1  ;;  %v5403_v39 = vld [vmem:[%s5846_s28 + $0x318] ss:$36 sps:$4 sm:$0xff]  }
  0x60   : > { %3140 = vmatpush1.bf16.msra.mxu0 %v5366_v40  ;;  %v5404_v40 = vld [vmem:[%s5846_s28 + $0xe0] ss:$36 sps:$4 sm:$0xff]  }
  0x61   : > { %2853 = vmatpush1.bf16.msra.mxu1 %v5332_v41  ;;  %3141 = vmatprep.subr.bf16.mxu0 %v5788_v1  ;;  %v5405_v41 = vld [vmem:[%s5846_s28 + $0x364] ss:$36 sps:$4 sm:$0xff]  }
  0x62   : > { %2854 = vmatprep.subr.bf16.mxu1 %v5788_v1 }
  0x64   : > { %2610 = vmatmul.mubr.bf16.gmra.mxu0 %v5337_v42  ;;  %2802 = vmatmul.mubr.bf16.gmra.mxu1 %v5338_v43  ;;  %v5407_v42 = vld [vmem:[%s5846_s28 + $0x12c] ss:$36 sps:$4 sm:$0xff]  }
  0x65   : > { %2855 = vmatpush1.bf16.msra.mxu1 %v5339_v44  ;;  %2617 = vmatprep.mubr.bf16.mxu0 %v5342_v45  ;;  %v5469_v43 = vld [vmem:[%s7267_s1 + $0x188] sm:$0xff]   ;;  %v5483_v44 = vld [vmem:[%s7267_s1 + $0x180] sm:$0xff]  }
  0x66   : > { %2856 = vmatprep.subr.bf16.mxu1 %v5788_v1  ;;  %2809 = vmatprep.mubr.bf16.mxu1 %v5344_v46  ;;  %v5409_v45 = vld [vmem:[%s5846_s28 + $0x360] ss:$36 sps:$4 sm:$0xff]   ;;  %v5410_v46 = vld [vmem:[%s5846_s28 + $0x128] ss:$36 sps:$4 sm:$0xff]  }
  0x67   : > { %3142 = vmatpush1.bf16.msra.mxu0 %v5376_v47  ;;  %v5413_v47 = vld [vmem:[%s5846_s28 + $0x3ac] ss:$36 sps:$4 sm:$0xff]  }
  0x68   : > { %3143 = vmatprep.subr.bf16.mxu0 %v5788_v1 }
  0x69   : > { %2857 = vmatpush1.bf16.msra.mxu1 %v5341_v48  ;;  %v5415_v48 = vld [vmem:[%s5846_s28 + $0x174] ss:$36 sps:$4 sm:$0xff]  }
  0x6a   : > { %2858 = vmatprep.subr.bf16.mxu1 %v5788_v1 }
  0x6b   : > { %3144 = vmatpush1.bf16.msra.mxu0 %v5390_v51  ;;  %v5417_v51 = vld [vmem:[%s5846_s28 + $0x3a8] ss:$36 sps:$4 sm:$0xff]  }
  0x6c   : > { %2618 = vmatmul.mubr.bf16.gmra.mxu0 %v5346_v49  ;;  %2810 = vmatmul.mubr.bf16.gmra.mxu1 %v5347_v50  ;;  %v5498_v49 = vld [vmem:[%s7267_s1 + $0x1f8] sm:$0xff]   ;;  %v5511_v50 = vld [vmem:[%s7267_s1 + $0x1f0] sm:$0xff]  }
  0x6d   : > { %2859 = vmatpush2.bf16.msra.mxu1 %v5348_v52  ;;  %2625 = vmatprep.mubr.bf16.mxu0 %v5351_v53  ;;  %v5418_v52 = vld [vmem:[%s5846_s28 + $0x170] ss:$36 sps:$4 sm:$0xff]  }
  0x6e   : > { %2860 = vmatprep.subr.bf16.mxu1 %v5788_v1  ;;  %2817 = vmatprep.mubr.bf16.mxu1 %v5353_v54  ;;  %v5420_v53 = vld [vmem:[%s5846_s28 + $0x3f4] ss:$36 sps:$4 sm:$0xff]   ;;  %v5422_v54 = vld [vmem:[%s5846_s28 + $0x1bc] ss:$36 sps:$4 sm:$0xff]  }
  0x6f   : > { %3145 = vmatprep.subr.bf16.mxu0 %v5788_v1 }
  0x70   : > { %3146 = vmatpush1.bf16.msra.mxu0 %v5398_v55  ;;  %v5525_v55 = vld [vmem:[%s7267_s1 + $0x1e8] sm:$0xff]  }
  0x71   : > { %2861 = vmatpush2.bf16.msra.mxu1 %v5349_v56  ;;  %3147 = vmatprep.subr.bf16.mxu0 %v5788_v1  ;;  %v5424_v56 = vld [vmem:[%s5846_s28 + $0x3f0] ss:$36 sps:$4 sm:$0xff]  }
  0x72   : > { %2862 = vmatprep.subr.bf16.mxu1 %v5788_v1 }
  0x74   : > { %2626 = vmatmul.mubr.bf16.gmra.mxu0 %v5355_v57  ;;  %2818 = vmatmul.mubr.bf16.gmra.mxu1 %v5356_v58  ;;  %v5425_v57 = vld [vmem:[%s5846_s28 + $0x1b8] ss:$36 sps:$4 sm:$0xff]  }
  0x75   : > { %2863 = vmatpush2.bf16.msra.mxu1 %v5357_v59  ;;  %2633 = vmatprep.mubr.bf16.mxu0 %v5359_v60  ;;  %v5427_v58 = vld [vmem:[%s5846_s28 + $0x43c] ss:$36 sps:$4 sm:$0xff]   ;;  %v5429_v59 = vld [vmem:[%s5846_s28 + $0x204] ss:$36 sps:$4 sm:$0xff]  }
  0x76   : > { %2864 = vmatprep.subr.bf16.mxu1 %v5788_v1  ;;  %2825 = vmatprep.mubr.bf16.mxu1 %v5361_v61  ;;  %v5538_v60 = vld [vmem:[%s7267_s1 + $0x1e0] sm:$0xff]   ;;  %v5431_v61 = vld [vmem:[%s5846_s28 + $0x438] ss:$36 sps:$4 sm:$0xff]  }
  0x77   : > { %3148 = vmatpush2.bf16.msra.mxu0 %v5411_v62  ;;  %v5432_v62 = vld [vmem:[%s5846_s28 + $0x200] ss:$36 sps:$4 sm:$0xff]  }
  0x78   : > { %3149 = vmatprep.subr.bf16.mxu0 %v5788_v1 }
  0x79   : > { %2865 = vmatpush2.bf16.msra.mxu1 %v5358_v63  ;;  %v5434_v63 = vld [vmem:[%s5846_s28 + $0x484] ss:$36 sps:$4 sm:$0xff]  }
  0x7a   : > { %2866 = vmatprep.subr.bf16.mxu1 %v5788_v1 }
  0x7b   : > { %3150 = vmatpush2.bf16.msra.mxu0 %v5419_v3  ;;  %v5439_v3 = vld [vmem:[%s5846_s28 + $0x248] ss:$36 sps:$4 sm:$0xff]  }
  0x7c   : > { %2634 = vmatmul.mubr.bf16.gmra.mxu0 %v5363_v0  ;;  %2826 = vmatmul.mubr.bf16.gmra.mxu1 %v5364_v2  ;;  %v5436_v0 = vld [vmem:[%s5846_s28 + $0x24c] ss:$36 sps:$4 sm:$0xff]   ;;  %v5438_v2 = vld [vmem:[%s5846_s28 + $0x480] ss:$36 sps:$4 sm:$0xff]  }
  0x7d   : > { %2867 = vmatpush2.bf16.msra.mxu1 %v5365_v4  ;;  %2641 = vmatprep.mubr.bf16.mxu0 %v5368_v5  ;;  %v5442_v4 = vld [vmem:[%s5846_s28 + $0x4cc] ss:$36 sps:$4 sm:$0xff]   ;;  %v5444_v5 = vld [vmem:[%s5846_s28 + $0x294] ss:$36 sps:$4 sm:$0xff]  }
  0x7e   : > { %2868 = vmatprep.subr.bf16.mxu1 %v5788_v1  ;;  %2833 = vmatprep.mubr.bf16.mxu1 %v5370_v6  ;;  %v5552_v6 = vld [vmem:[%s7267_s1 + $0x1d8] sm:$0xff]  }
  0x7f   : > { %3151 = vmatprep.subr.bf16.mxu0 %v5788_v1 }
  0x80   : > { %3152 = vmatpush2.bf16.msra.mxu0 %v5433_v7  ;;  %v5446_v7 = vld [vmem:[%s5846_s28 + $0x4c8] ss:$36 sps:$4 sm:$0xff]  }
  0x81   : > { %2869 = vmatpush2.bf16.msra.mxu1 %v5367_v8  ;;  %3153 = vmatprep.subr.bf16.mxu0 %v5788_v1  ;;  %v5447_v8 = vld [vmem:[%s5846_s28 + $0x290] ss:$36 sps:$4 sm:$0xff]  }
  0x82   : > { %2870 = vmatprep.subr.bf16.mxu1 %v5788_v1 }
  0x84   : > { %2642 = vmatmul.mubr.bf16.gmra.mxu0 %v5372_v9  ;;  %2834 = vmatmul.mubr.bf16.gmra.mxu1 %v5373_v10  ;;  %v5448_v9 = vld [vmem:[%s5846_s28 + $0x514] ss:$36 sps:$4 sm:$0xff]   ;;  %v5450_v10 = vld [vmem:[%s5846_s28 + $0x2dc] ss:$36 sps:$4 sm:$0xff]  }
  0x85   : > { %2871 = vmatpush2.bf16.msra.mxu1 %v5374_v11  ;;  %2649 = vmatprep.mubr.bf16.mxu0 %v5377_v12  ;;  %v5452_v11 = vld [vmem:[%s5846_s28 + $0x510] ss:$36 sps:$4 sm:$0xff]   ;;  %v5453_v12 = vld [vmem:[%s5846_s28 + $0x2d8] ss:$36 sps:$4 sm:$0xff]  }
  0x86   : > { %2872 = vmatprep.subr.bf16.mxu1 %v5788_v1  ;;  %2874 = vmatprep.mubr.bf16.mxu1 %v5381_v13  ;;  %v5456_v13 = vld [vmem:[%s5846_s28 + $0x55c] ss:$36 sps:$4 sm:$0xff]  }
  0x87   : > { %3154 = vmatpush2.bf16.msra.mxu0 %v5441_v14  ;;  %v5458_v14 = vld [vmem:[%s5846_s28 + $0x324] ss:$36 sps:$4 sm:$0xff]  }
  0x88   : > { %3155 = vmatprep.subr.bf16.mxu0 %v5788_v1 }
  0x89   : > { %2873 = vmatpush2.bf16.msra.mxu1 %v5375_v15  ;;  %v5565_v15 = vld [vmem:[%s7267_s1 + $0x1d0] sm:$0xff]  }
  0x8a   : > { %3420 = vmatprep.subr.bf16.mxu1 %v5788_v1 }
  0x8b   : > { %3156 = vmatpush2.bf16.msra.mxu0 %v5454_v16  ;;  %v5460_v16 = vld [vmem:[%s5846_s28 + $0x558] ss:$36 sps:$4 sm:$0xff]  }
  0x8c   : > { %2650 = vmatmul.mubr.bf16.gmra.mxu0 %v5382_v18  ;;  %2875 = vmatmul.mubr.bf16.vlgmr.msra.gmra.mxu1 %v5379_v17  ;;  %v5461_v17 = vld [vmem:[%s5846_s28 + $0x320] ss:$36 sps:$4 sm:$0xff]  }
  0x8d   : > { %3421 = vmatpush1.bf16.msra.mxu1 %v5383_v19  ;;  %2657 = vmatprep.mubr.bf16.mxu0 %v5384_v20  ;;  %v5463_v18 = vld [vmem:[%s5846_s28 + $0x5a4] ss:$36 sps:$4 sm:$0xff]   ;;  %v5465_v19 = vld [vmem:[%s5846_s28 + $0x36c] ss:$36 sps:$4 sm:$0xff]  }
  0x8e   : > { %2882 = vmatprep.mubr.bf16.mxu1 %v5386_v21  ;;  %3422 = vmatprep.subr.bf16.mxu1 %v5788_v1  ;;  %v5467_v20 = vld [vmem:[%s5846_s28 + $0x5a0] ss:$36 sps:$4 sm:$0xff]   ;;  %v5468_v21 = vld [vmem:[%s5846_s28 + $0x368] ss:$36 sps:$4 sm:$0xff]  }
  0x8f   : > { %3157 = vmatprep.subr.bf16.mxu0 %v5788_v1 }
  0x90   : > { %3158 = vmatpush2.bf16.msra.mxu0 %v5462_v22  ;;  %v5470_v22 = vld [vmem:[%s5846_s28 + $0x5ec] ss:$36 sps:$4 sm:$0xff]  }
  0x91   : > { %3423 = vmatpush1.bf16.msra.mxu1 %v5397_v23  ;;  %3159 = vmatprep.subr.bf16.mxu0 %v5788_v1  ;;  %v5472_v23 = vld [vmem:[%s5846_s28 + $0x3b4] ss:$36 sps:$4 sm:$0xff]  }
  0x92   : > { %3424 = vmatprep.subr.bf16.mxu1 %v5788_v1 }
  0x94   : > { %2658 = vmatmul.mubr.bf16.gmra.mxu0 %v5388_v24  ;;  %2883 = vmatmul.mubr.bf16.gmra.mxu1 %v5389_v25  ;;  %v5579_v24 = vld [vmem:[%s7267_s1 + $0x1c8] sm:$0xff]  }
  0x95   : > { %2665 = vmatprep.mubr.bf16.mxu0 %v5391_v26  ;;  %2890 = vmatprep.mubr.bf16.mxu1 %v5393_v27  ;;  %v5474_v25 = vld [vmem:[%s5846_s28 + $0x5e8] ss:$36 sps:$4 sm:$0xff]   ;;  %v5475_v26 = vld [vmem:[%s5846_s28 + $0x3b0] ss:$36 sps:$4 sm:$0xff]  }
  0x96   : > { %3425 = vmatpush1.bf16.msra.mxu1 %v5412_v28  ;;  %3160 = vmatpush2.bf16.msra.mxu0 %v5476_v29  ;;  %v5477_v27 = vld [vmem:[%s5846_s28 + $0x634] ss:$36 sps:$4 sm:$0xff]   ;;  %v5479_v28 = vld [vmem:[%s5846_s28 + $0x3fc] ss:$36 sps:$4 sm:$0xff]  }
  0x97   : > { %3426 = vmatprep.subr.bf16.mxu1 %v5788_v1  ;;  %3161 = vmatprep.subr.bf16.mxu0 %v5788_v1  ;;  %v5481_v29 = vld [vmem:[%s5846_s28 + $0x630] ss:$36 sps:$4 sm:$0xff]  }
  0x9a   : > { %3427 = vmatpush1.bf16.msra.mxu1 %v5426_v30  ;;  %3162 = vmatpush2.bf16.msra.mxu0 %v5484_v31  ;;  %v5482_v30 = vld [vmem:[%s5846_s28 + $0x3f8] ss:$36 sps:$4 sm:$0xff]  }
  0x9b   : > { %3428 = vmatprep.subr.bf16.mxu1 %v5788_v1  ;;  %5169 = vmatprep.subr.bf16.mxu0 %v6092_v32  ;;  %v5485_v31 = vld [vmem:[%s5846_s28 + $0x67c] ss:$36 sps:$4 sm:$0xff]  }
  0x9c   : > { %2666 = vmatmul.mubr.bf16.gmra.mxu0 %v5395_v33  ;;  %2891 = vmatmul.mubr.bf16.gmra.mxu1 %v5396_v34  ;;  %v5487_v33 = vld [vmem:[%s5846_s28 + $0x444] ss:$36 sps:$4 sm:$0xff]   ;;  %v5489_v34 = vld [vmem:[%s5846_s28 + $0x678] ss:$36 sps:$4 sm:$0xff]  }
  0x9d   : > { %2673 = vmatprep.mubr.bf16.mxu0 %v5399_v35  ;;  %2898 = vmatprep.mubr.bf16.mxu1 %v5401_v36  ;;  %v5490_v35 = vld [vmem:[%s5846_s28 + $0x440] ss:$36 sps:$4 sm:$0xff]   ;;  %v5491_v36 = vld [vmem:[%s5846_s28 + $0x48c] ss:$36 sps:$4 sm:$0xff]  }
  0x9e   : > { %3429 = vmatpush1.bf16.msra.mxu1 %v5440_v37  ;;  %v5495_v37 = vld [vmem:[%s5846_s28 + $0x14] ss:$36 sps:$4 sm:$0xff]  }
  0x9f   : > { %3430 = vmatprep.subr.bf16.mxu1 %v5788_v1 }
  0xa2   : > { %3431 = vmatpush1.bf16.msra.mxu1 %v5455_v38  ;;  %v5493_v38 = vld [vmem:[%s5846_s28 + $0x10] ss:$36 sps:$4 sm:$0xff]  }
  0xa3   : > { %3432 = vmatprep.subr.bf16.mxu1 %v5788_v1 }
  0xa4   : > { %2674 = vmatmul.mubr.bf16.gmra.mxu0 %v5403_v39  ;;  %2899 = vmatmul.mubr.bf16.gmra.mxu1 %v5404_v40  ;;  %v5496_v39 = vld [vmem:[%s5846_s28 + $0x488] ss:$36 sps:$4 sm:$0xff]   ;;  %v5499_v40 = vld [vmem:[%s5846_s28 + $0x4d4] ss:$36 sps:$4 sm:$0xff]  }
  0xa5   : > { %2681 = vmatprep.mubr.bf16.mxu0 %v5405_v41  ;;  %2906 = vmatprep.mubr.bf16.mxu1 %v5407_v42  ;;  %v5501_v41 = vld [vmem:[%s5846_s28 + $0x5c] ss:$36 sps:$4 sm:$0xff]   ;;  %v5524_v42 = vld [vmem:[%s7267_s1 + $0x230] sm:$0xff]  }
  0xa6   : > { %3433 = vmatpush1.bf16.msra.mxu1 %v5469_v43 }
  0xa7   : > { %3434 = vmatprep.subr.bf16.mxu1 %v5788_v1 }
  0xaa   : > { %3435 = vmatpush1.bf16.msra.mxu1 %v5483_v44 }
  0xab   : > { %3436 = vmatprep.subr.bf16.mxu1 %v5788_v1 }
  0xac   : > { %2682 = vmatmul.mubr.bf16.gmra.mxu0 %v5409_v45  ;;  %2907 = vmatmul.mubr.bf16.gmra.mxu1 %v5410_v46 }
  0xad   : > { %2689 = vmatprep.mubr.bf16.mxu0 %v5413_v47  ;;  %2914 = vmatprep.mubr.bf16.mxu1 %v5415_v48  ;;  %v5551_v47 = vld [vmem:[%s7267_s1 + $0x228] sm:$0xff]  }
  0xae   : > { %3437 = vmatpush2.bf16.msra.mxu1 %v5498_v49 }
  0xaf   : > { %3438 = vmatprep.subr.bf16.mxu1 %v5788_v1 }
  0xb2   : > { %3439 = vmatpush2.bf16.msra.mxu1 %v5511_v50  ;;  %v5503_v50 = vld [vmem:[%s5846_s28 + $0x4d0] ss:$36 sps:$4 sm:$0xff]  }
  0xb3   : > { %3440 = vmatprep.subr.bf16.mxu1 %v5788_v1 }
  0xb4   : > { %2690 = vmatmul.mubr.bf16.gmra.mxu0 %v5417_v51  ;;  %2915 = vmatmul.mubr.bf16.gmra.mxu1 %v5418_v52  ;;  %v5504_v51 = vld [vmem:[%s5846_s28 + $0x58] ss:$36 sps:$4 sm:$0xff]  }
  0xb5   : > { %2697 = vmatprep.mubr.bf16.mxu0 %v5420_v53  ;;  %2922 = vmatprep.mubr.bf16.mxu1 %v5422_v54  ;;  %v5505_v52 = vld [vmem:[%s5846_s28 + $0x51c] ss:$36 sps:$4 sm:$0xff]   ;;  %v5507_v53 = vld [vmem:[%s5846_s28 + $0xa4] ss:$36 sps:$4 sm:$0xff]  }
  0xb6   : > { %3441 = vmatpush2.bf16.msra.mxu1 %v5525_v55  ;;  %v5578_v55 = vld [vmem:[%s7267_s1 + $0x220] sm:$0xff]  }
  0xb7   : > { %3442 = vmatprep.subr.bf16.mxu1 %v5788_v1 }
  0xba   : > { %3443 = vmatpush2.bf16.msra.mxu1 %v5538_v60  ;;  %v5605_v60 = vld [vmem:[%s7267_s1 + $0x218] sm:$0xff]  }
  0xbb   : > { %3444 = vmatprep.subr.bf16.mxu1 %v5788_v1 }
  0xbc   : > { %2698 = vmatmul.mubr.bf16.gmra.mxu0 %v5424_v56  ;;  %2923 = vmatmul.mubr.bf16.gmra.mxu1 %v5425_v57 }
  0xbd   : > { %2705 = vmatprep.mubr.bf16.mxu0 %v5427_v58  ;;  %2930 = vmatprep.mubr.bf16.mxu1 %v5429_v59 }
  0xbe   : > { %3445 = vmatpush2.bf16.msra.mxu1 %v5552_v6 }
  0xbf   : > { %3446 = vmatprep.subr.bf16.mxu1 %v5788_v1 }
  0xc2   : > { %3447 = vmatpush2.bf16.msra.mxu1 %v5565_v15  ;;  %v5523_v15 = vld [vmem:[%s5846_s28 + $0x134] ss:$36 sps:$4 sm:$0xff]  }
  0xc3   : > { %3448 = vmatprep.subr.bf16.mxu1 %v5788_v1 }
  0xc4   : > { %2706 = vmatmul.mubr.bf16.gmra.mxu0 %v5431_v61  ;;  %2931 = vmatmul.mubr.bf16.gmra.mxu1 %v5432_v62 }
  0xc5   : > { %2713 = vmatprep.mubr.bf16.mxu0 %v5434_v63  ;;  %2938 = vmatprep.mubr.bf16.mxu1 %v5436_v0  ;;  %v5509_v63 = vld [vmem:[%s5846_s28 + $0x518] ss:$36 sps:$4 sm:$0xff]   ;;  %v5510_v0 = vld [vmem:[%s5846_s28 + $0xa0] ss:$36 sps:$4 sm:$0xff]  }
  0xc6   : > { %3449 = vmatpush2.bf16.msra.mxu1 %v5579_v24  ;;  %v5518_v24 = vld [vmem:[%s5846_s28 + $0x5a8] ss:$36 sps:$4 sm:$0xff]  }
  0xc7   : > { %3450 = vmatprep.subr.bf16.mxu1 %v5788_v1  ;;  %v5592_v1 = vld [vmem:[%s7267_s1 + $0x1c0] sm:$0xff]  }
  0xca   : > { %3451 = vmatpush2.bf16.msra.mxu1 %v5592_v1 }
  0xcc   : > { %2714 = vmatmul.mubr.bf16.gmra.mxu0 %v5438_v2  ;;  %2939 = vmatmul.mubr.bf16.gmra.mxu1 %v5439_v3  ;;  %v5512_v2 = vld [vmem:[%s5846_s28 + $0x564] ss:$36 sps:$4 sm:$0xff]   ;;  %v5514_v3 = vld [vmem:[%s5846_s28 + $0xec] ss:$36 sps:$4 sm:$0xff]  }
  0xcd   : > { %2721 = vmatprep.mubr.bf16.mxu0 %v5442_v4  ;;  %2946 = vmatprep.mubr.bf16.mxu1 %v5444_v5 }
  0xd4   : > { %2722 = vmatmul.mubr.bf16.gmra.mxu0 %v5446_v7  ;;  %2947 = vmatmul.mubr.bf16.gmra.mxu1 %v5447_v8 }
  0xd5   : > { %2729 = vmatprep.mubr.bf16.mxu0 %v5448_v9  ;;  %2954 = vmatprep.mubr.bf16.mxu1 %v5450_v10 }
  0xdc   : > { %2730 = vmatmul.mubr.bf16.gmra.mxu0 %v5452_v11  ;;  %2955 = vmatmul.mubr.bf16.gmra.mxu1 %v5453_v12  ;;  %v5516_v12 = vld [vmem:[%s5846_s28 + $0x560] ss:$36 sps:$4 sm:$0xff]  }
  0xdd   : > { %2737 = vmatprep.mubr.bf16.mxu0 %v5456_v13  ;;  %2962 = vmatprep.mubr.bf16.mxu1 %v5458_v14  ;;  %v5517_v13 = vld [vmem:[%s5846_s28 + $0xe8] ss:$36 sps:$4 sm:$0xff]  }
  0xde   : > { %v5520_v14 = vld [vmem:[%s5846_s28 + $0x5ac] ss:$36 sps:$4 sm:$0xff]  }
  0xe4   : > { %2738 = vmatmul.mubr.bf16.gmra.mxu0 %v5460_v16  ;;  %2963 = vmatmul.mubr.bf16.gmra.mxu1 %v5461_v17 }
  0xe5   : > { %2745 = vmatprep.mubr.bf16.mxu0 %v5463_v18  ;;  %2970 = vmatprep.mubr.bf16.mxu1 %v5465_v19 }
  0xec   : > { %2746 = vmatmul.mubr.bf16.gmra.mxu0 %v5467_v20  ;;  %2971 = vmatmul.mubr.bf16.gmra.mxu1 %v5468_v21 }
  0xed   : > { %2753 = vmatprep.mubr.bf16.mxu0 %v5470_v22  ;;  %2978 = vmatprep.mubr.bf16.mxu1 %v5472_v23 }
  0xf4   : > { %2754 = vmatmul.mubr.bf16.gmra.mxu0 %v5474_v25  ;;  %2979 = vmatmul.mubr.bf16.gmra.mxu1 %v5475_v26  ;;  %v5521_v25 = vld [vmem:[%s5846_s28 + $0x130] ss:$36 sps:$4 sm:$0xff]  }
  0xf5   : > { %2761 = vmatprep.mubr.bf16.mxu0 %v5477_v27  ;;  %2986 = vmatprep.mubr.bf16.mxu1 %v5479_v28  ;;  %v5528_v26 = vld [vmem:[%s5846_s28 + $0x5f4] ss:$36 sps:$4 sm:$0xff]   ;;  %v5531_v27 = vld [vmem:[%s5846_s28 + $0x17c] ss:$36 sps:$4 sm:$0xff]  }
  0xfc   : > { %2762 = vmatmul.mubr.bf16.gmra.mxu0 %v5481_v29  ;;  %2987 = vmatmul.mubr.bf16.gmra.mxu1 %v5482_v30 }
  0xfd   : > { %2769 = vmatprep.mubr.bf16.mxu0 %v5485_v31  ;;  %2994 = vmatprep.mubr.bf16.mxu1 %v5487_v33  ;;  %v5630_v33 = vld [vmem:[%s7267_s1 + $0x210] sm:$0xff]  }
 0x104   : > { %2770 = vmatmul.mubr.bf16.gmra.mxu0 %v5489_v34  ;;  %2995 = vmatmul.mubr.bf16.gmra.mxu1 %v5490_v35 }
 0x105   : > { %3002 = vmatprep.mubr.bf16.mxu1 %v5491_v36  ;;  %3163 = vmatprep.mubr.bf16.mxu0 %v5495_v37  ;;  %v5526_v37 = vld [vmem:[%s5846_s28 + $0x5f0] ss:$36 sps:$4 sm:$0xff]  }
 0x10c   : > { %v6208_v43 = vpop.f32.mrf.mxu0  ;;  %v6210_v44 = vpop.f32.mrf.mxu1  ;;  %3003 = vmatmul.mubr.bf16.gmra.mxu1 %v5496_v39  ;;  %3164 = vmatmul.mubr.bf16.vlgmr.msra.gmra.mxu0 %v5493_v38  ;;  %v5529_v38 = vld [vmem:[%s5846_s28 + $0x178] ss:$36 sps:$4 sm:$0xff]  }
 0x10d   : > { %5170 = vmatpush3.bf16.msra.mxu0 %v6092_v32  ;;  %3010 = vmatprep.mubr.bf16.mxu1 %v5499_v40  ;;  %v5534_v39 = vld [vmem:[%s5846_s28 + $0x63c] ss:$36 sps:$4 sm:$0xff]   ;;  %v5537_v40 = vld [vmem:[%s5846_s28 + $0x1c4] ss:$36 sps:$4 sm:$0xff]  }
 0x10e   : > { %v2589_v45 = vpop.f32.mrf.mxu0  ;;  %v2781_v46 = vpop.f32.mrf.mxu1  ;;  %3171 = vmatprep.mubr.bf16.mxu0 %v5501_v41  ;;  %5171 = vmatprep.subr.bf16.mxu0 %v5524_v42 }
 0x110   : > { %v6216_v48 = vpop.f32.mrf.mxu0  ;;  %v6218_v49 = vpop.f32.mrf.mxu1 }
 0x111   : > { %5172 = vmatpush3.bf16.msra.mxu0 %v5524_v42 }
 0x112   : > { %v2592_v54 = vpop.f32.mrf.mxu0  ;;  %v2784_v32 = vpop.f32.mrf.mxu1  ;;  %5173 = vmatprep.subr.bf16.mxu0 %v5551_v47 }
 0x113   : > { %v5535_v54 = vld [vmem:[%s5846_s28 + $0x1c0] ss:$36 sps:$4 sm:$0xff]  }
 0x114   : > { %v6227_v56 = vpop.f32.mrf.mxu0  ;;  %v6229_v57 = vpop.f32.mrf.mxu1  ;;  %3011 = vmatmul.mubr.bf16.gmra.mxu1 %v5503_v50  ;;  %3172 = vmatmul.mubr.bf16.gmra.mxu0 %v5504_v51  ;;  %v5541_v32 = vld [vmem:[%s5846_s28 + $0x684] ss:$36 sps:$4 sm:$0xff]  }
 0x115   : > { %3018 = vmatprep.mubr.bf16.mxu1 %v5505_v52  ;;  %3179 = vmatprep.mubr.bf16.mxu0 %v5507_v53  ;;  %v5532_v53 = vld [vmem:[%s5846_s28 + $0x638] ss:$36 sps:$4 sm:$0xff]  }
 0x116   : > { %v2597_v58 = vpop.f32.mrf.mxu0  ;;  %v2789_v59 = vpop.f32.mrf.mxu1  ;;  %5174 = vmatpush3.bf16.msra.mxu0 %v5551_v47 }
 0x117   : > { %5175 = vmatprep.subr.bf16.mxu0 %v5578_v55 }
 0x118   : > { %v6234_v61 = vpop.f32.mrf.mxu0  ;;  %v6236_v62 = vpop.f32.mrf.mxu1 }
 0x11a   : > { %v2600_v4 = vpop.f32.mrf.mxu0  ;;  %v2792_v5 = vpop.f32.mrf.mxu1  ;;  %5176 = vmatpush3.bf16.msra.mxu0 %v5578_v55  ;;  %v5544_v55 = vld [vmem:[%s5846_s28 + $0x20c] ss:$36 sps:$4 sm:$0xff]  }
 0x11b   : > { %5177 = vmatprep.subr.bf16.mxu0 %v5605_v60  ;;  %v5539_v5 = vld [vmem:[%s5846_s28 + $0x680] ss:$36 sps:$4 sm:$0xff]  }
 0x11c   : > { %v6242_v6 = vpop.f32.mrf.mxu0  ;;  %v6244_v7 = vpop.f32.mrf.mxu1  ;;  %3019 = vmatmul.mubr.bf16.gmra.mxu1 %v5509_v63  ;;  %3180 = vmatmul.mubr.bf16.gmra.mxu0 %v5510_v0 }
 0x11d   : > { %3026 = vmatprep.mubr.bf16.mxu1 %v5512_v2  ;;  %3187 = vmatprep.mubr.bf16.mxu0 %v5514_v3 }
 0x11e   : > { %v2605_v8 = vpop.f32.mrf.mxu0  ;;  %v2797_v9 = vpop.f32.mrf.mxu1  ;;  %5178 = vmatpush3.bf16.msra.mxu0 %v5605_v60 }
 0x11f   : > { %5179 = vmatprep.subr.bf16.mxu0 %v5630_v33  ;;  %v5542_v8 = vld [vmem:[%s5846_s28 + $0x208] ss:$36 sps:$4 sm:$0xff]  }
 0x120   : > { %v6246_v10 = vpop.f32.mrf.mxu0  ;;  %v6248_v11 = vpop.f32.mrf.mxu1  ;;  %v5547_v9 = vld [vmem:[%s5846_s28 + $0x6cc] ss:$36 sps:$4 sm:$0xff]  }
 0x122   : > { %v2608_v16 = vpop.f32.mrf.mxu0  ;;  %v2800_v17 = vpop.f32.mrf.mxu1  ;;  %5180 = vmatpush3.bf16.msra.mxu0 %v5630_v33 }
 0x124   : > { %v6254_v18 = vpop.f32.mrf.mxu0  ;;  %v6256_v19 = vpop.f32.mrf.mxu1  ;;  %3027 = vmatmul.mubr.bf16.gmra.mxu1 %v5516_v12  ;;  %3188 = vmatmul.mubr.bf16.gmra.mxu0 %v5517_v13  ;;  %v5550_v12 = vld [vmem:[%s5846_s28 + $0x254] ss:$36 sps:$4 sm:$0xff]  }
 0x125   : > { %3034 = vmatprep.mubr.bf16.mxu1 %v5520_v14  ;;  %3195 = vmatprep.mubr.bf16.mxu0 %v5523_v15 }
 0x126   : > { %v2613_v20 = vpop.f32.mrf.mxu0  ;;  %v2805_v21 = vpop.f32.mrf.mxu1 }
 0x127   : > { %v6312_v21 = vld [vmem:[%s7268_s2] ss:$0 sm:$0xff] }
 0x128   : > { %v6258_v22 = vpop.f32.mrf.mxu0  ;;  %v6260_v23 = vpop.f32.mrf.mxu1 }
 0x129   : > { %7270 = vst [vmem:[#allocation2_spill] sm:$0xff] %v6260_v23  ;;  %v5642_v23 = vld [vmem:[%s5846_s28 + $0x1cc] ss:$36 sps:$4 sm:$0xff]  }
 0x12a   : > { %v2616_v28 = vpop.f32.mrf.mxu0  ;;  %v2808_v29 = vpop.f32.mrf.mxu1 }
 0x12b   : > { %v5555_v28 = vld [vmem:[%s5846_s28 + $0x714] ss:$36 sps:$4 sm:$0xff]   ;;  %v5558_v29 = vld [vmem:[%s5846_s28 + $0x29c] ss:$36 sps:$4 sm:$0xff]  }
 0x12c   : > { %v6266_v30 = vpop.f32.mrf.mxu0  ;;  %v6268_v31 = vpop.f32.mrf.mxu1  ;;  %3035 = vmatmul.mubr.bf16.gmra.mxu1 %v5518_v24  ;;  %3196 = vmatmul.mubr.bf16.gmra.mxu0 %v5521_v25 }
 0x12d   : > { %7271 = vst [vmem:[#allocation3_spill] sm:$0xff] %v6268_v31  ;;  %3042 = vmatprep.mubr.bf16.mxu1 %v5528_v26  ;;  %3203 = vmatprep.mubr.bf16.mxu0 %v5531_v27  ;;  %v5545_v26 = vld [vmem:[%s5846_s28 + $0x6c8] ss:$36 sps:$4 sm:$0xff]   ;;  %v5548_v27 = vld [vmem:[%s5846_s28 + $0x250] ss:$36 sps:$4 sm:$0xff]  }
 0x12e   : > { %v2621_v1 = vpop.f32.mrf.mxu0  ;;  %v2813_v34 = vpop.f32.mrf.mxu1  ;;  %v5636_v31 = vld [vmem:[%s5846_s28 + $0x184] ss:$36 sps:$4 sm:$0xff]  }
 0x12f   : > { %v2588_v34 = vadd.f32 %v6312_v21, %v6208_v43  ;;  %v2591_v43 = vadd.f32 %v6312_v21, %v6216_v48 }
 0x130   : > { %v6273_v35 = vpop.f32.mrf.mxu0  ;;  %v6275_v36 = vpop.f32.mrf.mxu1 }
 0x131   : > { %7272 = vst [vmem:[#allocation4_spill] sm:$0xff] %v6275_v36  ;;  %v5633_v36 = vld [vmem:[%s5846_s28 + $0x5fc] ss:$36 sps:$4 sm:$0xff]  }
 0x132   : > { %v2624_v41 = vpop.f32.mrf.mxu0  ;;  %v2816_v42 = vpop.f32.mrf.mxu1 }
 0x134   : > { %v6281_v45 = vpop.f32.mrf.mxu0  ;;  %v6283_v46 = vpop.f32.mrf.mxu1  ;;  %3043 = vmatmul.mubr.bf16.gmra.mxu1 %v5526_v37  ;;  %3204 = vmatmul.mubr.bf16.gmra.mxu0 %v5529_v38 }
 0x135   : > { %7273 = vst [vmem:[#allocation5_spill] sm:$0xff] %v6283_v46  ;;  %3050 = vmatprep.mubr.bf16.mxu1 %v5534_v39  ;;  %3211 = vmatprep.mubr.bf16.mxu0 %v5537_v40  ;;  %v5655_v40 = vld [vmem:[%s7267_s1 + $0x208] sm:$0xff]   ;;  %v5629_v46 = vld [vmem:[%s5846_s28 + $0x13c] ss:$36 sps:$4 sm:$0xff]  }
 0x136   : > { %v2629_v47 = vpop.f32.mrf.mxu0  ;;  %v2821_v50 = vpop.f32.mrf.mxu1  ;;  %5181 = vmatprep.subr.bf16.mxu0 %v5655_v40 }
 0x137   : > { %5182 = vmatpush3.bf16.msra.mxu0 %v5655_v40 }
 0x138   : > { %v6285_v51 = vpop.f32.mrf.mxu0  ;;  %v6287_v52 = vpop.f32.mrf.mxu1 }
 0x139   : > { %7274 = vst [vmem:[#allocation6_spill] sm:$0xff] %v6287_v52  ;;  %v5626_v52 = vld [vmem:[%s5846_s28 + $0x5b4] ss:$36 sps:$4 sm:$0xff]  }
 0x13a   : > { %v2632_v58 = vpop.f32.mrf.mxu0  ;;  %v2824_v59 = vpop.f32.mrf.mxu1 }
 0x13b   : > { %v5564_v58 = vld [vmem:[%s5846_s28 + $0x2e4] ss:$36 sps:$4 sm:$0xff]  }
 0x13c   : > { %v6293_v60 = vpop.f32.mrf.mxu0  ;;  %v6295_v63 = vpop.f32.mrf.mxu1  ;;  %3051 = vmatmul.mubr.bf16.gmra.mxu1 %v5532_v53  ;;  %3212 = vmatmul.mubr.bf16.gmra.mxu0 %v5535_v54  ;;  %v5553_v53 = vld [vmem:[%s5846_s28 + $0x710] ss:$36 sps:$4 sm:$0xff]   ;;  %v5556_v54 = vld [vmem:[%s5846_s28 + $0x298] ss:$36 sps:$4 sm:$0xff]  }
 0x13d   : > { %7275 = vst [vmem:[#allocation7_spill] sm:$0xff] %v6295_v63  ;;  %3058 = vmatprep.mubr.bf16.mxu1 %v5541_v32  ;;  %3219 = vmatprep.mubr.bf16.mxu0 %v5544_v55  ;;  %v5561_v55 = vld [vmem:[%s5846_s28 + $0x75c] ss:$36 sps:$4 sm:$0xff]   ;;  %v5623_v63 = vld [vmem:[%s5846_s28 + $0xf4] ss:$36 sps:$4 sm:$0xff]  }
 0x13e   : > { %v2637_v0 = vpop.f32.mrf.mxu0  ;;  %v2829_v2 = vpop.f32.mrf.mxu1 }
 0x13f   : > { %v2596_v2 = vadd.f32 %v6312_v21, %v6227_v56  ;;  %v5559_v56 = vld [vmem:[%s5846_s28 + $0x758] ss:$36 sps:$4 sm:$0xff]  }
 0x140   : > { %v6297_v3 = vpop.f32.mrf.mxu0  ;;  %v6299_v4 = vpop.f32.mrf.mxu1 }
 0x141   : > { %7276 = vst [vmem:[#allocation8_spill] sm:$0xff] %v6299_v4  ;;  %v5620_v4 = vld [vmem:[%s5846_s28 + $0x56c] ss:$36 sps:$4 sm:$0xff]  }
 0x142   : > { %v2640_v13 = vpop.f32.mrf.mxu0  ;;  %v2832_v14 = vpop.f32.mrf.mxu1 }
 0x143   : > { %v2599_v13 = vadd.f32 %v6312_v21, %v6234_v61 }
 0x144   : > { %v6305_v15 = vpop.f32.mrf.mxu0  ;;  %v6307_v16 = vpop.f32.mrf.mxu1  ;;  %3059 = vmatmul.mubr.bf16.gmra.mxu1 %v5539_v5  ;;  %3220 = vmatmul.mubr.bf16.gmra.mxu0 %v5542_v8 }
 0x145   : > { %7277 = vst [vmem:[#allocation9_spill] sm:$0xff] %v6307_v16  ;;  %3066 = vmatprep.mubr.bf16.mxu1 %v5547_v9  ;;  %3227 = vmatprep.mubr.bf16.mxu0 %v5550_v12  ;;  %v5617_v16 = vld [vmem:[%s5846_s28 + $0xac] ss:$36 sps:$4 sm:$0xff]  }
 0x146   : > { %v2645_v17 = vpop.f32.mrf.mxu0  ;;  %v2837_v20 = vpop.f32.mrf.mxu1 }
 0x147   : > { %v5562_v20 = vld [vmem:[%s5846_s28 + $0x2e0] ss:$36 sps:$4 sm:$0xff]  }
 0x148   : > { %v6314_v24 = vpop.f32.mrf.mxu0  ;;  %v6316_v25 = vpop.f32.mrf.mxu1 }
 0x149   : > { %7278 = vst [vmem:[#allocation10_spill] sm:$0xff] %v6316_v25  ;;  %v5614_v25 = vld [vmem:[%s5846_s28 + $0x524] ss:$36 sps:$4 sm:$0xff]  }
 0x14a   : > { %v2648_v33 = vpop.f32.mrf.mxu0  ;;  %v2840_v1 = vpop.f32.mrf.mxu1 }
 0x14b   : > { %v2604_v1 = vadd.f32 %v6312_v21, %v6242_v6  ;;  %v5566_v6 = vld [vmem:[%s5846_s28 + $0x7a0] ss:$36 sps:$4 sm:$0xff]  }
 0x14c   : > { %v6324_v37 = vpop.f32.mrf.mxu0  ;;  %v2876_v38 = vpop.f32.mrf.mxu1  ;;  %3067 = vmatmul.mubr.bf16.gmra.mxu1 %v5545_v26  ;;  %3228 = vmatmul.mubr.bf16.gmra.mxu0 %v5548_v27  ;;  %v5568_v27 = vld [vmem:[%s5846_s28 + $0x7a4] ss:$36 sps:$4 sm:$0xff]  }
 0x14d   : > { %v6326_v39 = vadd.f32 %v2876_v38, %v2588_v34  ;;  %3074 = vmatprep.mubr.bf16.mxu1 %v5555_v28  ;;  %3235 = vmatprep.mubr.bf16.mxu0 %v5558_v29  ;;  %v5571_v28 = vld [vmem:[%s5846_s28 + $0x32c] ss:$36 sps:$4 sm:$0xff]  }
 0x14e   : > { %v2653_v41 = vpop.f32.mrf.mxu0  ;;  %v2878_v42 = vpop.f32.mrf.mxu1 }
 0x14f   : > { %v2607_v42 = vadd.f32 %v6312_v21, %v6246_v10 }
 0x150   : > { %v6333_v47 = vpop.f32.mrf.mxu0  ;;  %v2879_v50 = vpop.f32.mrf.mxu1 }
 0x151   : > { %v6337_v32 = vadd.f32 %v2879_v50, %v2591_v43 }
 0x152   : > { %v2656_v59 = vpop.f32.mrf.mxu0  ;;  %v2881_v0 = vpop.f32.mrf.mxu1 }
 0x154   : > { %v6343_v48 = vpop.f32.mrf.mxu0  ;;  %v2884_v5 = vpop.f32.mrf.mxu1  ;;  %3075 = vmatmul.mubr.bf16.gmra.mxu1 %v5553_v53  ;;  %3236 = vmatmul.mubr.bf16.gmra.mxu0 %v5556_v54  ;;  %v5569_v53 = vld [vmem:[%s5846_s28 + $0x328] ss:$36 sps:$4 sm:$0xff]  }
 0x155   : > { %v6345_v8 = vadd.f32 %v2884_v5, %v2596_v2  ;;  %3082 = vmatprep.mubr.bf16.mxu1 %v5561_v55  ;;  %3243 = vmatprep.mubr.bf16.mxu0 %v5564_v58  ;;  %v5574_v55 = vld [vmem:[%s5846_s28 + $0x7ec] ss:$36 sps:$4 sm:$0xff]   ;;  %v5577_v58 = vld [vmem:[%s5846_s28 + $0x374] ss:$36 sps:$4 sm:$0xff]   ;;  %v2612_v2 = vadd.f32 %v6312_v21, %v6254_v18 }
 0x156   : > { %v2661_v9 = vpop.f32.mrf.mxu0  ;;  %v2886_v12 = vpop.f32.mrf.mxu1  ;;  %v5572_v18 = vld [vmem:[%s5846_s28 + $0x7e8] ss:$36 sps:$4 sm:$0xff]  }
 0x158   : > { %v6349_v14 = vpop.f32.mrf.mxu0  ;;  %v2887_v17 = vpop.f32.mrf.mxu1 }
 0x159   : > { %v6353_v26 = vadd.f32 %v2887_v17, %v2599_v13  ;;  %v2615_v17 = vadd.f32 %v6312_v21, %v6258_v22 }
 0x15a   : > { %v2664_v29 = vpop.f32.mrf.mxu0  ;;  %v2889_v33 = vpop.f32.mrf.mxu1 }
 0x15b   : > { %v5582_v29 = vld [vmem:[%s5846_s28 + $0x834] ss:$36 sps:$4 sm:$0xff]   ;;  %v5585_v33 = vld [vmem:[%s5846_s28 + $0x3bc] ss:$36 sps:$4 sm:$0xff]  }
 0x15c   : > { %v6359_v34 = vpop.f32.mrf.mxu0  ;;  %v2892_v61 = vpop.f32.mrf.mxu1  ;;  %3083 = vmatmul.mubr.bf16.gmra.mxu1 %v5559_v56  ;;  %3244 = vmatmul.mubr.bf16.gmra.mxu0 %v5562_v20 }
 0x15d   : > { %v6361_v38 = vadd.f32 %v2892_v61, %v2604_v1  ;;  %3090 = vmatprep.mubr.bf16.mxu1 %v5568_v27  ;;  %3251 = vmatprep.mubr.bf16.mxu0 %v5571_v28  ;;  %v5575_v27 = vld [vmem:[%s5846_s28 + $0x370] ss:$36 sps:$4 sm:$0xff]  }
 0x15e   : > { %v2669_v40 = vpop.f32.mrf.mxu0  ;;  %v2894_v41 = vpop.f32.mrf.mxu1 }
 0x15f   : > { %v2620_v40 = vadd.f32 %v6312_v21, %v6266_v30  ;;  %v2623_v30 = vadd.f32 %v6312_v21, %v6273_v35 }
 0x160   : > { %v6365_v43 = vpop.f32.mrf.mxu0  ;;  %v2895_v50 = vpop.f32.mrf.mxu1 }
 0x161   : > { %v6369_v54 = vadd.f32 %v2895_v50, %v2607_v42  ;;  %v5680_v50 = vld [vmem:[%s7267_s1 + $0x200] sm:$0xff]  }
 0x162   : > { %v2672_v59 = vpop.f32.mrf.mxu0  ;;  %v2897_v0 = vpop.f32.mrf.mxu1  ;;  %5183 = vmatprep.subr.bf16.mxu0 %v5680_v50 }
 0x163   : > { %v5580_v59 = vld [vmem:[%s5846_s28 + $0x830] ss:$36 sps:$4 sm:$0xff]   ;;  %v5583_v0 = vld [vmem:[%s5846_s28 + $0x3b8] ss:$36 sps:$4 sm:$0xff]   ;;  %5184 = vmatpush3.bf16.msra.mxu0 %v5680_v50 }
 0x164   : > { %v6375_v5 = vpop.f32.mrf.mxu0  ;;  %v2900_v10 = vpop.f32.mrf.mxu1  ;;  %3091 = vmatmul.mubr.bf16.gmra.mxu1 %v5566_v6  ;;  %3252 = vmatmul.mubr.bf16.gmra.mxu0 %v5569_v53 }
 0x165   : > { %v6377_v9 = vadd.f32 %v2900_v10, %v2612_v2  ;;  %3098 = vmatprep.mubr.bf16.mxu1 %v5574_v55  ;;  %3259 = vmatprep.mubr.bf16.mxu0 %v5577_v58  ;;  %v5588_v10 = vld [vmem:[%s5846_s28 + $0x87c] ss:$36 sps:$4 sm:$0xff]  }
 0x166   : > { %v2677_v12 = vpop.f32.mrf.mxu0  ;;  %v2902_v13 = vpop.f32.mrf.mxu1 }
 0x167   : > { %v5591_v12 = vld [vmem:[%s5846_s28 + $0x404] ss:$36 sps:$4 sm:$0xff]  }
 0x168   : > { %v6381_v56 = vpop.f32.mrf.mxu0  ;;  %v2903_v20 = vpop.f32.mrf.mxu1 }
 0x169   : > { %v6385_v28 = vadd.f32 %v2903_v20, %v2615_v17  ;;  %v2628_v20 = vadd.f32 %v6312_v21, %v6281_v45  ;;  %v5586_v45 = vld [vmem:[%s5846_s28 + $0x878] ss:$36 sps:$4 sm:$0xff]  }
 0x16a   : > { %v2680_v1 = vpop.f32.mrf.mxu0  ;;  %v2905_v61 = vpop.f32.mrf.mxu1 }
 0x16b   : > { %v2631_v1 = vadd.f32 %v6312_v21, %v6285_v51 }
 0x16c   : > { %v6391_v41 = vpop.f32.mrf.mxu0  ;;  %v2908_v42 = vpop.f32.mrf.mxu1  ;;  %3099 = vmatmul.mubr.bf16.gmra.mxu1 %v5572_v18  ;;  %3260 = vmatmul.mubr.bf16.gmra.mxu0 %v5575_v27 }
 0x16d   : > { %v6393_v22 = vadd.f32 %v2908_v42, %v2620_v40  ;;  %3106 = vmatprep.mubr.bf16.mxu1 %v5582_v29  ;;  %3267 = vmatprep.mubr.bf16.mxu0 %v5585_v33  ;;  %v5589_v42 = vld [vmem:[%s5846_s28 + $0x400] ss:$36 sps:$4 sm:$0xff]  }
 0x16e   : > { %v2685_v6 = vpop.f32.mrf.mxu0  ;;  %v2910_v53 = vpop.f32.mrf.mxu1 }
 0x16f   : > { %v5595_v6 = vld [vmem:[%s5846_s28 + $0x8c4] ss:$36 sps:$4 sm:$0xff]   ;;  %v5598_v53 = vld [vmem:[%s5846_s28 + $0x44c] ss:$36 sps:$4 sm:$0xff]  }
 0x170   : > { %v6400_v55 = vpop.f32.mrf.mxu0  ;;  %v2911_v58 = vpop.f32.mrf.mxu1 }
 0x171   : > { %v6404_v2 = vadd.f32 %v2911_v58, %v2623_v30 }
 0x172   : > { %v2688_v13 = vpop.f32.mrf.mxu0  ;;  %v2913_v17 = vpop.f32.mrf.mxu1 }
 0x173   : > { %v2639_v17 = vadd.f32 %v6312_v21, %v6297_v3 }
 0x174   : > { %v6410_v35 = vpop.f32.mrf.mxu0  ;;  %v2916_v18 = vpop.f32.mrf.mxu1  ;;  %3107 = vmatmul.mubr.bf16.gmra.mxu1 %v5580_v59  ;;  %3268 = vmatmul.mubr.bf16.gmra.mxu0 %v5583_v0  ;;  %v2636_v59 = vadd.f32 %v6312_v21, %v6293_v60  ;;  %v5593_v60 = vld [vmem:[%s5846_s28 + $0x8c0] ss:$36 sps:$4 sm:$0xff]  }
 0x175   : > { %v6412_v27 = vadd.f32 %v2916_v18, %v2628_v20  ;;  %3114 = vmatprep.mubr.bf16.mxu1 %v5588_v10  ;;  %3275 = vmatprep.mubr.bf16.mxu0 %v5591_v12 }
 0x176   : > { %v2693_v29 = vpop.f32.mrf.mxu0  ;;  %v2918_v33 = vpop.f32.mrf.mxu1 }
 0x177   : > { %v5596_v29 = vld [vmem:[%s5846_s28 + $0x448] ss:$36 sps:$4 sm:$0xff]  }
 0x178   : > { %v6416_v61 = vpop.f32.mrf.mxu0  ;;  %v2919_v40 = vpop.f32.mrf.mxu1 }
 0x179   : > { %v6420_v50 = vadd.f32 %v2919_v40, %v2631_v1  ;;  %v5601_v1 = vld [vmem:[%s5846_s28 + $0x494] ss:$36 sps:$4 sm:$0xff]   ;;  %v5604_v40 = vld [vmem:[%s5846_s28 + $0x1c] ss:$36 sps:$4 sm:$0xff]  }
 0x17a   : > { %v2696_v30 = vpop.f32.mrf.mxu0  ;;  %v2921_v58 = vpop.f32.mrf.mxu1 }
 0x17c   : > { %v6426_v0 = vpop.f32.mrf.mxu0  ;;  %v2924_v51 = vpop.f32.mrf.mxu1  ;;  %3115 = vmatmul.mubr.bf16.gmra.mxu1 %v5586_v45  ;;  %3276 = vmatmul.mubr.bf16.gmra.mxu0 %v5589_v42 }
 0x17d   : > { %v6428_v10 = vadd.f32 %v2924_v51, %v2636_v59  ;;  %3122 = vmatprep.mubr.bf16.mxu1 %v5595_v6  ;;  %3283 = vmatprep.mubr.bf16.mxu0 %v5598_v53  ;;  %v2644_v6 = vadd.f32 %v6312_v21, %v6305_v15  ;;  %v2647_v51 = vadd.f32 %v6312_v21, %v6314_v24  ;;  %v5599_v15 = vld [vmem:[%s5846_s28 + $0x490] ss:$36 sps:$4 sm:$0xff]  }
 0x17e   : > { %v2701_v12 = vpop.f32.mrf.mxu0  ;;  %v2926_v13 = vpop.f32.mrf.mxu1 }
 0x180   : > { %v6432_v20 = vpop.f32.mrf.mxu0  ;;  %v2927_v18 = vpop.f32.mrf.mxu1 }
 0x181   : > { %v6436_v33 = vadd.f32 %v2927_v18, %v2639_v17  ;;  %v5602_v17 = vld [vmem:[%s5846_s28 + $0x18] ss:$36 sps:$4 sm:$0xff]  }
 0x182   : > { %v2704_v45 = vpop.f32.mrf.mxu0  ;;  %v2929_v42 = vpop.f32.mrf.mxu1 }
 0x183   : > { %v5608_v45 = vld [vmem:[%s5846_s28 + $0x4dc] ss:$36 sps:$4 sm:$0xff]   ;;  %v5611_v42 = vld [vmem:[%s5846_s28 + $0x64] ss:$36 sps:$4 sm:$0xff]  }
 0x184   : > { %v6442_v53 = vpop.f32.mrf.mxu0  ;;  %v2932_v3 = vpop.f32.mrf.mxu1  ;;  %3123 = vmatmul.mubr.bf16.gmra.mxu1 %v5593_v60  ;;  %3284 = vmatmul.mubr.bf16.gmra.mxu0 %v5596_v29 }
 0x185   : > { %v6444_v30 = vadd.f32 %v2932_v3, %v2644_v6  ;;  %3291 = vmatprep.mubr.bf16.mxu0 %v5601_v1  ;;  %3452 = vmatprep.mubr.bf16.mxu1 %v5604_v40  ;;  %v2652_v1 = vadd.f32 %v6312_v21, %v6324_v37  ;;  %v5606_v37 = vld [vmem:[%s5846_s28 + $0x4d8] ss:$36 sps:$4 sm:$0xff]  }
 0x186   : > { %v2709_v58 = vpop.f32.mrf.mxu0  ;;  %v2934_v59 = vpop.f32.mrf.mxu1 }
 0x187   : > { %v2655_v59 = vadd.f32 %v6312_v21, %v6333_v47 }
 0x188   : > { %v6448_v12 = vpop.f32.mrf.mxu0  ;;  %v2935_v13 = vpop.f32.mrf.mxu1 }
 0x189   : > { %v6452_v18 = vadd.f32 %v2935_v13, %v2647_v51 }
 0x18a   : > { %v2712_v60 = vpop.f32.mrf.mxu0  ;;  %v2937_v29 = vpop.f32.mrf.mxu1 }
 0x18b   : > { %v5609_v60 = vld [vmem:[%s5846_s28 + $0x60] ss:$36 sps:$4 sm:$0xff]  }
 0x18c   : > { %v6458_v40 = vpop.f32.mrf.mxu0  ;;  %v2940_v24 = vpop.f32.mrf.mxu1  ;;  %3292 = vmatmul.mubr.bf16.gmra.mxu0 %v5599_v15  ;;  %3453 = vmatmul.mubr.bf16.vlgmr.msra.gmra.mxu1 %v5602_v17 }
 0x18d   : > { %v6460_v6 = vadd.f32 %v2940_v24, %v2652_v1  ;;  %3299 = vmatprep.mubr.bf16.mxu0 %v5608_v45  ;;  %3460 = vmatprep.mubr.bf16.mxu1 %v5611_v42  ;;  %v2660_v45 = vadd.f32 %v6312_v21, %v6343_v48  ;;  %v5612_v48 = vld [vmem:[%s5846_s28 + $0x520] ss:$36 sps:$4 sm:$0xff]  }
 0x18e   : > { %v2717_v3 = vpop.f32.mrf.mxu0  ;;  %v2942_v58 = vpop.f32.mrf.mxu1 }
 0x18f   : > { %v2663_v58 = vadd.f32 %v6312_v21, %v6349_v14 }
 0x190   : > { %v6464_v51 = vpop.f32.mrf.mxu0  ;;  %v2943_v13 = vpop.f32.mrf.mxu1 }
 0x191   : > { %v6468_v29 = vadd.f32 %v2943_v13, %v2655_v59 }
 0x192   : > { %v2720_v15 = vpop.f32.mrf.mxu0  ;;  %v2945_v17 = vpop.f32.mrf.mxu1 }
 0x193   : > { %v5615_v15 = vld [vmem:[%s5846_s28 + $0xa8] ss:$36 sps:$4 sm:$0xff]  }
 0x194   : > { %v6474_v42 = vpop.f32.mrf.mxu0  ;;  %v2948_v47 = vpop.f32.mrf.mxu1  ;;  %3300 = vmatmul.mubr.bf16.gmra.mxu0 %v5606_v37  ;;  %3461 = vmatmul.mubr.bf16.gmra.mxu1 %v5609_v60 }
 0x195   : > { %v6476_v1 = vadd.f32 %v2948_v47, %v2660_v45  ;;  %3307 = vmatprep.mubr.bf16.mxu0 %v5614_v25  ;;  %3468 = vmatprep.mubr.bf16.mxu1 %v5617_v16  ;;  %v2668_v16 = vadd.f32 %v6312_v21, %v6359_v34  ;;  %v5618_v34 = vld [vmem:[%s5846_s28 + $0x568] ss:$36 sps:$4 sm:$0xff]  }
 0x196   : > { %v2725_v24 = vpop.f32.mrf.mxu0  ;;  %v2950_v3 = vpop.f32.mrf.mxu1 }
 0x197   : > { %v2671_v3 = vadd.f32 %v6312_v21, %v6365_v43 }
 0x198   : > { %v6480_v59 = vpop.f32.mrf.mxu0  ;;  %v2951_v13 = vpop.f32.mrf.mxu1 }
 0x199   : > { %v6484_v17 = vadd.f32 %v2951_v13, %v2663_v58 }
 0x19a   : > { %v2728_v37 = vpop.f32.mrf.mxu0  ;;  %v2953_v60 = vpop.f32.mrf.mxu1 }
 0x19b   : > { %v5621_v37 = vld [vmem:[%s5846_s28 + $0xf0] ss:$36 sps:$4 sm:$0xff]  }
 0x19c   : > { %v6490_v25 = vpop.f32.mrf.mxu0  ;;  %v2956_v14 = vpop.f32.mrf.mxu1  ;;  %3308 = vmatmul.mubr.bf16.gmra.mxu0 %v5612_v48  ;;  %3469 = vmatmul.mubr.bf16.gmra.mxu1 %v5615_v15 }
 0x19d   : > { %v6492_v45 = vadd.f32 %v2956_v14, %v2668_v16  ;;  %3315 = vmatprep.mubr.bf16.mxu0 %v5620_v4  ;;  %3476 = vmatprep.mubr.bf16.mxu1 %v5623_v63  ;;  %v2676_v63 = vadd.f32 %v6312_v21, %v6375_v5  ;;  %v5624_v5 = vld [vmem:[%s5846_s28 + $0x5b0] ss:$36 sps:$4 sm:$0xff]  }
 0x19e   : > { %v2733_v47 = vpop.f32.mrf.mxu0  ;;  %v2958_v24 = vpop.f32.mrf.mxu1 }
 0x19f   : > { %v2679_v24 = vadd.f32 %v6312_v21, %v6381_v56 }
 0x1a0   : > { %v6496_v58 = vpop.f32.mrf.mxu0  ;;  %v2959_v13 = vpop.f32.mrf.mxu1 }
 0x1a1   : > { %v6500_v60 = vadd.f32 %v2959_v13, %v2671_v3 }
 0x1a2   : > { %v2736_v48 = vpop.f32.mrf.mxu0  ;;  %v2961_v15 = vpop.f32.mrf.mxu1 }
 0x1a3   : > { %v5627_v48 = vld [vmem:[%s5846_s28 + $0x138] ss:$36 sps:$4 sm:$0xff]  }
 0x1a4   : > { %v6506_v4 = vpop.f32.mrf.mxu0  ;;  %v2964_v43 = vpop.f32.mrf.mxu1  ;;  %3316 = vmatmul.mubr.bf16.gmra.mxu0 %v5618_v34  ;;  %3477 = vmatmul.mubr.bf16.gmra.mxu1 %v5621_v37 }
 0x1a5   : > { %v6508_v16 = vadd.f32 %v2964_v43, %v2676_v63  ;;  %3323 = vmatprep.mubr.bf16.mxu0 %v5626_v52  ;;  %3484 = vmatprep.mubr.bf16.mxu1 %v5629_v46  ;;  %v2684_v46 = vadd.f32 %v6312_v21, %v6391_v41  ;;  %v5631_v41 = vld [vmem:[%s5846_s28 + $0x5f8] ss:$36 sps:$4 sm:$0xff]  }
 0x1a6   : > { %v2741_v14 = vpop.f32.mrf.mxu0  ;;  %v2966_v47 = vpop.f32.mrf.mxu1 }
 0x1a7   : > { %v2687_v47 = vadd.f32 %v6312_v21, %v6400_v55 }
 0x1a8   : > { %v6512_v3 = vpop.f32.mrf.mxu0  ;;  %v2967_v13 = vpop.f32.mrf.mxu1 }
 0x1a9   : > { %v6516_v15 = vadd.f32 %v2967_v13, %v2679_v24 }
 0x1aa   : > { %v2744_v34 = vpop.f32.mrf.mxu0  ;;  %v2969_v37 = vpop.f32.mrf.mxu1 }
 0x1ab   : > { %7279 = vst [vmem:[#allocation11_spill] sm:$0xff] %v6516_v15  ;;  %v5634_v34 = vld [vmem:[%s5846_s28 + $0x180] ss:$36 sps:$4 sm:$0xff]  }
 0x1ac   : > { %v6522_v52 = vpop.f32.mrf.mxu0  ;;  %v2972_v56 = vpop.f32.mrf.mxu1  ;;  %3324 = vmatmul.mubr.bf16.gmra.mxu0 %v5624_v5  ;;  %3485 = vmatmul.mubr.bf16.gmra.mxu1 %v5627_v48  ;;  %v5639_v15 = vld [vmem:[%s5846_s28 + $0x644] ss:$36 sps:$4 sm:$0xff]  }
 0x1ad   : > { %v6524_v63 = vadd.f32 %v2972_v56, %v2684_v46  ;;  %3331 = vmatprep.mubr.bf16.mxu0 %v5633_v36  ;;  %3492 = vmatprep.mubr.bf16.mxu1 %v5636_v31  ;;  %v2692_v31 = vadd.f32 %v6312_v21, %v6410_v35  ;;  %v5637_v35 = vld [vmem:[%s5846_s28 + $0x640] ss:$36 sps:$4 sm:$0xff]  }
 0x1ae   : > { %v2749_v43 = vpop.f32.mrf.mxu0  ;;  %v2974_v14 = vpop.f32.mrf.mxu1 }
 0x1af   : > { %7280 = vst [vmem:[#allocation12_spill] sm:$0xff] %v6524_v63  ;;  %v2695_v14 = vadd.f32 %v6312_v21, %v6416_v61  ;;  %v5648_v63 = vld [vmem:[%s5846_s28 + $0x214] ss:$36 sps:$4 sm:$0xff]  }
 0x1b0   : > { %v6528_v24 = vpop.f32.mrf.mxu0  ;;  %v2975_v13 = vpop.f32.mrf.mxu1 }
 0x1b1   : > { %v6532_v37 = vadd.f32 %v2975_v13, %v2687_v47 }
 0x1b2   : > { %v2752_v5 = vpop.f32.mrf.mxu0  ;;  %v2977_v48 = vpop.f32.mrf.mxu1 }
 0x1b3   : > { %7281 = vst [vmem:[#allocation13_spill] sm:$0xff] %v6532_v37  ;;  %v5640_v5 = vld [vmem:[%s5846_s28 + $0x1c8] ss:$36 sps:$4 sm:$0xff]  }
 0x1b4   : > { %v6538_v36 = vpop.f32.mrf.mxu0  ;;  %v2980_v55 = vpop.f32.mrf.mxu1  ;;  %3332 = vmatmul.mubr.bf16.gmra.mxu0 %v5631_v41  ;;  %3493 = vmatmul.mubr.bf16.gmra.mxu1 %v5634_v34  ;;  %v5645_v37 = vld [vmem:[%s5846_s28 + $0x68c] ss:$36 sps:$4 sm:$0xff]  }
 0x1b5   : > { %v6540_v46 = vadd.f32 %v2980_v55, %v2692_v31  ;;  %3339 = vmatprep.mubr.bf16.mxu0 %v5639_v15  ;;  %3500 = vmatprep.mubr.bf16.mxu1 %v5642_v23  ;;  %v2700_v23 = vadd.f32 %v6312_v21, %v6426_v0  ;;  %v5643_v0 = vld [vmem:[%s5846_s28 + $0x688] ss:$36 sps:$4 sm:$0xff]  }
 0x1b6   : > { %v2757_v56 = vpop.f32.mrf.mxu0  ;;  %v2982_v43 = vpop.f32.mrf.mxu1 }
 0x1b7   : > { %7282 = vst [vmem:[#allocation14_spill] sm:$0xff] %v6540_v46  ;;  %v2703_v43 = vadd.f32 %v6312_v21, %v6432_v20  ;;  %v5654_v46 = vld [vmem:[%s5846_s28 + $0x25c] ss:$36 sps:$4 sm:$0xff]  }
 0x1b8   : > { %v6544_v47 = vpop.f32.mrf.mxu0  ;;  %v2983_v13 = vpop.f32.mrf.mxu1 }
 0x1b9   : > { %v6548_v48 = vadd.f32 %v2983_v13, %v2695_v14 }
 0x1ba   : > { %v2760_v41 = vpop.f32.mrf.mxu0  ;;  %v2985_v34 = vpop.f32.mrf.mxu1 }
 0x1bb   : > { %7283 = vst [vmem:[#allocation15_spill] sm:$0xff] %v6548_v48  ;;  %v5646_v41 = vld [vmem:[%s5846_s28 + $0x210] ss:$36 sps:$4 sm:$0xff]  }
 0x1bc   : > { %v6554_v15 = vpop.f32.mrf.mxu0  ;;  %v2988_v61 = vpop.f32.mrf.mxu1  ;;  %3340 = vmatmul.mubr.bf16.gmra.mxu0 %v5637_v35  ;;  %3501 = vmatmul.mubr.bf16.gmra.mxu1 %v5640_v5  ;;  %v5651_v48 = vld [vmem:[%s5846_s28 + $0x6d4] ss:$36 sps:$4 sm:$0xff]  }
 0x1bd   : > { %v6556_v31 = vadd.f32 %v2988_v61, %v2700_v23  ;;  %3347 = vmatprep.mubr.bf16.mxu0 %v5645_v37  ;;  %3508 = vmatprep.mubr.bf16.mxu1 %v5648_v63  ;;  %v2708_v63 = vadd.f32 %v6312_v21, %v6442_v53  ;;  %v5649_v53 = vld [vmem:[%s5846_s28 + $0x6d0] ss:$36 sps:$4 sm:$0xff]  }
 0x1be   : > { %v2765_v55 = vpop.f32.mrf.mxu0  ;;  %v2990_v56 = vpop.f32.mrf.mxu1 }
 0x1bf   : > { %7284 = vst [vmem:[#allocation16_spill] sm:$0xff] %v6556_v31  ;;  %v2711_v56 = vadd.f32 %v6312_v21, %v6448_v12  ;;  %v5661_v31 = vld [vmem:[%s5846_s28 + $0x2a4] ss:$36 sps:$4 sm:$0xff]  }
 0x1c0   : > { %v6560_v14 = vpop.f32.mrf.mxu0  ;;  %v2991_v13 = vpop.f32.mrf.mxu1 }
 0x1c1   : > { %v6564_v34 = vadd.f32 %v2991_v13, %v2703_v43 }
 0x1c2   : > { %v2768_v35 = vpop.f32.mrf.mxu0  ;;  %v2993_v5 = vpop.f32.mrf.mxu1 }
 0x1c3   : > { %7285 = vst [vmem:[#allocation17_spill] sm:$0xff] %v6564_v34  ;;  %v5652_v35 = vld [vmem:[%s5846_s28 + $0x258] ss:$36 sps:$4 sm:$0xff]  }
 0x1c4   : > { %v6570_v37 = vpop.f32.mrf.mxu0  ;;  %v2996_v20 = vpop.f32.mrf.mxu1  ;;  %3348 = vmatmul.mubr.bf16.gmra.mxu0 %v5643_v0  ;;  %3509 = vmatmul.mubr.bf16.gmra.mxu1 %v5646_v41  ;;  %v5658_v34 = vld [vmem:[%s5846_s28 + $0x71c] ss:$36 sps:$4 sm:$0xff]  }
 0x1c5   : > { %v6572_v23 = vadd.f32 %v2996_v20, %v2708_v63  ;;  %3355 = vmatprep.mubr.bf16.mxu0 %v5651_v48  ;;  %3516 = vmatprep.mubr.bf16.mxu1 %v5654_v46  ;;  %v2716_v46 = vadd.f32 %v6312_v21, %v6458_v40 }
 0x1c6   : > { %v2773_v61 = vpop.f32.mrf.mxu0  ;;  %v2998_v55 = vpop.f32.mrf.mxu1 }
 0x1c8   : > { %v6576_v43 = vpop.f32.mrf.mxu0  ;;  %v2999_v13 = vpop.f32.mrf.mxu1 }
 0x1c9   : > { %v6580_v5 = vadd.f32 %v2999_v13, %v2711_v56  ;;  %v2719_v56 = vadd.f32 %v6312_v21, %v6464_v51 }
 0x1ca   : > { %v2776_v0 = vpop.f32.mrf.mxu0  ;;  %v3001_v41 = vpop.f32.mrf.mxu1 }
 0x1cb   : > { %7286 = vst [vmem:[#allocation18_spill] sm:$0xff] %v6580_v5  ;;  %v5656_v0 = vld [vmem:[%s5846_s28 + $0x718] ss:$36 sps:$4 sm:$0xff]   ;;  %v5659_v41 = vld [vmem:[%s5846_s28 + $0x2a0] ss:$36 sps:$4 sm:$0xff]  }
 0x1cc   : > { %v3004_v48 = vpop.f32.mrf.mxu1  ;;  %v3165_v63 = vpop.f32.mrf.mxu0  ;;  %3356 = vmatmul.mubr.bf16.gmra.mxu0 %v5649_v53  ;;  %3517 = vmatmul.mubr.bf16.gmra.mxu1 %v5652_v35  ;;  %v5664_v35 = vld [vmem:[%s5846_s28 + $0x764] ss:$36 sps:$4 sm:$0xff]  }
 0x1cd   : > { %v6586_v12 = vadd.f32 %v3004_v48, %v2716_v46  ;;  %v6589_v20 = vadd.f32 %v3165_v63, %v6326_v39  ;;  %3363 = vmatprep.mubr.bf16.mxu0 %v5658_v34  ;;  %3524 = vmatprep.mubr.bf16.mxu1 %v5661_v31  ;;  %v5667_v46 = vld [vmem:[%s5846_s28 + $0x2ec] ss:$36 sps:$4 sm:$0xff]   ;;  %v2724_v31 = vadd.f32 %v6312_v21, %v6474_v42 }
 0x1ce   : > { %v3006_v61 = vpop.f32.mrf.mxu1  ;;  %v3167_v55 = vpop.f32.mrf.mxu0 }
 0x1d0   : > { %v3007_v13 = vpop.f32.mrf.mxu1  ;;  %v3168_v40 = vpop.f32.mrf.mxu0 }
 0x1d1   : > { %v6595_v5 = vadd.f32 %v3007_v13, %v2719_v56  ;;  %v6598_v53 = vadd.f32 %v3168_v40, %v6337_v32  ;;  %v2727_v56 = vadd.f32 %v6312_v21, %v6480_v59  ;;  %v5662_v40 = vld [vmem:[%s5846_s28 + $0x760] ss:$36 sps:$4 sm:$0xff]  }
 0x1d2   : > { %v3009_v39 = vpop.f32.mrf.mxu1  ;;  %v3170_v34 = vpop.f32.mrf.mxu0 }
 0x1d3   : > { %v5665_v39 = vld [vmem:[%s5846_s28 + $0x2e8] ss:$36 sps:$4 sm:$0xff]  }
 0x1d4   : > { %v3012_v48 = vpop.f32.mrf.mxu1  ;;  %v3173_v51 = vpop.f32.mrf.mxu0  ;;  %3364 = vmatmul.mubr.bf16.gmra.mxu0 %v5656_v0  ;;  %3525 = vmatmul.mubr.bf16.gmra.mxu1 %v5659_v41  ;;  %v5670_v41 = vld [vmem:[%s5846_s28 + $0x7ac] ss:$36 sps:$4 sm:$0xff]  }
 0x1d5   : > { %v6604_v63 = vadd.f32 %v3012_v48, %v2724_v31  ;;  %v6607_v32 = vadd.f32 %v3173_v51, %v6345_v8  ;;  %3371 = vmatprep.mubr.bf16.mxu0 %v5664_v35  ;;  %3532 = vmatprep.mubr.bf16.mxu1 %v5667_v46  ;;  %v5673_v31 = vld [vmem:[%s5846_s28 + $0x334] ss:$36 sps:$4 sm:$0xff]   ;;  %v2732_v46 = vadd.f32 %v6312_v21, %v6490_v25 }
 0x1d6   : > { %v3014_v61 = vpop.f32.mrf.mxu1  ;;  %v3175_v55 = vpop.f32.mrf.mxu0 }
 0x1d8   : > { %v3015_v13 = vpop.f32.mrf.mxu1  ;;  %v3176_v42 = vpop.f32.mrf.mxu0 }
 0x1d9   : > { %v6613_v34 = vadd.f32 %v3015_v13, %v2727_v56  ;;  %v6616_v0 = vadd.f32 %v3176_v42, %v6353_v26  ;;  %v2735_v56 = vadd.f32 %v6312_v21, %v6496_v58  ;;  %v5668_v42 = vld [vmem:[%s5846_s28 + $0x7a8] ss:$36 sps:$4 sm:$0xff]  }
 0x1da   : > { %v3017_v8 = vpop.f32.mrf.mxu1  ;;  %v3178_v35 = vpop.f32.mrf.mxu0 }
 0x1db   : > { %v5671_v8 = vld [vmem:[%s5846_s28 + $0x330] ss:$36 sps:$4 sm:$0xff]  }
 0x1dc   : > { %v3020_v48 = vpop.f32.mrf.mxu1  ;;  %v3181_v59 = vpop.f32.mrf.mxu0  ;;  %3372 = vmatmul.mubr.bf16.gmra.mxu0 %v5662_v40  ;;  %3533 = vmatmul.mubr.bf16.gmra.mxu1 %v5665_v39  ;;  %v5676_v39 = vld [vmem:[%s5846_s28 + $0x7f4] ss:$36 sps:$4 sm:$0xff]  }
 0x1dd   : > { %v6622_v51 = vadd.f32 %v3020_v48, %v2732_v46  ;;  %v6625_v26 = vadd.f32 %v3181_v59, %v6361_v38  ;;  %3379 = vmatprep.mubr.bf16.mxu0 %v5670_v41  ;;  %3540 = vmatprep.mubr.bf16.mxu1 %v5673_v31  ;;  %v5679_v46 = vld [vmem:[%s5846_s28 + $0x37c] ss:$36 sps:$4 sm:$0xff]   ;;  %v2740_v31 = vadd.f32 %v6312_v21, %v6506_v4 }
 0x1de   : > { %v3022_v61 = vpop.f32.mrf.mxu1  ;;  %v3183_v55 = vpop.f32.mrf.mxu0 }
 0x1e0   : > { %v3023_v13 = vpop.f32.mrf.mxu1  ;;  %v3184_v25 = vpop.f32.mrf.mxu0 }
 0x1e1   : > { %v6631_v35 = vadd.f32 %v3023_v13, %v2735_v56  ;;  %v6634_v40 = vadd.f32 %v3184_v25, %v6369_v54  ;;  %v2743_v56 = vadd.f32 %v6312_v21, %v6512_v3  ;;  %v5674_v25 = vld [vmem:[%s5846_s28 + $0x7f0] ss:$36 sps:$4 sm:$0xff]  }
 0x1e2   : > { %v3025_v38 = vpop.f32.mrf.mxu1  ;;  %v3186_v41 = vpop.f32.mrf.mxu0 }
 0x1e3   : > { %v5677_v38 = vld [vmem:[%s5846_s28 + $0x378] ss:$36 sps:$4 sm:$0xff]  }
 0x1e4   : > { %v3028_v48 = vpop.f32.mrf.mxu1  ;;  %v3189_v58 = vpop.f32.mrf.mxu0  ;;  %3380 = vmatmul.mubr.bf16.gmra.mxu0 %v5668_v42  ;;  %3541 = vmatmul.mubr.bf16.gmra.mxu1 %v5671_v8  ;;  %v5683_v8 = vld [vmem:[%s5846_s28 + $0x83c] ss:$36 sps:$4 sm:$0xff]  }
 0x1e5   : > { %v6640_v59 = vadd.f32 %v3028_v48, %v2740_v31  ;;  %v6643_v54 = vadd.f32 %v3189_v58, %v6377_v9  ;;  %3387 = vmatprep.mubr.bf16.mxu0 %v5676_v39  ;;  %3548 = vmatprep.mubr.bf16.mxu1 %v5679_v46  ;;  %v5686_v31 = vld [vmem:[%s5846_s28 + $0x3c4] ss:$36 sps:$4 sm:$0xff]   ;;  %v2748_v46 = vadd.f32 %v6312_v21, %v6522_v52 }
 0x1e6   : > { %v3030_v61 = vpop.f32.mrf.mxu1  ;;  %v3191_v55 = vpop.f32.mrf.mxu0 }
 0x1e8   : > { %v3031_v13 = vpop.f32.mrf.mxu1  ;;  %v3192_v4 = vpop.f32.mrf.mxu0 }
 0x1e9   : > { %v6649_v41 = vadd.f32 %v3031_v13, %v2743_v56  ;;  %v6652_v42 = vadd.f32 %v3192_v4, %v6385_v28  ;;  %v2751_v56 = vadd.f32 %v6312_v21, %v6528_v24  ;;  %v5681_v4 = vld [vmem:[%s5846_s28 + $0x838] ss:$36 sps:$4 sm:$0xff]  }
 0x1ea   : > { %v3033_v9 = vpop.f32.mrf.mxu1  ;;  %v3194_v39 = vpop.f32.mrf.mxu0 }
 0x1eb   : > { %v5684_v9 = vld [vmem:[%s5846_s28 + $0x3c0] ss:$36 sps:$4 sm:$0xff]  }
 0x1ec   : > { %v3036_v48 = vpop.f32.mrf.mxu1  ;;  %v3197_v3 = vpop.f32.mrf.mxu0  ;;  %3388 = vmatmul.mubr.bf16.gmra.mxu0 %v5674_v25  ;;  %3549 = vmatmul.mubr.bf16.gmra.mxu1 %v5677_v38  ;;  %v5689_v38 = vld [vmem:[%s5846_s28 + $0x884] ss:$36 sps:$4 sm:$0xff]  }
 0x1ed   : > { %v6658_v58 = vadd.f32 %v3036_v48, %v2748_v46  ;;  %v6661_v28 = vadd.f32 %v3197_v3, %v6393_v22  ;;  %3395 = vmatprep.mubr.bf16.mxu0 %v5683_v8  ;;  %3556 = vmatprep.mubr.bf16.mxu1 %v5686_v31  ;;  %v5692_v46 = vld [vmem:[%s5846_s28 + $0x40c] ss:$36 sps:$4 sm:$0xff]   ;;  %v2756_v31 = vadd.f32 %v6312_v21, %v6538_v36 }
 0x1ee   : > { %v3038_v61 = vpop.f32.mrf.mxu1  ;;  %v3199_v55 = vpop.f32.mrf.mxu0 }
 0x1f0   : > { %v3039_v13 = vpop.f32.mrf.mxu1  ;;  %v3200_v52 = vpop.f32.mrf.mxu0 }
 0x1f1   : > { %v6667_v39 = vadd.f32 %v3039_v13, %v2751_v56  ;;  %v6670_v25 = vadd.f32 %v3200_v52, %v6404_v2  ;;  %v2759_v56 = vadd.f32 %v6312_v21, %v6544_v47  ;;  %v5687_v52 = vld [vmem:[%s5846_s28 + $0x880] ss:$36 sps:$4 sm:$0xff]  }
 0x1f2   : > { %v3041_v22 = vpop.f32.mrf.mxu1  ;;  %v3202_v8 = vpop.f32.mrf.mxu0 }
 0x1f3   : > { %v5690_v22 = vld [vmem:[%s5846_s28 + $0x408] ss:$36 sps:$4 sm:$0xff]  }
 0x1f4   : > { %v3044_v48 = vpop.f32.mrf.mxu1  ;;  %v3205_v24 = vpop.f32.mrf.mxu0  ;;  %3396 = vmatmul.mubr.bf16.gmra.mxu0 %v5681_v4  ;;  %3557 = vmatmul.mubr.bf16.gmra.mxu1 %v5684_v9  ;;  %v5695_v9 = vld [vmem:[%s5846_s28 + $0x8cc] ss:$36 sps:$4 sm:$0xff]  }
 0x1f5   : > { %v6676_v3 = vadd.f32 %v3044_v48, %v2756_v31  ;;  %v6679_v2 = vadd.f32 %v3205_v24, %v6412_v27  ;;  %3403 = vmatprep.mubr.bf16.mxu0 %v5689_v38  ;;  %3564 = vmatprep.mubr.bf16.mxu1 %v5692_v46  ;;  %v5698_v31 = vld [vmem:[%s5846_s28 + $0x454] ss:$36 sps:$4 sm:$0xff]   ;;  %v2764_v46 = vadd.f32 %v6312_v21, %v6554_v15 }
 0x1f6   : > { %v3046_v61 = vpop.f32.mrf.mxu1  ;;  %v3207_v55 = vpop.f32.mrf.mxu0 }
 0x1f8   : > { %v3047_v13 = vpop.f32.mrf.mxu1  ;;  %v3208_v36 = vpop.f32.mrf.mxu0 }
 0x1f9   : > { %v6685_v8 = vadd.f32 %v3047_v13, %v2759_v56  ;;  %v6688_v4 = vadd.f32 %v3208_v36, %v6420_v50  ;;  %v2767_v56 = vadd.f32 %v6312_v21, %v6560_v14  ;;  %v5693_v36 = vld [vmem:[%s5846_s28 + $0x8c8] ss:$36 sps:$4 sm:$0xff]  }
 0x1fa   : > { %v3049_v27 = vpop.f32.mrf.mxu1  ;;  %v3210_v38 = vpop.f32.mrf.mxu0 }
 0x1fb   : > { %v5696_v27 = vld [vmem:[%s5846_s28 + $0x450] ss:$36 sps:$4 sm:$0xff]  }
 0x1fc   : > { %v3052_v48 = vpop.f32.mrf.mxu1  ;;  %v3213_v47 = vpop.f32.mrf.mxu0  ;;  %3404 = vmatmul.mubr.bf16.gmra.mxu0 %v5687_v52  ;;  %3565 = vmatmul.mubr.bf16.gmra.mxu1 %v5690_v22  ;;  %v5701_v22 = vld [vmem:[%s5846_s28 + $0x49c] ss:$36 sps:$4 sm:$0xff]  }
 0x1fd   : > { %v6694_v24 = vadd.f32 %v3052_v48, %v2764_v46  ;;  %v6697_v50 = vadd.f32 %v3213_v47, %v6428_v10  ;;  %3411 = vmatprep.mubr.bf16.mxu0 %v5695_v9  ;;  %3572 = vmatprep.mubr.bf16.mxu1 %v5698_v31  ;;  %v5702_v46 = vld [vmem:[%s5846_s28 + $0x20] ss:$36 sps:$4 sm:$0xff]   ;;  %v2772_v31 = vadd.f32 %v6312_v21, %v6570_v37 }
 0x1fe   : > { %v3054_v61 = vpop.f32.mrf.mxu1  ;;  %v3215_v55 = vpop.f32.mrf.mxu0 }
 0x200   : > { %v3055_v13 = vpop.f32.mrf.mxu1  ;;  %v3216_v15 = vpop.f32.mrf.mxu0 }
 0x201   : > { %v6703_v38 = vadd.f32 %v3055_v13, %v2767_v56  ;;  %v6706_v52 = vadd.f32 %v3216_v15, %v6436_v33  ;;  %v2775_v56 = vadd.f32 %v6312_v21, %v6576_v43  ;;  %v5699_v15 = vld [vmem:[%s5846_s28 + $0x498] ss:$36 sps:$4 sm:$0xff]  }
 0x202   : > { %v3057_v10 = vpop.f32.mrf.mxu1  ;;  %v3218_v9 = vpop.f32.mrf.mxu0 }
 0x203   : > { %v5703_v10 = vld [vmem:[%s5846_s28 + $0x68] ss:$36 sps:$4 sm:$0xff]  }
 0x204   : > { %v3060_v48 = vpop.f32.mrf.mxu1  ;;  %v3221_v14 = vpop.f32.mrf.mxu0  ;;  %3412 = vmatmul.mubr.bf16.gmra.mxu0 %v5693_v36  ;;  %3573 = vmatmul.mubr.bf16.gmra.mxu1 %v5696_v27  ;;  %v5706_v27 = vld [vmem:[%s5846_s28 + $0x4e4] ss:$36 sps:$4 sm:$0xff]  }
 0x205   : > { %v6712_v47 = vadd.f32 %v3060_v48, %v2772_v31  ;;  %v6715_v33 = vadd.f32 %v3221_v14, %v6444_v30  ;;  %3580 = vmatprep.mubr.bf16.mxu1 %v5701_v22  ;;  %5185 = vmatprep.mubr.bf16.mxu0 %v5702_v46  ;;  %v5707_v31 = vld [vmem:[%s5846_s28 + $0xb0] ss:$36 sps:$4 sm:$0xff]   ;;  %v2780_v22 = vadd.f32 %v6312_v21, %v6210_v44  ;;  %v6738_v44 = vld [vmem:[%s7268_s2] ss:$0 sm:$0xff] }
 0x206   : > { %v3062_v61 = vpop.f32.mrf.mxu1  ;;  %v3223_v55 = vpop.f32.mrf.mxu0  ;;  %v2783_v21 = vadd.f32 %v6738_v44, %v6218_v49 }
 0x208   : > { %v3063_v13 = vpop.f32.mrf.mxu1  ;;  %v3224_v37 = vpop.f32.mrf.mxu0 }
 0x209   : > { %v6721_v9 = vadd.f32 %v3063_v13, %v2775_v56  ;;  %v6724_v36 = vadd.f32 %v3224_v37, %v6452_v18  ;;  %v5704_v37 = vld [vmem:[%s5846_s28 + $0x4e0] ss:$36 sps:$4 sm:$0xff]  }
 0x20a   : > { %v3065_v30 = vpop.f32.mrf.mxu1  ;;  %v3226_v48 = vpop.f32.mrf.mxu0 }
 0x20c   : > { %v3068_v46 = vpop.f32.mrf.mxu1  ;;  %v3229_v43 = vpop.f32.mrf.mxu0  ;;  %3581 = vmatmul.mubr.bf16.gmra.mxu1 %v5699_v15  ;;  %5186 = vmatmul.mubr.bf16.vlgmr.msra.gmra.mxu0 %v5703_v10  ;;  %v5708_v15 = vld [vmem:[%s5846_s28 + $0xf8] ss:$36 sps:$4 sm:$0xff]  }
 0x20d   : > { %v6730_v14 = vadd.f32 %v3068_v46, %v2780_v22  ;;  %v6733_v18 = vadd.f32 %v3229_v43, %v6460_v6  ;;  %3588 = vmatprep.mubr.bf16.mxu1 %v5706_v27  ;;  %5189 = vmatprep.mubr.bf16.mxu0 %v5707_v31  ;;  %v5711_v27 = vld [vmem:[%s5846_s28 + $0x52c] ss:$36 sps:$4 sm:$0xff]   ;;  %v5712_v31 = vld [vmem:[%s5846_s28 + $0x140] ss:$36 sps:$4 sm:$0xff]   ;;  %v2788_v22 = vadd.f32 %v6738_v44, %v6229_v57 }
 0x20e   : > { %v3070_v61 = vpop.f32.mrf.mxu1  ;;  %v3231_v55 = vpop.f32.mrf.mxu0 }
 0x210   : > { %v3071_v56 = vpop.f32.mrf.mxu1  ;;  %v3232_v13 = vpop.f32.mrf.mxu0 }
 0x211   : > { %v6744_v10 = vadd.f32 %v3071_v56, %v2783_v21  ;;  %v6747_v6 = vadd.f32 %v3232_v13, %v6468_v29  ;;  %v2791_v21 = vadd.f32 %v6738_v44, %v6236_v62  ;;  %v5709_v13 = vld [vmem:[%s5846_s28 + $0x528] ss:$36 sps:$4 sm:$0xff]  }
 0x212   : > { %v3073_v30 = vpop.f32.mrf.mxu1  ;;  %v3234_v48 = vpop.f32.mrf.mxu0 }
 0x213   : > { %v5713_v30 = vld [vmem:[%s5846_s28 + $0x188] ss:$36 sps:$4 sm:$0xff]  }
 0x214   : > { %v3076_v46 = vpop.f32.mrf.mxu1  ;;  %v3237_v49 = vpop.f32.mrf.mxu0  ;;  %3589 = vmatmul.mubr.bf16.gmra.mxu1 %v5704_v37  ;;  %5190 = vmatmul.mubr.bf16.gmra.mxu0 %v5708_v15  ;;  %v5716_v15 = vld [vmem:[%s5846_s28 + $0x574] ss:$36 sps:$4 sm:$0xff]  }
 0x215   : > { %v6753_v43 = vadd.f32 %v3076_v46, %v2788_v22  ;;  %v6756_v29 = vadd.f32 %v3237_v49, %v6476_v1  ;;  %3596 = vmatprep.mubr.bf16.mxu1 %v5711_v27  ;;  %5193 = vmatprep.mubr.bf16.mxu0 %v5712_v31  ;;  %v5717_v22 = vld [vmem:[%s5846_s28 + $0x1d0] ss:$36 sps:$4 sm:$0xff]   ;;  %v2796_v31 = vadd.f32 %v6738_v44, %v6244_v7 }
 0x216   : > { %v3078_v61 = vpop.f32.mrf.mxu1  ;;  %v3239_v55 = vpop.f32.mrf.mxu0 }
 0x218   : > { %v3079_v56 = vpop.f32.mrf.mxu1  ;;  %v3240_v57 = vpop.f32.mrf.mxu0 }
 0x219   : > { %v6762_v48 = vadd.f32 %v3079_v56, %v2791_v21  ;;  %v6765_v37 = vadd.f32 %v3240_v57, %v6484_v17  ;;  %v2799_v21 = vadd.f32 %v6738_v44, %v6248_v11  ;;  %v5714_v57 = vld [vmem:[%s5846_s28 + $0x570] ss:$36 sps:$4 sm:$0xff]  }
 0x21a   : > { %v3081_v1 = vpop.f32.mrf.mxu1  ;;  %v3242_v27 = vpop.f32.mrf.mxu0 }
 0x21b   : > { %v5718_v1 = vld [vmem:[%s5846_s28 + $0x218] ss:$36 sps:$4 sm:$0xff]  }
 0x21c   : > { %v3084_v46 = vpop.f32.mrf.mxu1  ;;  %v3245_v62 = vpop.f32.mrf.mxu0  ;;  %3597 = vmatmul.mubr.bf16.gmra.mxu1 %v5709_v13  ;;  %5194 = vmatmul.mubr.bf16.gmra.mxu0 %v5713_v30  ;;  %v5721_v30 = vld [vmem:[%s5846_s28 + $0x5bc] ss:$36 sps:$4 sm:$0xff]  }
 0x21d   : > { %v6771_v49 = vadd.f32 %v3084_v46, %v2796_v31  ;;  %v6774_v17 = vadd.f32 %v3245_v62, %v6492_v45  ;;  %3604 = vmatprep.mubr.bf16.mxu1 %v5716_v15  ;;  %5197 = vmatprep.mubr.bf16.mxu0 %v5717_v22  ;;  %v5722_v31 = vld [vmem:[%s5846_s28 + $0x260] ss:$36 sps:$4 sm:$0xff]   ;;  %v2804_v22 = vadd.f32 %v6738_v44, %v6256_v19 }
 0x21e   : > { %v3086_v61 = vpop.f32.mrf.mxu1  ;;  %v3247_v55 = vpop.f32.mrf.mxu0 }
 0x220   : > { %v3087_v56 = vpop.f32.mrf.mxu1  ;;  %v3248_v7 = vpop.f32.mrf.mxu0 }
 0x221   : > { %v6780_v27 = vadd.f32 %v3087_v56, %v2799_v21  ;;  %v6783_v13 = vadd.f32 %v3248_v7, %v6500_v60  ;;  %v7290_v21 = vld [vmem:[#allocation2_spill] sm:$0xff] }
 0x222   : > { %v3089_v45 = vpop.f32.mrf.mxu1  ;;  %v3250_v15 = vpop.f32.mrf.mxu0  ;;  %v2807_v56 = vadd.f32 %v6738_v44, %v7290_v21 }
 0x223   : > { %7287 = vst [vmem:[#allocation19_spill] sm:$0xff] %v6783_v13  ;;  %v5719_v45 = vld [vmem:[%s5846_s28 + $0x5b8] ss:$36 sps:$4 sm:$0xff]   ;;  %v5723_v15 = vld [vmem:[%s5846_s28 + $0x2a8] ss:$36 sps:$4 sm:$0xff]  }
 0x224   : > { %v3092_v46 = vpop.f32.mrf.mxu1  ;;  %v3253_v11 = vpop.f32.mrf.mxu0  ;;  %3605 = vmatmul.mubr.bf16.gmra.mxu1 %v5714_v57  ;;  %5198 = vmatmul.mubr.bf16.gmra.mxu0 %v5718_v1  ;;  %v7292_v57 = vld [vmem:[#allocation11_spill] sm:$0xff] }
 0x225   : > { %v6789_v62 = vadd.f32 %v3092_v46, %v2804_v22  ;;  %v6792_v60 = vadd.f32 %v3253_v11, %v6508_v16  ;;  %3612 = vmatprep.mubr.bf16.mxu1 %v5721_v30  ;;  %5201 = vmatprep.mubr.bf16.mxu0 %v5722_v31  ;;  %v5726_v22 = vld [vmem:[%s5846_s28 + $0x604] ss:$36 sps:$4 sm:$0xff]   ;;  %v5727_v46 = vld [vmem:[%s5846_s28 + $0x2f0] ss:$36 sps:$4 sm:$0xff]  }
 0x226   : > { %v3094_v61 = vpop.f32.mrf.mxu1  ;;  %v3255_v55 = vpop.f32.mrf.mxu0  ;;  %v7294_v31 = vld [vmem:[#allocation3_spill] sm:$0xff] }
 0x227   : > { %7288 = vst [vmem:[#allocation20_spill] sm:$0xff] %v6789_v62  ;;  %7289 = vst [vmem:[#allocation21_spill] sm:$0xff] %v6792_v60  ;;  %v2812_v11 = vadd.f32 %v6738_v44, %v7294_v31  ;;  %v5728_v60 = vld [vmem:[%s5846_s28 + $0x338] ss:$36 sps:$4 sm:$0xff]  }
 0x228   : > { %v3095_v7 = vpop.f32.mrf.mxu1  ;;  %v3256_v19 = vpop.f32.mrf.mxu0 }
 0x229   : > { %v6798_v13 = vadd.f32 %v3095_v7, %v2807_v56  ;;  %v6801_v1 = vadd.f32 %v3256_v19, %v7292_v57  ;;  %v7296_v56 = vld [vmem:[#allocation12_spill] sm:$0xff] }
 0x22a   : > { %v3097_v16 = vpop.f32.mrf.mxu1  ;;  %v3258_v30 = vpop.f32.mrf.mxu0 }
 0x22b   : > { %7291 = vst [vmem:[#allocation2_spill] sm:$0xff] %v6798_v13  ;;  %7293 = vst [vmem:[#allocation11_spill] sm:$0xff] %v6801_v1  ;;  %v7298_v16 = vld [vmem:[#allocation4_spill] sm:$0xff]  ;;  %v5724_v13 = vld [vmem:[%s5846_s28 + $0x600] ss:$36 sps:$4 sm:$0xff]  }
 0x22c   : > { %v3100_v61 = vpop.f32.mrf.mxu1  ;;  %v3261_v55 = vpop.f32.mrf.mxu0  ;;  %3613 = vmatmul.mubr.bf16.gmra.mxu1 %v5719_v45  ;;  %5202 = vmatmul.mubr.bf16.gmra.mxu0 %v5723_v15  ;;  %v2815_v30 = vadd.f32 %v6738_v44, %v7298_v16  ;;  %v7300_v45 = vld [vmem:[#allocation13_spill] sm:$0xff]  ;;  %v7304_v16 = vld [vmem:[#allocation14_spill] sm:$0xff] }
 0x22d   : > { %v6807_v21 = vadd.f32 %v3100_v61, %v2812_v11  ;;  %v6810_v7 = vadd.f32 %v3261_v55, %v7296_v56  ;;  %3620 = vmatprep.mubr.bf16.mxu1 %v5726_v22  ;;  %5205 = vmatprep.mubr.bf16.mxu0 %v5727_v46  ;;  %v5731_v11 = vld [vmem:[%s5846_s28 + $0x64c] ss:$36 sps:$4 sm:$0xff]   ;;  %v5732_v61 = vld [vmem:[%s5846_s28 + $0x380] ss:$36 sps:$4 sm:$0xff]   ;;  %v7302_v46 = vld [vmem:[#allocation5_spill] sm:$0xff] }
 0x22e   : > { %v3102_v19 = vpop.f32.mrf.mxu1  ;;  %v3263_v57 = vpop.f32.mrf.mxu0  ;;  %v2820_v56 = vadd.f32 %v6738_v44, %v7302_v46 }
 0x22f   : > { %7295 = vst [vmem:[#allocation3_spill] sm:$0xff] %v6807_v21  ;;  %7297 = vst [vmem:[#allocation12_spill] sm:$0xff] %v6810_v7  ;;  %v5733_v7 = vld [vmem:[%s5846_s28 + $0x3c8] ss:$36 sps:$4 sm:$0xff]  }
 0x230   : > { %v3103_v1 = vpop.f32.mrf.mxu1  ;;  %v3264_v31 = vpop.f32.mrf.mxu0 }
 0x231   : > { %v6816_v62 = vadd.f32 %v3103_v1, %v2815_v30  ;;  %v6819_v15 = vadd.f32 %v3264_v31, %v7300_v45 }
 0x232   : > { %v3105_v55 = vpop.f32.mrf.mxu1  ;;  %v3266_v22 = vpop.f32.mrf.mxu0 }
 0x233   : > { %7299 = vst [vmem:[#allocation4_spill] sm:$0xff] %v6816_v62  ;;  %7301 = vst [vmem:[#allocation13_spill] sm:$0xff] %v6819_v15  ;;  %v7306_v55 = vld [vmem:[#allocation6_spill] sm:$0xff]  ;;  %v5729_v62 = vld [vmem:[%s5846_s28 + $0x648] ss:$36 sps:$4 sm:$0xff]  }
 0x234   : > { %v3108_v19 = vpop.f32.mrf.mxu1  ;;  %v3269_v57 = vpop.f32.mrf.mxu0  ;;  %3621 = vmatmul.mubr.bf16.gmra.mxu1 %v5724_v13  ;;  %5206 = vmatmul.mubr.bf16.gmra.mxu0 %v5728_v60  ;;  %v2823_v22 = vadd.f32 %v6738_v44, %v7306_v55  ;;  %v7308_v13 = vld [vmem:[#allocation15_spill] sm:$0xff]  ;;  %v7311_v55 = vld [vmem:[#allocation16_spill] sm:$0xff] }
 0x235   : > { %v6825_v1 = vadd.f32 %v3108_v19, %v2820_v56  ;;  %v6828_v30 = vadd.f32 %v3269_v57, %v7304_v16  ;;  %3628 = vmatprep.mubr.bf16.mxu1 %v5731_v11  ;;  %5209 = vmatprep.mubr.bf16.mxu0 %v5732_v61  ;;  %v5736_v56 = vld [vmem:[%s5846_s28 + $0x694] ss:$36 sps:$4 sm:$0xff]   ;;  %v7310_v61 = vld [vmem:[#allocation7_spill] sm:$0xff] }
 0x236   : > { %v3110_v31 = vpop.f32.mrf.mxu1  ;;  %v3271_v45 = vpop.f32.mrf.mxu0  ;;  %v5737_v19 = vld [vmem:[%s5846_s28 + $0x410] ss:$36 sps:$4 sm:$0xff]   ;;  %v2828_v16 = vadd.f32 %v6738_v44, %v7310_v61 }
 0x237   : > { %7303 = vst [vmem:[#allocation5_spill] sm:$0xff] %v6825_v1  ;;  %7305 = vst [vmem:[#allocation14_spill] sm:$0xff] %v6828_v30  ;;  %v5738_v30 = vld [vmem:[%s5846_s28 + $0x458] ss:$36 sps:$4 sm:$0xff]  }
 0x238   : > { %v3111_v15 = vpop.f32.mrf.mxu1  ;;  %v3272_v46 = vpop.f32.mrf.mxu0 }
 0x239   : > { %v6834_v21 = vadd.f32 %v3111_v15, %v2823_v22  ;;  %v6837_v60 = vadd.f32 %v3272_v46, %v7308_v13 }
 0x23a   : > { %v3113_v57 = vpop.f32.mrf.mxu1  ;;  %v3274_v11 = vpop.f32.mrf.mxu0 }
 0x23b   : > { %7307 = vst [vmem:[#allocation6_spill] sm:$0xff] %v6834_v21  ;;  %7309 = vst [vmem:[#allocation15_spill] sm:$0xff] %v6837_v60  ;;  %v7313_v57 = vld [vmem:[#allocation8_spill] sm:$0xff] }
 0x23c   : > { %v3116_v31 = vpop.f32.mrf.mxu1  ;;  %v3277_v45 = vpop.f32.mrf.mxu0  ;;  %3629 = vmatmul.mubr.bf16.gmra.mxu1 %v5729_v62  ;;  %5210 = vmatmul.mubr.bf16.gmra.mxu0 %v5733_v7  ;;  %v2831_v11 = vadd.f32 %v6738_v44, %v7313_v57  ;;  %v5734_v21 = vld [vmem:[%s5846_s28 + $0x690] ss:$36 sps:$4 sm:$0xff]   ;;  %v7315_v62 = vld [vmem:[#allocation17_spill] sm:$0xff] }
 0x23d   : > { %v6843_v15 = vadd.f32 %v3116_v31, %v2828_v16  ;;  %v6846_v22 = vadd.f32 %v3277_v45, %v7311_v55  ;;  %3636 = vmatprep.mubr.bf16.mxu1 %v5736_v56  ;;  %5213 = vmatprep.mubr.bf16.mxu0 %v5737_v19  ;;  %v5741_v16 = vld [vmem:[%s5846_s28 + $0x6dc] ss:$36 sps:$4 sm:$0xff]  }
 0x23e   : > { %v3118_v46 = vpop.f32.mrf.mxu1  ;;  %v3279_v13 = vpop.f32.mrf.mxu0  ;;  %v5742_v31 = vld [vmem:[%s5846_s28 + $0x4a0] ss:$36 sps:$4 sm:$0xff]   ;;  %v7317_v19 = vld [vmem:[#allocation9_spill] sm:$0xff] }
 0x23f   : > { %7312 = vst [vmem:[#allocation7_spill] sm:$0xff] %v6846_v22  ;;  %v2836_v55 = vadd.f32 %v6738_v44, %v7317_v19 }
 0x240   : > { %v3119_v60 = vpop.f32.mrf.mxu1  ;;  %v3280_v61 = vpop.f32.mrf.mxu0 }
 0x241   : > { %v6852_v1 = vadd.f32 %v3119_v60, %v2831_v11  ;;  %v6855_v7 = vadd.f32 %v3280_v61, %v7315_v62  ;;  %v7318_v62 = vld [vmem:[#allocation10_spill] sm:$0xff] }
 0x242   : > { %v3121_v45 = vpop.f32.mrf.mxu1  ;;  %v3282_v56 = vpop.f32.mrf.mxu0 }
 0x243   : > { %7314 = vst [vmem:[#allocation16_spill] sm:$0xff] %v6852_v1  ;;  %7316 = vst [vmem:[#allocation8_spill] sm:$0xff] %v6855_v7  ;;  %v2839_v45 = vadd.f32 %v6738_v44, %v7318_v62  ;;  %v5739_v7 = vld [vmem:[%s5846_s28 + $0x6d8] ss:$36 sps:$4 sm:$0xff]   ;;  %v5743_v1 = vld [vmem:[%s5846_s28 + $0x4e8] ss:$36 sps:$4 sm:$0xff]  }
 0x244   : > { %v3124_v46 = vpop.f32.mrf.mxu1  ;;  %v3285_v13 = vpop.f32.mrf.mxu0  ;;  %3637 = vmatmul.mubr.bf16.gmra.mxu1 %v5734_v21  ;;  %5214 = vmatmul.mubr.bf16.gmra.mxu0 %v5738_v30  ;;  %v7319_v21 = vld [vmem:[#allocation18_spill] sm:$0xff] }
 0x245   : > { %v6861_v60 = vadd.f32 %v3124_v46, %v2836_v55  ;;  %v6864_v57 = vadd.f32 %v3285_v13, %v6572_v23  ;;  %3644 = vmatprep.mubr.bf16.mxu1 %v5741_v16  ;;  %5217 = vmatprep.mubr.bf16.mxu0 %v5742_v31  ;;  %v5746_v55 = vld [vmem:[%s5846_s28 + $0x724] ss:$36 sps:$4 sm:$0xff]   ;;  %v5747_v23 = vld [vmem:[%s5846_s28 + $0x530] ss:$36 sps:$4 sm:$0xff]  }
 0x246   : > { %v3126_v11 = vpop.f32.mrf.mxu1  ;;  %v3287_v61 = vpop.f32.mrf.mxu0 }
 0x248   : > { %v3127_v56 = vpop.f32.mrf.mxu1  ;;  %v3288_v19 = vpop.f32.mrf.mxu0 }
 0x249   : > { %v6870_v22 = vadd.f32 %v3127_v56, %v2839_v45  ;;  %v6873_v30 = vadd.f32 %v3288_v19, %v7319_v21  ;;  %v5744_v19 = vld [vmem:[%s5846_s28 + $0x720] ss:$36 sps:$4 sm:$0xff]   ;;  %v5748_v21 = vld [vmem:[%s5846_s28 + $0x578] ss:$36 sps:$4 sm:$0xff]  }
 0x24a   : > { %v3129_v16 = vpop.f32.mrf.mxu1  ;;  %v3290_v31 = vpop.f32.mrf.mxu0 }
 0x24c   : > { %v3293_v46 = vpop.f32.mrf.mxu0  ;;  %v3454_v13 = vpop.f32.mrf.mxu1  ;;  %3645 = vmatmul.mubr.bf16.gmra.mxu1 %v5739_v7  ;;  %5218 = vmatmul.mubr.bf16.gmra.mxu0 %v5743_v1  ;;  %v5751_v1 = vld [vmem:[%s5846_s28 + $0x76c] ss:$36 sps:$4 sm:$0xff]  }
 0x24d   : > { %v6878_v44 = vadd.f32 %v3293_v46, %v6586_v12  ;;  %v6881_v11 = vadd.f32 %v3454_v13, %v6589_v20  ;;  %3652 = vmatprep.mubr.bf16.mxu1 %v5746_v55  ;;  %5221 = vmatprep.mubr.bf16.mxu0 %v5747_v23  ;;  %v5752_v12 = vld [vmem:[%s5846_s28 + $0x5c0] ss:$36 sps:$4 sm:$0xff]  }
 0x24e   : > { %v3295_v61 = vpop.f32.mrf.mxu0  ;;  %v3456_v62 = vpop.f32.mrf.mxu1 }
 0x250   : > { %v3296_v45 = vpop.f32.mrf.mxu0  ;;  %v3457_v56 = vpop.f32.mrf.mxu1 }
 0x251   : > { %v6886_v16 = vadd.f32 %v3296_v45, %v6595_v5  ;;  %v6889_v7 = vadd.f32 %v3457_v56, %v6598_v53  ;;  %v5749_v45 = vld [vmem:[%s5846_s28 + $0x768] ss:$36 sps:$4 sm:$0xff]  }
 0x252   : > { %v3298_v20 = vpop.f32.mrf.mxu0  ;;  %v3459_v31 = vpop.f32.mrf.mxu1  ;;  %v5753_v56 = vld [vmem:[%s5846_s28 + $0x608] ss:$36 sps:$4 sm:$0xff]  }
 0x254   : > { %v3301_v55 = vpop.f32.mrf.mxu0  ;;  %v3462_v23 = vpop.f32.mrf.mxu1  ;;  %3653 = vmatmul.mubr.bf16.gmra.mxu1 %v5744_v19  ;;  %5222 = vmatmul.mubr.bf16.gmra.mxu0 %v5748_v21  ;;  %v5756_v21 = vld [vmem:[%s5846_s28 + $0x7b4] ss:$36 sps:$4 sm:$0xff]  }
 0x255   : > { %v6894_v46 = vadd.f32 %v3301_v55, %v6604_v63  ;;  %v6897_v5 = vadd.f32 %v3462_v23, %v6607_v32  ;;  %3660 = vmatprep.mubr.bf16.mxu1 %v5751_v1  ;;  %5225 = vmatprep.mubr.bf16.mxu0 %v5752_v12  ;;  %v5757_v63 = vld [vmem:[%s5846_s28 + $0x650] ss:$36 sps:$4 sm:$0xff]  }
 0x256   : > { %v3303_v53 = vpop.f32.mrf.mxu0  ;;  %v3464_v13 = vpop.f32.mrf.mxu1 }
 0x258   : > { %v3304_v61 = vpop.f32.mrf.mxu0  ;;  %v3465_v62 = vpop.f32.mrf.mxu1 }
 0x259   : > { %v6902_v20 = vadd.f32 %v3304_v61, %v6613_v34  ;;  %v6905_v19 = vadd.f32 %v3465_v62, %v6616_v0  ;;  %v5754_v61 = vld [vmem:[%s5846_s28 + $0x7b0] ss:$36 sps:$4 sm:$0xff]   ;;  %v5758_v62 = vld [vmem:[%s5846_s28 + $0x698] ss:$36 sps:$4 sm:$0xff]  }
 0x25a   : > { %v3306_v32 = vpop.f32.mrf.mxu0  ;;  %v3467_v31 = vpop.f32.mrf.mxu1 }
 0x25c   : > { %v3309_v1 = vpop.f32.mrf.mxu0  ;;  %v3470_v12 = vpop.f32.mrf.mxu1  ;;  %3661 = vmatmul.mubr.bf16.gmra.mxu1 %v5749_v45  ;;  %5226 = vmatmul.mubr.bf16.gmra.mxu0 %v5753_v56  ;;  %v5761_v56 = vld [vmem:[%s5846_s28 + $0x7fc] ss:$36 sps:$4 sm:$0xff]  }
 0x25d   : > { %v6910_v55 = vadd.f32 %v3309_v1, %v6622_v51  ;;  %v6913_v34 = vadd.f32 %v3470_v12, %v6625_v26  ;;  %3668 = vmatprep.mubr.bf16.mxu1 %v5756_v21  ;;  %5229 = vmatprep.mubr.bf16.mxu0 %v5757_v63  ;;  %v5762_v51 = vld [vmem:[%s5846_s28 + $0x6e0] ss:$36 sps:$4 sm:$0xff]  }
 0x25e   : > { %v3311_v0 = vpop.f32.mrf.mxu0  ;;  %v3472_v23 = vpop.f32.mrf.mxu1 }
 0x260   : > { %v3312_v53 = vpop.f32.mrf.mxu0  ;;  %v3473_v13 = vpop.f32.mrf.mxu1 }
 0x261   : > { %v6918_v32 = vadd.f32 %v3312_v53, %v6631_v35  ;;  %v6921_v45 = vadd.f32 %v3473_v13, %v6634_v40  ;;  %v5759_v53 = vld [vmem:[%s5846_s28 + $0x7f8] ss:$36 sps:$4 sm:$0xff]   ;;  %v5763_v13 = vld [vmem:[%s5846_s28 + $0x728] ss:$36 sps:$4 sm:$0xff]  }
 0x262   : > { %v3314_v26 = vpop.f32.mrf.mxu0  ;;  %v3475_v31 = vpop.f32.mrf.mxu1 }
 0x264   : > { %v3317_v21 = vpop.f32.mrf.mxu0  ;;  %v3478_v63 = vpop.f32.mrf.mxu1  ;;  %3669 = vmatmul.mubr.bf16.gmra.mxu1 %v5754_v61  ;;  %5230 = vmatmul.mubr.bf16.gmra.mxu0 %v5758_v62  ;;  %v5766_v62 = vld [vmem:[%s5846_s28 + $0x844] ss:$36 sps:$4 sm:$0xff]  }
 0x265   : > { %v6926_v1 = vadd.f32 %v3317_v21, %v6640_v59  ;;  %v6929_v35 = vadd.f32 %v3478_v63, %v6643_v54  ;;  %3676 = vmatprep.mubr.bf16.mxu1 %v5761_v56  ;;  %5233 = vmatprep.mubr.bf16.mxu0 %v5762_v51  ;;  %v5767_v59 = vld [vmem:[%s5846_s28 + $0x770] ss:$36 sps:$4 sm:$0xff]  }
 0x266   : > { %v3319_v40 = vpop.f32.mrf.mxu0  ;;  %v3480_v12 = vpop.f32.mrf.mxu1 }
 0x268   : > { %v3320_v0 = vpop.f32.mrf.mxu0  ;;  %v3481_v23 = vpop.f32.mrf.mxu1 }
 0x269   : > { %v6934_v26 = vadd.f32 %v3320_v0, %v6649_v41  ;;  %v6937_v61 = vadd.f32 %v3481_v23, %v6652_v42  ;;  %v5764_v0 = vld [vmem:[%s5846_s28 + $0x840] ss:$36 sps:$4 sm:$0xff]   ;;  %v5768_v23 = vld [vmem:[%s5846_s28 + $0x7b8] ss:$36 sps:$4 sm:$0xff]  }
 0x26a   : > { %v3322_v54 = vpop.f32.mrf.mxu0  ;;  %v3483_v31 = vpop.f32.mrf.mxu1 }
 0x26c   : > { %v3325_v56 = vpop.f32.mrf.mxu0  ;;  %v3486_v51 = vpop.f32.mrf.mxu1  ;;  %3677 = vmatmul.mubr.bf16.gmra.mxu1 %v5759_v53  ;;  %5234 = vmatmul.mubr.bf16.gmra.mxu0 %v5763_v13  ;;  %v5771_v13 = vld [vmem:[%s5846_s28 + $0x88c] ss:$36 sps:$4 sm:$0xff]  }
 0x26d   : > { %v6942_v21 = vadd.f32 %v3325_v56, %v6658_v58  ;;  %v6945_v41 = vadd.f32 %v3486_v51, %v6661_v28  ;;  %3684 = vmatprep.mubr.bf16.mxu1 %v5766_v62  ;;  %5237 = vmatprep.mubr.bf16.mxu0 %v5767_v59  ;;  %v5772_v58 = vld [vmem:[%s5846_s28 + $0x800] ss:$36 sps:$4 sm:$0xff]  }
 0x26e   : > { %v3327_v42 = vpop.f32.mrf.mxu0  ;;  %v3488_v63 = vpop.f32.mrf.mxu1 }
 0x270   : > { %v3328_v40 = vpop.f32.mrf.mxu0  ;;  %v3489_v12 = vpop.f32.mrf.mxu1 }
 0x271   : > { %v6950_v54 = vadd.f32 %v3328_v40, %v6667_v39  ;;  %v6953_v53 = vadd.f32 %v3489_v12, %v6670_v25  ;;  %v5769_v40 = vld [vmem:[%s5846_s28 + $0x888] ss:$36 sps:$4 sm:$0xff]  }
 0x272   : > { %v3330_v28 = vpop.f32.mrf.mxu0  ;;  %v3491_v31 = vpop.f32.mrf.mxu1  ;;  %v5773_v12 = vld [vmem:[%s5846_s28 + $0x848] ss:$36 sps:$4 sm:$0xff]  }
 0x274   : > { %v3333_v62 = vpop.f32.mrf.mxu0  ;;  %v3494_v59 = vpop.f32.mrf.mxu1  ;;  %3685 = vmatmul.mubr.bf16.gmra.mxu1 %v5764_v0  ;;  %5238 = vmatmul.mubr.bf16.gmra.mxu0 %v5768_v23  ;;  %v5776_v23 = vld [vmem:[%s5846_s28 + $0x8d4] ss:$36 sps:$4 sm:$0xff]  }
 0x275   : > { %v6958_v56 = vadd.f32 %v3333_v62, %v6676_v3  ;;  %v6961_v39 = vadd.f32 %v3494_v59, %v6679_v2  ;;  %3692 = vmatprep.mubr.bf16.mxu1 %v5771_v13  ;;  %5241 = vmatprep.mubr.bf16.mxu0 %v5772_v58  ;;  %v5777_v3 = vld [vmem:[%s5846_s28 + $0x890] ss:$36 sps:$4 sm:$0xff]  }
 0x276   : > { %v3335_v25 = vpop.f32.mrf.mxu0  ;;  %v3496_v51 = vpop.f32.mrf.mxu1 }
 0x278   : > { %v3336_v42 = vpop.f32.mrf.mxu0  ;;  %v3497_v63 = vpop.f32.mrf.mxu1 }
 0x279   : > { %v6966_v28 = vadd.f32 %v3336_v42, %v6685_v8  ;;  %v6969_v0 = vadd.f32 %v3497_v63, %v6688_v4  ;;  %v5774_v42 = vld [vmem:[%s5846_s28 + $0x8d0] ss:$36 sps:$4 sm:$0xff]   ;;  %v5778_v63 = vld [vmem:[%s5846_s28 + $0x8d8] ss:$36 sps:$4 sm:$0xff]   ;;  %s4446_s28 = sshll.u32 %s7369_s16, 2 }
 0x27a   : > { %v3338_v2 = vpop.f32.mrf.mxu0  ;;  %v3499_v31 = vpop.f32.mrf.mxu1  ;;  %s7108_s24 = scalar_lea.vmem %s7269_s3, %s4446_s28 }
 0x27c   : > { %v3341_v13 = vpop.f32.mrf.mxu0  ;;  %v3502_v58 = vpop.f32.mrf.mxu1  ;;  %3693 = vmatmul.mubr.bf16.gmra.mxu1 %v5769_v40  ;;  %5242 = vmatmul.mubr.bf16.gmra.mxu0 %v5773_v12 }
 0x27d   : > { %v6974_v62 = vadd.f32 %v3341_v13, %v6694_v24  ;;  %v6977_v59 = vadd.f32 %v3502_v58, %v6697_v50  ;;  %3700 = vmatprep.mubr.bf16.mxu1 %v5776_v23  ;;  %5245 = vmatprep.mubr.bf16.mxu0 %v5777_v3 }
 0x27e   : > { %v3343_v8 = vpop.f32.mrf.mxu0  ;;  %v3504_v4 = vpop.f32.mrf.mxu1 }
 0x280   : > { %v3344_v25 = vpop.f32.mrf.mxu0  ;;  %v3505_v51 = vpop.f32.mrf.mxu1 }
 0x281   : > { %v6982_v2 = vadd.f32 %v3344_v25, %v6703_v38  ;;  %v6985_v40 = vadd.f32 %v3505_v51, %v6706_v52 }
 0x282   : > { %v3346_v12 = vpop.f32.mrf.mxu0  ;;  %v3507_v24 = vpop.f32.mrf.mxu1 }
 0x283   : > { %7320 = vst [vmem:[#allocation17_spill] sm:$0xff] %v6982_v2  ;;  %v7344_v2 = vld [vmem:[#allocation6_spill] sm:$0xff] }
 0x284   : > { %v3349_v31 = vpop.f32.mrf.mxu0  ;;  %v3510_v13 = vpop.f32.mrf.mxu1  ;;  %3701 = vmatmul.mubr.bf16.gmra.mxu1 %v5774_v42  ;;  %5246 = vmatmul.mubr.bf16.gmra.mxu0 %v5778_v63 }
 0x285   : > { %v6988_v50 = vadd.f32 %v3349_v31, %v6712_v47  ;;  %v6991_v23 = vadd.f32 %v3510_v13, %v6715_v33 }
 0x286   : > { %v3351_v3 = vpop.f32.mrf.mxu0  ;;  %v3512_v58 = vpop.f32.mrf.mxu1 }
 0x288   : > { %v3352_v8 = vpop.f32.mrf.mxu0  ;;  %v3513_v38 = vpop.f32.mrf.mxu1 }
 0x289   : > { %v6994_v4 = vadd.f32 %v3352_v8, %v6721_v9  ;;  %v6997_v52 = vadd.f32 %v3513_v38, %v6724_v36 }
 0x28a   : > { %v3354_v25 = vpop.f32.mrf.mxu0  ;;  %v3515_v51 = vpop.f32.mrf.mxu1 }
 0x28b   : > { %7321 = vst [vmem:[#allocation9_spill] sm:$0xff] %v6994_v4  ;;  %v7348_v4 = vld [vmem:[#allocation16_spill] sm:$0xff] }
 0x28c   : > { %v3357_v42 = vpop.f32.mrf.mxu0  ;;  %v3518_v63 = vpop.f32.mrf.mxu1 }
 0x28d   : > { %v7000_v47 = vadd.f32 %v3357_v42, %v6730_v14  ;;  %v7003_v33 = vadd.f32 %v3518_v63, %v6733_v18 }
 0x28e   : > { %v3359_v12 = vpop.f32.mrf.mxu0  ;;  %v3520_v24 = vpop.f32.mrf.mxu1 }
 0x28f   : > { %7322 = vst [vmem:[#allocation10_spill] sm:$0xff] %v7000_v47  ;;  %v7338_v47 = vld [vmem:[#allocation4_spill] sm:$0xff] }
 0x290   : > { %v3360_v31 = vpop.f32.mrf.mxu0  ;;  %v3521_v13 = vpop.f32.mrf.mxu1 }
 0x291   : > { %v7006_v9 = vadd.f32 %v3360_v31, %v6744_v10  ;;  %v7009_v36 = vadd.f32 %v3521_v13, %v6747_v6 }
 0x292   : > { %v3362_v3 = vpop.f32.mrf.mxu0  ;;  %v3523_v58 = vpop.f32.mrf.mxu1 }
 0x293   : > { %7323 = vst [vmem:[#allocation18_spill] sm:$0xff] %v7006_v9  ;;  %v7332_v9 = vld [vmem:[#allocation2_spill] sm:$0xff] }
 0x294   : > { %v3365_v8 = vpop.f32.mrf.mxu0  ;;  %v3526_v38 = vpop.f32.mrf.mxu1 }
 0x295   : > { %v7012_v14 = vadd.f32 %v3365_v8, %v6753_v43  ;;  %v7015_v18 = vadd.f32 %v3526_v38, %v6756_v29 }
 0x296   : > { %v3367_v25 = vpop.f32.mrf.mxu0  ;;  %v3528_v51 = vpop.f32.mrf.mxu1 }
 0x297   : > { %7324 = vst [vmem:[#allocation22_spill] sm:$0xff] %v7012_v14  ;;  %v7328_v25 = vld [vmem:[#allocation19_spill] sm:$0xff]  ;;  %v7341_v14 = vld [vmem:[#allocation5_spill] sm:$0xff] }
 0x298   : > { %v3368_v42 = vpop.f32.mrf.mxu0  ;;  %v3529_v63 = vpop.f32.mrf.mxu1 }
 0x299   : > { %v7018_v10 = vadd.f32 %v3368_v42, %v6762_v48  ;;  %v7021_v6 = vadd.f32 %v3529_v63, %v6765_v37 }
 0x29a   : > { %v3370_v12 = vpop.f32.mrf.mxu0  ;;  %v3531_v24 = vpop.f32.mrf.mxu1 }
 0x29b   : > { %7325 = vst [vmem:[#allocation23_spill] sm:$0xff] %v7018_v10  ;;  %v7329_v24 = vld [vmem:[#allocation20_spill] sm:$0xff]  ;;  %v7335_v10 = vld [vmem:[#allocation3_spill] sm:$0xff] }
 0x29c   : > { %v3373_v31 = vpop.f32.mrf.mxu0  ;;  %v3534_v13 = vpop.f32.mrf.mxu1 }
 0x29d   : > { %v7024_v43 = vadd.f32 %v3373_v31, %v6771_v49  ;;  %v7027_v29 = vadd.f32 %v3534_v13, %v6774_v17  ;;  %v7331_v31 = vld [vmem:[#allocation21_spill] sm:$0xff] }
 0x29e   : > { %v3375_v3 = vpop.f32.mrf.mxu0  ;;  %v3536_v58 = vpop.f32.mrf.mxu1 }
 0x29f   : > { %7326 = vst [vmem:[#allocation24_spill] sm:$0xff] %v7024_v43 }
 0x2a0   : > { %v3376_v8 = vpop.f32.mrf.mxu0  ;;  %v3537_v38 = vpop.f32.mrf.mxu1 }
 0x2a1   : > { %v7030_v48 = vadd.f32 %v3376_v8, %v6780_v27  ;;  %v7033_v37 = vadd.f32 %v3537_v38, %v7328_v25  ;;  %v7334_v8 = vld [vmem:[#allocation11_spill] sm:$0xff] }
 0x2a2   : > { %v3378_v51 = vpop.f32.mrf.mxu0  ;;  %v3539_v42 = vpop.f32.mrf.mxu1 }
 0x2a3   : > { %7327 = vst [vmem:[#allocation25_spill] sm:$0xff] %v7030_v48 }
 0x2a4   : > { %v3381_v63 = vpop.f32.mrf.mxu0  ;;  %v3542_v12 = vpop.f32.mrf.mxu1 }
 0x2a5   : > { %v7036_v49 = vadd.f32 %v3381_v63, %v7329_v24  ;;  %v7039_v17 = vadd.f32 %v3542_v12, %v7331_v31  ;;  %v7337_v24 = vld [vmem:[#allocation12_spill] sm:$0xff] }
 0x2a6   : > { %v3383_v13 = vpop.f32.mrf.mxu0  ;;  %v3544_v3 = vpop.f32.mrf.mxu1 }
 0x2a7   : > { %7330 = vst [vmem:[#allocation19_spill] sm:$0xff] %v7036_v49 }
 0x2a8   : > { %v3384_v58 = vpop.f32.mrf.mxu0  ;;  %v3545_v43 = vpop.f32.mrf.mxu1 }
 0x2a9   : > { %v7042_v27 = vadd.f32 %v3384_v58, %v7332_v9  ;;  %v7045_v38 = vadd.f32 %v3545_v43, %v7334_v8  ;;  %v7340_v58 = vld [vmem:[#allocation13_spill] sm:$0xff] }
 0x2aa   : > { %v3386_v25 = vpop.f32.mrf.mxu0  ;;  %v3547_v51 = vpop.f32.mrf.mxu1 }
 0x2ab   : > { %7333 = vst [vmem:[#allocation20_spill] sm:$0xff] %v7042_v27 }
 0x2ac   : > { %v3389_v42 = vpop.f32.mrf.mxu0  ;;  %v3550_v48 = vpop.f32.mrf.mxu1 }
 0x2ad   : > { %v7048_v63 = vadd.f32 %v3389_v42, %v7335_v10  ;;  %v7051_v12 = vadd.f32 %v3550_v48, %v7337_v24  ;;  %v7343_v42 = vld [vmem:[#allocation14_spill] sm:$0xff] }
 0x2ae   : > { %v3391_v31 = vpop.f32.mrf.mxu0  ;;  %v3552_v13 = vpop.f32.mrf.mxu1 }
 0x2af   : > { %7336 = vst [vmem:[#allocation21_spill] sm:$0xff] %v7048_v63 }
 0x2b0   : > { %v3392_v3 = vpop.f32.mrf.mxu0  ;;  %v3553_v49 = vpop.f32.mrf.mxu1 }
 0x2b1   : > { %v7054_v9 = vadd.f32 %v3392_v3, %v7338_v47  ;;  %v7057_v43 = vadd.f32 %v3553_v49, %v7340_v58  ;;  %v7346_v3 = vld [vmem:[#allocation15_spill] sm:$0xff] }
 0x2b2   : > { %v3394_v8 = vpop.f32.mrf.mxu0  ;;  %v3555_v25 = vpop.f32.mrf.mxu1 }
 0x2b3   : > { %7339 = vst [vmem:[#allocation2_spill] sm:$0xff] %v7054_v9 }
 0x2b4   : > { %v3397_v51 = vpop.f32.mrf.mxu0  ;;  %v3558_v27 = vpop.f32.mrf.mxu1 }
 0x2b5   : > { %v7060_v10 = vadd.f32 %v3397_v51, %v7341_v14  ;;  %v7063_v48 = vadd.f32 %v3558_v27, %v7343_v42  ;;  %v7347_v51 = vld [vmem:[#allocation7_spill] sm:$0xff] }
 0x2b6   : > { %v3399_v24 = vpop.f32.mrf.mxu0  ;;  %v3560_v31 = vpop.f32.mrf.mxu1 }
 0x2b7   : > { %7342 = vst [vmem:[#allocation11_spill] sm:$0xff] %v7060_v10 }
 0x2b8   : > { %v3400_v13 = vpop.f32.mrf.mxu0  ;;  %v3561_v63 = vpop.f32.mrf.mxu1 }
 0x2b9   : > { %v7066_v47 = vadd.f32 %v3400_v13, %v7344_v2  ;;  %v7069_v49 = vadd.f32 %v3561_v63, %v7346_v3  ;;  %v7350_v13 = vld [vmem:[#allocation8_spill] sm:$0xff] }
 0x2ba   : > { %v3402_v58 = vpop.f32.mrf.mxu0  ;;  %v3563_v8 = vpop.f32.mrf.mxu1 }
 0x2bb   : > { %7345 = vst [vmem:[#allocation3_spill] sm:$0xff] %v7066_v47 }
 0x2bc   : > { %v3405_v25 = vpop.f32.mrf.mxu0  ;;  %v3566_v9 = vpop.f32.mrf.mxu1 }
 0x2bd   : > { %v7072_v14 = vadd.f32 %v3405_v25, %v6843_v15  ;;  %v7075_v27 = vadd.f32 %v3566_v9, %v7347_v51 }
 0x2be   : > { %v3407_v42 = vpop.f32.mrf.mxu0  ;;  %v3568_v24 = vpop.f32.mrf.mxu1 }
 0x2c0   : > { %v3408_v31 = vpop.f32.mrf.mxu0  ;;  %v3569_v10 = vpop.f32.mrf.mxu1 }
 0x2c1   : > { %v7078_v2 = vadd.f32 %v3408_v31, %v7348_v4  ;;  %v7081_v63 = vadd.f32 %v3569_v10, %v7350_v13 }
 0x2c2   : > { %v3410_v3 = vpop.f32.mrf.mxu0  ;;  %v3571_v58 = vpop.f32.mrf.mxu1 }
 0x2c3   : > { %7349 = vst [vmem:[#allocation12_spill] sm:$0xff] %v7078_v2 }
 0x2c4   : > { %v3413_v8 = vpop.f32.mrf.mxu0  ;;  %v3574_v47 = vpop.f32.mrf.mxu1 }
 0x2c5   : > { %v7084_v15 = vadd.f32 %v3413_v8, %v6861_v60  ;;  %v7087_v9 = vadd.f32 %v3574_v47, %v6864_v57 }
 0x2c6   : > { %v3415_v25 = vpop.f32.mrf.mxu0  ;;  %v3576_v51 = vpop.f32.mrf.mxu1 }
 0x2c8   : > { %v3416_v42 = vpop.f32.mrf.mxu0  ;;  %v7089_v24 = vpop.f32.mrf.mxu1 }
 0x2c9   : > { %v7092_v4 = vadd.f32 %v3416_v42, %v6870_v22 }
 0x2ca   : > { %v3418_v10 = vpop.f32.mrf.mxu0  ;;  %v3579_v31 = vpop.f32.mrf.mxu1 }
 0x2cb   : > { %7351 = vst [vmem:[#allocation4_spill] sm:$0xff] %v7092_v4 }
 0x2cc   : > { %v3582_v13 = vpop.f32.mrf.mxu1  ;;  %v5187_v3 = vpop.f32.mrf.mxu0 }
 0x2cd   : > { %v7095_v58 = vadd.f32 %v3582_v13, %v6878_v44  ;;  %v3752_v57 = vadd.f32 %v5187_v3, %v6897_v5 }
 0x2ce   : > { %v3584_v60 = vpop.f32.mrf.mxu1  ;;  %v3743_v8 = vpop.f32.mrf.mxu0 }
 0x2cf   : > { %v3744_v51 = vadd.f32 %v3743_v8, %v6881_v11  ;;  %v4000_v31 = vmax.f32 %v3752_v57, 0.0 }
 0x2d0   : > { %v3585_v47 = vpop.f32.mrf.mxu1  ;;  %v5188_v25 = vpop.f32.mrf.mxu0 }
 0x2d1   : > { %v7100_v2 = vadd.f32 %v3585_v47, %v6886_v16  ;;  %v3755_v22 = vadd.f32 %v5188_v25, %v6905_v19  ;;  %v3998_v5 = vmax.f32 %v3744_v51, 0.0 }
 0x2d2   : > { %v3587_v42 = vpop.f32.mrf.mxu1  ;;  %v3746_v10 = vpop.f32.mrf.mxu0 }
 0x2d3   : > { %v4001_v4 = vmax.f32 %v3755_v22, 0.0  ;;  %v3747_v44 = vadd.f32 %v3746_v10, %v6889_v7 }
 0x2d4   : > { %v7110_v11 = vpop.f32.mrf.mxu1  ;;  %v5191_v16 = vpop.f32.mrf.mxu0 }
 0x2d5   : > { %v4946_v13 = vpack.c.bf16 %v4001_v4, %v4000_v31  ;;  %v3999_v3 = vmax.f32 %v3747_v44, 0.0  ;;  %v3768_v57 = vadd.f32 %v5191_v16, %v6929_v35 }
 0x2d6   : > { %v3592_v19 = vpop.f32.mrf.mxu1  ;;  %v3759_v60 = vpop.f32.mrf.mxu0 }
 0x2d7   : > { %5098 = vst [vmem:[%s7108_s24 + $0x8] sm:$0xff] %v4946_v13   ;;  %v4941_v8 = vpack.c.bf16 %v3999_v3, %v3998_v5  ;;  %v3760_v25 = vadd.f32 %v3759_v60, %v6913_v34  ;;  %v4004_v4 = vmax.f32 %v3768_v57, 0.0 }
 0x2d8   : > { %v7114_v7 = vpop.f32.mrf.mxu1  ;;  %v5192_v47 = vpop.f32.mrf.mxu0 }
 0x2d9   : > { %4942 = vst [vmem:[%s7108_s24] sm:$0xff] %v4941_v8   ;;  %v3771_v22 = vadd.f32 %v5192_v47, %v6937_v61  ;;  %v4002_v35 = vmax.f32 %v3760_v25, 0.0 }
 0x2da   : > { %v3595_v42 = vpop.f32.mrf.mxu1  ;;  %v3762_v10 = vpop.f32.mrf.mxu0 }
 0x2db   : > { %v4005_v51 = vmax.f32 %v3771_v22, 0.0  ;;  %v3763_v31 = vadd.f32 %v3762_v10, %v6921_v45 }
 0x2dc   : > { %v7120_v44 = vpop.f32.mrf.mxu1  ;;  %v5195_v5 = vpop.f32.mrf.mxu0 }
 0x2dd   : > { %v4956_v16 = vpack.c.bf16 %v4005_v51, %v4004_v4  ;;  %v4003_v13 = vmax.f32 %v3763_v31, 0.0  ;;  %v3784_v34 = vadd.f32 %v5195_v5, %v6961_v39 }
 0x2de   : > { %v3600_v3 = vpop.f32.mrf.mxu1  ;;  %v3775_v19 = vpop.f32.mrf.mxu0 }
 0x2df   : > { %5100 = vst [vmem:[%s7108_s24 + $0x18] sm:$0xff] %v4956_v16   ;;  %v4951_v8 = vpack.c.bf16 %v4003_v13, %v4002_v35  ;;  %v3776_v57 = vadd.f32 %v3775_v19, %v6945_v41  ;;  %v4008_v25 = vmax.f32 %v3784_v34, 0.0 }
 0x2e0   : > { %v7124_v61 = vpop.f32.mrf.mxu1  ;;  %v5196_v60 = vpop.f32.mrf.mxu0 }
 0x2e1   : > { %5099 = vst [vmem:[%s7108_s24 + $0x10] sm:$0xff] %v4951_v8   ;;  %v3787_v45 = vadd.f32 %v5196_v60, %v6969_v0  ;;  %v4006_v39 = vmax.f32 %v3776_v57, 0.0 }
 0x2e2   : > { %v3603_v47 = vpop.f32.mrf.mxu1  ;;  %v3778_v22 = vpop.f32.mrf.mxu0 }
 0x2e3   : > { %v4009_v42 = vmax.f32 %v3787_v45, 0.0  ;;  %v3779_v10 = vadd.f32 %v3778_v22, %v6953_v53 }
 0x2e4   : > { %v7130_v4 = vpop.f32.mrf.mxu1  ;;  %v5199_v51 = vpop.f32.mrf.mxu0 }
 0x2e5   : > { %v4966_v31 = vpack.c.bf16 %v4009_v42, %v4008_v25  ;;  %v4007_v5 = vmax.f32 %v3779_v10, 0.0  ;;  %v3800_v41 = vadd.f32 %v5199_v51, %v6991_v23 }
 0x2e6   : > { %v3608_v35 = vpop.f32.mrf.mxu1  ;;  %v3791_v16 = vpop.f32.mrf.mxu0 }
 0x2e7   : > { %5102 = vst [vmem:[%s7108_s24 + $0x28] sm:$0xff] %v4966_v31   ;;  %v4961_v13 = vpack.c.bf16 %v4007_v5, %v4006_v39  ;;  %v3792_v19 = vadd.f32 %v3791_v16, %v6977_v59  ;;  %v4012_v60 = vmax.f32 %v3800_v41, 0.0 }
 0x2e8   : > { %v7134_v0 = vpop.f32.mrf.mxu1  ;;  %v5200_v3 = vpop.f32.mrf.mxu0 }
 0x2e9   : > { %5101 = vst [vmem:[%s7108_s24 + $0x20] sm:$0xff] %v4961_v13   ;;  %v3803_v53 = vadd.f32 %v5200_v3, %v6997_v52  ;;  %v4010_v23 = vmax.f32 %v3792_v19, 0.0 }
 0x2ea   : > { %v3611_v8 = vpop.f32.mrf.mxu1  ;;  %v3794_v34 = vpop.f32.mrf.mxu0 }
 0x2eb   : > { %v4013_v57 = vmax.f32 %v3803_v53, 0.0  ;;  %v3795_v45 = vadd.f32 %v3794_v34, %v6985_v40 }
 0x2ec   : > { %v7140_v47 = vpop.f32.mrf.mxu1  ;;  %v5203_v22 = vpop.f32.mrf.mxu0 }
 0x2ed   : > { %v4976_v25 = vpack.c.bf16 %v4013_v57, %v4012_v60  ;;  %v4011_v42 = vmax.f32 %v3795_v45, 0.0  ;;  %v3816_v59 = vadd.f32 %v5203_v22, %v7015_v18 }
 0x2ee   : > { %v3616_v10 = vpop.f32.mrf.mxu1  ;;  %v3807_v51 = vpop.f32.mrf.mxu0 }
 0x2ef   : > { %5104 = vst [vmem:[%s7108_s24 + $0x38] sm:$0xff] %v4976_v25   ;;  %v4971_v39 = vpack.c.bf16 %v4011_v42, %v4010_v23  ;;  %v3808_v5 = vadd.f32 %v3807_v51, %v7003_v33  ;;  %v4016_v13 = vmax.f32 %v3816_v59, 0.0 }
 0x2f0   : > { %v7144_v52 = vpop.f32.mrf.mxu1  ;;  %v5204_v31 = vpop.f32.mrf.mxu0 }
 0x2f1   : > { %5103 = vst [vmem:[%s7108_s24 + $0x30] sm:$0xff] %v4971_v39   ;;  %v3819_v40 = vadd.f32 %v5204_v31, %v7021_v6  ;;  %v4014_v18 = vmax.f32 %v3808_v5, 0.0 }
 0x2f2   : > { %v3619_v35 = vpop.f32.mrf.mxu1  ;;  %v3810_v16 = vpop.f32.mrf.mxu0 }
 0x2f3   : > { %v4017_v41 = vmax.f32 %v3819_v40, 0.0  ;;  %v3811_v3 = vadd.f32 %v3810_v16, %v7009_v36 }
 0x2f4   : > { %v7150_v19 = vpop.f32.mrf.mxu1  ;;  %v5207_v53 = vpop.f32.mrf.mxu0 }
 0x2f5   : > { %v4986_v8 = vpack.c.bf16 %v4017_v41, %v4016_v13  ;;  %v4015_v34 = vmax.f32 %v3811_v3, 0.0  ;;  %v3832_v33 = vadd.f32 %v5207_v53, %v7039_v17 }
 0x2f6   : > { %v3624_v60 = vpop.f32.mrf.mxu1  ;;  %v3823_v57 = vpop.f32.mrf.mxu0 }
 0x2f7   : > { %5106 = vst [vmem:[%s7108_s24 + $0x48] sm:$0xff] %v4986_v8   ;;  %v4981_v45 = vpack.c.bf16 %v4015_v34, %v4014_v18  ;;  %v3824_v23 = vadd.f32 %v3823_v57, %v7027_v29  ;;  %v4020_v10 = vmax.f32 %v3832_v33, 0.0 }
 0x2f8   : > { %v7154_v6 = vpop.f32.mrf.mxu1  ;;  %v5208_v22 = vpop.f32.mrf.mxu0 }
 0x2f9   : > { %5105 = vst [vmem:[%s7108_s24 + $0x40] sm:$0xff] %v4981_v45   ;;  %v3835_v36 = vadd.f32 %v5208_v22, %v7045_v38  ;;  %v4018_v17 = vmax.f32 %v3824_v23, 0.0 }
 0x2fa   : > { %v3627_v25 = vpop.f32.mrf.mxu1  ;;  %v3826_v42 = vpop.f32.mrf.mxu0 }
 0x2fb   : > { %v4021_v51 = vmax.f32 %v3835_v36, 0.0  ;;  %v3827_v39 = vadd.f32 %v3826_v42, %v7033_v37 }
 0x2fc   : > { %v7160_v59 = vpop.f32.mrf.mxu1  ;;  %v5211_v31 = vpop.f32.mrf.mxu0 }
 0x2fd   : > { %v4996_v5 = vpack.c.bf16 %v4021_v51, %v4020_v10  ;;  %v4019_v40 = vmax.f32 %v3827_v39, 0.0  ;;  %v3848_v29 = vadd.f32 %v5211_v31, %v7063_v48 }
 0x2fe   : > { %v3632_v35 = vpop.f32.mrf.mxu1  ;;  %v3839_v16 = vpop.f32.mrf.mxu0 }
 0x2ff   : > { %5108 = vst [vmem:[%s7108_s24 + $0x58] sm:$0xff] %v4996_v5   ;;  %v4991_v13 = vpack.c.bf16 %v4019_v40, %v4018_v17  ;;  %v3840_v3 = vadd.f32 %v3839_v16, %v7051_v12  ;;  %v4024_v8 = vmax.f32 %v3848_v29, 0.0  ;;  %v3578_v12 = vadd.f32 %v7089_v24, %v6873_v30 }
 0x300   : > { %v7164_v38 = vpop.f32.mrf.mxu1  ;;  %v5212_v41 = vpop.f32.mrf.mxu0 }
 0x301   : > { %5107 = vst [vmem:[%s7108_s24 + $0x50] sm:$0xff] %v4991_v13   ;;  %v3851_v37 = vadd.f32 %v5212_v41, %v7069_v49  ;;  %v4022_v48 = vmax.f32 %v3840_v3, 0.0  ;;  %v3594_v41 = vadd.f32 %v7114_v7, %v6902_v20  ;;  %v3607_v7 = vadd.f32 %v7130_v4, %v6926_v1 }
 0x302   : > { %v3635_v53 = vpop.f32.mrf.mxu1  ;;  %v3842_v18 = vpop.f32.mrf.mxu0  ;;  %v3602_v1 = vadd.f32 %v7124_v61, %v6918_v32 }
 0x303   : > { %v4025_v34 = vmax.f32 %v3851_v37, 0.0  ;;  %v3843_v60 = vadd.f32 %v3842_v18, %v7057_v43 }
 0x304   : > { %v7170_v57 = vpop.f32.mrf.mxu1  ;;  %v5215_v45 = vpop.f32.mrf.mxu0 }
 0x305   : > { %v5006_v33 = vpack.c.bf16 %v4025_v34, %v4024_v8  ;;  %v4023_v22 = vmax.f32 %v3843_v60, 0.0  ;;  %v3864_v25 = vadd.f32 %v5215_v45, %v7087_v9  ;;  %v3591_v9 = vadd.f32 %v7110_v11, %v6894_v46 }
 0x306   : > { %v3640_v23 = vpop.f32.mrf.mxu1  ;;  %v3855_v36 = vpop.f32.mrf.mxu0 }
 0x307   : > { %5110 = vst [vmem:[%s7108_s24 + $0x68] sm:$0xff] %v5006_v33   ;;  %v5001_v49 = vpack.c.bf16 %v4023_v22, %v4022_v48  ;;  %v3856_v43 = vadd.f32 %v3855_v36, %v7075_v27  ;;  %v4028_v17 = vmax.f32 %v3864_v25, 0.0 }
 0x308   : > { %v7176_v42 = vpop.f32.mrf.mxu1  ;;  %v5216_v10 = vpop.f32.mrf.mxu0 }
 0x309   : > { %5109 = vst [vmem:[%s7108_s24 + $0x60] sm:$0xff] %v5001_v49   ;;  %v3867_v51 = vadd.f32 %v5216_v10, %v3578_v12  ;;  %v4026_v35 = vmax.f32 %v3856_v43, 0.0  ;;  %v3599_v12 = vadd.f32 %v7120_v44, %v6910_v55  ;;  %v3610_v49 = vadd.f32 %v7134_v0, %v6934_v26 }
 0x30a   : > { %v3643_v39 = vpop.f32.mrf.mxu1  ;;  %v3858_v31 = vpop.f32.mrf.mxu0  ;;  %v3623_v0 = vadd.f32 %v7150_v19, %v6958_v56  ;;  %v3618_v56 = vadd.f32 %v7144_v52, %v6950_v54  ;;  %v3631_v52 = vadd.f32 %v7160_v59, %v6974_v62 }
 0x30b   : > { %v4029_v5 = vmax.f32 %v3867_v51, 0.0  ;;  %v3859_v40 = vadd.f32 %v3858_v31, %v7081_v63 }
 0x30c   : > { %v7181_v30 = vpop.f32.mrf.mxu1  ;;  %v5219_v24 = vpop.f32.mrf.mxu0 }
 0x30d   : > { %v5016_v16 = vpack.c.bf16 %v4029_v5, %v4028_v17  ;;  %v4027_v13 = vmax.f32 %v3859_v40, 0.0  ;;  %v3880_v37 = vadd.f32 %v5219_v24, %v3591_v9 }
 0x30e   : > { %v3648_v29 = vpop.f32.mrf.mxu1  ;;  %v3871_v27 = vpop.f32.mrf.mxu0 }
 0x30f   : > { %5112 = vst [vmem:[%s7108_s24 + $0x78] sm:$0xff] %v5016_v16   ;;  %v5011_v3 = vpack.c.bf16 %v4027_v13, %v4026_v35  ;;  %v3872_v18 = vadd.f32 %v3871_v27, %v7095_v58  ;;  %v4032_v34 = vmax.f32 %v3880_v37, 0.0  ;;  %v3615_v35 = vadd.f32 %v7140_v47, %v6942_v21 }
 0x310   : > { %v7188_v53 = vpop.f32.mrf.mxu1  ;;  %v5220_v63 = vpop.f32.mrf.mxu0  ;;  %v3626_v16 = vadd.f32 %v7154_v6, %v6966_v28  ;;  %v3639_v6 = vadd.f32 %v7170_v57, %v6988_v50 }
 0x311   : > { %5111 = vst [vmem:[%s7108_s24 + $0x70] sm:$0xff] %v5011_v3   ;;  %v3883_v8 = vadd.f32 %v5220_v63, %v3594_v41  ;;  %v4030_v33 = vmax.f32 %v3872_v18, 0.0 }
 0x312   : > { %v3651_v46 = vpop.f32.mrf.mxu1  ;;  %v3874_v11 = vpop.f32.mrf.mxu0 }
 0x313   : > { %v4033_v60 = vmax.f32 %v3883_v8, 0.0  ;;  %v3875_v45 = vadd.f32 %v3874_v11, %v7100_v2 }
 0x314   : > { %v7193_v48 = vpop.f32.mrf.mxu1  ;;  %v5223_v20 = vpop.f32.mrf.mxu0 }
 0x315   : > { %v5026_v22 = vpack.c.bf16 %v4033_v60, %v4032_v34  ;;  %v4031_v23 = vmax.f32 %v3875_v45, 0.0  ;;  %v3896_v25 = vadd.f32 %v5223_v20, %v3607_v7  ;;  %v7352_v45 = vld [vmem:[#allocation9_spill] sm:$0xff] }
 0x316   : > { %v3656_v36 = vpop.f32.mrf.mxu1  ;;  %v3887_v58 = vpop.f32.mrf.mxu0  ;;  %v3642_v20 = vadd.f32 %v7176_v42, %v7352_v45 }
 0x317   : > { %5114 = vst [vmem:[%s7108_s24 + $0x88] sm:$0xff] %v5026_v22   ;;  %v5021_v2 = vpack.c.bf16 %v4031_v23, %v4030_v33  ;;  %v3888_v4 = vadd.f32 %v3887_v58, %v3599_v12  ;;  %v4036_v17 = vmax.f32 %v3896_v25, 0.0  ;;  %v7353_v36 = vld [vmem:[#allocation17_spill] sm:$0xff] }
 0x318   : > { %v7202_v10 = vpop.f32.mrf.mxu1  ;;  %v5224_v43 = vpop.f32.mrf.mxu0  ;;  %v3634_v58 = vadd.f32 %v7164_v38, %v7353_v36 }
 0x319   : > { %5113 = vst [vmem:[%s7108_s24 + $0x80] sm:$0xff] %v5021_v2   ;;  %v3899_v51 = vadd.f32 %v5224_v43, %v3610_v49  ;;  %v4034_v40 = vmax.f32 %v3888_v4, 0.0  ;;  %v7354_v43 = vld [vmem:[#allocation22_spill] sm:$0xff] }
 0x31a   : > { %v3659_v39 = vpop.f32.mrf.mxu1  ;;  %v3890_v31 = vpop.f32.mrf.mxu0 }
 0x31b   : > { %v4037_v55 = vmax.f32 %v3899_v51, 0.0  ;;  %v3891_v44 = vadd.f32 %v3890_v31, %v3602_v1  ;;  %v3655_v1 = vadd.f32 %v7193_v48, %v7354_v43  ;;  %v7364_v43 = vld [vmem:[#allocation3_spill] sm:$0xff] }
 0x31c   : > { %v7207_v5 = vpop.f32.mrf.mxu1  ;;  %v5227_v26 = vpop.f32.mrf.mxu0 }
 0x31d   : > { %v5036_v24 = vpack.c.bf16 %v4037_v55, %v4036_v17  ;;  %v4035_v9 = vmax.f32 %v3891_v44, 0.0  ;;  %v3912_v29 = vadd.f32 %v5227_v26, %v3623_v0  ;;  %v7355_v17 = vld [vmem:[#allocation10_spill] sm:$0xff]  ;;  %v7356_v44 = vld [vmem:[#allocation23_spill] sm:$0xff] }
 0x31e   : > { %v3664_v32 = vpop.f32.mrf.mxu1  ;;  %v3903_v61 = vpop.f32.mrf.mxu0  ;;  %v3647_v55 = vadd.f32 %v7181_v30, %v7355_v17  ;;  %v3658_v26 = vadd.f32 %v7202_v10, %v7356_v44 }
 0x31f   : > { %5116 = vst [vmem:[%s7108_s24 + $0x98] sm:$0xff] %v5036_v24   ;;  %v5031_v13 = vpack.c.bf16 %v4035_v9, %v4034_v40  ;;  %v3904_v19 = vadd.f32 %v3903_v61, %v3615_v35  ;;  %v4040_v18 = vmax.f32 %v3912_v29, 0.0  ;;  %v7357_v32 = vld [vmem:[#allocation18_spill] sm:$0xff] }
 0x320   : > { %v7216_v27 = vpop.f32.mrf.mxu1  ;;  %v5228_v41 = vpop.f32.mrf.mxu0  ;;  %v3650_v61 = vadd.f32 %v7188_v53, %v7357_v32  ;;  %v7359_v53 = vld [vmem:[#allocation24_spill] sm:$0xff] }
 0x321   : > { %5115 = vst [vmem:[%s7108_s24 + $0x90] sm:$0xff] %v5031_v13   ;;  %v3915_v3 = vadd.f32 %v5228_v41, %v3626_v16  ;;  %v4038_v46 = vmax.f32 %v3904_v19, 0.0  ;;  %v7358_v19 = vld [vmem:[#allocation19_spill] sm:$0xff] }
 0x322   : > { %v3667_v37 = vpop.f32.mrf.mxu1  ;;  %v3906_v63 = vpop.f32.mrf.mxu0 }
 0x323   : > { %v4041_v21 = vmax.f32 %v3915_v3, 0.0  ;;  %v3907_v47 = vadd.f32 %v3906_v63, %v3618_v56 }
 0x324   : > { %v3670_v8 = vpop.f32.mrf.mxu1  ;;  %v5231_v28 = vpop.f32.mrf.mxu0 }
 0x325   : > { %v5046_v11 = vpack.c.bf16 %v4041_v21, %v4040_v18  ;;  %v4039_v34 = vmax.f32 %v3907_v47, 0.0  ;;  %v3928_v33 = vadd.f32 %v5231_v28, %v3639_v6  ;;  %v3671_v3 = vadd.f32 %v3670_v8, %v7358_v19  ;;  %v7360_v6 = vld [vmem:[#allocation20_spill] sm:$0xff] }
 0x326   : > { %v3672_v60 = vpop.f32.mrf.mxu1  ;;  %v3919_v54 = vpop.f32.mrf.mxu0  ;;  %v3663_v28 = vadd.f32 %v7207_v5, %v7359_v53  ;;  %v7366_v19 = vld [vmem:[#allocation12_spill] sm:$0xff] }
 0x327   : > { %5118 = vst [vmem:[%s7108_s24 + $0xa8] sm:$0xff] %v5046_v11   ;;  %v5041_v7 = vpack.c.bf16 %v4039_v34, %v4038_v46  ;;  %v3920_v50 = vadd.f32 %v3919_v54, %v3631_v52  ;;  %v4044_v2 = vmax.f32 %v3928_v33, 0.0  ;;  %v7361_v52 = vld [vmem:[#allocation25_spill] sm:$0xff] }
 0x328   : > { %v3673_v22 = vpop.f32.mrf.mxu1  ;;  %v5232_v23 = vpop.f32.mrf.mxu0  ;;  %v3666_v45 = vadd.f32 %v7216_v27, %v7361_v52  ;;  %v7363_v27 = vld [vmem:[#allocation21_spill] sm:$0xff] }
 0x329   : > { %5117 = vst [vmem:[%s7108_s24 + $0xa0] sm:$0xff] %v5041_v7   ;;  %v3931_v57 = vadd.f32 %v5232_v23, %v3642_v20  ;;  %v4042_v4 = vmax.f32 %v3920_v50, 0.0  ;;  %v3674_v46 = vadd.f32 %v3673_v22, %v7360_v6  ;;  %v7362_v50 = vld [vmem:[#allocation11_spill] sm:$0xff] }
 0x32a   : > { %v3675_v12 = vpop.f32.mrf.mxu1  ;;  %v3922_v49 = vpop.f32.mrf.mxu0 }
 0x32b   : > { %v4045_v25 = vmax.f32 %v3931_v57, 0.0  ;;  %v3923_v62 = vadd.f32 %v3922_v49, %v3634_v58 }
 0x32c   : > { %v3678_v59 = vpop.f32.mrf.mxu1  ;;  %v5235_v42 = vpop.f32.mrf.mxu0 }
 0x32d   : > { %v5056_v51 = vpack.c.bf16 %v4045_v25, %v4044_v2  ;;  %v4043_v39 = vmax.f32 %v3923_v62, 0.0  ;;  %v3944_v40 = vadd.f32 %v5235_v42, %v3655_v1  ;;  %v3679_v42 = vadd.f32 %v3678_v59, %v7363_v27 }
 0x32e   : > { %v3680_v31 = vpop.f32.mrf.mxu1  ;;  %v3935_v38 = vpop.f32.mrf.mxu0 }
 0x32f   : > { %5120 = vst [vmem:[%s7108_s24 + $0xb8] sm:$0xff] %v5056_v51   ;;  %v5051_v0 = vpack.c.bf16 %v4043_v39, %v4042_v4  ;;  %v3936_v48 = vadd.f32 %v3935_v38, %v3647_v55  ;;  %v4048_v29 = vmax.f32 %v3944_v40, 0.0  ;;  %v7365_v38 = vld [vmem:[#allocation2_spill] sm:$0xff] }
 0x330   : > { %v3681_v24 = vpop.f32.mrf.mxu1  ;;  %v5236_v9 = vpop.f32.mrf.mxu0 }
 0x331   : > { %5119 = vst [vmem:[%s7108_s24 + $0xb0] sm:$0xff] %v5051_v0   ;;  %v3947_v35 = vadd.f32 %v5236_v9, %v3658_v26  ;;  %v4046_v37 = vmax.f32 %v3936_v48, 0.0  ;;  %v3682_v17 = vadd.f32 %v3681_v24, %v7365_v38 }
 0x332   : > { %v3683_v16 = vpop.f32.mrf.mxu1  ;;  %v3938_v13 = vpop.f32.mrf.mxu0 }
 0x333   : > { %v4049_v41 = vmax.f32 %v3947_v35, 0.0  ;;  %v3939_v30 = vadd.f32 %v3938_v13, %v3650_v61 }
 0x334   : > { %v3686_v56 = vpop.f32.mrf.mxu1  ;;  %v5239_v10 = vpop.f32.mrf.mxu0 }
 0x335   : > { %v5066_v63 = vpack.c.bf16 %v4049_v41, %v4048_v29  ;;  %v4047_v18 = vmax.f32 %v3939_v30, 0.0  ;;  %v3960_v34 = vadd.f32 %v5239_v10, %v3671_v3  ;;  %v3687_v57 = vadd.f32 %v3686_v56, %v7362_v50 }
 0x336   : > { %v3688_v21 = vpop.f32.mrf.mxu1  ;;  %v3951_v47 = vpop.f32.mrf.mxu0 }
 0x337   : > { %5122 = vst [vmem:[%s7108_s24 + $0xc8] sm:$0xff] %v5066_v63   ;;  %v5061_v11 = vpack.c.bf16 %v4047_v18, %v4046_v37  ;;  %v3952_v8 = vadd.f32 %v3951_v47, %v3663_v28  ;;  %v4052_v23 = vmax.f32 %v3960_v34, 0.0  ;;  %v7367_v18 = vld [vmem:[#allocation4_spill] sm:$0xff] }
 0x338   : > { %v3689_v60 = vpop.f32.mrf.mxu1  ;;  %v5240_v54 = vpop.f32.mrf.mxu0 }
 0x339   : > { %5121 = vst [vmem:[%s7108_s24 + $0xc0] sm:$0xff] %v5061_v11   ;;  %v3963_v20 = vadd.f32 %v5240_v54, %v3674_v46  ;;  %v4050_v12 = vmax.f32 %v3952_v8, 0.0  ;;  %v3690_v1 = vadd.f32 %v3689_v60, %v7364_v43 }
 0x33a   : > { %v3691_v7 = vpop.f32.mrf.mxu1  ;;  %v3954_v33 = vpop.f32.mrf.mxu0 }
 0x33b   : > { %v4053_v36 = vmax.f32 %v3963_v20, 0.0  ;;  %v3955_v58 = vadd.f32 %v3954_v33, %v3666_v45 }
 0x33c   : > { %v3694_v5 = vpop.f32.mrf.mxu1  ;;  %v5243_v22 = vpop.f32.mrf.mxu0 }
 0x33d   : > { %v5076_v49 = vpack.c.bf16 %v4053_v36, %v4052_v23  ;;  %v4051_v2 = vmax.f32 %v3955_v58, 0.0  ;;  %v3976_v51 = vadd.f32 %v5243_v22, %v3687_v57  ;;  %v3695_v24 = vadd.f32 %v3694_v5, %v7072_v14 }
 0x33e   : > { %v3696_v25 = vpop.f32.mrf.mxu1  ;;  %v3967_v62 = vpop.f32.mrf.mxu0 }
 0x33f   : > { %5124 = vst [vmem:[%s7108_s24 + $0xd8] sm:$0xff] %v5076_v49   ;;  %v5071_v4 = vpack.c.bf16 %v4051_v2, %v4050_v12  ;;  %v3968_v55 = vadd.f32 %v3967_v62, %v3679_v42  ;;  %v4056_v40 = vmax.f32 %v3976_v51, 0.0 }
 0x340   : > { %v3697_v39 = vpop.f32.mrf.mxu1  ;;  %v5244_v31 = vpop.f32.mrf.mxu0 }
 0x341   : > { %5123 = vst [vmem:[%s7108_s24 + $0xd0] sm:$0xff] %v5071_v4   ;;  %v3979_v44 = vadd.f32 %v5244_v31, %v3690_v1  ;;  %v4054_v48 = vmax.f32 %v3968_v55, 0.0  ;;  %v3698_v3 = vadd.f32 %v3697_v39, %v7366_v19 }
 0x342   : > { %v3699_v26 = vpop.f32.mrf.mxu1  ;;  %v3970_v0 = vpop.f32.mrf.mxu0 }
 0x343   : > { %v4057_v9 = vmax.f32 %v3979_v44, 0.0  ;;  %v3971_v32 = vadd.f32 %v3970_v0, %v3682_v17 }
 0x344   : > { %v3702_v59 = vpop.f32.mrf.mxu1  ;;  %v5247_v61 = vpop.f32.mrf.mxu0 }
 0x345   : > { %v5086_v35 = vpack.c.bf16 %v4057_v9, %v4056_v40  ;;  %v4055_v16 = vmax.f32 %v3971_v32, 0.0  ;;  %v3703_v13 = vadd.f32 %v3702_v59, %v7084_v15 }
 0x346   : > { %v3704_v29 = vpop.f32.mrf.mxu1  ;;  %v3983_v41 = vpop.f32.mrf.mxu0 }
 0x347   : > { %5126 = vst [vmem:[%s7108_s24 + $0xe8] sm:$0xff] %v5086_v35   ;;  %v5081_v30 = vpack.c.bf16 %v4055_v16, %v4054_v48  ;;  %v3992_v37 = vadd.f32 %v5247_v61, %v3703_v13  ;;  %v3984_v63 = vadd.f32 %v3983_v41, %v3695_v24 }
 0x348   : > { %v3705_v56 = vpop.f32.mrf.mxu1  ;;  %v5248_v10 = vpop.f32.mrf.mxu0 }
 0x349   : > { %5125 = vst [vmem:[%s7108_s24 + $0xe0] sm:$0xff] %v5081_v30   ;;  %v3706_v21 = vadd.f32 %v3705_v56, %v7367_v18  ;;  %v4060_v6 = vmax.f32 %v3992_v37, 0.0  ;;  %v4058_v46 = vmax.f32 %v3984_v63, 0.0 }
 0x34a   : > { %v3707_v47 = vpop.f32.mrf.mxu1  ;;  %v3986_v53 = vpop.f32.mrf.mxu0 }
 0x34b   : > { %v3995_v15 = vadd.f32 %v5248_v10, %v3706_v21  ;;  %v3987_v28 = vadd.f32 %v3986_v53, %v3698_v3 }
 0x34d   : > { %v4061_v14 = vmax.f32 %v3995_v15, 0.0  ;;  %v4059_v11 = vmax.f32 %v3987_v28, 0.0 }
 0x34f   : > { %v5096_v34 = vpack.c.bf16 %v4061_v14, %v4060_v6  ;;  %v5091_v60 = vpack.c.bf16 %v4059_v11, %v4058_v46 }
 0x351   : > { %5128 = vst [vmem:[%s7108_s24 + $0xf8] sm:$0xff] %v5096_v34   ;;  %5127 = vst [vmem:[%s7108_s24 + $0xf0] sm:$0xff] %v5091_v60  }
 0x352 PF: > { %s13_s12 = sadd.s32 1, %s5786_s12  }
 0x353   : > { %p10_p4 = scmp.ge.s32.totalorder %s13_s12, 4  }
 0x355   :  { %12 = sbr.rel (!%p10_p4) target bundleno = 1 (0x1), region = 62 }

// kernel: vae_forward.9
= control target key start
LH: loop header
LB: loop body
LE: loop exit
PB: predicated region body
PF: predicated region fallthrough
CT: control target
= control target key end

     0   :  { %s4851_s1 = inlined_call_operand.vmem [shape: bf16[1152,128], index: 1, kind: input, shape index: {}]   ;;  %s4852_s0 = inlined_call_operand.vmem [shape: bf16[256,1152], index: 0, kind: input, shape index: {}]   ;;  %s4853_s2 = inlined_call_operand.vmem [shape: f32[1,128], index: 2, kind: input, shape index: {}]   ;;  %s4854_s3 = inlined_call_operand.vmem [shape: bf16[256,128], index: 3, kind: output, shape index: {}]  }
   0x1   :  { %v3407_v0 = vld [vmem:[%s4851_s1 + $0x78] sm:$0xff]   ;;  %v3409_v2 = vld [vmem:[%s4851_s1 + $0x70] sm:$0xff]   ;;  %v3411_v4 = vld [vmem:[%s4851_s1 + $0x68] sm:$0xff]  }
   0x2   :  { %v3408_v1 = vld [vmem:[%s4851_s1 + $0x38] sm:$0xff]   ;;  %2871 = vmatprep.subr.bf16.mxu0 %v3407_v0  ;;  %3391 = vmatprep.subr.bf16.mxu1 %v3407_v0  ;;  %v3410_v3 = vld [vmem:[%s4851_s1 + $0x30] sm:$0xff]   ;;  %v3412_v5 = vld [vmem:[%s4851_s1 + $0x28] sm:$0xff]  }
   0x3   :  { %2872 = vmatpush3.bf16.msra.mxu0 %v3408_v1  ;;  %3399 = vmatpush3.bf16.msra.mxu1 %v3408_v1  ;;  %v3413_v6 = vld [vmem:[%s4851_s1 + $0x60] sm:$0xff]   ;;  %v3415_v8 = vld [vmem:[%s4851_s1 + $0x58] sm:$0xff]   ;;  %v3417_v10 = vld [vmem:[%s4851_s1 + $0x50] sm:$0xff]  }
   0x4   :  { %2873 = vmatprep.subr.bf16.mxu0 %v3409_v2  ;;  %3392 = vmatprep.subr.bf16.mxu1 %v3409_v2  ;;  %v3414_v7 = vld [vmem:[%s4851_s1 + $0x20] sm:$0xff]   ;;  %v3416_v9 = vld [vmem:[%s4851_s1 + $0x18] sm:$0xff]   ;;  %v3418_v13 = vld [vmem:[%s4851_s1 + $0x10] sm:$0xff]  }
   0x5   :  { %v3425_v11 = vld [vmem:[%s4852_s0 + $0x4] ss:$36 sps:$4 sm:$0xff]   ;;  %v3429_v18 = vld [vmem:[%s4851_s1 + $0xf8] sm:$0xff]   ;;  %v3431_v23 = vld [vmem:[%s4851_s1 + $0xf0] sm:$0xff]  }
   0x6   :  { %v3428_v12 = vld [vmem:[%s4852_s0 + $0x364] ss:$36 sps:$4 sm:$0xff]   ;;  %1526 = vmatprep.mubr.bf16.mxu0 %v3425_v11  ;;  %v3432_v21 = vld [vmem:[%s4851_s1 + $0x178] sm:$0xff]   ;;  %v3435_v25 = vld [vmem:[%s4852_s0 + $0x4c] ss:$36 sps:$4 sm:$0xff]  }
   0x7   :  { %2874 = vmatpush3.bf16.msra.mxu0 %v3410_v3  ;;  %3400 = vmatpush3.bf16.msra.mxu1 %v3410_v3  ;;  %v3419_v14 = vld [vmem:[%s4851_s1 + $0x48] sm:$0xff]   ;;  %v3421_v16 = vld [vmem:[%s4851_s1 + $0x40] sm:$0xff]   ;;  %v3430_v22 = vld [vmem:[%s4851_s1 + $0xb8] sm:$0xff]  }
   0x8   :  { %2875 = vmatprep.subr.bf16.mxu0 %v3411_v4  ;;  %3393 = vmatprep.subr.bf16.mxu1 %v3411_v4  ;;  %v3420_v15 = vld [vmem:[%s4851_s1 + $0x8] sm:$0xff]   ;;  %v3422_v17 = vld [vmem:[%s4851_s1] sm:$0xff]   ;;  %v3434_v24 = vld [vmem:[%s4851_s1 + $0x138] sm:$0xff]  }
   0x9   :  { %1622 = vmatprep.mubr.bf16.mxu1 %v3428_v12  ;;  %v3423_v19 = vld [vmem:[%s4852_s0] ss:$36 sps:$4 sm:$0xff]   ;;  %v3437_v26 = vld [vmem:[%s4852_s0 + $0x3ac] ss:$36 sps:$4 sm:$0xff]   ;;  %v3445_v35 = vld [vmem:[%s4852_s0 + $0x94] ss:$36 sps:$4 sm:$0xff]  }
   0xa   :  { %v3426_v20 = vld [vmem:[%s4852_s0 + $0x360] ss:$36 sps:$4 sm:$0xff]   ;;  %v3433_v27 = vld [vmem:[%s4851_s1 + $0xb0] sm:$0xff]   ;;  %v3439_v29 = vld [vmem:[%s4852_s0 + $0x48] ss:$36 sps:$4 sm:$0xff]  }
   0xb   :  { %2876 = vmatpush3.bf16.msra.mxu0 %v3412_v5  ;;  %3401 = vmatpush3.bf16.msra.mxu1 %v3412_v5  ;;  %v3452_v28 = vld [vmem:[%s4851_s1 + $0x170] sm:$0xff]   ;;  %v3440_v30 = vld [vmem:[%s4852_s0 + $0x3a8] ss:$36 sps:$4 sm:$0xff]   ;;  %v3443_v34 = vld [vmem:[%s4851_s1 + $0xe0] sm:$0xff]  }
   0xc   :  { %2877 = vmatprep.subr.bf16.mxu0 %v3413_v6  ;;  %3394 = vmatprep.subr.bf16.mxu1 %v3413_v6  ;;  %v3441_v31 = vld [vmem:[%s4851_s1 + $0xe8] sm:$0xff]   ;;  %v3454_v33 = vld [vmem:[%s4851_s1 + $0x130] sm:$0xff]   ;;  %v3444_v37 = vld [vmem:[%s4851_s1 + $0xa0] sm:$0xff]  }
   0xd   :  { %v3442_v32 = vld [vmem:[%s4851_s1 + $0xa8] sm:$0xff]   ;;  %v3447_v36 = vld [vmem:[%s4852_s0 + $0x3f4] ss:$36 sps:$4 sm:$0xff]   ;;  %v3457_v44 = vld [vmem:[%s4852_s0 + $0xdc] ss:$36 sps:$4 sm:$0xff]  }
   0xe   :  { %v3449_v38 = vld [vmem:[%s4852_s0 + $0x90] ss:$36 sps:$4 sm:$0xff]   ;;  %v3451_v40 = vld [vmem:[%s4851_s1 + $0xd8] sm:$0xff]   ;;  %v3466_v43 = vld [vmem:[%s4851_s1 + $0x168] sm:$0xff]  }
   0xf   :  { %2878 = vmatpush3.bf16.msra.mxu0 %v3414_v7  ;;  %3402 = vmatpush3.bf16.msra.mxu1 %v3414_v7  ;;  %v3450_v39 = vld [vmem:[%s4852_s0 + $0x3f0] ss:$36 sps:$4 sm:$0xff]   ;;  %v3453_v41 = vld [vmem:[%s4851_s1 + $0x98] sm:$0xff]   ;;  %v3468_v46 = vld [vmem:[%s4851_s1 + $0x128] sm:$0xff]  }
  0x10   :  { %2879 = vmatprep.subr.bf16.mxu0 %v3415_v8  ;;  %3395 = vmatprep.subr.bf16.mxu1 %v3415_v8  ;;  %v3455_v42 = vld [vmem:[%s4851_s1 + $0xd0] sm:$0xff]   ;;  %v3459_v45 = vld [vmem:[%s4852_s0 + $0x43c] ss:$36 sps:$4 sm:$0xff]   ;;  %v3463_v48 = vld [vmem:[%s4851_s1 + $0xc8] sm:$0xff]  }
  0x11   :  { %v3456_v47 = vld [vmem:[%s4851_s1 + $0x90] sm:$0xff]   ;;  %v3461_v49 = vld [vmem:[%s4852_s0 + $0xd8] ss:$36 sps:$4 sm:$0xff]   ;;  %v3464_v51 = vld [vmem:[%s4851_s1 + $0x88] sm:$0xff]  }
  0x12   :  { %v3462_v50 = vld [vmem:[%s4852_s0 + $0x438] ss:$36 sps:$4 sm:$0xff]   ;;  %v3465_v52 = vld [vmem:[%s4851_s1 + $0xc0] sm:$0xff]   ;;  %v3473_v54 = vld [vmem:[%s4852_s0 + $0xc] ss:$36 sps:$4 sm:$0xff]  }
  0x13   :  { %2880 = vmatpush3.bf16.msra.mxu0 %v3416_v9  ;;  %3403 = vmatpush3.bf16.msra.mxu1 %v3416_v9  ;;  %v3469_v53 = vld [vmem:[%s4852_s0 + $0x124] ss:$36 sps:$4 sm:$0xff]   ;;  %v3475_v60 = vld [vmem:[%s4851_s1 + $0x1f8] sm:$0xff]   ;;  %v3477_v62 = vld [vmem:[%s4852_s0 + $0x16c] ss:$36 sps:$4 sm:$0xff]  }
  0x14   :  { %2881 = vmatprep.subr.bf16.mxu0 %v3417_v10  ;;  %3396 = vmatprep.subr.bf16.mxu1 %v3417_v10  ;;  %v3483_v55 = vld [vmem:[%s4851_s1 + $0x160] sm:$0xff]   ;;  %v3471_v58 = vld [vmem:[%s4852_s0 + $0x8] ss:$36 sps:$4 sm:$0xff]   ;;  %v3476_v61 = vld [vmem:[%s4851_s1 + $0x1b8] sm:$0xff]  }
  0x15   :  { %v3484_v56 = vld [vmem:[%s4851_s1 + $0x120] sm:$0xff]   ;;  %v3479_v63 = vld [vmem:[%s4852_s0 + $0x54] ss:$36 sps:$4 sm:$0xff]   ;;  %v3481_v4 = vld [vmem:[%s4852_s0 + $0x168] ss:$36 sps:$4 sm:$0xff]  }
  0x16   :  { %v3467_v57 = vld [vmem:[%s4851_s1 + $0x80] sm:$0xff]   ;;  %v3493_v0 = vld [vmem:[%s4851_s1 + $0x158] sm:$0xff]   ;;  %v3491_v1 = vld [vmem:[%s4851_s1 + $0x1f0] sm:$0xff]  }
  0x17   :  { %2882 = vmatpush3.bf16.msra.mxu0 %v3418_v13  ;;  %3404 = vmatpush3.bf16.msra.mxu1 %v3418_v13  ;;  %v3474_v59 = vld [vmem:[%s4852_s0 + $0x120] ss:$36 sps:$4 sm:$0xff]   ;;  %v3494_v2 = vld [vmem:[%s4851_s1 + $0x118] sm:$0xff]   ;;  %v3492_v3 = vld [vmem:[%s4851_s1 + $0x1b0] sm:$0xff]  }
  0x18   :  { %2883 = vmatprep.subr.bf16.mxu0 %v3419_v14  ;;  %3397 = vmatprep.subr.bf16.mxu1 %v3419_v14  ;;  %v3482_v5 = vld [vmem:[%s4852_s0 + $0x50] ss:$36 sps:$4 sm:$0xff]   ;;  %v3487_v7 = vld [vmem:[%s4852_s0 + $0x9c] ss:$36 sps:$4 sm:$0xff]   ;;  %v3508_v9 = vld [vmem:[%s4851_s1 + $0x1e8] sm:$0xff]  }
  0x19   :  { %v3485_v6 = vld [vmem:[%s4852_s0 + $0x1b4] ss:$36 sps:$4 sm:$0xff]   ;;  %v3510_v11 = vld [vmem:[%s4851_s1 + $0x1a8] sm:$0xff]   ;;  %v3495_v14 = vld [vmem:[%s4852_s0 + $0x1fc] ss:$36 sps:$4 sm:$0xff]  }
  0x1a   :  { %v3507_v8 = vld [vmem:[%s4851_s1 + $0x150] sm:$0xff]   ;;  %v3490_v13 = vld [vmem:[%s4852_s0 + $0x98] ss:$36 sps:$4 sm:$0xff]  }
  0x1b   :  { %2884 = vmatpush3.bf16.msra.mxu0 %v3420_v15  ;;  %3405 = vmatpush3.bf16.msra.mxu1 %v3420_v15  ;;  %v3509_v10 = vld [vmem:[%s4851_s1 + $0x110] sm:$0xff]   ;;  %v3517_v15 = vld [vmem:[%s4851_s1 + $0x148] sm:$0xff]  }
  0x1c   :  { %2885 = vmatprep.subr.bf16.mxu0 %v3421_v16  ;;  %3398 = vmatprep.subr.bf16.mxu1 %v3421_v16  ;;  %v3489_v12 = vld [vmem:[%s4852_s0 + $0x1b0] ss:$36 sps:$4 sm:$0xff]   ;;  %v3518_v16 = vld [vmem:[%s4851_s1 + $0x108] sm:$0xff]  }
  0x1f   :  { %2886 = vmatpush3.bf16.msra.mxu0 %v3422_v17  ;;  %3406 = vmatpush3.bf16.msra.mxu1 %v3422_v17  ;;  %v3497_v17 = vld [vmem:[%s4852_s0 + $0xe4] ss:$36 sps:$4 sm:$0xff]  }
  0x20   :  { %2983 = vmatprep.subr.bf16.mxu1 %v3429_v18  ;;  %3095 = vmatprep.subr.bf16.mxu0 %v3432_v21  ;;  %v3525_v18 = vld [vmem:[%s4851_s1 + $0x1e0] sm:$0xff]  }
  0x21   :  { %v3500_v21 = vld [vmem:[%s4852_s0 + $0xe0] ss:$36 sps:$4 sm:$0xff]  }
  0x22   :  { %1527 = vmatmul.mubr.bf16.vlgmr.msra.gmra.mxu0 %v3423_v19  ;;  %1623 = vmatmul.mubr.bf16.vlgmr.msra.gmra.mxu1 %v3426_v20  ;;  %v3526_v19 = vld [vmem:[%s4851_s1 + $0x1a0] sm:$0xff]   ;;  %v3499_v20 = vld [vmem:[%s4852_s0 + $0x1f8] ss:$36 sps:$4 sm:$0xff]  }
  0x23   :  { %2984 = vmatpush3.bf16.msra.mxu1 %v3430_v22  ;;  %3096 = vmatpush3.bf16.msra.mxu0 %v3434_v24  ;;  %v3501_v22 = vld [vmem:[%s4852_s0 + $0x244] ss:$36 sps:$4 sm:$0xff]  }
  0x24   :  { %2985 = vmatprep.subr.bf16.mxu1 %v3431_v23  ;;  %1534 = vmatprep.mubr.bf16.mxu0 %v3435_v25  ;;  %v3503_v23 = vld [vmem:[%s4852_s0 + $0x12c] ss:$36 sps:$4 sm:$0xff]   ;;  %v3533_v24 = vld [vmem:[%s4851_s1 + $0x140] sm:$0xff]  }
  0x25   :  { %1630 = vmatprep.mubr.bf16.mxu1 %v3437_v26  ;;  %3097 = vmatprep.subr.bf16.mxu0 %v3452_v28  ;;  %v3534_v25 = vld [vmem:[%s4851_s1 + $0x100] sm:$0xff]   ;;  %v3541_v26 = vld [vmem:[%s4851_s1 + $0x1d8] sm:$0xff]  }
  0x26   :  { %v3542_v28 = vld [vmem:[%s4851_s1 + $0x198] sm:$0xff]  }
  0x27   :  { %2986 = vmatpush3.bf16.msra.mxu1 %v3433_v27  ;;  %3098 = vmatpush3.bf16.msra.mxu0 %v3454_v33  ;;  %v3505_v27 = vld [vmem:[%s4852_s0 + $0x240] ss:$36 sps:$4 sm:$0xff]   ;;  %v3556_v33 = vld [vmem:[%s4851_s1 + $0x1d0] sm:$0xff]  }
  0x28   :  { %2987 = vmatprep.subr.bf16.mxu1 %v3441_v31  ;;  %3099 = vmatprep.subr.bf16.mxu0 %v3466_v43  ;;  %v3511_v31 = vld [vmem:[%s4852_s0 + $0x28c] ss:$36 sps:$4 sm:$0xff]   ;;  %v3527_v43 = vld [vmem:[%s4852_s0 + $0x31c] ss:$36 sps:$4 sm:$0xff]  }
  0x2a   :  { %1535 = vmatmul.mubr.bf16.gmra.mxu0 %v3439_v29  ;;  %1631 = vmatmul.mubr.bf16.gmra.mxu1 %v3440_v30  ;;  %v3543_v29 = vld [vmem:[%s4851_s1 + $0x238] sm:$0xff]   ;;  %v3506_v30 = vld [vmem:[%s4852_s0 + $0x128] ss:$36 sps:$4 sm:$0xff]  }
  0x2b   :  { %2988 = vmatpush3.bf16.msra.mxu1 %v3442_v32  ;;  %1542 = vmatprep.mubr.bf16.mxu0 %v3445_v35  ;;  %v3513_v32 = vld [vmem:[%s4852_s0 + $0x174] ss:$36 sps:$4 sm:$0xff]  }
  0x2c   :  { %2989 = vmatprep.subr.bf16.mxu1 %v3443_v34  ;;  %1638 = vmatprep.mubr.bf16.mxu1 %v3447_v36  ;;  %v3515_v34 = vld [vmem:[%s4852_s0 + $0x288] ss:$36 sps:$4 sm:$0xff]   ;;  %v3557_v35 = vld [vmem:[%s4851_s1 + $0x190] sm:$0xff]  }
  0x2d   :  { %3100 = vmatpush3.bf16.msra.mxu0 %v3468_v46  ;;  %v3516_v36 = vld [vmem:[%s4852_s0 + $0x170] ss:$36 sps:$4 sm:$0xff]   ;;  %v3532_v46 = vld [vmem:[%s4852_s0 + $0x200] ss:$36 sps:$4 sm:$0xff]  }
  0x2e   :  { %3101 = vmatprep.subr.bf16.mxu0 %v3483_v55  ;;  %v3558_v55 = vld [vmem:[%s4851_s1 + $0x230] sm:$0xff]  }
  0x2f   :  { %2990 = vmatpush3.bf16.msra.mxu1 %v3444_v37  ;;  %v3519_v37 = vld [vmem:[%s4852_s0 + $0x2d4] ss:$36 sps:$4 sm:$0xff]  }
  0x30   :  { %2991 = vmatprep.subr.bf16.mxu1 %v3451_v40  ;;  %v3524_v40 = vld [vmem:[%s4852_s0 + $0x1b8] ss:$36 sps:$4 sm:$0xff]  }
  0x31   :  { %3102 = vmatpush3.bf16.msra.mxu0 %v3484_v56  ;;  %v3573_v56 = vld [vmem:[%s4851_s1 + $0x228] sm:$0xff]  }
  0x32   :  { %1543 = vmatmul.mubr.bf16.gmra.mxu0 %v3449_v38  ;;  %1639 = vmatmul.mubr.bf16.gmra.mxu1 %v3450_v39  ;;  %v3521_v38 = vld [vmem:[%s4852_s0 + $0x1bc] ss:$36 sps:$4 sm:$0xff]   ;;  %v3523_v39 = vld [vmem:[%s4852_s0 + $0x2d0] ss:$36 sps:$4 sm:$0xff]  }
  0x33   :  { %2992 = vmatpush3.bf16.msra.mxu1 %v3453_v41  ;;  %1550 = vmatprep.mubr.bf16.mxu0 %v3457_v44  ;;  %v3571_v41 = vld [vmem:[%s4851_s1 + $0x1c8] sm:$0xff]  }
  0x34   :  { %2993 = vmatprep.subr.bf16.mxu1 %v3455_v42  ;;  %1646 = vmatprep.mubr.bf16.mxu1 %v3459_v45  ;;  %v3572_v42 = vld [vmem:[%s4851_s1 + $0x188] sm:$0xff]   ;;  %v3531_v45 = vld [vmem:[%s4852_s0 + $0x318] ss:$36 sps:$4 sm:$0xff]  }
  0x35   :  { %3103 = vmatprep.subr.bf16.mxu0 %v3493_v0  ;;  %v3529_v44 = vld [vmem:[%s4852_s0 + $0x204] ss:$36 sps:$4 sm:$0xff]  }
  0x36   :  { %3104 = vmatpush3.bf16.msra.mxu0 %v3494_v2  ;;  %v3555_v0 = vld [vmem:[%s4852_s0 + $0xa0] ss:$36 sps:$4 sm:$0xff]   ;;  %v3561_v2 = vld [vmem:[%s4852_s0 + $0xec] ss:$36 sps:$4 sm:$0xff]  }
  0x37   :  { %2994 = vmatpush3.bf16.msra.mxu1 %v3456_v47  ;;  %3105 = vmatprep.subr.bf16.mxu0 %v3507_v8  ;;  %v3586_v47 = vld [vmem:[%s4851_s1 + $0x1c0] sm:$0xff]   ;;  %v3567_v8 = vld [vmem:[%s4852_s0 + $0x134] ss:$36 sps:$4 sm:$0xff]  }
  0x38   :  { %2995 = vmatprep.subr.bf16.mxu1 %v3463_v48  ;;  %v3587_v48 = vld [vmem:[%s4851_s1 + $0x180] sm:$0xff]  }
  0x3a   :  { %1551 = vmatmul.mubr.bf16.gmra.mxu0 %v3461_v49  ;;  %1647 = vmatmul.mubr.bf16.gmra.mxu1 %v3462_v50  ;;  %v3535_v49 = vld [vmem:[%s4852_s0 + $0x24c] ss:$36 sps:$4 sm:$0xff]   ;;  %v3539_v50 = vld [vmem:[%s4852_s0 + $0x14] ss:$36 sps:$4 sm:$0xff]  }
  0x3b   :  { %2996 = vmatpush3.bf16.msra.mxu1 %v3464_v51  ;;  %1558 = vmatprep.mubr.bf16.mxu0 %v3469_v53  ;;  %v3537_v51 = vld [vmem:[%s4852_s0 + $0x10] ss:$36 sps:$4 sm:$0xff]  }
  0x3c   :  { %2997 = vmatprep.subr.bf16.mxu1 %v3465_v52  ;;  %1687 = vmatprep.mubr.bf16.mxu1 %v3473_v54  ;;  %v3540_v52 = vld [vmem:[%s4852_s0 + $0x248] ss:$36 sps:$4 sm:$0xff]   ;;  %v3544_v53 = vld [vmem:[%s4852_s0 + $0x294] ss:$36 sps:$4 sm:$0xff]   ;;  %v3546_v54 = vld [vmem:[%s4852_s0 + $0x5c] ss:$36 sps:$4 sm:$0xff]  }
  0x3d   :  { %3106 = vmatpush3.bf16.msra.mxu0 %v3509_v10  ;;  %v3569_v10 = vld [vmem:[%s4852_s0 + $0x368] ss:$36 sps:$4 sm:$0xff]  }
  0x3e   :  { %3107 = vmatprep.subr.bf16.mxu0 %v3517_v15  ;;  %v3579_v15 = vld [vmem:[%s4852_s0 + $0x178] ss:$36 sps:$4 sm:$0xff]  }
  0x3f   :  { %2998 = vmatpush3.bf16.msra.mxu1 %v3467_v57  ;;  %v3548_v57 = vld [vmem:[%s4852_s0 + $0x290] ss:$36 sps:$4 sm:$0xff]  }
  0x40   :  { %3207 = vmatprep.subr.bf16.mxu1 %v3475_v60  ;;  %v3552_v60 = vld [vmem:[%s4852_s0 + $0xa4] ss:$36 sps:$4 sm:$0xff]  }
  0x41   :  { %3108 = vmatpush3.bf16.msra.mxu0 %v3518_v16  ;;  %v3580_v16 = vld [vmem:[%s4852_s0 + $0x3fc] ss:$36 sps:$4 sm:$0xff]  }
  0x42   :  { %1559 = vmatmul.mubr.bf16.gmra.mxu0 %v3474_v59  ;;  %1688 = vmatmul.mubr.bf16.vlgmr.msra.gmra.mxu1 %v3471_v58  ;;  %v3549_v58 = vld [vmem:[%s4852_s0 + $0x58] ss:$36 sps:$4 sm:$0xff]  }
  0x43   :  { %3208 = vmatpush3.bf16.msra.mxu1 %v3476_v61  ;;  %1566 = vmatprep.mubr.bf16.mxu0 %v3477_v62  ;;  %v3550_v59 = vld [vmem:[%s4852_s0 + $0x2dc] ss:$36 sps:$4 sm:$0xff]  }
  0x44   :  { %1695 = vmatprep.mubr.bf16.mxu1 %v3479_v63  ;;  %3209 = vmatprep.subr.bf16.mxu1 %v3491_v1  ;;  %v3588_v61 = vld [vmem:[%s4851_s1 + $0x220] sm:$0xff]   ;;  %v3554_v62 = vld [vmem:[%s4852_s0 + $0x2d8] ss:$36 sps:$4 sm:$0xff]  }
  0x45   :  { %3109 = vmatprep.subr.bf16.mxu0 %v3533_v24  ;;  %v3601_v63 = vld [vmem:[%s4851_s1 + $0x218] sm:$0xff]   ;;  %v3559_v1 = vld [vmem:[%s4852_s0 + $0x324] ss:$36 sps:$4 sm:$0xff]  }
  0x46   :  { %3110 = vmatpush3.bf16.msra.mxu0 %v3534_v25  ;;  %v3595_v24 = vld [vmem:[%s4852_s0 + $0x254] ss:$36 sps:$4 sm:$0xff]   ;;  %v3599_v25 = vld [vmem:[%s4852_s0 + $0x1c] ss:$36 sps:$4 sm:$0xff]  }
  0x47   :  { %3210 = vmatpush3.bf16.msra.mxu1 %v3492_v3  ;;  %3343 = vmatprep.subr.bf16.mxu0 %v3543_v29  ;;  %v3614_v3 = vld [vmem:[%s4851_s1 + $0x210] sm:$0xff]  }
  0x48   :  { %3211 = vmatprep.subr.bf16.mxu1 %v3508_v9  ;;  %v3640_v9 = vld [vmem:[%s4851_s1 + $0x200] sm:$0xff]  }
  0x4a   :  { %1567 = vmatmul.mubr.bf16.gmra.mxu0 %v3481_v4  ;;  %1696 = vmatmul.mubr.bf16.gmra.mxu1 %v3482_v5  ;;  %v3563_v4 = vld [vmem:[%s4852_s0 + $0x320] ss:$36 sps:$4 sm:$0xff]   ;;  %v3627_v5 = vld [vmem:[%s4851_s1 + $0x208] sm:$0xff]  }
  0x4b   :  { %1574 = vmatprep.mubr.bf16.mxu0 %v3485_v6  ;;  %1703 = vmatprep.mubr.bf16.mxu1 %v3487_v7  ;;  %v3564_v6 = vld [vmem:[%s4852_s0 + $0xe8] ss:$36 sps:$4 sm:$0xff]  }
  0x4c   :  { %3212 = vmatpush3.bf16.msra.mxu1 %v3510_v11  ;;  %v3565_v7 = vld [vmem:[%s4852_s0 + $0x36c] ss:$36 sps:$4 sm:$0xff]  }
  0x4d   :  { %3213 = vmatprep.subr.bf16.mxu1 %v3525_v18  ;;  %v3570_v11 = vld [vmem:[%s4852_s0 + $0x130] ss:$36 sps:$4 sm:$0xff]   ;;  %v3584_v18 = vld [vmem:[%s4852_s0 + $0x3f8] ss:$36 sps:$4 sm:$0xff]  }
  0x50   :  { %3214 = vmatpush3.bf16.msra.mxu1 %v3526_v19  ;;  %v3585_v19 = vld [vmem:[%s4852_s0 + $0x1c0] ss:$36 sps:$4 sm:$0xff]  }
  0x51   :  { %3215 = vmatprep.subr.bf16.mxu1 %v3541_v26  ;;  %v3597_v26 = vld [vmem:[%s4852_s0 + $0x18] ss:$36 sps:$4 sm:$0xff]  }
  0x52   :  { %1575 = vmatmul.mubr.bf16.gmra.mxu0 %v3489_v12  ;;  %1704 = vmatmul.mubr.bf16.gmra.mxu1 %v3490_v13  ;;  %v3574_v12 = vld [vmem:[%s4852_s0 + $0x3b4] ss:$36 sps:$4 sm:$0xff]   ;;  %v3576_v13 = vld [vmem:[%s4852_s0 + $0x17c] ss:$36 sps:$4 sm:$0xff]  }
  0x53   :  { %1582 = vmatprep.mubr.bf16.mxu0 %v3495_v14  ;;  %1711 = vmatprep.mubr.bf16.mxu1 %v3497_v17  ;;  %v3578_v14 = vld [vmem:[%s4852_s0 + $0x3b0] ss:$36 sps:$4 sm:$0xff]   ;;  %v3582_v17 = vld [vmem:[%s4852_s0 + $0x1c4] ss:$36 sps:$4 sm:$0xff]  }
  0x54   :  { %3216 = vmatpush3.bf16.msra.mxu1 %v3542_v28  ;;  %v3602_v28 = vld [vmem:[%s4852_s0 + $0x29c] ss:$36 sps:$4 sm:$0xff]  }
  0x55   :  { %3217 = vmatprep.subr.bf16.mxu1 %v3556_v33  ;;  %v3610_v33 = vld [vmem:[%s4852_s0 + $0xac] ss:$36 sps:$4 sm:$0xff]  }
  0x58   :  { %3218 = vmatpush3.bf16.msra.mxu1 %v3557_v35  ;;  %v3613_v35 = vld [vmem:[%s4852_s0 + $0xa8] ss:$36 sps:$4 sm:$0xff]  }
  0x59   :  { %3219 = vmatprep.subr.bf16.mxu1 %v3571_v41  ;;  %v3623_v41 = vld [vmem:[%s4852_s0 + $0x13c] ss:$36 sps:$4 sm:$0xff]  }
  0x5a   :  { %1583 = vmatmul.mubr.bf16.gmra.mxu0 %v3499_v20  ;;  %1712 = vmatmul.mubr.bf16.gmra.mxu1 %v3500_v21  ;;  %v3589_v20 = vld [vmem:[%s4852_s0 + $0x444] ss:$36 sps:$4 sm:$0xff]   ;;  %v3591_v21 = vld [vmem:[%s4852_s0 + $0x20c] ss:$36 sps:$4 sm:$0xff]  }
  0x5b   :  { %1590 = vmatprep.mubr.bf16.mxu0 %v3501_v22  ;;  %1719 = vmatprep.mubr.bf16.mxu1 %v3503_v23  ;;  %v3593_v22 = vld [vmem:[%s4852_s0 + $0x440] ss:$36 sps:$4 sm:$0xff]   ;;  %v3594_v23 = vld [vmem:[%s4852_s0 + $0x208] ss:$36 sps:$4 sm:$0xff]  }
  0x5c   :  { %3220 = vmatpush3.bf16.msra.mxu1 %v3572_v42  ;;  %v3625_v42 = vld [vmem:[%s4852_s0 + $0x370] ss:$36 sps:$4 sm:$0xff]  }
  0x5d   :  { %3221 = vmatprep.subr.bf16.mxu1 %v3586_v47 }
  0x60   :  { %3222 = vmatpush3.bf16.msra.mxu1 %v3587_v48 }
  0x62   :  { %1591 = vmatmul.mubr.bf16.gmra.mxu0 %v3505_v27  ;;  %1720 = vmatmul.mubr.bf16.gmra.mxu1 %v3506_v30  ;;  %v3600_v27 = vld [vmem:[%s4852_s0 + $0x250] ss:$36 sps:$4 sm:$0xff]   ;;  %v3606_v30 = vld [vmem:[%s4852_s0 + $0x298] ss:$36 sps:$4 sm:$0xff]  }
  0x63   :  { %1598 = vmatprep.mubr.bf16.mxu0 %v3511_v31  ;;  %1727 = vmatprep.mubr.bf16.mxu1 %v3513_v32  ;;  %v3607_v31 = vld [vmem:[%s4852_s0 + $0x60] ss:$36 sps:$4 sm:$0xff]  }
  0x64   :  { %v3608_v32 = vld [vmem:[%s4852_s0 + $0x2e4] ss:$36 sps:$4 sm:$0xff]  }
  0x6a   :  { %1599 = vmatmul.mubr.bf16.gmra.mxu0 %v3515_v34  ;;  %1728 = vmatmul.mubr.bf16.gmra.mxu1 %v3516_v36  ;;  %v3612_v34 = vld [vmem:[%s4852_s0 + $0x2e0] ss:$36 sps:$4 sm:$0xff]   ;;  %v3615_v36 = vld [vmem:[%s4852_s0 + $0x32c] ss:$36 sps:$4 sm:$0xff]  }
  0x6b   :  { %1606 = vmatprep.mubr.bf16.mxu0 %v3519_v37  ;;  %1735 = vmatprep.mubr.bf16.mxu1 %v3521_v38  ;;  %v3617_v37 = vld [vmem:[%s4852_s0 + $0xf4] ss:$36 sps:$4 sm:$0xff]   ;;  %v3619_v38 = vld [vmem:[%s4852_s0 + $0x328] ss:$36 sps:$4 sm:$0xff]  }
  0x72   :  { %1607 = vmatmul.mubr.bf16.gmra.mxu0 %v3523_v39  ;;  %1736 = vmatmul.mubr.bf16.gmra.mxu1 %v3524_v40  ;;  %v3620_v39 = vld [vmem:[%s4852_s0 + $0xf0] ss:$36 sps:$4 sm:$0xff]  }
  0x73   :  { %1614 = vmatprep.mubr.bf16.mxu0 %v3527_v43  ;;  %1743 = vmatprep.mubr.bf16.mxu1 %v3529_v44  ;;  %v3621_v40 = vld [vmem:[%s4852_s0 + $0x374] ss:$36 sps:$4 sm:$0xff]   ;;  %v3628_v44 = vld [vmem:[%s4852_s0 + $0x3bc] ss:$36 sps:$4 sm:$0xff]  }
  0x74   :  { %v3626_v43 = vld [vmem:[%s4852_s0 + $0x138] ss:$36 sps:$4 sm:$0xff]  }
  0x7a   :  { %1615 = vmatmul.mubr.bf16.gmra.mxu0 %v3531_v45  ;;  %1744 = vmatmul.mubr.bf16.gmra.mxu1 %v3532_v46  ;;  %v3630_v45 = vld [vmem:[%s4852_s0 + $0x184] ss:$36 sps:$4 sm:$0xff]  }
  0x7b   :  { %1751 = vmatprep.mubr.bf16.mxu1 %v3535_v49  ;;  %1848 = vmatprep.mubr.bf16.mxu0 %v3539_v50 }
  0x82   :  { %1752 = vmatmul.mubr.bf16.gmra.mxu1 %v3540_v52  ;;  %1849 = vmatmul.mubr.bf16.vlgmr.msra.gmra.mxu0 %v3537_v51 }
  0x83   :  { %3344 = vmatpush3.bf16.msra.mxu0 %v3543_v29  ;;  %1759 = vmatprep.mubr.bf16.mxu1 %v3544_v53  ;;  %v3604_v29 = vld [vmem:[%s4852_s0 + $0x64] ss:$36 sps:$4 sm:$0xff]  }
  0x84   :  { %1856 = vmatprep.mubr.bf16.mxu0 %v3546_v54  ;;  %3345 = vmatprep.subr.bf16.mxu0 %v3558_v55  ;;  %v3632_v54 = vld [vmem:[%s4852_s0 + $0x3b8] ss:$36 sps:$4 sm:$0xff]  }
  0x87   :  { %3346 = vmatpush3.bf16.msra.mxu0 %v3558_v55  ;;  %v3633_v55 = vld [vmem:[%s4852_s0 + $0x180] ss:$36 sps:$4 sm:$0xff]  }
  0x88   :  { %3347 = vmatprep.subr.bf16.mxu0 %v3573_v56 }
  0x8a   :  { %1760 = vmatmul.mubr.bf16.gmra.mxu1 %v3548_v57  ;;  %1857 = vmatmul.mubr.bf16.gmra.mxu0 %v3549_v58  ;;  %v3636_v57 = vld [vmem:[%s4852_s0 + $0x1cc] ss:$36 sps:$4 sm:$0xff]  }
  0x8b   :  { %1767 = vmatprep.mubr.bf16.mxu1 %v3550_v59  ;;  %1864 = vmatprep.mubr.bf16.mxu0 %v3552_v60 }
  0x8c   :  { %3348 = vmatpush3.bf16.msra.mxu0 %v3573_v56  ;;  %v3634_v56 = vld [vmem:[%s4852_s0 + $0x404] ss:$36 sps:$4 sm:$0xff]  }
  0x8d   :  { %3349 = vmatprep.subr.bf16.mxu0 %v3588_v61 }
  0x90   :  { %3350 = vmatpush3.bf16.msra.mxu0 %v3588_v61 }
  0x91   :  { %3351 = vmatprep.subr.bf16.mxu0 %v3601_v63 }
  0x92   :  { %1768 = vmatmul.mubr.bf16.gmra.mxu1 %v3554_v62  ;;  %1865 = vmatmul.mubr.bf16.gmra.mxu0 %v3555_v0 }
  0x93   :  { %1775 = vmatprep.mubr.bf16.mxu1 %v3559_v1  ;;  %1872 = vmatprep.mubr.bf16.mxu0 %v3561_v2 }
  0x94   :  { %3352 = vmatpush3.bf16.msra.mxu0 %v3601_v63 }
  0x95   :  { %3353 = vmatprep.subr.bf16.mxu0 %v3614_v3 }
  0x98   :  { %3354 = vmatpush3.bf16.msra.mxu0 %v3614_v3 }
  0x99   :  { %3355 = vmatprep.subr.bf16.mxu0 %v3627_v5 }
  0x9a   :  { %1776 = vmatmul.mubr.bf16.gmra.mxu1 %v3563_v4  ;;  %1873 = vmatmul.mubr.bf16.gmra.mxu0 %v3564_v6  ;;  %v3638_v6 = vld [vmem:[%s4852_s0 + $0x400] ss:$36 sps:$4 sm:$0xff]  }
  0x9b   :  { %1783 = vmatprep.mubr.bf16.mxu1 %v3565_v7  ;;  %1880 = vmatprep.mubr.bf16.mxu0 %v3567_v8  ;;  %v3639_v7 = vld [vmem:[%s4852_s0 + $0x1c8] ss:$36 sps:$4 sm:$0xff]  }
  0x9c   :  { %3356 = vmatpush3.bf16.msra.mxu0 %v3627_v5  ;;  %v3641_v8 = vld [vmem:[%s4852_s0 + $0x44c] ss:$36 sps:$4 sm:$0xff]  }
  0x9d   :  { %3357 = vmatprep.subr.bf16.mxu0 %v3640_v9 }
  0xa0   :  { %3358 = vmatpush3.bf16.msra.mxu0 %v3640_v9  ;;  %v3643_v9 = vld [vmem:[%s4852_s0 + $0x214] ss:$36 sps:$4 sm:$0xff]  }
  0xa2   :  { %1784 = vmatmul.mubr.bf16.gmra.mxu1 %v3569_v10  ;;  %1881 = vmatmul.mubr.bf16.gmra.mxu0 %v3570_v11 }
  0xa3   :  { %1791 = vmatprep.mubr.bf16.mxu1 %v3574_v12  ;;  %1888 = vmatprep.mubr.bf16.mxu0 %v3576_v13 }
  0xaa   :  { %1792 = vmatmul.mubr.bf16.gmra.mxu1 %v3578_v14  ;;  %1889 = vmatmul.mubr.bf16.gmra.mxu0 %v3579_v15 }
  0xab   :  { %1799 = vmatprep.mubr.bf16.mxu1 %v3580_v16  ;;  %1896 = vmatprep.mubr.bf16.mxu0 %v3582_v17 }
  0xb2   :  { %1800 = vmatmul.mubr.bf16.gmra.mxu1 %v3584_v18  ;;  %1897 = vmatmul.mubr.bf16.gmra.mxu0 %v3585_v19 }
  0xb3   :  { %1807 = vmatprep.mubr.bf16.mxu1 %v3589_v20  ;;  %1904 = vmatprep.mubr.bf16.mxu0 %v3591_v21 }
  0xba   :  { %1808 = vmatmul.mubr.bf16.gmra.mxu1 %v3593_v22  ;;  %1905 = vmatmul.mubr.bf16.gmra.mxu0 %v3594_v23  ;;  %v3645_v22 = vld [vmem:[%s4852_s0 + $0x448] ss:$36 sps:$4 sm:$0xff]   ;;  %v3646_v23 = vld [vmem:[%s4852_s0 + $0x210] ss:$36 sps:$4 sm:$0xff]  }
  0xbb   :  { %1912 = vmatprep.mubr.bf16.mxu0 %v3595_v24  ;;  %2009 = vmatprep.mubr.bf16.mxu1 %v3599_v25  ;;  %v3649_v24 = vld [vmem:[%s4852_s0 + $0x25c] ss:$36 sps:$4 sm:$0xff]  }
  0xbc   :  { %v3650_v25 = vld [vmem:[%s4852_s0 + $0x20] ss:$36 sps:$4 sm:$0xff]  }
  0xc2   :  { %1913 = vmatmul.mubr.bf16.gmra.mxu0 %v3600_v27  ;;  %2010 = vmatmul.mubr.bf16.vlgmr.msra.gmra.mxu1 %v3597_v26 }
  0xc3   :  { %1920 = vmatprep.mubr.bf16.mxu0 %v3602_v28  ;;  %2017 = vmatprep.mubr.bf16.mxu1 %v3604_v29 }
  0xca   :  { %1921 = vmatmul.mubr.bf16.gmra.mxu0 %v3606_v30  ;;  %2018 = vmatmul.mubr.bf16.gmra.mxu1 %v3607_v31 }
  0xcb   :  { %1928 = vmatprep.mubr.bf16.mxu0 %v3608_v32  ;;  %2025 = vmatprep.mubr.bf16.mxu1 %v3610_v33 }
  0xd2   :  { %1929 = vmatmul.mubr.bf16.gmra.mxu0 %v3612_v34  ;;  %2026 = vmatmul.mubr.bf16.gmra.mxu1 %v3613_v35 }
  0xd3   :  { %1936 = vmatprep.mubr.bf16.mxu0 %v3615_v36  ;;  %2033 = vmatprep.mubr.bf16.mxu1 %v3617_v37 }
  0xda   :  { %1937 = vmatmul.mubr.bf16.gmra.mxu0 %v3619_v38  ;;  %2034 = vmatmul.mubr.bf16.gmra.mxu1 %v3620_v39  ;;  %v3647_v38 = vld [vmem:[%s4852_s0 + $0x258] ss:$36 sps:$4 sm:$0xff]   ;;  %v3651_v39 = vld [vmem:[%s4852_s0 + $0x68] ss:$36 sps:$4 sm:$0xff]  }
  0xdb   :  { %1944 = vmatprep.mubr.bf16.mxu0 %v3621_v40  ;;  %2041 = vmatprep.mubr.bf16.mxu1 %v3623_v41  ;;  %v3654_v40 = vld [vmem:[%s4852_s0 + $0x2a4] ss:$36 sps:$4 sm:$0xff]   ;;  %v3655_v41 = vld [vmem:[%s4852_s0 + $0xb0] ss:$36 sps:$4 sm:$0xff]  }
  0xe2   :  { %v2887_v46 = vpop.f32.mrf.mxu0  ;;  %v2959_v47 = vpop.f32.mrf.mxu1  ;;  %1945 = vmatmul.mubr.bf16.gmra.mxu0 %v3625_v42  ;;  %2042 = vmatmul.mubr.bf16.gmra.mxu1 %v3626_v43 }
  0xe3   :  { %1952 = vmatprep.mubr.bf16.mxu0 %v3628_v44  ;;  %2049 = vmatprep.mubr.bf16.mxu1 %v3630_v45 }
  0xe4   :  { %v2888_v48 = vpop.f32.mrf.mxu0  ;;  %v2960_v49 = vpop.f32.mrf.mxu1 }
  0xe5   :  { %v4229_v50 = vadd.f32 %v2888_v48, %v2887_v46  ;;  %v4231_v51 = vadd.f32 %v2960_v49, %v2959_v47  ;;  %v4312_v48 = vld [vmem:[%s4853_s2] ss:$0 sm:$0xff] }
  0xe6   :  { %v2890_v52 = vpop.f32.mrf.mxu0  ;;  %v2962_v53 = vpop.f32.mrf.mxu1 }
  0xe8   :  { %v2891_v58 = vpop.f32.mrf.mxu0  ;;  %v2963_v59 = vpop.f32.mrf.mxu1 }
  0xe9   :  { %v4245_v60 = vadd.f32 %v2891_v58, %v2890_v52  ;;  %v4247_v61 = vadd.f32 %v2963_v59, %v2962_v53  ;;  %v1529_v53 = vadd.f32 %v4229_v50, %v4312_v48  ;;  %v3652_v58 = vld [vmem:[%s4852_s0 + $0x2a0] ss:$36 sps:$4 sm:$0xff]   ;;  %v3656_v59 = vld [vmem:[%s4852_s0 + $0xf8] ss:$36 sps:$4 sm:$0xff]  }
  0xea   :  { %v2893_v62 = vpop.f32.mrf.mxu0  ;;  %v2965_v63 = vpop.f32.mrf.mxu1  ;;  %1953 = vmatmul.mubr.bf16.gmra.mxu0 %v3632_v54  ;;  %2050 = vmatmul.mubr.bf16.gmra.mxu1 %v3633_v55  ;;  %v3660_v50 = vld [vmem:[%s4852_s0 + $0x140] ss:$36 sps:$4 sm:$0xff]  }
  0xeb   :  { %1960 = vmatprep.mubr.bf16.mxu0 %v3634_v56  ;;  %2057 = vmatprep.mubr.bf16.mxu1 %v3636_v57 }
  0xec   :  { %v2894_v0 = vpop.f32.mrf.mxu0  ;;  %v2966_v1 = vpop.f32.mrf.mxu1 }
  0xed   :  { %v4249_v2 = vadd.f32 %v2894_v0, %v2893_v62  ;;  %v4251_v3 = vadd.f32 %v2966_v1, %v2965_v63  ;;  %v3659_v63 = vld [vmem:[%s4852_s0 + $0x2ec] ss:$36 sps:$4 sm:$0xff]  }
  0xee   :  { %v2896_v4 = vpop.f32.mrf.mxu0  ;;  %v2968_v5 = vpop.f32.mrf.mxu1 }
  0xf0   :  { %v2897_v10 = vpop.f32.mrf.mxu0  ;;  %v2969_v11 = vpop.f32.mrf.mxu1 }
  0xf1   :  { %v4265_v12 = vadd.f32 %v2897_v10, %v2896_v4  ;;  %v4267_v13 = vadd.f32 %v2969_v11, %v2968_v5  ;;  %v1532_v4 = vadd.f32 %v4245_v60, %v4312_v48 }
  0xf2   :  { %v2899_v14 = vpop.f32.mrf.mxu0  ;;  %v2971_v15 = vpop.f32.mrf.mxu1  ;;  %1961 = vmatmul.mubr.bf16.gmra.mxu0 %v3638_v6  ;;  %2058 = vmatmul.mubr.bf16.gmra.mxu1 %v3639_v7 }
  0xf3   :  { %1968 = vmatprep.mubr.bf16.mxu0 %v3641_v8  ;;  %2065 = vmatprep.mubr.bf16.mxu1 %v3643_v9 }
  0xf4   :  { %v2900_v16 = vpop.f32.mrf.mxu0  ;;  %v2972_v17 = vpop.f32.mrf.mxu1 }
  0xf5   :  { %v4269_v18 = vadd.f32 %v2900_v16, %v2899_v14  ;;  %v4271_v19 = vadd.f32 %v2972_v17, %v2971_v15  ;;  %v1537_v14 = vadd.f32 %v4249_v2, %v4312_v48  ;;  %v3665_v2 = vld [vmem:[%s4852_s0 + $0x1d0] ss:$36 sps:$4 sm:$0xff]  }
  0xf6   :  { %v2902_v20 = vpop.f32.mrf.mxu0  ;;  %v2974_v21 = vpop.f32.mrf.mxu1 }
  0xf8   :  { %v2903_v26 = vpop.f32.mrf.mxu0  ;;  %v2975_v27 = vpop.f32.mrf.mxu1 }
  0xf9   :  { %v4285_v28 = vadd.f32 %v2903_v26, %v2902_v20  ;;  %v4287_v29 = vadd.f32 %v2975_v27, %v2974_v21  ;;  %v3657_v20 = vld [vmem:[%s4852_s0 + $0x2e8] ss:$36 sps:$4 sm:$0xff]   ;;  %v1540_v26 = vadd.f32 %v4265_v12, %v4312_v48 }
  0xfa   :  { %v2905_v30 = vpop.f32.mrf.mxu0  ;;  %v2977_v31 = vpop.f32.mrf.mxu1  ;;  %1969 = vmatmul.mubr.bf16.gmra.mxu0 %v3645_v22  ;;  %2066 = vmatmul.mubr.bf16.gmra.mxu1 %v3646_v23  ;;  %v3661_v21 = vld [vmem:[%s4852_s0 + $0x188] ss:$36 sps:$4 sm:$0xff]   ;;  %v3664_v23 = vld [vmem:[%s4852_s0 + $0x334] ss:$36 sps:$4 sm:$0xff]  }
  0xfb   :  { %2073 = vmatprep.mubr.bf16.mxu1 %v3649_v24  ;;  %3359 = vmatprep.mubr.bf16.mxu0 %v3650_v25 }
  0xfc   :  { %v2906_v32 = vpop.f32.mrf.mxu0  ;;  %v2978_v33 = vpop.f32.mrf.mxu1 }
  0xfd   :  { %v4289_v34 = vadd.f32 %v2906_v32, %v2905_v30  ;;  %v4291_v35 = vadd.f32 %v2978_v33, %v2977_v31 }
  0xfe   :  { %v2908_v36 = vpop.f32.mrf.mxu0  ;;  %v2980_v37 = vpop.f32.mrf.mxu1 }
 0x100   :  { %v2909_v42 = vpop.f32.mrf.mxu0  ;;  %v2981_v43 = vpop.f32.mrf.mxu1 }
 0x101   :  { %v4305_v44 = vadd.f32 %v2909_v42, %v2908_v36  ;;  %v4307_v45 = vadd.f32 %v2981_v43, %v2980_v37  ;;  %v3662_v42 = vld [vmem:[%s4852_s0 + $0x330] ss:$36 sps:$4 sm:$0xff]   ;;  %v3666_v43 = vld [vmem:[%s4852_s0 + $0x218] ss:$36 sps:$4 sm:$0xff]  }
 0x102   :  { %v2911_v46 = vpop.f32.mrf.mxu0  ;;  %v2999_v47 = vpop.f32.mrf.mxu1  ;;  %2074 = vmatmul.mubr.bf16.gmra.mxu1 %v3647_v38  ;;  %3360 = vmatmul.mubr.bf16.vlgmr.msra.gmra.mxu0 %v3651_v39  ;;  %v1545_v38 = vadd.f32 %v4269_v18, %v4312_v48  ;;  %v3670_v18 = vld [vmem:[%s4852_s0 + $0x260] ss:$36 sps:$4 sm:$0xff]  }
 0x103   :  { %2081 = vmatprep.mubr.bf16.mxu1 %v3654_v40  ;;  %3363 = vmatprep.mubr.bf16.mxu0 %v3655_v41 }
 0x104   :  { %v2912_v49 = vpop.f32.mrf.mxu0  ;;  %v3000_v52 = vpop.f32.mrf.mxu1 }
 0x105   :  { %v4316_v54 = vadd.f32 %v2912_v49, %v2911_v46  ;;  %v3001_v55 = vadd.f32 %v3000_v52, %v2999_v47  ;;  %v3669_v47 = vld [vmem:[%s4852_s0 + $0x37c] ss:$36 sps:$4 sm:$0xff]  }
 0x106   :  { %v2914_v56 = vpop.f32.mrf.mxu0  ;;  %v3002_v57 = vpop.f32.mrf.mxu1 }
 0x107   :  { %v4324_v62 = vadd.f32 %v3001_v55, %v1529_v53  ;;  %v1548_v53 = vadd.f32 %v4285_v28, %v4312_v48 }
 0x108   :  { %v2915_v0 = vpop.f32.mrf.mxu0  ;;  %v3003_v1 = vpop.f32.mrf.mxu1 }
 0x109   :  { %v4334_v5 = vadd.f32 %v2915_v0, %v2914_v56  ;;  %v3004_v6 = vadd.f32 %v3003_v1, %v3002_v57  ;;  %v1553_v0 = vadd.f32 %v4289_v34, %v4312_v48  ;;  %v3675_v34 = vld [vmem:[%s4852_s0 + $0x2f0] ss:$36 sps:$4 sm:$0xff]  }
 0x10a   :  { %v2917_v7 = vpop.f32.mrf.mxu0  ;;  %v3005_v8 = vpop.f32.mrf.mxu1  ;;  %2082 = vmatmul.mubr.bf16.gmra.mxu1 %v3652_v58  ;;  %3364 = vmatmul.mubr.bf16.gmra.mxu0 %v3656_v59 }
 0x10b   :  { %v4336_v9 = vadd.f32 %v3004_v6, %v1532_v4  ;;  %2089 = vmatprep.mubr.bf16.mxu1 %v3659_v63  ;;  %3367 = vmatprep.mubr.bf16.mxu0 %v3660_v50 }
 0x10c   :  { %v2918_v10 = vpop.f32.mrf.mxu0  ;;  %v3006_v11 = vpop.f32.mrf.mxu1 }
 0x10d   :  { %v4340_v15 = vadd.f32 %v2918_v10, %v2917_v7  ;;  %v3007_v16 = vadd.f32 %v3006_v11, %v3005_v8  ;;  %v3667_v7 = vld [vmem:[%s4852_s0 + $0x378] ss:$36 sps:$4 sm:$0xff]   ;;  %v3671_v8 = vld [vmem:[%s4852_s0 + $0x2a8] ss:$36 sps:$4 sm:$0xff]  }
 0x10e   :  { %v2920_v60 = vpop.f32.mrf.mxu0  ;;  %v3008_v17 = vpop.f32.mrf.mxu1  ;;  %v3674_v11 = vld [vmem:[%s4852_s0 + $0x3c4] ss:$36 sps:$4 sm:$0xff]  }
 0x10f   :  { %v4348_v22 = vadd.f32 %v3007_v16, %v1537_v14 }
 0x110   :  { %v2921_v24 = vpop.f32.mrf.mxu0  ;;  %v3009_v25 = vpop.f32.mrf.mxu1 }
 0x111   :  { %v4358_v27 = vadd.f32 %v2921_v24, %v2920_v60  ;;  %v3010_v30 = vadd.f32 %v3009_v25, %v3008_v17  ;;  %v1556_v60 = vadd.f32 %v4305_v44, %v4312_v48 }
 0x112   :  { %v2923_v31 = vpop.f32.mrf.mxu0  ;;  %v3011_v32 = vpop.f32.mrf.mxu1  ;;  %2090 = vmatmul.mubr.bf16.gmra.mxu1 %v3657_v20  ;;  %3368 = vmatmul.mubr.bf16.gmra.mxu0 %v3661_v21 }
 0x113   :  { %v4360_v33 = vadd.f32 %v3010_v30, %v1540_v26  ;;  %2097 = vmatprep.mubr.bf16.mxu1 %v3664_v23  ;;  %3371 = vmatprep.mubr.bf16.mxu0 %v3665_v2  ;;  %v1561_v26 = vadd.f32 %v4316_v54, %v4312_v48  ;;  %v3680_v54 = vld [vmem:[%s4852_s0 + $0x380] ss:$36 sps:$4 sm:$0xff]  }
 0x114   :  { %v2924_v36 = vpop.f32.mrf.mxu0  ;;  %v3012_v37 = vpop.f32.mrf.mxu1 }
 0x115   :  { %v4364_v39 = vadd.f32 %v2924_v36, %v2923_v31  ;;  %v3013_v40 = vadd.f32 %v3012_v37, %v3011_v32  ;;  %v3672_v36 = vld [vmem:[%s4852_s0 + $0x3c0] ss:$36 sps:$4 sm:$0xff]   ;;  %v3676_v37 = vld [vmem:[%s4852_s0 + $0x338] ss:$36 sps:$4 sm:$0xff]  }
 0x116   :  { %v2926_v12 = vpop.f32.mrf.mxu0  ;;  %v3014_v41 = vpop.f32.mrf.mxu1 }
 0x117   :  { %v4372_v46 = vadd.f32 %v3013_v40, %v1545_v38  ;;  %v3679_v40 = vld [vmem:[%s4852_s0 + $0x40c] ss:$36 sps:$4 sm:$0xff]  }
 0x118   :  { %v2927_v49 = vpop.f32.mrf.mxu0  ;;  %v3015_v52 = vpop.f32.mrf.mxu1 }
 0x119   :  { %v4382_v55 = vadd.f32 %v2927_v49, %v2926_v12  ;;  %v3016_v56 = vadd.f32 %v3015_v52, %v3014_v41 }
 0x11a   :  { %v2929_v57 = vpop.f32.mrf.mxu0  ;;  %v3017_v58 = vpop.f32.mrf.mxu1  ;;  %2098 = vmatmul.mubr.bf16.gmra.mxu1 %v3662_v42  ;;  %3372 = vmatmul.mubr.bf16.gmra.mxu0 %v3666_v43  ;;  %v1564_v42 = vadd.f32 %v4334_v5, %v4312_v48 }
 0x11b   :  { %v4384_v59 = vadd.f32 %v3016_v56, %v1548_v53  ;;  %2105 = vmatprep.mubr.bf16.mxu1 %v3669_v47  ;;  %3375 = vmatprep.mubr.bf16.mxu0 %v3670_v18 }
 0x11c   :  { %v2930_v63 = vpop.f32.mrf.mxu0  ;;  %v3018_v50 = vpop.f32.mrf.mxu1 }
 0x11d   :  { %v4388_v1 = vadd.f32 %v2930_v63, %v2929_v57  ;;  %v3019_v4 = vadd.f32 %v3018_v50, %v3017_v58  ;;  %v1569_v57 = vadd.f32 %v4340_v15, %v4312_v48  ;;  %v3685_v15 = vld [vmem:[%s4852_s0 + $0x410] ss:$36 sps:$4 sm:$0xff]  }
 0x11e   :  { %v2932_v28 = vpop.f32.mrf.mxu0  ;;  %v3020_v6 = vpop.f32.mrf.mxu1 }
 0x11f   :  { %v4396_v10 = vadd.f32 %v3019_v4, %v1553_v0  ;;  %v3677_v0 = vld [vmem:[%s4852_s0 + $0x408] ss:$36 sps:$4 sm:$0xff]  }
 0x120   :  { %v2933_v14 = vpop.f32.mrf.mxu0  ;;  %v3021_v16 = vpop.f32.mrf.mxu1  ;;  %v3681_v4 = vld [vmem:[%s4852_s0 + $0x3c8] ss:$36 sps:$4 sm:$0xff]  }
 0x121   :  { %v4406_v17 = vadd.f32 %v2933_v14, %v2932_v28  ;;  %v3022_v20 = vadd.f32 %v3021_v16, %v3020_v6  ;;  %v3684_v6 = vld [vmem:[%s4852_s0 + $0x454] ss:$36 sps:$4 sm:$0xff]  }
 0x122   :  { %v2935_v21 = vpop.f32.mrf.mxu0  ;;  %v3023_v23 = vpop.f32.mrf.mxu1  ;;  %2106 = vmatmul.mubr.bf16.gmra.mxu1 %v3667_v7  ;;  %3376 = vmatmul.mubr.bf16.gmra.mxu0 %v3671_v8 }
 0x123   :  { %v4408_v2 = vadd.f32 %v3022_v20, %v1556_v60  ;;  %2113 = vmatprep.mubr.bf16.mxu1 %v3674_v11  ;;  %3379 = vmatprep.mubr.bf16.mxu0 %v3675_v34  ;;  %v1572_v11 = vadd.f32 %v4358_v27, %v4312_v48 }
 0x124   :  { %v2936_v24 = vpop.f32.mrf.mxu0  ;;  %v3024_v25 = vpop.f32.mrf.mxu1 }
 0x125   :  { %v4412_v30 = vadd.f32 %v2936_v24, %v2935_v21  ;;  %v3025_v31 = vadd.f32 %v3024_v25, %v3023_v23  ;;  %v1577_v24 = vadd.f32 %v4364_v39, %v4312_v48  ;;  %v1580_v39 = vadd.f32 %v4382_v55, %v4312_v48 }
 0x126   :  { %v2938_v44 = vpop.f32.mrf.mxu0  ;;  %v3026_v32 = vpop.f32.mrf.mxu1 }
 0x127   :  { %v4420_v38 = vadd.f32 %v3025_v31, %v1561_v26 }
 0x128   :  { %v2939_v12 = vpop.f32.mrf.mxu0  ;;  %v3027_v41 = vpop.f32.mrf.mxu1 }
 0x129   :  { %v4430_v43 = vadd.f32 %v2939_v12, %v2938_v44  ;;  %v3028_v47 = vadd.f32 %v3027_v41, %v3026_v32  ;;  %v3682_v44 = vld [vmem:[%s4852_s0 + $0x450] ss:$36 sps:$4 sm:$0xff]   ;;  %v3686_v32 = vld [vmem:[%s4852_s0 + $0x458] ss:$36 sps:$4 sm:$0xff]  }
 0x12a   :  { %v2941_v18 = vpop.f32.mrf.mxu0  ;;  %v3029_v49 = vpop.f32.mrf.mxu1  ;;  %2114 = vmatmul.mubr.bf16.gmra.mxu1 %v3672_v36  ;;  %3380 = vmatmul.mubr.bf16.gmra.mxu0 %v3676_v37 }
 0x12b   :  { %v4432_v52 = vadd.f32 %v3028_v47, %v1564_v42  ;;  %2121 = vmatprep.mubr.bf16.mxu1 %v3679_v40  ;;  %3383 = vmatprep.mubr.bf16.mxu0 %v3680_v54 }
 0x12c   :  { %v2942_v53 = vpop.f32.mrf.mxu0  ;;  %v3030_v56 = vpop.f32.mrf.mxu1 }
 0x12d   :  { %v4436_v58 = vadd.f32 %v2942_v53, %v2941_v18  ;;  %v3031_v63 = vadd.f32 %v3030_v56, %v3029_v49  ;;  %v1585_v53 = vadd.f32 %v4388_v1, %v4312_v48 }
 0x12e   :  { %v2944_v5 = vpop.f32.mrf.mxu0  ;;  %v3032_v50 = vpop.f32.mrf.mxu1 }
 0x12f   :  { %v4444_v28 = vadd.f32 %v3031_v63, %v1569_v57 }
 0x130   :  { %v2945_v7 = vpop.f32.mrf.mxu0  ;;  %v3033_v8 = vpop.f32.mrf.mxu1 }
 0x131   :  { %v4454_v34 = vadd.f32 %v2945_v7, %v2944_v5  ;;  %v3034_v14 = vadd.f32 %v3033_v8, %v3032_v50 }
 0x132   :  { %v2947_v16 = vpop.f32.mrf.mxu0  ;;  %v3035_v60 = vpop.f32.mrf.mxu1  ;;  %2122 = vmatmul.mubr.bf16.gmra.mxu1 %v3677_v0  ;;  %3384 = vmatmul.mubr.bf16.gmra.mxu0 %v3681_v4  ;;  %v1588_v4 = vadd.f32 %v4406_v17, %v4312_v48 }
 0x133   :  { %v4456_v20 = vadd.f32 %v3034_v14, %v1572_v11  ;;  %2129 = vmatprep.mubr.bf16.mxu1 %v3684_v6  ;;  %3387 = vmatprep.mubr.bf16.mxu0 %v3685_v15 }
 0x134   :  { %v2948_v21 = vpop.f32.mrf.mxu0  ;;  %v3036_v23 = vpop.f32.mrf.mxu1 }
 0x135   :  { %v4460_v25 = vadd.f32 %v2948_v21, %v2947_v16  ;;  %v3037_v26 = vadd.f32 %v3036_v23, %v3035_v60  ;;  %v1593_v16 = vadd.f32 %v4412_v30, %v4312_v48 }
 0x136   :  { %v2950_v27 = vpop.f32.mrf.mxu0  ;;  %v3038_v31 = vpop.f32.mrf.mxu1 }
 0x137   :  { %v4468_v36 = vadd.f32 %v3037_v26, %v1577_v24 }
 0x138   :  { %v2951_v37 = vpop.f32.mrf.mxu0  ;;  %v3039_v40 = vpop.f32.mrf.mxu1 }
 0x139   :  { %v4472_v54 = vadd.f32 %v2951_v37, %v2950_v27  ;;  %v3040_v12 = vadd.f32 %v3039_v40, %v3038_v31 }
 0x13a   :  { %v2953_v41 = vpop.f32.mrf.mxu0  ;;  %v3041_v42 = vpop.f32.mrf.mxu1  ;;  %2130 = vmatmul.mubr.bf16.gmra.mxu1 %v3682_v44  ;;  %3388 = vmatmul.mubr.bf16.gmra.mxu0 %v3686_v32  ;;  %v1596_v44 = vadd.f32 %v4430_v43, %v4312_v48 }
 0x13b   :  { %v4474_v47 = vadd.f32 %v3040_v12, %v1580_v39 }
 0x13c   :  { %v2954_v18 = vpop.f32.mrf.mxu0  ;;  %v3042_v49 = vpop.f32.mrf.mxu1 }
 0x13d   :  { %v4478_v56 = vadd.f32 %v2954_v18, %v2953_v41  ;;  %v3043_v57 = vadd.f32 %v3042_v49, %v3041_v42 }
 0x13e   :  { %v2956_v63 = vpop.f32.mrf.mxu0  ;;  %v3044_v5 = vpop.f32.mrf.mxu1 }
 0x13f   :  { %v4480_v55 = vadd.f32 %v3043_v57, %v1585_v53 }
 0x140   :  { %v2957_v50 = vpop.f32.mrf.mxu0  ;;  %v3045_v0 = vpop.f32.mrf.mxu1 }
 0x141   :  { %v4484_v6 = vadd.f32 %v2957_v50, %v2956_v63  ;;  %v3046_v15 = vadd.f32 %v3045_v0, %v3044_v5 }
 0x142   :  { %v3047_v7 = vpop.f32.mrf.mxu1  ;;  %v3111_v8 = vpop.f32.mrf.mxu0 }
 0x143   :  { %v4486_v11 = vadd.f32 %v3046_v15, %v1588_v4 }
 0x144   :  { %v3048_v1 = vpop.f32.mrf.mxu1  ;;  %v3112_v14 = vpop.f32.mrf.mxu0 }
 0x145   :  { %v3049_v60 = vadd.f32 %v3048_v1, %v3047_v7  ;;  %v3113_v21 = vadd.f32 %v3112_v14, %v3111_v8 }
 0x146   :  { %v3050_v23 = vpop.f32.mrf.mxu1  ;;  %v3114_v24 = vpop.f32.mrf.mxu0 }
 0x147   :  { %v4490_v26 = vadd.f32 %v3049_v60, %v1593_v16  ;;  %v4493_v17 = vadd.f32 %v3113_v21, %v4324_v62  ;;  %v1601_v62 = vadd.f32 %v4436_v58, %v4312_v48 }
 0x148   :  { %v3051_v27 = vpop.f32.mrf.mxu1  ;;  %v3115_v31 = vpop.f32.mrf.mxu0 }
 0x149   :  { %v3052_v32 = vadd.f32 %v3051_v27, %v3050_v23  ;;  %v3116_v37 = vadd.f32 %v3115_v31, %v3114_v24 }
 0x14a   :  { %v3053_v40 = vpop.f32.mrf.mxu1  ;;  %v3117_v39 = vpop.f32.mrf.mxu0 }
 0x14b   :  { %v4497_v12 = vadd.f32 %v3052_v32, %v1596_v44  ;;  %v4500_v30 = vadd.f32 %v3116_v37, %v4336_v9  ;;  %v1604_v9 = vadd.f32 %v4454_v34, %v4312_v48 }
 0x14c   :  { %v3054_v41 = vpop.f32.mrf.mxu1  ;;  %v3118_v42 = vpop.f32.mrf.mxu0 }
 0x14d   :  { %v3055_v18 = vadd.f32 %v3054_v41, %v3053_v40  ;;  %v3119_v49 = vadd.f32 %v3118_v42, %v3117_v39 }
 0x14e   :  { %v3056_v53 = vpop.f32.mrf.mxu1  ;;  %v3120_v57 = vpop.f32.mrf.mxu0 }
 0x14f   :  { %v4504_v63 = vadd.f32 %v3055_v18, %v1601_v62  ;;  %v4507_v43 = vadd.f32 %v3119_v49, %v4348_v22  ;;  %v1609_v22 = vadd.f32 %v4460_v25, %v4312_v48 }
 0x150   :  { %v3057_v5 = vpop.f32.mrf.mxu1  ;;  %v3121_v50 = vpop.f32.mrf.mxu0 }
 0x151   :  { %v3058_v0 = vadd.f32 %v3057_v5, %v3056_v53  ;;  %v3122_v4 = vadd.f32 %v3121_v50, %v3120_v57 }
 0x152   :  { %v3059_v15 = vpop.f32.mrf.mxu1  ;;  %v3123_v7 = vpop.f32.mrf.mxu0 }
 0x153   :  { %v4511_v8 = vadd.f32 %v3058_v0, %v1604_v9  ;;  %v4514_v58 = vadd.f32 %v3122_v4, %v4360_v33  ;;  %v1612_v33 = vadd.f32 %v4472_v54, %v4312_v48 }
 0x154   :  { %v3060_v1 = vpop.f32.mrf.mxu1  ;;  %v3124_v14 = vpop.f32.mrf.mxu0 }
 0x155   :  { %v3061_v16 = vadd.f32 %v3060_v1, %v3059_v15  ;;  %v3125_v60 = vadd.f32 %v3124_v14, %v3123_v7 }
 0x156   :  { %v3062_v21 = vpop.f32.mrf.mxu1  ;;  %v3126_v23 = vpop.f32.mrf.mxu0 }
 0x157   :  { %v4518_v24 = vadd.f32 %v3061_v16, %v1609_v22  ;;  %v4521_v34 = vadd.f32 %v3125_v60, %v4372_v46  ;;  %v1617_v46 = vadd.f32 %v4478_v56, %v4312_v48 }
 0x158   :  { %v3063_v27 = vpop.f32.mrf.mxu1  ;;  %v3127_v31 = vpop.f32.mrf.mxu0 }
 0x159   :  { %v3064_v44 = vadd.f32 %v3063_v27, %v3062_v21  ;;  %v3128_v32 = vadd.f32 %v3127_v31, %v3126_v23 }
 0x15a   :  { %v3065_v37 = vpop.f32.mrf.mxu1  ;;  %v3129_v40 = vpop.f32.mrf.mxu0 }
 0x15b   :  { %v4525_v39 = vadd.f32 %v3064_v44, %v1612_v33  ;;  %v4528_v25 = vadd.f32 %v3128_v32, %v4384_v59  ;;  %v1620_v59 = vadd.f32 %v4484_v6, %v4312_v48 }
 0x15c   :  { %v3066_v41 = vpop.f32.mrf.mxu1  ;;  %v3130_v42 = vpop.f32.mrf.mxu0 }
 0x15d   :  { %v3067_v62 = vadd.f32 %v3066_v41, %v3065_v37  ;;  %v3131_v18 = vadd.f32 %v3130_v42, %v3129_v40 }
 0x15e   :  { %v3068_v49 = vpop.f32.mrf.mxu1  ;;  %v3132_v53 = vpop.f32.mrf.mxu0 }
 0x15f   :  { %v4532_v57 = vadd.f32 %v3067_v62, %v1617_v46  ;;  %v4535_v54 = vadd.f32 %v3131_v18, %v4396_v10  ;;  %v1625_v10 = vadd.f32 %v4231_v51, %v4312_v48 }
 0x160   :  { %v3069_v5 = vpop.f32.mrf.mxu1  ;;  %v3133_v50 = vpop.f32.mrf.mxu0 }
 0x161   :  { %v3070_v9 = vadd.f32 %v3069_v5, %v3068_v49  ;;  %v3134_v0 = vadd.f32 %v3133_v50, %v3132_v53 }
 0x162   :  { %v3071_v4 = vpop.f32.mrf.mxu1  ;;  %v3135_v15 = vpop.f32.mrf.mxu0 }
 0x163   :  { %v4539_v7 = vadd.f32 %v3070_v9, %v1620_v59  ;;  %v4542_v56 = vadd.f32 %v3134_v0, %v4408_v2  ;;  %v1628_v2 = vadd.f32 %v4247_v61, %v4312_v48 }
 0x164   :  { %v3072_v1 = vpop.f32.mrf.mxu1  ;;  %v3136_v14 = vpop.f32.mrf.mxu0 }
 0x165   :  { %v3073_v22 = vadd.f32 %v3072_v1, %v3071_v4  ;;  %v3137_v16 = vadd.f32 %v3136_v14, %v3135_v15 }
 0x166   :  { %v3074_v60 = vpop.f32.mrf.mxu1  ;;  %v3138_v21 = vpop.f32.mrf.mxu0 }
 0x167   :  { %v4546_v23 = vadd.f32 %v3073_v22, %v1625_v10  ;;  %v4549_v6 = vadd.f32 %v3137_v16, %v4420_v38  ;;  %v1633_v38 = vadd.f32 %v4251_v3, %v4312_v48 }
 0x168   :  { %v3075_v27 = vpop.f32.mrf.mxu1  ;;  %v3139_v31 = vpop.f32.mrf.mxu0 }
 0x169   :  { %v3076_v33 = vadd.f32 %v3075_v27, %v3074_v60  ;;  %v3140_v44 = vadd.f32 %v3139_v31, %v3138_v21 }
 0x16a   :  { %v3077_v32 = vpop.f32.mrf.mxu1  ;;  %v3141_v37 = vpop.f32.mrf.mxu0 }
 0x16b   :  { %v4553_v40 = vadd.f32 %v3076_v33, %v1628_v2  ;;  %v4556_v51 = vadd.f32 %v3140_v44, %v4432_v52  ;;  %v1636_v52 = vadd.f32 %v4267_v13, %v4312_v48 }
 0x16c   :  { %v3078_v41 = vpop.f32.mrf.mxu1  ;;  %v3142_v42 = vpop.f32.mrf.mxu0 }
 0x16d   :  { %v3079_v46 = vadd.f32 %v3078_v41, %v3077_v32  ;;  %v3143_v62 = vadd.f32 %v3142_v42, %v3141_v37 }
 0x16e   :  { %v3080_v18 = vpop.f32.mrf.mxu1  ;;  %v3144_v49 = vpop.f32.mrf.mxu0 }
 0x16f   :  { %v4560_v53 = vadd.f32 %v3079_v46, %v1633_v38  ;;  %v4563_v61 = vadd.f32 %v3143_v62, %v4444_v28  ;;  %v1641_v28 = vadd.f32 %v4271_v19, %v4312_v48 }
 0x170   :  { %v3081_v5 = vpop.f32.mrf.mxu1  ;;  %v3145_v50 = vpop.f32.mrf.mxu0 }
 0x171   :  { %v3082_v59 = vadd.f32 %v3081_v5, %v3080_v18  ;;  %v3146_v9 = vadd.f32 %v3145_v50, %v3144_v49 }
 0x172   :  { %v3083_v0 = vpop.f32.mrf.mxu1  ;;  %v3147_v4 = vpop.f32.mrf.mxu0 }
 0x173   :  { %v4567_v15 = vadd.f32 %v3082_v59, %v1636_v52  ;;  %v4570_v3 = vadd.f32 %v3146_v9, %v4456_v20  ;;  %v1644_v20 = vadd.f32 %v4287_v29, %v4312_v48 }
 0x174   :  { %v3084_v1 = vpop.f32.mrf.mxu1  ;;  %v3148_v14 = vpop.f32.mrf.mxu0 }
 0x175   :  { %v3085_v10 = vadd.f32 %v3084_v1, %v3083_v0  ;;  %v3149_v22 = vadd.f32 %v3148_v14, %v3147_v4 }
 0x176   :  { %v3086_v16 = vpop.f32.mrf.mxu1  ;;  %v3150_v60 = vpop.f32.mrf.mxu0 }
 0x177   :  { %v4574_v21 = vadd.f32 %v3085_v10, %v1641_v28  ;;  %v4577_v13 = vadd.f32 %v3149_v22, %v4468_v36  ;;  %v1649_v36 = vadd.f32 %v4291_v35, %v4312_v48 }
 0x178   :  { %v3087_v27 = vpop.f32.mrf.mxu1  ;;  %v3151_v31 = vpop.f32.mrf.mxu0 }
 0x179   :  { %v3088_v2 = vadd.f32 %v3087_v27, %v3086_v16  ;;  %v3152_v33 = vadd.f32 %v3151_v31, %v3150_v60 }
 0x17a   :  { %v3089_v44 = vpop.f32.mrf.mxu1  ;;  %v3153_v32 = vpop.f32.mrf.mxu0 }
 0x17b   :  { %v4581_v37 = vadd.f32 %v3088_v2, %v1644_v20  ;;  %v4584_v19 = vadd.f32 %v3152_v33, %v4474_v47  ;;  %v1652_v47 = vadd.f32 %v4307_v45, %v4312_v48 }
 0x17c   :  { %v3090_v41 = vpop.f32.mrf.mxu1  ;;  %v3154_v42 = vpop.f32.mrf.mxu0 }
 0x17d   :  { %v3091_v38 = vadd.f32 %v3090_v41, %v3089_v44  ;;  %v3155_v46 = vadd.f32 %v3154_v42, %v3153_v32 }
 0x17e   :  { %v3092_v62 = vpop.f32.mrf.mxu1  ;;  %v3156_v18 = vpop.f32.mrf.mxu0 }
 0x17f   :  { %v4588_v49 = vadd.f32 %v3091_v38, %v1649_v36  ;;  %v4591_v29 = vadd.f32 %v3155_v46, %v4480_v55 }
 0x180   :  { %v3093_v5 = vpop.f32.mrf.mxu1  ;;  %v3157_v50 = vpop.f32.mrf.mxu0 }
 0x181   :  { %v3094_v52 = vadd.f32 %v3093_v5, %v3092_v62  ;;  %v3158_v59 = vadd.f32 %v3157_v50, %v3156_v18 }
 0x182   :  { %v3159_v9 = vpop.f32.mrf.mxu0  ;;  %v3223_v0 = vpop.f32.mrf.mxu1 }
 0x183   :  { %v4595_v4 = vadd.f32 %v3094_v52, %v1652_v47  ;;  %v4598_v35 = vadd.f32 %v3158_v59, %v4486_v11 }
 0x184   :  { %v3160_v1 = vpop.f32.mrf.mxu0  ;;  %v3224_v14 = vpop.f32.mrf.mxu1 }
 0x185   :  { %v3161_v28 = vadd.f32 %v3160_v1, %v3159_v9  ;;  %v3225_v10 = vadd.f32 %v3224_v14, %v3223_v0 }
 0x186   :  { %v3162_v55 = vpop.f32.mrf.mxu0  ;;  %v4600_v22 = vpop.f32.mrf.mxu1 }
 0x187   :  { %v4603_v16 = vadd.f32 %v3161_v28, %v4490_v26  ;;  %v4606_v45 = vadd.f32 %v3225_v10, %v4493_v17 }
 0x188   :  { %v3163_v48 = vpop.f32.mrf.mxu0  ;;  %v4608_v60 = vpop.f32.mrf.mxu1 }
 0x189   :  { %v3164_v27 = vadd.f32 %v3163_v48, %v3162_v55 }
 0x18a   :  { %v3165_v31 = vpop.f32.mrf.mxu0  ;;  %v4610_v11 = vpop.f32.mrf.mxu1 }
 0x18b   :  { %v4613_v20 = vadd.f32 %v3164_v27, %v4497_v12 }
 0x18c   :  { %v3166_v2 = vpop.f32.mrf.mxu0  ;;  %v4615_v33 = vpop.f32.mrf.mxu1 }
 0x18d   :  { %v3167_v44 = vadd.f32 %v3166_v2, %v3165_v31 }
 0x18e   :  { %v3168_v32 = vpop.f32.mrf.mxu0  ;;  %v4617_v26 = vpop.f32.mrf.mxu1 }
 0x18f   :  { %v4620_v17 = vadd.f32 %v3167_v44, %v4504_v63 }
 0x190   :  { %v3169_v41 = vpop.f32.mrf.mxu0  ;;  %v4622_v42 = vpop.f32.mrf.mxu1 }
 0x191   :  { %v3170_v36 = vadd.f32 %v3169_v41, %v3168_v32 }
 0x192   :  { %v3171_v38 = vpop.f32.mrf.mxu0  ;;  %v4624_v46 = vpop.f32.mrf.mxu1 }
 0x193   :  { %v4627_v12 = vadd.f32 %v3170_v36, %v4511_v8 }
 0x194   :  { %v3172_v62 = vpop.f32.mrf.mxu0  ;;  %v4629_v18 = vpop.f32.mrf.mxu1 }
 0x195   :  { %v3173_v5 = vadd.f32 %v3172_v62, %v3171_v38 }
 0x196   :  { %v3174_v50 = vpop.f32.mrf.mxu0  ;;  %v4631_v47 = vpop.f32.mrf.mxu1 }
 0x197   :  { %v4634_v63 = vadd.f32 %v3173_v5, %v4518_v24 }
 0x198   :  { %v3175_v52 = vpop.f32.mrf.mxu0  ;;  %v4636_v59 = vpop.f32.mrf.mxu1 }
 0x199   :  { %4855 = vst [vmem:[#allocation2_spill] sm:$0xff] %v4634_v63  ;;  %v3176_v9 = vadd.f32 %v3175_v52, %v3174_v50 }
 0x19a   :  { %v3177_v0 = vpop.f32.mrf.mxu0  ;;  %v4638_v1 = vpop.f32.mrf.mxu1 }
 0x19b   :  { %v4641_v8 = vadd.f32 %v3176_v9, %v4525_v39 }
 0x19c   :  { %v3178_v14 = vpop.f32.mrf.mxu0  ;;  %v4643_v28 = vpop.f32.mrf.mxu1 }
 0x19d   :  { %4856 = vst [vmem:[#allocation3_spill] sm:$0xff] %v4641_v8  ;;  %v3179_v10 = vadd.f32 %v3178_v14, %v3177_v0 }
 0x19e   :  { %v3180_v55 = vpop.f32.mrf.mxu0  ;;  %v4645_v48 = vpop.f32.mrf.mxu1 }
 0x19f   :  { %v4648_v24 = vadd.f32 %v3179_v10, %v4532_v57 }
 0x1a0   :  { %v3181_v27 = vpop.f32.mrf.mxu0  ;;  %v4650_v31 = vpop.f32.mrf.mxu1 }
 0x1a1   :  { %4857 = vst [vmem:[#allocation4_spill] sm:$0xff] %v4648_v24  ;;  %v3182_v2 = vadd.f32 %v3181_v27, %v3180_v55 }
 0x1a2   :  { %v3183_v44 = vpop.f32.mrf.mxu0  ;;  %v4652_v32 = vpop.f32.mrf.mxu1 }
 0x1a3   :  { %v4655_v39 = vadd.f32 %v3182_v2, %v4539_v7 }
 0x1a4   :  { %v3184_v41 = vpop.f32.mrf.mxu0  ;;  %v4657_v36 = vpop.f32.mrf.mxu1 }
 0x1a5   :  { %4858 = vst [vmem:[#allocation5_spill] sm:$0xff] %v4655_v39  ;;  %v3185_v38 = vadd.f32 %v3184_v41, %v3183_v44 }
 0x1a6   :  { %v3186_v62 = vpop.f32.mrf.mxu0  ;;  %v4659_v5 = vpop.f32.mrf.mxu1 }
 0x1a7   :  { %v4662_v57 = vadd.f32 %v3185_v38, %v4546_v23 }
 0x1a8   :  { %v3187_v50 = vpop.f32.mrf.mxu0  ;;  %v4664_v52 = vpop.f32.mrf.mxu1 }
 0x1a9   :  { %4859 = vst [vmem:[#allocation6_spill] sm:$0xff] %v4662_v57  ;;  %v3188_v9 = vadd.f32 %v3187_v50, %v3186_v62 }
 0x1aa   :  { %v3189_v0 = vpop.f32.mrf.mxu0  ;;  %v4666_v14 = vpop.f32.mrf.mxu1 }
 0x1ab   :  { %v4669_v7 = vadd.f32 %v3188_v9, %v4553_v40 }
 0x1ac   :  { %v3190_v10 = vpop.f32.mrf.mxu0  ;;  %v4671_v55 = vpop.f32.mrf.mxu1 }
 0x1ad   :  { %4860 = vst [vmem:[#allocation7_spill] sm:$0xff] %v4669_v7  ;;  %v3191_v27 = vadd.f32 %v3190_v10, %v3189_v0 }
 0x1ae   :  { %v3192_v2 = vpop.f32.mrf.mxu0  ;;  %v4673_v44 = vpop.f32.mrf.mxu1 }
 0x1af   :  { %v4676_v23 = vadd.f32 %v3191_v27, %v4560_v53 }
 0x1b0   :  { %v3193_v41 = vpop.f32.mrf.mxu0  ;;  %v4678_v38 = vpop.f32.mrf.mxu1 }
 0x1b1   :  { %4861 = vst [vmem:[#allocation8_spill] sm:$0xff] %v4676_v23  ;;  %v3194_v62 = vadd.f32 %v3193_v41, %v3192_v2 }
 0x1b2   :  { %v3195_v50 = vpop.f32.mrf.mxu0  ;;  %v4680_v57 = vpop.f32.mrf.mxu1 }
 0x1b3   :  { %v4683_v40 = vadd.f32 %v3194_v62, %v4567_v15 }
 0x1b4   :  { %v3196_v9 = vpop.f32.mrf.mxu0  ;;  %v4685_v7 = vpop.f32.mrf.mxu1 }
 0x1b5   :  { %4862 = vst [vmem:[#allocation9_spill] sm:$0xff] %v4683_v40  ;;  %v3197_v0 = vadd.f32 %v3196_v9, %v3195_v50 }
 0x1b6   :  { %v3198_v10 = vpop.f32.mrf.mxu0  ;;  %v4687_v8 = vpop.f32.mrf.mxu1 }
 0x1b7   :  { %v4690_v53 = vadd.f32 %v3197_v0, %v4574_v21  ;;  %v3231_v21 = vadd.f32 %v4615_v33, %v4610_v11 }
 0x1b8   :  { %v3199_v27 = vpop.f32.mrf.mxu0  ;;  %v4692_v23 = vpop.f32.mrf.mxu1 }
 0x1b9   :  { %4863 = vst [vmem:[#allocation10_spill] sm:$0xff] %v4690_v53  ;;  %v3200_v2 = vadd.f32 %v3199_v27, %v3198_v10  ;;  %v2020_v11 = vadd.f32 %v3231_v21, %v4507_v43  ;;  %v3237_v43 = vadd.f32 %v4629_v18, %v4624_v46 }
 0x1ba   :  { %v3201_v41 = vpop.f32.mrf.mxu0  ;;  %v4694_v39 = vpop.f32.mrf.mxu1 }
 0x1bb   :  { %v4697_v15 = vadd.f32 %v3200_v2, %v4581_v37  ;;  %v3234_v37 = vadd.f32 %v4622_v42, %v4617_v26  ;;  %v3243_v42 = vadd.f32 %v4643_v28, %v4638_v1  ;;  %v3240_v1 = vadd.f32 %v4636_v59, %v4631_v47 }
 0x1bc   :  { %v3202_v62 = vpop.f32.mrf.mxu0  ;;  %v4699_v40 = vpop.f32.mrf.mxu1 }
 0x1bd   :  { %4864 = vst [vmem:[#allocation11_spill] sm:$0xff] %v4697_v15  ;;  %v3203_v50 = vadd.f32 %v3202_v62, %v3201_v41  ;;  %v3228_v41 = vadd.f32 %v4608_v60, %v4600_v22  ;;  %v2036_v46 = vadd.f32 %v3243_v42, %v4535_v54  ;;  %v2031_v42 = vadd.f32 %v3240_v1, %v4528_v25 }
 0x1be   :  { %v3204_v9 = vpop.f32.mrf.mxu0  ;;  %v4701_v63 = vpop.f32.mrf.mxu1 }
 0x1bf   :  { %v4706_v0 = vadd.f32 %v3203_v50, %v4588_v49 }
 0x1c0   :  { %v3205_v10 = vpop.f32.mrf.mxu0  ;;  %v4708_v27 = vpop.f32.mrf.mxu1 }
 0x1c1   :  { %4865 = vst [vmem:[#allocation12_spill] sm:$0xff] %v4706_v0  ;;  %v3206_v2 = vadd.f32 %v3205_v10, %v3204_v9  ;;  %v2023_v0 = vadd.f32 %v3234_v37, %v4514_v58  ;;  %v3246_v58 = vadd.f32 %v4650_v31, %v4645_v48 }
 0x1c2   :  { %v4712_v15 = vpop.f32.mrf.mxu1  ;;  %v3361_v53 = vpop.f32.mrf.mxu0 }
 0x1c3   :  { %v4717_v62 = vadd.f32 %v3206_v2, %v4595_v4  ;;  %v2181_v50 = vadd.f32 %v3361_v53, %v2020_v11  ;;  %v2015_v4 = vadd.f32 %v3228_v41, %v4500_v30  ;;  %v2028_v11 = vadd.f32 %v3237_v43, %v4521_v34 }
 0x1c4   :  { %v4720_v49 = vpop.f32.mrf.mxu1  ;;  %v2172_v33 = vpop.f32.mrf.mxu0  ;;  %v2039_v47 = vadd.f32 %v3246_v58, %v4542_v56  ;;  %v3258_v56 = vadd.f32 %v4678_v38, %v4673_v44 }
 0x1c5   :  { %v2173_v9 = vadd.f32 %v2172_v33, %v4606_v45  ;;  %v2301_v53 = vmax.f32 %v2181_v50, 0.0  ;;  %v3255_v50 = vadd.f32 %v4671_v55, %v4666_v14  ;;  %v3252_v14 = vadd.f32 %v4664_v52, %v4659_v5 }
 0x1c6   :  { %v4723_v24 = vpop.f32.mrf.mxu1  ;;  %v3362_v26 = vpop.f32.mrf.mxu0  ;;  %v2055_v5 = vadd.f32 %v3258_v56, %v4570_v3  ;;  %v3270_v3 = vadd.f32 %v4708_v27, %v4701_v63 }
 0x1c7   :  { %v2184_v22 = vadd.f32 %v3362_v26, %v2023_v0  ;;  %v2299_v0 = vmax.f32 %v2173_v9, 0.0  ;;  %v3249_v9 = vadd.f32 %v4657_v36, %v4652_v32 }
 0x1c8   :  { %v4731_v60 = vpop.f32.mrf.mxu1  ;;  %v2175_v21 = vpop.f32.mrf.mxu0 }
 0x1c9   :  { %v2302_v10 = vmax.f32 %v2184_v22, 0.0  ;;  %v2176_v37 = vadd.f32 %v2175_v21, %v2015_v4  ;;  %v2044_v1 = vadd.f32 %v3249_v9, %v4549_v6 }
 0x1ca   :  { %v4737_v28 = vpop.f32.mrf.mxu1  ;;  %v3365_v45 = vpop.f32.mrf.mxu0 }
 0x1cb   :  { %v2784_v30 = vpack.c.bf16 %v2302_v10, %v2301_v53  ;;  %v2300_v2 = vmax.f32 %v2176_v37, 0.0  ;;  %v2197_v31 = vadd.f32 %v3365_v45, %v2036_v46  ;;  %v2052_v37 = vadd.f32 %v3255_v50, %v4563_v61 }
 0x1cc   :  { %v4740_v18 = vpop.f32.mrf.mxu1  ;;  %v2188_v41 = vpop.f32.mrf.mxu0  ;;  %v3261_v46 = vadd.f32 %v4685_v7, %v4680_v57 }
 0x1cd   :  { %2856 = vst [vmem:[%s4854_s3 + $0x8] sm:$0xff] %v2784_v30   ;;  %v2779_v48 = vpack.c.bf16 %v2300_v2, %v2299_v0  ;;  %v2189_v54 = vadd.f32 %v2188_v41, %v2028_v11  ;;  %v2305_v4 = vmax.f32 %v2197_v31, 0.0  ;;  %v3267_v0 = vadd.f32 %v4699_v40, %v4694_v39 }
 0x1ce   :  { %v4747_v59 = vpop.f32.mrf.mxu1  ;;  %v3366_v33 = vpop.f32.mrf.mxu0  ;;  %v2047_v2 = vadd.f32 %v3252_v14, %v4556_v51  ;;  %v3264_v39 = vadd.f32 %v4692_v23, %v4687_v8  ;;  %v2060_v27 = vadd.f32 %v3261_v46, %v4577_v13  ;;  %v3279_v9 = vadd.f32 %v4740_v18, %v4737_v28 }
 0x1cf   :  { %2780 = vst [vmem:[%s4854_s3] sm:$0xff] %v2779_v48   ;;  %v2200_v26 = vadd.f32 %v3366_v33, %v2039_v47  ;;  %v2303_v53 = vmax.f32 %v2189_v54, 0.0  ;;  %v2068_v51 = vadd.f32 %v3267_v0, %v4591_v29  ;;  %v3276_v28 = vadd.f32 %v4731_v60, %v4723_v24 }
 0x1d0   :  { %v3281_v34 = vpop.f32.mrf.mxu1  ;;  %v2191_v22 = vpop.f32.mrf.mxu0  ;;  %v2063_v56 = vadd.f32 %v3264_v39, %v4584_v19  ;;  %v2084_v19 = vadd.f32 %v3279_v9, %v4620_v17  ;;  %v4866_v39 = vld [vmem:[#allocation4_spill] sm:$0xff] }
 0x1d1   :  { %v2306_v43 = vmax.f32 %v2200_v26, 0.0  ;;  %v2192_v21 = vadd.f32 %v2191_v22, %v2031_v42  ;;  %v2071_v42 = vadd.f32 %v3270_v3, %v4598_v35  ;;  %v3282_v35 = vadd.f32 %v3281_v34, %v4747_v59 }
 0x1d2   :  { %v4761_v55 = vpop.f32.mrf.mxu1  ;;  %v3369_v58 = vpop.f32.mrf.mxu0 }
 0x1d3   :  { %v2794_v10 = vpack.c.bf16 %v2306_v43, %v2305_v4  ;;  %v2304_v25 = vmax.f32 %v2192_v21, 0.0  ;;  %v2213_v38 = vadd.f32 %v3369_v58, %v2052_v37  ;;  %v3273_v4 = vadd.f32 %v4720_v49, %v4712_v15 }
 0x1d4   :  { %v4764_v32 = vpop.f32.mrf.mxu1  ;;  %v2204_v36 = vpop.f32.mrf.mxu0  ;;  %v2087_v34 = vadd.f32 %v3282_v35, %v4627_v12 }
 0x1d5   :  { %2858 = vst [vmem:[%s4854_s3 + $0x18] sm:$0xff] %v2794_v10   ;;  %v2789_v44 = vpack.c.bf16 %v2304_v25, %v2303_v53  ;;  %v2205_v61 = vadd.f32 %v2204_v36, %v2044_v1  ;;  %v2309_v48 = vmax.f32 %v2213_v38, 0.0  ;;  %v2076_v59 = vadd.f32 %v3273_v4, %v4603_v16 }
 0x1d6   :  { %v4771_v52 = vpop.f32.mrf.mxu1  ;;  %v3370_v45 = vpop.f32.mrf.mxu0 }
 0x1d7   :  { %2857 = vst [vmem:[%s4854_s3 + $0x10] sm:$0xff] %v2789_v44   ;;  %v2216_v30 = vadd.f32 %v3370_v45, %v2055_v5  ;;  %v2307_v33 = vmax.f32 %v2205_v61, 0.0  ;;  %v2079_v5 = vadd.f32 %v3276_v28, %v4613_v20  ;;  %v3285_v45 = vadd.f32 %v4764_v32, %v4761_v55 }
 0x1d8   :  { %v3287_v6 = vpop.f32.mrf.mxu1  ;;  %v2207_v41 = vpop.f32.mrf.mxu0 }
 0x1d9   :  { %v2310_v31 = vmax.f32 %v2216_v30, 0.0  ;;  %v2208_v11 = vadd.f32 %v2207_v41, %v2047_v2  ;;  %v3288_v46 = vadd.f32 %v3287_v6, %v4771_v52 }
 0x1da   :  { %v3289_v40 = vpop.f32.mrf.mxu1  ;;  %v3373_v47 = vpop.f32.mrf.mxu0 }
 0x1db   :  { %v2804_v50 = vpack.c.bf16 %v2310_v31, %v2309_v48  ;;  %v2308_v54 = vmax.f32 %v2208_v11, 0.0  ;;  %v2229_v7 = vadd.f32 %v3373_v47, %v2068_v51 }
 0x1dc   :  { %v3290_v26 = vpop.f32.mrf.mxu1  ;;  %v2220_v57 = vpop.f32.mrf.mxu0 }
 0x1dd   :  { %2860 = vst [vmem:[%s4854_s3 + $0x28] sm:$0xff] %v2804_v50   ;;  %v2799_v63 = vpack.c.bf16 %v2308_v54, %v2307_v33  ;;  %v2221_v29 = vadd.f32 %v2220_v57, %v2060_v27  ;;  %v2313_v21 = vmax.f32 %v2229_v7, 0.0  ;;  %v3291_v38 = vadd.f32 %v3290_v26, %v3289_v40  ;;  %v4867_v33 = vld [vmem:[#allocation2_spill] sm:$0xff]  ;;  %v4868_v54 = vld [vmem:[#allocation5_spill] sm:$0xff]  ;;  %v4869_v7 = vld [vmem:[#allocation3_spill] sm:$0xff] }
 0x1de   :  { %v3292_v8 = vpop.f32.mrf.mxu1  ;;  %v3374_v23 = vpop.f32.mrf.mxu0  ;;  %v2092_v50 = vadd.f32 %v3285_v45, %v4867_v33  ;;  %v2095_v27 = vadd.f32 %v3288_v46, %v4869_v7  ;;  %v4876_v33 = vld [vmem:[#allocation11_spill] sm:$0xff] }
 0x1df   :  { %2859 = vst [vmem:[%s4854_s3 + $0x20] sm:$0xff] %v2799_v63   ;;  %v2232_v22 = vadd.f32 %v3374_v23, %v2071_v42  ;;  %v2311_v10 = vmax.f32 %v2221_v29, 0.0  ;;  %v2100_v40 = vadd.f32 %v3291_v38, %v4866_v39 }
 0x1e0   :  { %v3293_v43 = vpop.f32.mrf.mxu1  ;;  %v2223_v13 = vpop.f32.mrf.mxu0 }
 0x1e1   :  { %v2314_v14 = vmax.f32 %v2232_v22, 0.0  ;;  %v2224_v58 = vadd.f32 %v2223_v13, %v2063_v56  ;;  %v3294_v30 = vadd.f32 %v3293_v43, %v3292_v8 }
 0x1e2   :  { %v3295_v18 = vpop.f32.mrf.mxu1  ;;  %v3377_v53 = vpop.f32.mrf.mxu0 }
 0x1e3   :  { %v2814_v25 = vpack.c.bf16 %v2314_v14, %v2313_v21  ;;  %v2312_v37 = vmax.f32 %v2224_v58, 0.0  ;;  %v2245_v49 = vadd.f32 %v3377_v53, %v2084_v19  ;;  %v2103_v51 = vadd.f32 %v3294_v30, %v4868_v54  ;;  %v4870_v58 = vld [vmem:[#allocation8_spill] sm:$0xff] }
 0x1e4   :  { %v3296_v36 = vpop.f32.mrf.mxu1  ;;  %v2236_v44 = vpop.f32.mrf.mxu0 }
 0x1e5   :  { %2862 = vst [vmem:[%s4854_s3 + $0x38] sm:$0xff] %v2814_v25   ;;  %v2809_v15 = vpack.c.bf16 %v2312_v37, %v2311_v10  ;;  %v2237_v17 = vadd.f32 %v2236_v44, %v2076_v59  ;;  %v2317_v16 = vmax.f32 %v2245_v49, 0.0  ;;  %v3297_v42 = vadd.f32 %v3296_v36, %v3295_v18  ;;  %v4871_v37 = vld [vmem:[#allocation6_spill] sm:$0xff]  ;;  %v4872_v36 = vld [vmem:[#allocation9_spill] sm:$0xff] }
 0x1e6   :  { %v3298_v24 = vpop.f32.mrf.mxu1  ;;  %v3378_v60 = vpop.f32.mrf.mxu0 }
 0x1e7   :  { %2861 = vst [vmem:[%s4854_s3 + $0x30] sm:$0xff] %v2809_v15   ;;  %v2248_v1 = vadd.f32 %v3378_v60, %v2087_v34  ;;  %v2315_v48 = vmax.f32 %v2237_v17, 0.0  ;;  %v2108_v19 = vadd.f32 %v3297_v42, %v4871_v37 }
 0x1e8   :  { %v3299_v0 = vpop.f32.mrf.mxu1  ;;  %v2239_v61 = vpop.f32.mrf.mxu0 }
 0x1e9   :  { %v2318_v2 = vmax.f32 %v2248_v1, 0.0  ;;  %v2240_v12 = vadd.f32 %v2239_v61, %v2079_v5  ;;  %v3300_v4 = vadd.f32 %v3299_v0, %v3298_v24  ;;  %v4873_v24 = vld [vmem:[#allocation7_spill] sm:$0xff] }
 0x1ea   :  { %v3301_v41 = vpop.f32.mrf.mxu1  ;;  %v3381_v3 = vpop.f32.mrf.mxu0 }
 0x1eb   :  { %v2824_v31 = vpack.c.bf16 %v2318_v2, %v2317_v16  ;;  %v2316_v11 = vmax.f32 %v2240_v12, 0.0  ;;  %v2261_v32 = vadd.f32 %v3381_v3, %v2100_v40  ;;  %v2111_v60 = vadd.f32 %v3300_v4, %v4873_v24 }
 0x1ec   :  { %v3302_v47 = vpop.f32.mrf.mxu1  ;;  %v2252_v20 = vpop.f32.mrf.mxu0 }
 0x1ed   :  { %2864 = vst [vmem:[%s4854_s3 + $0x48] sm:$0xff] %v2824_v31   ;;  %v2819_v55 = vpack.c.bf16 %v2316_v11, %v2315_v48  ;;  %v3303_v26 = vadd.f32 %v3302_v47, %v3301_v41  ;;  %v2253_v57 = vadd.f32 %v2252_v20, %v2092_v50  ;;  %v2321_v9 = vmax.f32 %v2261_v32, 0.0  ;;  %v4874_v11 = vld [vmem:[#allocation10_spill] sm:$0xff]  ;;  %v4875_v20 = vld [vmem:[#allocation12_spill] sm:$0xff] }
 0x1ee   :  { %v3304_v52 = vpop.f32.mrf.mxu1  ;;  %v3382_v6 = vpop.f32.mrf.mxu0 }
 0x1ef   :  { %2863 = vst [vmem:[%s4854_s3 + $0x40] sm:$0xff] %v2819_v55   ;;  %v2264_v63 = vadd.f32 %v3382_v6, %v2103_v51  ;;  %v2319_v35 = vmax.f32 %v2253_v57, 0.0  ;;  %v2116_v28 = vadd.f32 %v3303_v26, %v4870_v58 }
 0x1f0   :  { %v3305_v8 = vpop.f32.mrf.mxu1  ;;  %v2255_v23 = vpop.f32.mrf.mxu0 }
 0x1f1   :  { %v2322_v29 = vmax.f32 %v2264_v63, 0.0  ;;  %v3306_v22 = vadd.f32 %v3305_v8, %v3304_v52  ;;  %v2256_v56 = vadd.f32 %v2255_v23, %v2095_v27 }
 0x1f2   :  { %v3307_v43 = vpop.f32.mrf.mxu1  ;;  %v3385_v13 = vpop.f32.mrf.mxu0 }
 0x1f3   :  { %v2834_v21 = vpack.c.bf16 %v2322_v29, %v2321_v9  ;;  %v2320_v14 = vmax.f32 %v2256_v56, 0.0  ;;  %v2277_v25 = vadd.f32 %v3385_v13, %v2116_v28  ;;  %v2119_v44 = vadd.f32 %v3306_v22, %v4872_v36 }
 0x1f4   :  { %v3308_v53 = vpop.f32.mrf.mxu1  ;;  %v2268_v10 = vpop.f32.mrf.mxu0 }
 0x1f5   :  { %2866 = vst [vmem:[%s4854_s3 + $0x58] sm:$0xff] %v2834_v21   ;;  %v2829_v18 = vpack.c.bf16 %v2320_v14, %v2319_v35  ;;  %v2269_v59 = vadd.f32 %v2268_v10, %v2108_v19  ;;  %v2325_v1 = vmax.f32 %v2277_v25, 0.0  ;;  %v3309_v5 = vadd.f32 %v3308_v53, %v3307_v43 }
 0x1f6   :  { %v3310_v15 = vpop.f32.mrf.mxu1  ;;  %v3386_v49 = vpop.f32.mrf.mxu0 }
 0x1f7   :  { %2865 = vst [vmem:[%s4854_s3 + $0x50] sm:$0xff] %v2829_v18   ;;  %v2280_v34 = vadd.f32 %v3386_v49, %v2119_v44  ;;  %v2323_v16 = vmax.f32 %v2269_v59, 0.0  ;;  %v2124_v39 = vadd.f32 %v3309_v5, %v4874_v11 }
 0x1f8   :  { %v3311_v38 = vpop.f32.mrf.mxu1  ;;  %v2271_v17 = vpop.f32.mrf.mxu0 }
 0x1f9   :  { %v2326_v45 = vmax.f32 %v2280_v34, 0.0  ;;  %v2272_v0 = vadd.f32 %v2271_v17, %v2111_v60  ;;  %v3312_v12 = vadd.f32 %v3311_v38, %v3310_v15 }
 0x1fa   :  { %v3313_v61 = vpop.f32.mrf.mxu1  ;;  %v3389_v30 = vpop.f32.mrf.mxu0 }
 0x1fb   :  { %v2844_v2 = vpack.c.bf16 %v2326_v45, %v2325_v1  ;;  %v2324_v46 = vmax.f32 %v2272_v0, 0.0  ;;  %v2127_v50 = vadd.f32 %v3312_v12, %v4876_v33 }
 0x1fc   :  { %v3314_v41 = vpop.f32.mrf.mxu1  ;;  %v2284_v3 = vpop.f32.mrf.mxu0 }
 0x1fd   :  { %2868 = vst [vmem:[%s4854_s3 + $0x68] sm:$0xff] %v2844_v2   ;;  %v2839_v48 = vpack.c.bf16 %v2324_v46, %v2323_v16  ;;  %v3315_v31 = vadd.f32 %v3314_v41, %v3313_v61  ;;  %v2285_v32 = vadd.f32 %v2284_v3, %v2124_v39 }
 0x1fe   :  { %v3316_v40 = vpop.f32.mrf.mxu1  ;;  %v3390_v47 = vpop.f32.mrf.mxu0 }
 0x1ff   :  { %2867 = vst [vmem:[%s4854_s3 + $0x60] sm:$0xff] %v2839_v48   ;;  %v2132_v55 = vadd.f32 %v3315_v31, %v4875_v20  ;;  %v2327_v57 = vmax.f32 %v2285_v32, 0.0 }
 0x200   :  { %v3317_v54 = vpop.f32.mrf.mxu1  ;;  %v2287_v51 = vpop.f32.mrf.mxu0 }
 0x201   :  { %v3318_v52 = vadd.f32 %v3317_v54, %v3316_v40  ;;  %v2288_v6 = vadd.f32 %v2287_v51, %v2127_v50  ;;  %v2293_v26 = vadd.f32 %v3389_v30, %v2132_v55 }
 0x203   :  { %v2135_v63 = vadd.f32 %v3318_v52, %v4717_v62  ;;  %v2328_v7 = vmax.f32 %v2288_v6, 0.0  ;;  %v2329_v8 = vmax.f32 %v2293_v26, 0.0 }
 0x205   :  { %v2296_v27 = vadd.f32 %v3390_v47, %v2135_v63  ;;  %v2849_v42 = vpack.c.bf16 %v2328_v7, %v2327_v57 }
 0x207   :  { %v2330_v23 = vmax.f32 %v2296_v27, 0.0  ;;  %2869 = vst [vmem:[%s4854_s3 + $0x70] sm:$0xff] %v2849_v42  }
 0x209   :  { %v2854_v9 = vpack.c.bf16 %v2330_v23, %v2329_v8 }
 0x20b   :  { %2870 = vst [vmem:[%s4854_s3 + $0x78] sm:$0xff] %v2854_v9  }

// kernel: vae_forward.10
= control target key start
LH: loop header
LB: loop body
LE: loop exit
PB: predicated region body
PF: predicated region fallthrough
CT: control target
= control target key end

     0   :  { %s2108_s1 = inlined_call_operand.vmem [shape: bf16[1152,128], index: 1, kind: input, shape index: {}]   ;;  %s2109_s0 = inlined_call_operand.vmem [shape: bf16[64,1152], index: 0, kind: input, shape index: {}]   ;;  %s2110_s2 = inlined_call_operand.vmem [shape: f32[1,128], index: 2, kind: input, shape index: {}]   ;;  %s2111_s3 = inlined_call_operand.vmem [shape: bf16[64,128], index: 3, kind: output, shape index: {}]  }
   0x1   :  { %v1559_v0 = vld [vmem:[%s2108_s1 + $0x78] sm:$0xff]   ;;  %v1563_v4 = vld [vmem:[%s2108_s1 + $0x70] sm:$0xff]   ;;  %v1567_v8 = vld [vmem:[%s2108_s1 + $0x68] sm:$0xff]  }
   0x2   :  { %v1560_v1 = vld [vmem:[%s2108_s1 + $0xf8] sm:$0xff]   ;;  %1347 = vmatprep.subr.bf16.mxu0 %v1559_v0  ;;  %v1564_v5 = vld [vmem:[%s2108_s1 + $0xf0] sm:$0xff]   ;;  %v1568_v9 = vld [vmem:[%s2108_s1 + $0xe8] sm:$0xff]  }
   0x3   :  { %v1561_v2 = vld [vmem:[%s2108_s1 + $0x38] sm:$0xff]   ;;  %1387 = vmatprep.subr.bf16.mxu1 %v1560_v1  ;;  %v1565_v6 = vld [vmem:[%s2108_s1 + $0x30] sm:$0xff]   ;;  %v1569_v10 = vld [vmem:[%s2108_s1 + $0x28] sm:$0xff]  }
   0x4   :  { %v1562_v3 = vld [vmem:[%s2108_s1 + $0xb8] sm:$0xff]   ;;  %1348 = vmatpush3.bf16.msra.mxu0 %v1561_v2  ;;  %v1566_v7 = vld [vmem:[%s2108_s1 + $0xb0] sm:$0xff]   ;;  %v1570_v11 = vld [vmem:[%s2108_s1 + $0xa8] sm:$0xff]  }
   0x5   :  { %1388 = vmatpush3.bf16.msra.mxu1 %v1562_v3  ;;  %1349 = vmatprep.subr.bf16.mxu0 %v1563_v4  ;;  %v1571_v12 = vld [vmem:[%s2108_s1 + $0x60] sm:$0xff]   ;;  %v1575_v16 = vld [vmem:[%s2108_s1 + $0x58] sm:$0xff]   ;;  %v1579_v20 = vld [vmem:[%s2108_s1 + $0x50] sm:$0xff]  }
   0x6   :  { %1389 = vmatprep.subr.bf16.mxu1 %v1564_v5  ;;  %v1572_v13 = vld [vmem:[%s2108_s1 + $0xe0] sm:$0xff]   ;;  %v1576_v17 = vld [vmem:[%s2108_s1 + $0xd8] sm:$0xff]   ;;  %v1580_v21 = vld [vmem:[%s2108_s1 + $0xd0] sm:$0xff]  }
   0x7   :  { %v1573_v14 = vld [vmem:[%s2108_s1 + $0x20] sm:$0xff]   ;;  %v1577_v18 = vld [vmem:[%s2108_s1 + $0x18] sm:$0xff]   ;;  %v1581_v22 = vld [vmem:[%s2108_s1 + $0x10] sm:$0xff]  }
   0x8   :  { %1350 = vmatpush3.bf16.msra.mxu0 %v1565_v6  ;;  %v1574_v15 = vld [vmem:[%s2108_s1 + $0xa0] sm:$0xff]   ;;  %v1578_v19 = vld [vmem:[%s2108_s1 + $0x98] sm:$0xff]   ;;  %v1582_v23 = vld [vmem:[%s2108_s1 + $0x90] sm:$0xff]  }
   0x9   :  { %1390 = vmatpush3.bf16.msra.mxu1 %v1566_v7  ;;  %1351 = vmatprep.subr.bf16.mxu0 %v1567_v8  ;;  %v1583_v24 = vld [vmem:[%s2108_s1 + $0x48] sm:$0xff]   ;;  %v1587_v28 = vld [vmem:[%s2108_s1 + $0x40] sm:$0xff]   ;;  %v1597_v36 = vld [vmem:[%s2108_s1 + $0x178] sm:$0xff]  }
   0xa   :  { %1391 = vmatprep.subr.bf16.mxu1 %v1568_v9  ;;  %v1584_v25 = vld [vmem:[%s2108_s1 + $0xc8] sm:$0xff]   ;;  %v1588_v29 = vld [vmem:[%s2108_s1 + $0xc0] sm:$0xff]   ;;  %v1598_v37 = vld [vmem:[%s2108_s1 + $0x1f8] sm:$0xff]  }
   0xb   :  { %v1585_v26 = vld [vmem:[%s2108_s1 + $0x8] sm:$0xff]   ;;  %v1589_v30 = vld [vmem:[%s2108_s1] sm:$0xff]   ;;  %v1599_v38 = vld [vmem:[%s2108_s1 + $0x138] sm:$0xff]  }
   0xc   :  { %1352 = vmatpush3.bf16.msra.mxu0 %v1569_v10  ;;  %v1586_v27 = vld [vmem:[%s2108_s1 + $0x88] sm:$0xff]   ;;  %v1590_v31 = vld [vmem:[%s2108_s1 + $0x80] sm:$0xff]   ;;  %v1600_v39 = vld [vmem:[%s2108_s1 + $0x1b8] sm:$0xff]  }
   0xd   :  { %1392 = vmatpush3.bf16.msra.mxu1 %v1570_v11  ;;  %1353 = vmatprep.subr.bf16.mxu0 %v1571_v12  ;;  %v1591_v32 = vld [vmem:[%s2109_s0] ss:$36 sps:$4 sm:$0xff]   ;;  %v1594_v34 = vld [vmem:[%s2109_s0 + $0x8] ss:$36 sps:$4 sm:$0xff]   ;;  %v1601_v40 = vld [vmem:[%s2108_s1 + $0x170] sm:$0xff]  }
   0xe   :  { %1393 = vmatprep.subr.bf16.mxu1 %v1572_v13  ;;  %v1593_v33 = vld [vmem:[%s2109_s0 + $0x4] ss:$36 sps:$4 sm:$0xff]   ;;  %v1596_v35 = vld [vmem:[%s2109_s0 + $0xc] ss:$36 sps:$4 sm:$0xff]   ;;  %v1607_v45 = vld [vmem:[%s2109_s0 + $0x54] ss:$36 sps:$4 sm:$0xff]  }
   0xf   :  { %854 = vmatprep.mubr.bf16.mxu0 %v1593_v33  ;;  %919 = vmatprep.mubr.bf16.mxu1 %v1596_v35  ;;  %v1602_v41 = vld [vmem:[%s2108_s1 + $0x1f0] sm:$0xff]   ;;  %v1609_v46 = vld [vmem:[%s2109_s0 + $0x48] ss:$36 sps:$4 sm:$0xff]   ;;  %v1615_v52 = vld [vmem:[%s2108_s1 + $0x160] sm:$0xff]  }
  0x10   :  { %1354 = vmatpush3.bf16.msra.mxu0 %v1573_v14  ;;  %v1603_v42 = vld [vmem:[%s2108_s1 + $0x130] sm:$0xff]   ;;  %v1611_v48 = vld [vmem:[%s2108_s1 + $0x168] sm:$0xff]   ;;  %v1616_v53 = vld [vmem:[%s2108_s1 + $0x1e0] sm:$0xff]  }
  0x11   :  { %1394 = vmatpush3.bf16.msra.mxu1 %v1574_v15  ;;  %1355 = vmatprep.subr.bf16.mxu0 %v1575_v16  ;;  %v1604_v43 = vld [vmem:[%s2108_s1 + $0x1b0] sm:$0xff]   ;;  %v1612_v49 = vld [vmem:[%s2108_s1 + $0x1e8] sm:$0xff]   ;;  %v1617_v54 = vld [vmem:[%s2108_s1 + $0x120] sm:$0xff]  }
  0x12   :  { %1395 = vmatprep.subr.bf16.mxu1 %v1576_v17  ;;  %v1605_v44 = vld [vmem:[%s2109_s0 + $0x4c] ss:$36 sps:$4 sm:$0xff]   ;;  %v1618_v55 = vld [vmem:[%s2108_s1 + $0x1a0] sm:$0xff]   ;;  %v1619_v56 = vld [vmem:[%s2109_s0 + $0x94] ss:$36 sps:$4 sm:$0xff]  }
  0x13   :  { %v1610_v47 = vld [vmem:[%s2109_s0 + $0x50] ss:$36 sps:$4 sm:$0xff]   ;;  %v1613_v50 = vld [vmem:[%s2108_s1 + $0x128] sm:$0xff]   ;;  %v1621_v57 = vld [vmem:[%s2109_s0 + $0x9c] ss:$36 sps:$4 sm:$0xff]  }
  0x14   :  { %1356 = vmatpush3.bf16.msra.mxu0 %v1577_v18  ;;  %v1614_v51 = vld [vmem:[%s2108_s1 + $0x1a8] sm:$0xff]   ;;  %v1623_v58 = vld [vmem:[%s2109_s0 + $0x90] ss:$36 sps:$4 sm:$0xff]   ;;  %v1624_v59 = vld [vmem:[%s2109_s0 + $0x98] ss:$36 sps:$4 sm:$0xff]  }
  0x15   :  { %1396 = vmatpush3.bf16.msra.mxu1 %v1578_v19  ;;  %1357 = vmatprep.subr.bf16.mxu0 %v1579_v20  ;;  %v1625_v60 = vld [vmem:[%s2108_s1 + $0x158] sm:$0xff]   ;;  %v1629_v0 = vld [vmem:[%s2108_s1 + $0x150] sm:$0xff]   ;;  %v1635_v5 = vld [vmem:[%s2109_s0 + $0xe4] ss:$36 sps:$4 sm:$0xff]  }
  0x16   :  { %1397 = vmatprep.subr.bf16.mxu1 %v1580_v21  ;;  %v1626_v61 = vld [vmem:[%s2108_s1 + $0x1d8] sm:$0xff]   ;;  %v1630_v1 = vld [vmem:[%s2108_s1 + $0x1d0] sm:$0xff]   ;;  %v1638_v7 = vld [vmem:[%s2109_s0 + $0xe0] ss:$36 sps:$4 sm:$0xff]  }
  0x17   :  { %v1627_v62 = vld [vmem:[%s2108_s1 + $0x118] sm:$0xff]   ;;  %v1631_v2 = vld [vmem:[%s2108_s1 + $0x110] sm:$0xff]   ;;  %v1639_v8 = vld [vmem:[%s2108_s1 + $0x148] sm:$0xff]  }
  0x18   :  { %1358 = vmatpush3.bf16.msra.mxu0 %v1581_v22  ;;  %v1628_v63 = vld [vmem:[%s2108_s1 + $0x198] sm:$0xff]   ;;  %v1632_v3 = vld [vmem:[%s2108_s1 + $0x190] sm:$0xff]   ;;  %v1640_v9 = vld [vmem:[%s2108_s1 + $0x1c8] sm:$0xff]  }
  0x19   :  { %1398 = vmatpush3.bf16.msra.mxu1 %v1582_v23  ;;  %1359 = vmatprep.subr.bf16.mxu0 %v1583_v24  ;;  %v1633_v4 = vld [vmem:[%s2109_s0 + $0xdc] ss:$36 sps:$4 sm:$0xff]   ;;  %v1641_v10 = vld [vmem:[%s2108_s1 + $0x108] sm:$0xff]   ;;  %v1647_v16 = vld [vmem:[%s2109_s0 + $0x10] ss:$36 sps:$4 sm:$0xff]  }
  0x1a   :  { %1399 = vmatprep.subr.bf16.mxu1 %v1584_v25  ;;  %v1637_v6 = vld [vmem:[%s2109_s0 + $0xd8] ss:$36 sps:$4 sm:$0xff]   ;;  %v1642_v11 = vld [vmem:[%s2108_s1 + $0x188] sm:$0xff]   ;;  %v1643_v12 = vld [vmem:[%s2108_s1 + $0x140] sm:$0xff]  }
  0x1b   :  { %v1644_v13 = vld [vmem:[%s2108_s1 + $0x1c0] sm:$0xff]   ;;  %v1649_v17 = vld [vmem:[%s2109_s0 + $0x14] ss:$36 sps:$4 sm:$0xff]   ;;  %v1671_v33 = vld [vmem:[%s2109_s0 + $0xec] ss:$36 sps:$4 sm:$0xff]  }
  0x1c   :  { %1360 = vmatpush3.bf16.msra.mxu0 %v1585_v26  ;;  %v1645_v14 = vld [vmem:[%s2108_s1 + $0x100] sm:$0xff]   ;;  %v1650_v18 = vld [vmem:[%s2109_s0 + $0x18] ss:$36 sps:$4 sm:$0xff]   ;;  %v1654_v21 = vld [vmem:[%s2108_s1 + $0x230] sm:$0xff]  }
  0x1d   :  { %1400 = vmatpush3.bf16.msra.mxu1 %v1586_v27  ;;  %1361 = vmatprep.subr.bf16.mxu0 %v1587_v28  ;;  %v1646_v15 = vld [vmem:[%s2108_s1 + $0x180] sm:$0xff]   ;;  %v1653_v20 = vld [vmem:[%s2108_s1 + $0x238] sm:$0xff]   ;;  %v1661_v26 = vld [vmem:[%s2108_s1 + $0x228] sm:$0xff]  }
  0x1e   :  { %1401 = vmatprep.subr.bf16.mxu1 %v1588_v29  ;;  %v1652_v19 = vld [vmem:[%s2109_s0 + $0x1c] ss:$36 sps:$4 sm:$0xff]   ;;  %v1657_v23 = vld [vmem:[%s2109_s0 + $0x64] ss:$36 sps:$4 sm:$0xff]   ;;  %v1665_v28 = vld [vmem:[%s2109_s0 + $0xac] ss:$36 sps:$4 sm:$0xff]  }
  0x1f   :  { %v1655_v22 = vld [vmem:[%s2109_s0 + $0x5c] ss:$36 sps:$4 sm:$0xff]   ;;  %v1663_v27 = vld [vmem:[%s2109_s0 + $0xa4] ss:$36 sps:$4 sm:$0xff]   ;;  %v1670_v35 = vld [vmem:[%s2108_s1 + $0x210] sm:$0xff]  }
  0x20   :  { %1362 = vmatpush3.bf16.msra.mxu0 %v1589_v30  ;;  %v1659_v24 = vld [vmem:[%s2109_s0 + $0x58] ss:$36 sps:$4 sm:$0xff]   ;;  %v1660_v25 = vld [vmem:[%s2109_s0 + $0x60] ss:$36 sps:$4 sm:$0xff]  }
  0x21   :  { %1402 = vmatpush3.bf16.msra.mxu1 %v1590_v31  ;;  %1427 = vmatprep.subr.bf16.mxu0 %v1597_v36  ;;  %v1662_v29 = vld [vmem:[%s2108_s1 + $0x220] sm:$0xff]   ;;  %v1668_v31 = vld [vmem:[%s2109_s0 + $0xa8] ss:$36 sps:$4 sm:$0xff]  }
  0x22   :  { %1467 = vmatprep.subr.bf16.mxu1 %v1598_v37  ;;  %v1667_v30 = vld [vmem:[%s2109_s0 + $0xa0] ss:$36 sps:$4 sm:$0xff]   ;;  %v1675_v36 = vld [vmem:[%s2109_s0 + $0xe8] ss:$36 sps:$4 sm:$0xff]  }
  0x23   :  { %855 = vmatmul.mubr.bf16.vlgmr.msra.gmra.mxu0 %v1591_v32  ;;  %v1669_v32 = vld [vmem:[%s2108_s1 + $0x218] sm:$0xff]   ;;  %v1677_v37 = vld [vmem:[%s2108_s1 + $0x208] sm:$0xff]  }
  0x24   :  { %920 = vmatmul.mubr.bf16.vlgmr.msra.gmra.mxu1 %v1594_v34  ;;  %1428 = vmatpush3.bf16.msra.mxu0 %v1599_v38  ;;  %v1673_v34 = vld [vmem:[%s2109_s0 + $0xf4] ss:$36 sps:$4 sm:$0xff]  }
  0x25   :  { %1468 = vmatpush3.bf16.msra.mxu1 %v1600_v39  ;;  %1429 = vmatprep.subr.bf16.mxu0 %v1601_v40  ;;  %v1676_v38 = vld [vmem:[%s2109_s0 + $0xf0] ss:$36 sps:$4 sm:$0xff]   ;;  %v1679_v39 = vld [vmem:[%s2109_s0 + $0x20] ss:$36 sps:$4 sm:$0xff]  }
  0x26   :  { %1469 = vmatprep.subr.bf16.mxu1 %v1602_v41  ;;  %862 = vmatprep.mubr.bf16.mxu0 %v1605_v44  ;;  %v1680_v40 = vld [vmem:[%s2109_s0 + $0xb0] ss:$36 sps:$4 sm:$0xff]   ;;  %v1678_v41 = vld [vmem:[%s2108_s1 + $0x200] sm:$0xff]  }
  0x27   :  { %927 = vmatprep.mubr.bf16.mxu1 %v1607_v45 }
  0x28   :  { %1430 = vmatpush3.bf16.msra.mxu0 %v1603_v42  ;;  %v1681_v42 = vld [vmem:[%s2109_s0 + $0x68] ss:$36 sps:$4 sm:$0xff]  }
  0x29   :  { %1470 = vmatpush3.bf16.msra.mxu1 %v1604_v43  ;;  %1431 = vmatprep.subr.bf16.mxu0 %v1611_v48  ;;  %v1682_v43 = vld [vmem:[%s2109_s0 + $0xf8] ss:$36 sps:$4 sm:$0xff]  }
  0x2a   :  { %1471 = vmatprep.subr.bf16.mxu1 %v1612_v49 }
  0x2b   :  { %863 = vmatmul.mubr.bf16.gmra.mxu0 %v1609_v46 }
  0x2c   :  { %928 = vmatmul.mubr.bf16.gmra.mxu1 %v1610_v47  ;;  %1432 = vmatpush3.bf16.msra.mxu0 %v1613_v50 }
  0x2d   :  { %1472 = vmatpush3.bf16.msra.mxu1 %v1614_v51  ;;  %1433 = vmatprep.subr.bf16.mxu0 %v1615_v52 }
  0x2e   :  { %1473 = vmatprep.subr.bf16.mxu1 %v1616_v53  ;;  %870 = vmatprep.mubr.bf16.mxu0 %v1619_v56 }
  0x2f   :  { %935 = vmatprep.mubr.bf16.mxu1 %v1621_v57 }
  0x30   :  { %1434 = vmatpush3.bf16.msra.mxu0 %v1617_v54 }
  0x31   :  { %1474 = vmatpush3.bf16.msra.mxu1 %v1618_v55  ;;  %1435 = vmatprep.subr.bf16.mxu0 %v1625_v60 }
  0x32   :  { %1475 = vmatprep.subr.bf16.mxu1 %v1626_v61 }
  0x33   :  { %871 = vmatmul.mubr.bf16.gmra.mxu0 %v1623_v58 }
  0x34   :  { %936 = vmatmul.mubr.bf16.gmra.mxu1 %v1624_v59  ;;  %1436 = vmatpush3.bf16.msra.mxu0 %v1627_v62 }
  0x35   :  { %1476 = vmatpush3.bf16.msra.mxu1 %v1628_v63  ;;  %1437 = vmatprep.subr.bf16.mxu0 %v1629_v0 }
  0x36   :  { %1477 = vmatprep.subr.bf16.mxu1 %v1630_v1  ;;  %878 = vmatprep.mubr.bf16.mxu0 %v1633_v4 }
  0x37   :  { %943 = vmatprep.mubr.bf16.mxu1 %v1635_v5 }
  0x38   :  { %1438 = vmatpush3.bf16.msra.mxu0 %v1631_v2 }
  0x39   :  { %1478 = vmatpush3.bf16.msra.mxu1 %v1632_v3  ;;  %1439 = vmatprep.subr.bf16.mxu0 %v1639_v8 }
  0x3a   :  { %1479 = vmatprep.subr.bf16.mxu1 %v1640_v9 }
  0x3b   :  { %879 = vmatmul.mubr.bf16.gmra.mxu0 %v1637_v6 }
  0x3c   :  { %944 = vmatmul.mubr.bf16.gmra.mxu1 %v1638_v7  ;;  %1440 = vmatpush3.bf16.msra.mxu0 %v1641_v10 }
  0x3d   :  { %1480 = vmatpush3.bf16.msra.mxu1 %v1642_v11  ;;  %1441 = vmatprep.subr.bf16.mxu0 %v1643_v12 }
  0x3e   :  { %1481 = vmatprep.subr.bf16.mxu1 %v1644_v13  ;;  %984 = vmatprep.mubr.bf16.mxu0 %v1649_v17 }
  0x3f   :  { %1049 = vmatprep.mubr.bf16.mxu1 %v1652_v19 }
  0x40   :  { %1442 = vmatpush3.bf16.msra.mxu0 %v1645_v14 }
  0x41   :  { %1482 = vmatpush3.bf16.msra.mxu1 %v1646_v15  ;;  %1519 = vmatprep.subr.bf16.mxu0 %v1653_v20 }
  0x42   :  { %1543 = vmatprep.subr.bf16.mxu1 %v1653_v20 }
  0x43   :  { %985 = vmatmul.mubr.bf16.vlgmr.msra.gmra.mxu0 %v1647_v16 }
  0x44   :  { %1050 = vmatmul.mubr.bf16.vlgmr.msra.gmra.mxu1 %v1650_v18  ;;  %1520 = vmatpush3.bf16.msra.mxu0 %v1653_v20 }
  0x45   :  { %1551 = vmatpush3.bf16.msra.mxu1 %v1653_v20  ;;  %1521 = vmatprep.subr.bf16.mxu0 %v1654_v21 }
  0x46   :  { %1544 = vmatprep.subr.bf16.mxu1 %v1654_v21  ;;  %992 = vmatprep.mubr.bf16.mxu0 %v1655_v22 }
  0x47   :  { %1057 = vmatprep.mubr.bf16.mxu1 %v1657_v23 }
  0x48   :  { %1522 = vmatpush3.bf16.msra.mxu0 %v1654_v21 }
  0x49   :  { %1552 = vmatpush3.bf16.msra.mxu1 %v1654_v21  ;;  %1523 = vmatprep.subr.bf16.mxu0 %v1661_v26 }
  0x4a   :  { %1545 = vmatprep.subr.bf16.mxu1 %v1661_v26 }
  0x4b   :  { %993 = vmatmul.mubr.bf16.gmra.mxu0 %v1659_v24 }
  0x4c   :  { %1058 = vmatmul.mubr.bf16.gmra.mxu1 %v1660_v25  ;;  %1000 = vmatprep.mubr.bf16.mxu0 %v1663_v27 }
  0x4d   :  { %1524 = vmatpush3.bf16.msra.mxu0 %v1661_v26  ;;  %1065 = vmatprep.mubr.bf16.mxu1 %v1665_v28 }
  0x4e   :  { %1553 = vmatpush3.bf16.msra.mxu1 %v1661_v26  ;;  %1525 = vmatprep.subr.bf16.mxu0 %v1662_v29 }
  0x4f   :  { %1546 = vmatprep.subr.bf16.mxu1 %v1662_v29 }
  0x51   :  { %1526 = vmatpush3.bf16.msra.mxu0 %v1662_v29 }
  0x52   :  { %1554 = vmatpush3.bf16.msra.mxu1 %v1662_v29  ;;  %1527 = vmatprep.subr.bf16.mxu0 %v1669_v32 }
  0x53   :  { %1001 = vmatmul.mubr.bf16.gmra.mxu0 %v1667_v30  ;;  %1547 = vmatprep.subr.bf16.mxu1 %v1669_v32  ;;  %v1199_v30 = vld [vmem:[%s2110_s2] ss:$0 sm:$0xff] }
  0x54   :  { %1066 = vmatmul.mubr.bf16.gmra.mxu1 %v1668_v31  ;;  %1008 = vmatprep.mubr.bf16.mxu0 %v1671_v33 }
  0x55   :  { %1528 = vmatpush3.bf16.msra.mxu0 %v1669_v32  ;;  %1073 = vmatprep.mubr.bf16.mxu1 %v1673_v34 }
  0x56   :  { %1555 = vmatpush3.bf16.msra.mxu1 %v1669_v32  ;;  %1529 = vmatprep.subr.bf16.mxu0 %v1670_v35 }
  0x57   :  { %1548 = vmatprep.subr.bf16.mxu1 %v1670_v35 }
  0x59   :  { %1530 = vmatpush3.bf16.msra.mxu0 %v1670_v35 }
  0x5a   :  { %1556 = vmatpush3.bf16.msra.mxu1 %v1670_v35  ;;  %1531 = vmatprep.subr.bf16.mxu0 %v1677_v37 }
  0x5b   :  { %1009 = vmatmul.mubr.bf16.gmra.mxu0 %v1675_v36  ;;  %1549 = vmatprep.subr.bf16.mxu1 %v1677_v37 }
  0x5c   :  { %1074 = vmatmul.mubr.bf16.gmra.mxu1 %v1676_v38  ;;  %1535 = vmatprep.mubr.bf16.mxu0 %v1679_v39 }
  0x5d   :  { %1532 = vmatpush3.bf16.msra.mxu0 %v1677_v37  ;;  %1539 = vmatprep.mubr.bf16.mxu1 %v1680_v40 }
  0x5e   :  { %1557 = vmatpush3.bf16.msra.mxu1 %v1677_v37  ;;  %1533 = vmatprep.subr.bf16.mxu0 %v1678_v41 }
  0x5f   :  { %1550 = vmatprep.subr.bf16.mxu1 %v1678_v41 }
  0x61   :  { %1534 = vmatpush3.bf16.msra.mxu0 %v1678_v41 }
  0x62   :  { %1558 = vmatpush3.bf16.msra.mxu1 %v1678_v41 }
  0x64   :  { %1536 = vmatmul.mubr.bf16.vlgmr.msra.gmra.mxu0 %v1681_v42 }
  0x65   :  { %1540 = vmatmul.mubr.bf16.vlgmr.msra.gmra.mxu1 %v1682_v43 }
  0xe3   :  { %v1363_v44 = vpop.f32.mrf.mxu0 }
  0xe4   :  { %v1403_v45 = vpop.f32.mrf.mxu1 }
  0xe5   :  { %v1364_v46 = vpop.f32.mrf.mxu0 }
  0xe6   :  { %v1404_v47 = vpop.f32.mrf.mxu1  ;;  %v1365_v29 = vadd.f32 %v1364_v46, %v1363_v44 }
  0xe7   :  { %v1366_v48 = vpop.f32.mrf.mxu0  ;;  %v1405_v42 = vadd.f32 %v1404_v47, %v1403_v45 }
  0xe8   :  { %v2027_v49 = vpop.f32.mrf.mxu1  ;;  %v857_v38 = vadd.f32 %v1365_v29, %v1199_v30 }
  0xe9   :  { %v1367_v50 = vpop.f32.mrf.mxu0 }
  0xea   :  { %v2029_v51 = vpop.f32.mrf.mxu1  ;;  %v1368_v33 = vadd.f32 %v1367_v50, %v1366_v48 }
  0xeb   :  { %v1369_v52 = vpop.f32.mrf.mxu0  ;;  %v1408_v50 = vadd.f32 %v2029_v51, %v2027_v49 }
  0xec   :  { %v2031_v53 = vpop.f32.mrf.mxu1  ;;  %v860_v44 = vadd.f32 %v1368_v33, %v1199_v30 }
  0xed   :  { %v1370_v54 = vpop.f32.mrf.mxu0 }
  0xee   :  { %v2033_v55 = vpop.f32.mrf.mxu1  ;;  %v1371_v34 = vadd.f32 %v1370_v54, %v1369_v52 }
  0xef   :  { %v1372_v56 = vpop.f32.mrf.mxu0  ;;  %v1411_v52 = vadd.f32 %v2033_v55, %v2031_v53 }
  0xf0   :  { %v2035_v57 = vpop.f32.mrf.mxu1  ;;  %v865_v46 = vadd.f32 %v1371_v34, %v1199_v30 }
  0xf1   :  { %v1373_v58 = vpop.f32.mrf.mxu0 }
  0xf2   :  { %v2037_v59 = vpop.f32.mrf.mxu1  ;;  %v1374_v39 = vadd.f32 %v1373_v58, %v1372_v56 }
  0xf3   :  { %v1375_v60 = vpop.f32.mrf.mxu0  ;;  %v1414_v45 = vadd.f32 %v2037_v59, %v2035_v57 }
  0xf4   :  { %v2039_v61 = vpop.f32.mrf.mxu1  ;;  %v868_v48 = vadd.f32 %v1374_v39, %v1199_v30 }
  0xf5   :  { %v1376_v62 = vpop.f32.mrf.mxu0 }
  0xf6   :  { %v2041_v63 = vpop.f32.mrf.mxu1  ;;  %v933_v49 = vadd.f32 %v1414_v45, %v868_v48 }
  0xf7   :  { %v1378_v0 = vpop.f32.mrf.mxu0  ;;  %v1417_v55 = vadd.f32 %v2041_v63, %v2039_v61 }
  0xf8   :  { %v2043_v1 = vpop.f32.mrf.mxu1 }
  0xf9   :  { %v1379_v2 = vpop.f32.mrf.mxu0 }
  0xfa   :  { %v2045_v3 = vpop.f32.mrf.mxu1  ;;  %v1380_v54 = vadd.f32 %v1379_v2, %v1378_v0 }
  0xfb   :  { %v1381_v4 = vpop.f32.mrf.mxu0 }
  0xfc   :  { %v1421_v5 = vpop.f32.mrf.mxu1  ;;  %v876_v0 = vadd.f32 %v1380_v54, %v1199_v30 }
  0xfd   :  { %v1382_v6 = vpop.f32.mrf.mxu0 }
  0xfe   :  { %v1422_v7 = vpop.f32.mrf.mxu1  ;;  %v1383_v35 = vadd.f32 %v1382_v6, %v1381_v4  ;;  %v925_v6 = vadd.f32 %v1408_v50, %v860_v44 }
  0xff   :  { %v1384_v8 = vpop.f32.mrf.mxu0  ;;  %v1423_v56 = vadd.f32 %v1422_v7, %v1421_v5 }
 0x100   :  { %v1424_v9 = vpop.f32.mrf.mxu1 }
 0x101   :  { %v1385_v10 = vpop.f32.mrf.mxu0 }
 0x102   :  { %v1425_v11 = vpop.f32.mrf.mxu1  ;;  %v1386_v43 = vadd.f32 %v1385_v10, %v1384_v8  ;;  %v930_v8 = vadd.f32 %v1411_v52, %v865_v46 }
 0x103   :  { %v1443_v12 = vpop.f32.mrf.mxu0  ;;  %v1426_v51 = vadd.f32 %v1425_v11, %v1424_v9 }
 0x104   :  { %v2047_v13 = vpop.f32.mrf.mxu1  ;;  %v884_v47 = vadd.f32 %v1386_v43, %v1199_v30 }
 0x105   :  { %v1444_v14 = vpop.f32.mrf.mxu0 }
 0x106   :  { %v2049_v15 = vpop.f32.mrf.mxu1  ;;  %v949_v7 = vadd.f32 %v1426_v51, %v884_v47 }
 0x107   :  { %v2051_v16 = vpop.f32.mrf.mxu0 }
 0x108   :  { %v2053_v17 = vpop.f32.mrf.mxu1 }
 0x109   :  { %2112 = vst [vmem:[#allocation2_spill] sm:$0xff] %v2053_v17  ;;  %v1447_v18 = vpop.f32.mrf.mxu0  ;;  %v881_v17 = vadd.f32 %v1383_v35, %v1199_v30  ;;  %v1445_v35 = vadd.f32 %v1444_v14, %v1443_v12 }
 0x10a   :  { %v2055_v19 = vpop.f32.mrf.mxu1 }
 0x10b   :  { %2113 = vst [vmem:[#allocation3_spill] sm:$0xff] %v2055_v19  ;;  %v1449_v20 = vpop.f32.mrf.mxu0  ;;  %v1377_v19 = vadd.f32 %v1376_v62, %v1375_v60  ;;  %v946_v29 = vadd.f32 %v1423_v56, %v881_v17 }
 0x10c   :  { %v2057_v21 = vpop.f32.mrf.mxu1 }
 0x10d   :  { %v1450_v22 = vpop.f32.mrf.mxu0  ;;  %v873_v10 = vadd.f32 %v1377_v19, %v1199_v30 }
 0x10e   :  { %v2059_v23 = vpop.f32.mrf.mxu1  ;;  %v1451_v60 = vadd.f32 %v1450_v22, %v1449_v20  ;;  %v1448_v20 = vadd.f32 %v1447_v18, %v2051_v16  ;;  %v1485_v18 = vadd.f32 %v2049_v15, %v2047_v13 }
 0x10f   :  { %v1452_v24 = vpop.f32.mrf.mxu0  ;;  %v938_v17 = vadd.f32 %v1417_v55, %v873_v10  ;;  %v1491_v61 = vadd.f32 %v2059_v23, %v2057_v21 }
 0x110   :  { %v2061_v25 = vpop.f32.mrf.mxu1  ;;  %v995_v22 = vadd.f32 %v1451_v60, %v930_v8  ;;  %v2120_v44 = vld [vmem:[#allocation2_spill] sm:$0xff] }
 0x111   :  { %2114 = vst [vmem:[#allocation4_spill] sm:$0xff] %v2061_v25  ;;  %v1453_v26 = vpop.f32.mrf.mxu0  ;;  %v922_v25 = vadd.f32 %v1405_v42, %v857_v38  ;;  %v990_v38 = vadd.f32 %v1448_v20, %v925_v6 }
 0x112   :  { %v2063_v27 = vpop.f32.mrf.mxu1  ;;  %v1454_v53 = vadd.f32 %v1453_v26, %v1452_v24  ;;  %v2121_v46 = vld [vmem:[#allocation3_spill] sm:$0xff] }
 0x113   :  { %2115 = vst [vmem:[#allocation5_spill] sm:$0xff] %v2063_v27  ;;  %v1455_v28 = vpop.f32.mrf.mxu0  ;;  %v987_v14 = vadd.f32 %v1445_v35, %v922_v25  ;;  %v1488_v48 = vadd.f32 %v2121_v46, %v2120_v44 }
 0x114   :  { %v2068_v31 = vpop.f32.mrf.mxu1  ;;  %v998_v63 = vadd.f32 %v1454_v53, %v933_v49 }
 0x115   :  { %2116 = vst [vmem:[#allocation6_spill] sm:$0xff] %v2068_v31  ;;  %v1456_v32 = vpop.f32.mrf.mxu0  ;;  %v1052_v52 = vadd.f32 %v1485_v18, %v987_v14 }
 0x116   :  { %v2070_v36 = vpop.f32.mrf.mxu1  ;;  %v1457_v2 = vadd.f32 %v1456_v32, %v1455_v28 }
 0x117   :  { %v1458_v37 = vpop.f32.mrf.mxu0 }
 0x118   :  { %v2072_v40 = vpop.f32.mrf.mxu1  ;;  %v1003_v28 = vadd.f32 %v1457_v2, %v938_v17  ;;  %v2117_v39 = vld [vmem:[#allocation4_spill] sm:$0xff] }
 0x119   :  { %v1459_v41 = vpop.f32.mrf.mxu0 }
 0x11a   :  { %v1499_v27 = vpop.f32.mrf.mxu1  ;;  %v1460_v9 = vadd.f32 %v1459_v41, %v1458_v37  ;;  %v1060_v37 = vadd.f32 %v1491_v61, %v995_v22 }
 0x11b   :  { %v1461_v31 = vpop.f32.mrf.mxu0  ;;  %v1500_v13 = vadd.f32 %v1499_v27, %v2072_v40 }
 0x11c   :  { %v1501_v58 = vpop.f32.mrf.mxu1  ;;  %v2119_v25 = vld [vmem:[#allocation6_spill] sm:$0xff] }
 0x11d   :  { %v1462_v4 = vpop.f32.mrf.mxu0  ;;  %v1497_v42 = vadd.f32 %v2070_v36, %v2119_v25 }
 0x11e   :  { %v1463_v62 = vadd.f32 %v1462_v4, %v1461_v31  ;;  %v1502_v33 = vpop.f32.mrf.mxu1  ;;  %v1420_v31 = vadd.f32 %v2045_v3, %v2043_v1  ;;  %v2118_v1 = vld [vmem:[#allocation5_spill] sm:$0xff] }
 0x11f   :  { %v1464_v34 = vpop.f32.mrf.mxu0  ;;  %v1503_v11 = vadd.f32 %v1502_v33, %v1501_v58  ;;  %v1494_v3 = vadd.f32 %v2118_v1, %v2117_v39  ;;  %v1068_v58 = vadd.f32 %v1497_v42, %v1003_v28 }
 0x120   :  { %v1011_v5 = vadd.f32 %v1463_v62, %v946_v29  ;;  %v1504_v57 = vpop.f32.mrf.mxu1  ;;  %v941_v26 = vadd.f32 %v1420_v31, %v876_v0  ;;  %v1055_v62 = vadd.f32 %v1488_v48, %v990_v38 }
 0x121   :  { %v1465_v59 = vpop.f32.mrf.mxu0  ;;  %v1063_v56 = vadd.f32 %v1494_v3, %v998_v63 }
 0x122   :  { %v1466_v19 = vadd.f32 %v1465_v59, %v1464_v34  ;;  %v1505_v12 = vpop.f32.mrf.mxu1  ;;  %v1076_v16 = vadd.f32 %v1503_v11, %v1011_v5  ;;  %v1006_v21 = vadd.f32 %v1460_v9, %v941_v26 }
 0x123   :  { %v1506_v30 = vadd.f32 %v1505_v12, %v1504_v57 }
 0x124   :  { %v1014_v24 = vadd.f32 %v1466_v19, %v949_v7  ;;  %v1537_v32 = vpop.f32.mrf.mxu0  ;;  %v1071_v10 = vadd.f32 %v1500_v13, %v1006_v21 }
 0x125   :  { %v1541_v41 = vpop.f32.mrf.mxu1  ;;  %v1125_v50 = vadd.f32 %v1537_v32, %v1060_v37 }
 0x126   :  { %v1116_v23 = vpop.f32.mrf.mxu0  ;;  %v1079_v43 = vadd.f32 %v1506_v30, %v1014_v24  ;;  %v1141_v15 = vadd.f32 %v1541_v41, %v1076_v16 }
 0x127   :  { %v1132_v54 = vpop.f32.mrf.mxu1  ;;  %v1117_v45 = vadd.f32 %v1116_v23, %v1052_v52  ;;  %v1149_v29 = vmax.f32 %v1125_v50, 0.0 }
 0x128   :  { %v1538_v4 = vpop.f32.mrf.mxu0  ;;  %v1133_v36 = vadd.f32 %v1132_v54, %v1068_v58  ;;  %v1153_v51 = vmax.f32 %v1141_v15, 0.0 }
 0x129   :  { %v1128_v47 = vadd.f32 %v1538_v4, %v1063_v56  ;;  %v1542_v60 = vpop.f32.mrf.mxu1  ;;  %v1147_v55 = vmax.f32 %v1117_v45, 0.0 }
 0x12a   :  { %v1144_v6 = vadd.f32 %v1542_v60, %v1079_v43  ;;  %v1119_v8 = vpop.f32.mrf.mxu0  ;;  %v1151_v0 = vmax.f32 %v1133_v36, 0.0 }
 0x12b   :  { %v1150_v33 = vmax.f32 %v1128_v47, 0.0  ;;  %v1120_v34 = vadd.f32 %v1119_v8, %v1055_v62  ;;  %v1135_v49 = vpop.f32.mrf.mxu1 }
 0x12c   :  { %v1154_v35 = vmax.f32 %v1144_v6, 0.0  ;;  %v1136_v53 = vadd.f32 %v1135_v49, %v1071_v10 }
 0x12d   :  { %v1332_v27 = vpack.c.bf16 %v1150_v33, %v1149_v29  ;;  %v1148_v40 = vmax.f32 %v1120_v34, 0.0 }
 0x12e   :  { %v1342_v2 = vpack.c.bf16 %v1154_v35, %v1153_v51  ;;  %v1152_v5 = vmax.f32 %v1136_v53, 0.0 }
 0x12f   :  { %1344 = vst [vmem:[%s2111_s3 + $0x8] sm:$0xff] %v1332_v27   ;;  %v1327_v57 = vpack.c.bf16 %v1148_v40, %v1147_v55 }
 0x130   :  { %1346 = vst [vmem:[%s2111_s3 + $0x18] sm:$0xff] %v1342_v2   ;;  %v1337_v59 = vpack.c.bf16 %v1152_v5, %v1151_v0 }
 0x131   :  { %1328 = vst [vmem:[%s2111_s3] sm:$0xff] %v1327_v57  }
 0x132   :  { %1345 = vst [vmem:[%s2111_s3 + $0x10] sm:$0xff] %v1337_v59  }

// kernel: vae_forward.11
= control target key start
LH: loop header
LB: loop body
LE: loop exit
PB: predicated region body
PF: predicated region fallthrough
CT: control target
= control target key end

     0   :  { %vm1171_vm0 = vmmov 0   ;;  %s1441_s1 = inlined_call_operand.vmem [shape: bf16[1152,128], index: 1, kind: input, shape index: {}]   ;;  %s1442_s0 = inlined_call_operand.vmem [shape: bf16[16,1152], index: 0, kind: input, shape index: {}]   ;;  %s1443_s2 = inlined_call_operand.vmem [shape: f32[1,128], index: 2, kind: input, shape index: {}]   ;;  %s1444_s3 = inlined_call_operand.vmem [shape: bf16[16,128], index: 3, kind: output, shape index: {}]  }
   0x1   :  { %v1085_v0 = vld [vmem:[%s1441_s1 + $0x78] sm:$0xff]   ;;  %v1089_v4 = vld [vmem:[%s1441_s1 + $0x70] sm:$0xff]   ;;  %v1093_v8 = vld [vmem:[%s1441_s1 + $0x68] sm:$0xff]  }
   0x2   :  { %v1086_v1 = vld [vmem:[%s1441_s1 + $0x38] sm:$0xff]   ;;  %966 = vmatprep.subr.bf16.mxu0 %v1085_v0  ;;  %v1090_v5 = vld [vmem:[%s1441_s1 + $0x30] sm:$0xff]   ;;  %v1094_v9 = vld [vmem:[%s1441_s1 + $0x28] sm:$0xff]  }
   0x3   :  { %v1087_v2 = vld [vmem:[%s1441_s1 + $0xf8] sm:$0xff]   ;;  %967 = vmatpush3.bf16.msra.mxu0 %v1086_v1  ;;  %v1091_v6 = vld [vmem:[%s1441_s1 + $0xf0] sm:$0xff]   ;;  %v1095_v10 = vld [vmem:[%s1441_s1 + $0xe8] sm:$0xff]  }
   0x4   :  { %v1088_v3 = vld [vmem:[%s1441_s1 + $0xb8] sm:$0xff]   ;;  %988 = vmatprep.subr.bf16.mxu1 %v1087_v2  ;;  %968 = vmatprep.subr.bf16.mxu0 %v1089_v4  ;;  %v1092_v7 = vld [vmem:[%s1441_s1 + $0xb0] sm:$0xff]   ;;  %v1096_v11 = vld [vmem:[%s1441_s1 + $0xa8] sm:$0xff]  }
   0x5   :  { %989 = vmatpush3.bf16.msra.mxu1 %v1088_v3  ;;  %v1097_v12 = vld [vmem:[%s1441_s1 + $0x60] sm:$0xff]   ;;  %v1101_v16 = vld [vmem:[%s1441_s1 + $0x58] sm:$0xff]   ;;  %v1105_v20 = vld [vmem:[%s1441_s1 + $0x50] sm:$0xff]  }
   0x6   :  { %990 = vmatprep.subr.bf16.mxu1 %v1091_v6  ;;  %v1098_v13 = vld [vmem:[%s1441_s1 + $0x20] sm:$0xff]   ;;  %v1102_v17 = vld [vmem:[%s1441_s1 + $0x18] sm:$0xff]   ;;  %v1106_v21 = vld [vmem:[%s1441_s1 + $0x10] sm:$0xff]   ;;  %v1170_v6 = vmov 0.0  }
   0x7   :  { %969 = vmatpush3.bf16.msra.mxu0 %v1090_v5  ;;  %v1099_v14 = vld [vmem:[%s1441_s1 + $0xe0] sm:$0xff]   ;;  %v1103_v18 = vld [vmem:[%s1441_s1 + $0xd8] sm:$0xff]   ;;  %v1107_v22 = vld [vmem:[%s1441_s1 + $0xd0] sm:$0xff]  }
   0x8   :  { %970 = vmatprep.subr.bf16.mxu0 %v1093_v8  ;;  %v1100_v15 = vld [vmem:[%s1441_s1 + $0xa0] sm:$0xff]   ;;  %v1104_v19 = vld [vmem:[%s1441_s1 + $0x98] sm:$0xff]   ;;  %v1108_v23 = vld [vmem:[%s1441_s1 + $0x90] sm:$0xff]  }
   0x9   :  { %991 = vmatpush3.bf16.msra.mxu1 %v1092_v7  ;;  %v1109_v24 = vld [vmem:[%s1441_s1 + $0x48] sm:$0xff]   ;;  %v1113_v28 = vld [vmem:[%s1441_s1 + $0x40] sm:$0xff]   ;;  %v1120_v34 = vld [vmem:[%s1441_s1 + $0x178] sm:$0xff]  }
   0xa   :  { %992 = vmatprep.subr.bf16.mxu1 %v1095_v10  ;;  %v1110_v25 = vld [vmem:[%s1441_s1 + $0x8] sm:$0xff]   ;;  %v1114_v29 = vld [vmem:[%s1441_s1] sm:$0xff]   ;;  %v1124_v37 = vld [vmem:[%s1441_s1 + $0x138] sm:$0xff]  }
   0xb   :  { %971 = vmatpush3.bf16.msra.mxu0 %v1094_v9  ;;  %v1111_v26 = vld [vmem:[%s1441_s1 + $0xc8] sm:$0xff]   ;;  %v1115_v30 = vld [vmem:[%s1441_s1 + $0xc0] sm:$0xff]   ;;  %v1125_v38 = vld [vmem:[%s1441_s1 + $0x1f8] sm:$0xff]  }
   0xc   :  { %972 = vmatprep.subr.bf16.mxu0 %v1097_v12  ;;  %v1112_v27 = vld [vmem:[%s1441_s1 + $0x88] sm:$0xff]   ;;  %v1116_v31 = vld [vmem:[%s1442_s0] ss:$36 sps:$4 sm:$0xff]   ;;  %v1126_v39 = vld [vmem:[%s1441_s1 + $0x1b8] sm:$0xff]  }
   0xd   :  { %993 = vmatpush3.bf16.msra.mxu1 %v1096_v11  ;;  %v1118_v32 = vld [vmem:[%s1442_s0 + $0x4] ss:$36 sps:$4 sm:$0xff]   ;;  %v1123_v36 = vld [vmem:[%s1442_s0 + $0xc] ss:$36 sps:$4 sm:$0xff]   ;;  %v1139_v52 = vld [vmem:[%s1441_s1 + $0x158] sm:$0xff]  }
   0xe   :  { %994 = vmatprep.subr.bf16.mxu1 %v1099_v14  ;;  %v1119_v33 = vld [vmem:[%s1441_s1 + $0x80] sm:$0xff]   ;;  %686 = vmatprep.mubr.bf16.mxu0 %v1118_v32  ;;  %v1121_v35 = vld [vmem:[%s1442_s0 + $0x8] ss:$36 sps:$4 sm:$0xff]   ;;  %v1127_v40 = vld [vmem:[%s1441_s1 + $0x170] sm:$0xff]  }
   0xf   :  { %973 = vmatpush3.bf16.msra.mxu0 %v1098_v13  ;;  %727 = vmatprep.mubr.bf16.mxu1 %v1123_v36  ;;  %v1128_v41 = vld [vmem:[%s1441_s1 + $0x130] sm:$0xff]   ;;  %v1131_v44 = vld [vmem:[%s1441_s1 + $0x168] sm:$0xff]   ;;  %v1135_v48 = vld [vmem:[%s1441_s1 + $0x160] sm:$0xff]  }
  0x10   :  { %974 = vmatprep.subr.bf16.mxu0 %v1101_v16  ;;  %v1129_v42 = vld [vmem:[%s1441_s1 + $0x1f0] sm:$0xff]   ;;  %v1132_v45 = vld [vmem:[%s1441_s1 + $0x128] sm:$0xff]   ;;  %v1136_v49 = vld [vmem:[%s1441_s1 + $0x120] sm:$0xff]  }
  0x11   :  { %995 = vmatpush3.bf16.msra.mxu1 %v1100_v15  ;;  %v1130_v43 = vld [vmem:[%s1441_s1 + $0x1b0] sm:$0xff]   ;;  %v1133_v46 = vld [vmem:[%s1441_s1 + $0x1e8] sm:$0xff]   ;;  %v1137_v50 = vld [vmem:[%s1441_s1 + $0x1e0] sm:$0xff]  }
  0x12   :  { %996 = vmatprep.subr.bf16.mxu1 %v1103_v18  ;;  %v1134_v47 = vld [vmem:[%s1441_s1 + $0x1a8] sm:$0xff]   ;;  %v1138_v51 = vld [vmem:[%s1441_s1 + $0x1a0] sm:$0xff]   ;;  %v1140_v53 = vld [vmem:[%s1441_s1 + $0x118] sm:$0xff]  }
  0x13   :  { %975 = vmatpush3.bf16.msra.mxu0 %v1102_v17  ;;  %v1141_v54 = vld [vmem:[%s1441_s1 + $0x1d8] sm:$0xff]   ;;  %v1143_v56 = vld [vmem:[%s1441_s1 + $0x150] sm:$0xff]   ;;  %v1147_v60 = vld [vmem:[%s1441_s1 + $0x148] sm:$0xff]  }
  0x14   :  { %976 = vmatprep.subr.bf16.mxu0 %v1105_v20  ;;  %v1142_v55 = vld [vmem:[%s1441_s1 + $0x198] sm:$0xff]   ;;  %v1144_v57 = vld [vmem:[%s1441_s1 + $0x110] sm:$0xff]   ;;  %v1148_v61 = vld [vmem:[%s1441_s1 + $0x108] sm:$0xff]  }
  0x15   :  { %997 = vmatpush3.bf16.msra.mxu1 %v1104_v19  ;;  %v1145_v58 = vld [vmem:[%s1441_s1 + $0x1d0] sm:$0xff]   ;;  %v1149_v62 = vld [vmem:[%s1441_s1 + $0x1c8] sm:$0xff]   ;;  %v1151_v0 = vld [vmem:[%s1441_s1 + $0x140] sm:$0xff]  }
  0x16   :  { %998 = vmatprep.subr.bf16.mxu1 %v1107_v22  ;;  %v1146_v59 = vld [vmem:[%s1441_s1 + $0x190] sm:$0xff]   ;;  %v1150_v63 = vld [vmem:[%s1441_s1 + $0x188] sm:$0xff]   ;;  %v1152_v1 = vld [vmem:[%s1441_s1 + $0x100] sm:$0xff]  }
  0x17   :  { %977 = vmatpush3.bf16.msra.mxu0 %v1106_v21  ;;  %v1153_v2 = vld [vmem:[%s1441_s1 + $0x1c0] sm:$0xff]   ;;  %v1154_v3 = vld [vmem:[%s1442_s0 + $0x10] ss:$36 sps:$4 sm:$0xff]   ;;  %v1158_v7 = vld [vmem:[%s1442_s0 + $0x18] ss:$36 sps:$4 sm:$0xff]  }
  0x18   :  { %978 = vmatprep.subr.bf16.mxu0 %v1109_v24  ;;  %v1156_v4 = vld [vmem:[%s1442_s0 + $0x14] ss:$36 sps:$4 sm:$0xff]   ;;  %v1157_v5 = vld [vmem:[%s1441_s1 + $0x180] sm:$0xff]   ;;  %v1163_v11 = vld [vmem:[%s1441_s1 + $0x228] sm:$0xff]  }
  0x19   :  { %999 = vmatpush3.bf16.msra.mxu1 %v1108_v23  ;;  %v1160_v8 = vld [vmem:[%s1442_s0 + $0x1c] ss:$36 sps:$4 sm:$0xff]   ;;  %v1162_v10 = vld [vmem:[%s1441_s1 + $0x230] sm:$0xff]   ;;  %v1167_v15 = vld [vmem:[%s1441_s1 + $0x208] sm:$0xff]  }
  0x1a   :  { %1000 = vmatprep.subr.bf16.mxu1 %v1111_v26  ;;  %v1161_v9 = vld [vmem:[%s1441_s1 + $0x238] sm:$0xff]   ;;  %v1164_v12 = vld [vmem:[%s1441_s1 + $0x220] sm:$0xff]   ;;  %v1166_v14 = vld [vmem:[%s1441_s1 + $0x210] sm:$0xff]  }
  0x1b   :  { %979 = vmatpush3.bf16.msra.mxu0 %v1110_v25  ;;  %v1165_v13 = vld [vmem:[%s1441_s1 + $0x218] sm:$0xff]   ;;  %v1168_v16 = vld [vmem:[%s1441_s1 + $0x200] sm:$0xff]  }
  0x1c   :  { %980 = vmatprep.subr.bf16.mxu0 %v1113_v28  ;;  %v1169_v17 = vld [vmem:[%s1442_s0 + $0x20] ss:$36 sps:$4 sm:$0xff]  }
  0x1d   :  { %1001 = vmatpush3.bf16.msra.mxu1 %v1112_v27 }
  0x1e   :  { %1002 = vmatprep.subr.bf16.mxu1 %v1115_v30  ;;  %v875_v30 = vld [vmem:[%s1443_s2] ss:$0 sm:$0xff] }
  0x1f   :  { %981 = vmatpush3.bf16.msra.mxu0 %v1114_v29 }
  0x20   :  { %1010 = vmatprep.subr.bf16.mxu0 %v1120_v34 }
  0x21   :  { %1003 = vmatpush3.bf16.msra.mxu1 %v1119_v33 }
  0x22   :  { %687 = vmatmul.mubr.bf16.vlgmr.msra.gmra.mxu0 %v1116_v31  ;;  %1032 = vmatprep.subr.bf16.mxu1 %v1125_v38 }
  0x23   :  { %1011 = vmatpush3.bf16.msra.mxu0 %v1124_v37  ;;  %768 = vmatprep.mubr.bf16.mxu0 %v1156_v4 }
  0x24   :  { %728 = vmatmul.mubr.bf16.vlgmr.msra.gmra.mxu1 %v1121_v35  ;;  %1012 = vmatprep.subr.bf16.mxu0 %v1127_v40 }
  0x25   :  { %1033 = vmatpush3.bf16.msra.mxu1 %v1126_v39  ;;  %809 = vmatprep.mubr.bf16.mxu1 %v1160_v8 }
  0x26   :  { %1034 = vmatprep.subr.bf16.mxu1 %v1129_v42 }
  0x27   :  { %1013 = vmatpush3.bf16.msra.mxu0 %v1128_v41 }
  0x28   :  { %1014 = vmatprep.subr.bf16.mxu0 %v1131_v44 }
  0x29   :  { %1035 = vmatpush3.bf16.msra.mxu1 %v1130_v43 }
  0x2a   :  { %1036 = vmatprep.subr.bf16.mxu1 %v1133_v46 }
  0x2b   :  { %1015 = vmatpush3.bf16.msra.mxu0 %v1132_v45 }
  0x2c   :  { %1016 = vmatprep.subr.bf16.mxu0 %v1135_v48 }
  0x2d   :  { %1037 = vmatpush3.bf16.msra.mxu1 %v1134_v47 }
  0x2e   :  { %1038 = vmatprep.subr.bf16.mxu1 %v1137_v50 }
  0x2f   :  { %1017 = vmatpush3.bf16.msra.mxu0 %v1136_v49 }
  0x30   :  { %1018 = vmatprep.subr.bf16.mxu0 %v1139_v52 }
  0x31   :  { %1039 = vmatpush3.bf16.msra.mxu1 %v1138_v51 }
  0x32   :  { %1040 = vmatprep.subr.bf16.mxu1 %v1141_v54 }
  0x33   :  { %1019 = vmatpush3.bf16.msra.mxu0 %v1140_v53 }
  0x34   :  { %1020 = vmatprep.subr.bf16.mxu0 %v1143_v56 }
  0x35   :  { %1041 = vmatpush3.bf16.msra.mxu1 %v1142_v55 }
  0x36   :  { %1042 = vmatprep.subr.bf16.mxu1 %v1145_v58 }
  0x37   :  { %1021 = vmatpush3.bf16.msra.mxu0 %v1144_v57 }
  0x38   :  { %1022 = vmatprep.subr.bf16.mxu0 %v1147_v60 }
  0x39   :  { %1043 = vmatpush3.bf16.msra.mxu1 %v1146_v59 }
  0x3a   :  { %1044 = vmatprep.subr.bf16.mxu1 %v1149_v62 }
  0x3b   :  { %1023 = vmatpush3.bf16.msra.mxu0 %v1148_v61 }
  0x3c   :  { %1024 = vmatprep.subr.bf16.mxu0 %v1151_v0 }
  0x3d   :  { %1045 = vmatpush3.bf16.msra.mxu1 %v1150_v63 }
  0x3e   :  { %1046 = vmatprep.subr.bf16.mxu1 %v1153_v2 }
  0x3f   :  { %1025 = vmatpush3.bf16.msra.mxu0 %v1152_v1 }
  0x40   :  { %1063 = vmatprep.subr.bf16.mxu0 %v1170_v6 }
  0x41   :  { %1047 = vmatpush3.bf16.msra.mxu1 %v1157_v5 }
  0x42   :  { %769 = vmatmul.mubr.bf16.vlgmr.msra.gmra.mxu0 %v1154_v3 }
  0x43   :  { %1079 = vmatprep.mubr.msk.bf16.mxu0 %vm1171_vm0, %v1170_v6  ;;  %1064 = vmatpush3.bf16.msra.mxu0 %v1161_v9 }
  0x44   :  { %810 = vmatmul.mubr.bf16.vlgmr.msra.gmra.mxu1 %v1158_v7  ;;  %1065 = vmatprep.subr.bf16.mxu0 %v1170_v6 }
  0x47   :  { %1066 = vmatpush3.bf16.msra.mxu0 %v1162_v10 }
  0x48   :  { %1067 = vmatprep.subr.bf16.mxu0 %v1170_v6 }
  0x4b   :  { %1068 = vmatpush3.bf16.msra.mxu0 %v1163_v11 }
  0x4c   :  { %1069 = vmatprep.subr.bf16.mxu0 %v1170_v6 }
  0x4f   :  { %1070 = vmatpush3.bf16.msra.mxu0 %v1164_v12 }
  0x50   :  { %1071 = vmatprep.subr.bf16.mxu0 %v1170_v6 }
  0x53   :  { %1072 = vmatpush3.bf16.msra.mxu0 %v1165_v13 }
  0x54   :  { %1073 = vmatprep.subr.bf16.mxu0 %v1170_v6 }
  0x57   :  { %1074 = vmatpush3.bf16.msra.mxu0 %v1166_v14 }
  0x58   :  { %1075 = vmatprep.subr.bf16.mxu0 %v1170_v6 }
  0x5b   :  { %1076 = vmatpush3.bf16.msra.mxu0 %v1167_v15 }
  0x5c   :  { %1077 = vmatprep.subr.bf16.mxu0 %v1170_v6 }
  0x5f   :  { %1078 = vmatpush3.bf16.msra.mxu0 %v1168_v16 }
  0x62   :  { %1080 = vmatmul.mubr.bf16.vlgmr.msra.gmra.mxu0 %v1169_v17 }
  0xe2   :  { %v982_v18 = vpop.f32.mrf.mxu0 }
  0xe4   :  { %v983_v19 = vpop.f32.mrf.mxu0  ;;  %v1004_v20 = vpop.f32.mrf.mxu1 }
  0xe5   :  { %v984_v29 = vadd.f32 %v983_v19, %v982_v18 }
  0xe6   :  { %v985_v21 = vpop.f32.mrf.mxu0  ;;  %v1005_v22 = vpop.f32.mrf.mxu1 }
  0xe7   :  { %v689_v34 = vadd.f32 %v984_v29, %v875_v30  ;;  %v1006_v35 = vadd.f32 %v1005_v22, %v1004_v20 }
  0xe8   :  { %v986_v23 = vpop.f32.mrf.mxu0  ;;  %v1007_v24 = vpop.f32.mrf.mxu1 }
  0xe9   :  { %v987_v33 = vadd.f32 %v986_v23, %v985_v21  ;;  %v730_v41 = vadd.f32 %v1006_v35, %v689_v34 }
  0xea   :  { %v1008_v26 = vpop.f32.mrf.mxu1 }
  0xeb   :  { %v692_v38 = vadd.f32 %v987_v33, %v875_v30  ;;  %v1009_v39 = vadd.f32 %v1008_v26, %v1007_v24 }
  0xed   :  { %v733_v44 = vadd.f32 %v1009_v39, %v692_v38 }
 0x102   :  { %v1026_v25 = vpop.f32.mrf.mxu0 }
 0x104   :  { %v1027_v27 = vpop.f32.mrf.mxu0  ;;  %v1048_v28 = vpop.f32.mrf.mxu1 }
 0x105   :  { %v1028_v40 = vadd.f32 %v1027_v27, %v1026_v25 }
 0x106   :  { %v1029_v31 = vpop.f32.mrf.mxu0  ;;  %v1049_v32 = vpop.f32.mrf.mxu1 }
 0x107   :  { %v771_v45 = vadd.f32 %v1028_v40, %v730_v41  ;;  %v1050_v46 = vadd.f32 %v1049_v32, %v1048_v28 }
 0x108   :  { %v1030_v36 = vpop.f32.mrf.mxu0  ;;  %v1051_v37 = vpop.f32.mrf.mxu1 }
 0x109   :  { %v1031_v42 = vadd.f32 %v1030_v36, %v1029_v31  ;;  %v812_v50 = vadd.f32 %v1050_v46, %v771_v45 }
 0x10a   :  { %v1052_v43 = vpop.f32.mrf.mxu1 }
 0x10b   :  { %v774_v47 = vadd.f32 %v1031_v42, %v733_v44  ;;  %v1053_v48 = vadd.f32 %v1052_v43, %v1051_v37 }
 0x10d   :  { %v815_v53 = vadd.f32 %v1053_v48, %v774_v47 }
 0x122   :  { %v852_v49 = vpop.f32.mrf.mxu0 }
 0x123   :  { %v853_v52 = vadd.f32 %v852_v49, %v812_v50 }
 0x124   :  { %v1081_v51 = vpop.f32.mrf.mxu0 }
 0x125   :  { %v859_v57 = vmax.f32 %v853_v52, 0.0 }
 0x126   :  { %v855_v54 = vpop.f32.mrf.mxu0 }
 0x127   :  { %v856_v55 = vadd.f32 %v855_v54, %v815_v53 }
 0x128   :  { %v1082_v56 = vpop.f32.mrf.mxu0 }
 0x129   :  { %v860_v58 = vmax.f32 %v856_v55, 0.0 }
 0x12b   :  { %v964_v59 = vpack.c.bf16 %v860_v58, %v859_v57 }
 0x12d   :  { %965 = vst [vmem:[%s1444_s3] sm:$0xff] %v964_v59  }

// kernel: vae_forward.12
= control target key start
LH: loop header
LB: loop body
LE: loop exit
PB: predicated region body
PF: predicated region fallthrough
CT: control target
= control target key end

     0   :  { %v1129_v21 = vmov 1983009808   ;;  %v176_v23 = vlaneseq  ;;  %vm1131_vm0 = vmmov 0   ;;  %s1389_s1 = inlined_call_operand.vmem [shape: bf16[1152,128], index: 1, kind: input, shape index: {}]   ;;  %s1390_s0 = inlined_call_operand.vmem [shape: bf16[4,1152], index: 0, kind: input, shape index: {}]   ;;  %s1391_s2 = inlined_call_operand.vmem [shape: f32[1,128], index: 2, kind: input, shape index: {}]   ;;  %s1392_s3 = inlined_call_operand.vmem [shape: bf16[4,128], index: 3, kind: output, shape index: {}]  }
   0x1   :  { %v1055_v0 = vld [vmem:[%s1389_s1 + $0x78] sm:$0xff]   ;;  %v1059_v4 = vld [vmem:[%s1389_s1 + $0x70] sm:$0xff]   ;;  %v1063_v8 = vld [vmem:[%s1389_s1 + $0x68] sm:$0xff]   ;;  %v174_v22 = vunpack.c.l.s4 %v1129_v21 }
   0x2   :  { %v1056_v1 = vld [vmem:[%s1389_s1 + $0x38] sm:$0xff]   ;;  %935 = vmatprep.subr.bf16.mxu0 %v1055_v0  ;;  %v1060_v5 = vld [vmem:[%s1389_s1 + $0x30] sm:$0xff]   ;;  %v1064_v9 = vld [vmem:[%s1389_s1 + $0x28] sm:$0xff]   ;;  %v177_v29 = vshrl.u32 %v176_v23, 7 }
   0x3   :  { %v1057_v2 = vld [vmem:[%s1389_s1 + $0xf8] sm:$0xff]   ;;  %936 = vmatpush3.bf16.msra.mxu0 %v1056_v1  ;;  %v1061_v6 = vld [vmem:[%s1389_s1 + $0xf0] sm:$0xff]   ;;  %v1065_v10 = vld [vmem:[%s1389_s1 + $0xe8] sm:$0xff]   ;;  %v175_v28 = vunpack.c.0.s8 %v174_v22 }
   0x4   :  { %v1058_v3 = vld [vmem:[%s1389_s1 + $0xb8] sm:$0xff]   ;;  %957 = vmatprep.subr.bf16.mxu1 %v1057_v2  ;;  %937 = vmatprep.subr.bf16.mxu0 %v1059_v4  ;;  %v1062_v7 = vld [vmem:[%s1389_s1 + $0xb0] sm:$0xff]   ;;  %v1066_v11 = vld [vmem:[%s1389_s1 + $0xa8] sm:$0xff]  }
   0x5   :  { %958 = vmatpush3.bf16.msra.mxu1 %v1058_v3  ;;  %v1067_v12 = vld [vmem:[%s1389_s1 + $0x60] sm:$0xff]   ;;  %v1071_v16 = vld [vmem:[%s1389_s1 + $0x58] sm:$0xff]   ;;  %v1075_v20 = vld [vmem:[%s1389_s1 + $0x50] sm:$0xff]   ;;  %v1239_v34 = vsub.s32 %v175_v28, %v177_v29 }
   0x6   :  { %959 = vmatprep.subr.bf16.mxu1 %v1061_v6  ;;  %v1068_v13 = vld [vmem:[%s1389_s1 + $0x20] sm:$0xff]   ;;  %v1072_v17 = vld [vmem:[%s1389_s1 + $0x18] sm:$0xff]   ;;  %v1076_v24 = vld [vmem:[%s1389_s1 + $0x10] sm:$0xff]  }
   0x7   :  { %938 = vmatpush3.bf16.msra.mxu0 %v1060_v5  ;;  %v1069_v14 = vld [vmem:[%s1389_s1 + $0xe0] sm:$0xff]   ;;  %v1073_v18 = vld [vmem:[%s1389_s1 + $0xd8] sm:$0xff]   ;;  %v1077_v25 = vld [vmem:[%s1389_s1 + $0xd0] sm:$0xff]  }
   0x8   :  { %939 = vmatprep.subr.bf16.mxu0 %v1063_v8  ;;  %v1070_v15 = vld [vmem:[%s1389_s1 + $0xa0] sm:$0xff]   ;;  %v1074_v19 = vld [vmem:[%s1389_s1 + $0x98] sm:$0xff]   ;;  %v1078_v26 = vld [vmem:[%s1389_s1 + $0x90] sm:$0xff]  }
   0x9   :  { %960 = vmatpush3.bf16.msra.mxu1 %v1062_v7  ;;  %v1079_v27 = vld [vmem:[%s1389_s1 + $0x48] sm:$0xff]   ;;  %v1083_v33 = vld [vmem:[%s1389_s1 + $0x40] sm:$0xff]   ;;  %v1087_v41 = vld [vmem:[%s1389_s1 + $0x178] sm:$0xff]  }
   0xa   :  { %961 = vmatprep.subr.bf16.mxu1 %v1065_v10  ;;  %v1080_v30 = vld [vmem:[%s1389_s1 + $0x8] sm:$0xff]   ;;  %v1084_v35 = vld [vmem:[%s1389_s1] sm:$0xff]   ;;  %v1089_v44 = vld [vmem:[%s1389_s1 + $0x138] sm:$0xff]  }
   0xb   :  { %940 = vmatpush3.bf16.msra.mxu0 %v1064_v9  ;;  %v1081_v31 = vld [vmem:[%s1389_s1 + $0xc8] sm:$0xff]   ;;  %v1085_v36 = vld [vmem:[%s1389_s1 + $0xc0] sm:$0xff]   ;;  %v1090_v45 = vld [vmem:[%s1389_s1 + $0x1f8] sm:$0xff]  }
   0xc   :  { %941 = vmatprep.subr.bf16.mxu0 %v1067_v12  ;;  %v1082_v32 = vld [vmem:[%s1389_s1 + $0x88] sm:$0xff]   ;;  %v15_v37 = vld [vmem:[%s1390_s0] sm:$0xff]  ;;  %v1091_v47 = vld [vmem:[%s1389_s1 + $0x1b8] sm:$0xff]  }
   0xd   :  { %962 = vmatpush3.bf16.msra.mxu1 %v1066_v11  ;;  %v179_v38 = vrot.slane %v15_v37, %v1239_v34  ;;  %v1086_v39 = vld [vmem:[%s1389_s1 + $0x80] sm:$0xff]   ;;  %v172_v40 = vcombine.high %v15_v37, %v15_v37  ;;  %v1092_v48 = vld [vmem:[%s1389_s1 + $0x170] sm:$0xff]   ;;  %v1096_v52 = vld [vmem:[%s1389_s1 + $0x168] sm:$0xff]  }
   0xe   :  { %963 = vmatprep.subr.bf16.mxu1 %v1069_v14  ;;  %v1093_v49 = vld [vmem:[%s1389_s1 + $0x130] sm:$0xff]   ;;  %v1097_v53 = vld [vmem:[%s1389_s1 + $0x128] sm:$0xff]   ;;  %v1100_v56 = vld [vmem:[%s1389_s1 + $0x160] sm:$0xff]  }
   0xf   :  { %942 = vmatpush3.bf16.msra.mxu0 %v1068_v13  ;;  %v187_v42 = vcombine.high %v179_v38, %v179_v38  ;;  %v186_v43 = vrot.slane %v172_v40, %v1239_v34  ;;  %v1094_v50 = vld [vmem:[%s1389_s1 + $0x1f0] sm:$0xff]   ;;  %v1098_v54 = vld [vmem:[%s1389_s1 + $0x1e8] sm:$0xff]   ;;  %v1101_v57 = vld [vmem:[%s1389_s1 + $0x120] sm:$0xff]  }
  0x10   :  { %943 = vmatprep.subr.bf16.mxu0 %v1071_v16  ;;  %v1095_v51 = vld [vmem:[%s1389_s1 + $0x1b0] sm:$0xff]   ;;  %v1099_v55 = vld [vmem:[%s1389_s1 + $0x1a8] sm:$0xff]   ;;  %v1102_v58 = vld [vmem:[%s1389_s1 + $0x1e0] sm:$0xff]  }
  0x11   :  { %964 = vmatpush3.bf16.msra.mxu1 %v1070_v15  ;;  %686 = vmatprep.mubr.bf16.mxu0 %v187_v42  ;;  %v188_v46 = vcombine.high %v186_v43, %v186_v43  ;;  %v1103_v59 = vld [vmem:[%s1389_s1 + $0x1a0] sm:$0xff]   ;;  %v1104_v60 = vld [vmem:[%s1389_s1 + $0x158] sm:$0xff]   ;;  %v1108_v0 = vld [vmem:[%s1389_s1 + $0x150] sm:$0xff]  }
  0x12   :  { %965 = vmatprep.subr.bf16.mxu1 %v1073_v18  ;;  %v1105_v61 = vld [vmem:[%s1389_s1 + $0x118] sm:$0xff]   ;;  %v1109_v1 = vld [vmem:[%s1389_s1 + $0x110] sm:$0xff]   ;;  %v1112_v4 = vld [vmem:[%s1389_s1 + $0x148] sm:$0xff]   ;;  %v1130_v18 = vmov 0.0  }
  0x13   :  { %944 = vmatpush3.bf16.msra.mxu0 %v1072_v17  ;;  %726 = vmatprep.mubr.bf16.mxu1 %v188_v46  ;;  %v1106_v62 = vld [vmem:[%s1389_s1 + $0x1d8] sm:$0xff]   ;;  %v1110_v2 = vld [vmem:[%s1389_s1 + $0x1d0] sm:$0xff]   ;;  %v1113_v5 = vld [vmem:[%s1389_s1 + $0x108] sm:$0xff]  }
  0x14   :  { %945 = vmatprep.subr.bf16.mxu0 %v1075_v20  ;;  %v1107_v63 = vld [vmem:[%s1389_s1 + $0x198] sm:$0xff]   ;;  %v1111_v3 = vld [vmem:[%s1389_s1 + $0x190] sm:$0xff]   ;;  %v1114_v6 = vld [vmem:[%s1389_s1 + $0x1c8] sm:$0xff]  }
  0x15   :  { %966 = vmatpush3.bf16.msra.mxu1 %v1074_v19  ;;  %v1115_v7 = vld [vmem:[%s1389_s1 + $0x188] sm:$0xff]   ;;  %v1116_v8 = vld [vmem:[%s1389_s1 + $0x140] sm:$0xff]   ;;  %v1121_v17 = vld [vmem:[%s1389_s1 + $0x238] sm:$0xff]  }
  0x16   :  { %967 = vmatprep.subr.bf16.mxu1 %v1077_v25  ;;  %v1117_v9 = vld [vmem:[%s1389_s1 + $0x100] sm:$0xff]   ;;  %v16_v11 = vld [vmem:[%s1390_s0 + $0x8] sm:$0xff]  ;;  %v1122_v20 = vld [vmem:[%s1389_s1 + $0x230] sm:$0xff]  }
  0x17   :  { %946 = vmatpush3.bf16.msra.mxu0 %v1076_v24  ;;  %v1118_v10 = vld [vmem:[%s1389_s1 + $0x1c0] sm:$0xff]   ;;  %v196_v12 = vrot.slane %v16_v11, %v1239_v34  ;;  %v189_v14 = vcombine.high %v16_v11, %v16_v11  ;;  %v1123_v21 = vld [vmem:[%s1389_s1 + $0x228] sm:$0xff]   ;;  %v1125_v23 = vld [vmem:[%s1389_s1 + $0x218] sm:$0xff]  }
  0x18   :  { %947 = vmatprep.subr.bf16.mxu0 %v1079_v27  ;;  %v1119_v13 = vld [vmem:[%s1389_s1 + $0x180] sm:$0xff]   ;;  %v1126_v24 = vld [vmem:[%s1389_s1 + $0x210] sm:$0xff]   ;;  %v1127_v25 = vld [vmem:[%s1389_s1 + $0x208] sm:$0xff]  }
  0x19   :  { %968 = vmatpush3.bf16.msra.mxu1 %v1078_v26  ;;  %v204_v15 = vcombine.high %v196_v12, %v196_v12  ;;  %v203_v16 = vrot.slane %v189_v14, %v1239_v34  ;;  %v1124_v22 = vld [vmem:[%s1389_s1 + $0x220] sm:$0xff]   ;;  %v862_v27 = vld.sshfl [vmem:[%s1390_s0 + $0x10] sm:$0x3 pattern:$0x76325410] }
  0x1a   :  { %969 = vmatprep.subr.bf16.mxu1 %v1081_v31  ;;  %v1128_v26 = vld [vmem:[%s1389_s1 + $0x200] sm:$0xff]  }
  0x1b   :  { %948 = vmatpush3.bf16.msra.mxu0 %v1080_v30  ;;  %v205_v19 = vcombine.high %v203_v16, %v203_v16 }
  0x1c   :  { %949 = vmatprep.subr.bf16.mxu0 %v1083_v33 }
  0x1d   :  { %970 = vmatpush3.bf16.msra.mxu1 %v1082_v32 }
  0x1e   :  { %971 = vmatprep.subr.bf16.mxu1 %v1085_v36 }
  0x1f   :  { %950 = vmatpush3.bf16.msra.mxu0 %v1084_v35 }
  0x20   :  { %979 = vmatprep.subr.bf16.mxu0 %v1087_v41 }
  0x21   :  { %972 = vmatpush3.bf16.msra.mxu1 %v1086_v39 }
  0x22   :  { %687 = vmatmul.mubr.bf16.vlgmr.msra.gmra.mxu0 %v179_v38  ;;  %1001 = vmatprep.subr.bf16.mxu1 %v1090_v45  ;;  %v861_v45 = vld [vmem:[%s1391_s2] ss:$0 sm:$0xff] }
  0x23   :  { %980 = vmatpush3.bf16.msra.mxu0 %v1089_v44  ;;  %766 = vmatprep.mubr.bf16.mxu0 %v204_v15 }
  0x24   :  { %727 = vmatmul.mubr.bf16.vlgmr.msra.gmra.mxu1 %v186_v43  ;;  %981 = vmatprep.subr.bf16.mxu0 %v1092_v48 }
  0x25   :  { %1002 = vmatpush3.bf16.msra.mxu1 %v1091_v47  ;;  %806 = vmatprep.mubr.bf16.mxu1 %v205_v19 }
  0x26   :  { %1003 = vmatprep.subr.bf16.mxu1 %v1094_v50 }
  0x27   :  { %982 = vmatpush3.bf16.msra.mxu0 %v1093_v49 }
  0x28   :  { %983 = vmatprep.subr.bf16.mxu0 %v1096_v52 }
  0x29   :  { %1004 = vmatpush3.bf16.msra.mxu1 %v1095_v51 }
  0x2a   :  { %1005 = vmatprep.subr.bf16.mxu1 %v1098_v54 }
  0x2b   :  { %984 = vmatpush3.bf16.msra.mxu0 %v1097_v53 }
  0x2c   :  { %985 = vmatprep.subr.bf16.mxu0 %v1100_v56 }
  0x2d   :  { %1006 = vmatpush3.bf16.msra.mxu1 %v1099_v55 }
  0x2e   :  { %1007 = vmatprep.subr.bf16.mxu1 %v1102_v58 }
  0x2f   :  { %986 = vmatpush3.bf16.msra.mxu0 %v1101_v57 }
  0x30   :  { %987 = vmatprep.subr.bf16.mxu0 %v1104_v60 }
  0x31   :  { %1008 = vmatpush3.bf16.msra.mxu1 %v1103_v59 }
  0x32   :  { %1009 = vmatprep.subr.bf16.mxu1 %v1106_v62 }
  0x33   :  { %988 = vmatpush3.bf16.msra.mxu0 %v1105_v61 }
  0x34   :  { %989 = vmatprep.subr.bf16.mxu0 %v1108_v0 }
  0x35   :  { %1010 = vmatpush3.bf16.msra.mxu1 %v1107_v63 }
  0x36   :  { %1011 = vmatprep.subr.bf16.mxu1 %v1110_v2 }
  0x37   :  { %990 = vmatpush3.bf16.msra.mxu0 %v1109_v1 }
  0x38   :  { %991 = vmatprep.subr.bf16.mxu0 %v1112_v4 }
  0x39   :  { %1012 = vmatpush3.bf16.msra.mxu1 %v1111_v3 }
  0x3a   :  { %1013 = vmatprep.subr.bf16.mxu1 %v1114_v6 }
  0x3b   :  { %992 = vmatpush3.bf16.msra.mxu0 %v1113_v5 }
  0x3c   :  { %993 = vmatprep.subr.bf16.mxu0 %v1116_v8 }
  0x3d   :  { %1014 = vmatpush3.bf16.msra.mxu1 %v1115_v7 }
  0x3e   :  { %1015 = vmatprep.subr.bf16.mxu1 %v1118_v10 }
  0x3f   :  { %994 = vmatpush3.bf16.msra.mxu0 %v1117_v9 }
  0x40   :  { %1032 = vmatprep.subr.bf16.mxu0 %v1130_v18 }
  0x41   :  { %1016 = vmatpush3.bf16.msra.mxu1 %v1119_v13 }
  0x42   :  { %767 = vmatmul.mubr.bf16.vlgmr.msra.gmra.mxu0 %v196_v12 }
  0x43   :  { %1033 = vmatpush3.bf16.msra.mxu0 %v1121_v17  ;;  %1048 = vmatprep.mubr.msk.bf16.mxu0 %vm1131_vm0, %v1130_v18 }
  0x44   :  { %807 = vmatmul.mubr.bf16.vlgmr.msra.gmra.mxu1 %v203_v16  ;;  %1034 = vmatprep.subr.bf16.mxu0 %v1130_v18 }
  0x47   :  { %1035 = vmatpush3.bf16.msra.mxu0 %v1122_v20 }
  0x48   :  { %1036 = vmatprep.subr.bf16.mxu0 %v1130_v18 }
  0x4b   :  { %1037 = vmatpush3.bf16.msra.mxu0 %v1123_v21 }
  0x4c   :  { %1038 = vmatprep.subr.bf16.mxu0 %v1130_v18 }
  0x4f   :  { %1039 = vmatpush3.bf16.msra.mxu0 %v1124_v22 }
  0x50   :  { %1040 = vmatprep.subr.bf16.mxu0 %v1130_v18 }
  0x53   :  { %1041 = vmatpush3.bf16.msra.mxu0 %v1125_v23 }
  0x54   :  { %1042 = vmatprep.subr.bf16.mxu0 %v1130_v18 }
  0x57   :  { %1043 = vmatpush3.bf16.msra.mxu0 %v1126_v24 }
  0x58   :  { %1044 = vmatprep.subr.bf16.mxu0 %v1130_v18 }
  0x5b   :  { %1045 = vmatpush3.bf16.msra.mxu0 %v1127_v25 }
  0x5c   :  { %1046 = vmatprep.subr.bf16.mxu0 %v1130_v18 }
  0x5f   :  { %1047 = vmatpush3.bf16.msra.mxu0 %v1128_v26 }
  0x62   :  { %1049 = vmatmul.mubr.bf16.vlgmr.msra.gmra.mxu0 %v862_v27 }
  0xe2   :  { %v951_v28 = vpop.f32.mrf.mxu0 }
  0xe4   :  { %v952_v29 = vpop.f32.mrf.mxu0  ;;  %v973_v30 = vpop.f32.mrf.mxu1 }
  0xe5   :  { %v953_v44 = vadd.f32 %v952_v29, %v951_v28 }
  0xe6   :  { %v954_v31 = vpop.f32.mrf.mxu0  ;;  %v974_v32 = vpop.f32.mrf.mxu1 }
  0xe7   :  { %v689_v46 = vadd.f32 %v953_v44, %v861_v45  ;;  %v975_v47 = vadd.f32 %v974_v32, %v973_v30 }
  0xe8   :  { %v955_v33 = vpop.f32.mrf.mxu0  ;;  %v976_v34 = vpop.f32.mrf.mxu1 }
  0xe9   :  { %v729_v49 = vadd.f32 %v975_v47, %v689_v46 }
  0xea   :  { %v977_v35 = vpop.f32.mrf.mxu1 }
 0x102   :  { %v995_v36 = vpop.f32.mrf.mxu0 }
 0x104   :  { %v996_v37 = vpop.f32.mrf.mxu0  ;;  %v1017_v38 = vpop.f32.mrf.mxu1 }
 0x105   :  { %v997_v48 = vadd.f32 %v996_v37, %v995_v36 }
 0x106   :  { %v998_v39 = vpop.f32.mrf.mxu0  ;;  %v1018_v40 = vpop.f32.mrf.mxu1 }
 0x107   :  { %v769_v50 = vadd.f32 %v997_v48, %v729_v49  ;;  %v1019_v51 = vadd.f32 %v1018_v40, %v1017_v38 }
 0x108   :  { %v999_v41 = vpop.f32.mrf.mxu0  ;;  %v1020_v42 = vpop.f32.mrf.mxu1 }
 0x109   :  { %v809_v52 = vadd.f32 %v1019_v51, %v769_v50 }
 0x10a   :  { %v1021_v43 = vpop.f32.mrf.mxu1 }
 0x122   :  { %v848_v53 = vpop.f32.mrf.mxu0 }
 0x123   :  { %v849_v54 = vadd.f32 %v848_v53, %v809_v52 }
 0x124   :  { %v1050_v55 = vpop.f32.mrf.mxu0 }
 0x125   :  { %v854_v56 = vmax.f32 %v849_v54, 0.0 }
 0x126   :  { %v851_v57 = vpop.f32.mrf.mxu0 }
 0x127   :  { %v855_v58 = vpack.c.bf16 %v854_v56, %v854_v56 }
 0x128   :  { %v1051_v59 = vpop.f32.mrf.mxu0 }
 0x129   :  { %856 = vst [vmem:[%s1392_s3] sm:$0x3] %v855_v58 }

// kernel: vae_forward.13
= control target key start
LH: loop header
LB: loop body
LE: loop exit
PB: predicated region body
PF: predicated region fallthrough
CT: control target
= control target key end

     0   :  { %16 = vsyncpa [#allocation3], 0  ;;  %v1066_v4 = vmov 0.0   ;;  %s1808_s0 = inlined_call_operand.vmem [shape: bf16[16,128], index: 0, kind: input, shape index: {}]   ;;  %s1809_s1 = inlined_call_operand.vmem [shape: f32[128,384], index: 1, kind: input, shape index: {}]   ;;  %s1810_s2 = inlined_call_operand.vmem [shape: f32[128,384], index: 2, kind: input, shape index: {}]   ;;  %s1811_s3 = inlined_call_operand.vmem [shape: f32[1,384], index: 3, kind: input, shape index: {}]   ;;  %s1812_s4 = inlined_call_operand.vmem [shape: f32[1,384], index: 4, kind: input, shape index: {}]   ;;  %s1813_s5 = inlined_call_operand.vmem [shape: f32[128,256], index: 5, kind: input, shape index: {}]   ;;  %s1814_s6 = inlined_call_operand.vmem [shape: f32[1,256], index: 6, kind: input, shape index: {}]   ;;  %s1815_s7 = inlined_call_operand.vmem [shape: f32[2,32], index: 7, kind: input, shape index: {}]   ;;  %s1816_s8 = inlined_call_operand.hbm [shape: f32[2,32], index: 8, kind: output, shape index: {0}]   ;;  %s1817_s9 = inlined_call_operand.hbm [shape: f32[2,32], index: 9, kind: output, shape index: {1}]   ;;  %s1818_s10 = inlined_call_operand.hbm [shape: f32[2,32], index: 10, kind: output, shape index: {2}]  }
   0x1   :  { %v84_v0 = vld [vmem:[%s1809_s1 + $0x170] sm:$0xff]  ;;  %v83_v1 = vld [vmem:[%s1809_s1 + $0x168] sm:$0xff]  ;;  %v81_v2 = vld [vmem:[%s1809_s1 + $0x158] sm:$0xff]  ;;  %167 = vmatprep.mubr.f32.mxu0 %v1066_v4 }
   0x2   :  { %103 = vmatprep.subr.mxu0 %v84_v0  ;;  %v80_v3 = vld [vmem:[%s1809_s1 + $0x150] sm:$0xff]  ;;  %v78_v5 = vld [vmem:[%s1809_s1 + $0x140] sm:$0xff]  ;;  %v77_v6 = vld [vmem:[%s1809_s1 + $0x138] sm:$0xff] }
   0x3   :  { %104 = vmatpush1.msra.mxu0 %v83_v1  ;;  %v75_v7 = vld [vmem:[%s1809_s1 + $0x128] sm:$0xff]  ;;  %v74_v8 = vld [vmem:[%s1809_s1 + $0x120] sm:$0xff]  ;;  %v72_v9 = vld [vmem:[%s1809_s1 + $0x110] sm:$0xff] }
   0x4   :  { %105 = vmatprep.subr.mxu0 %v81_v2  ;;  %v71_v10 = vld [vmem:[%s1809_s1 + $0x108] sm:$0xff]  ;;  %v69_v11 = vld [vmem:[%s1809_s1 + $0xf8] sm:$0xff]  ;;  %v68_v12 = vld [vmem:[%s1809_s1 + $0xf0] sm:$0xff] }
   0x5   :  { %106 = vmatpush1.msra.mxu0 %v80_v3  ;;  %v66_v13 = vld [vmem:[%s1809_s1 + $0xe0] sm:$0xff]  ;;  %v65_v14 = vld [vmem:[%s1809_s1 + $0xd8] sm:$0xff]  ;;  %v63_v16 = vld [vmem:[%s1809_s1 + $0xc8] sm:$0xff] }
   0x6   :  { %107 = vmatprep.subr.mxu0 %v78_v5  ;;  %v85_v15 = vld [vmem:[%s1809_s1 + $0x178] sm:$0xff]  ;;  %v82_v17 = vld [vmem:[%s1809_s1 + $0x160] sm:$0xff]  ;;  %v79_v19 = vld [vmem:[%s1809_s1 + $0x148] sm:$0xff] }
   0x7   :  { %108 = vmatpush1.msra.mxu0 %v77_v6  ;;  %870 = vmatprep.subr.mxu1 %v85_v15  ;;  %v62_v18 = vld [vmem:[%s1809_s1 + $0xc0] sm:$0xff]  ;;  %v60_v20 = vld [vmem:[%s1809_s1 + $0xb0] sm:$0xff]  ;;  %v59_v21 = vld [vmem:[%s1809_s1 + $0xa8] sm:$0xff] }
   0x8   :  { %109 = vmatprep.subr.mxu0 %v75_v7  ;;  %871 = vmatpush3.msra.mxu1 %v85_v15  ;;  %v76_v22 = vld [vmem:[%s1809_s1 + $0x130] sm:$0xff]  ;;  %v57_v23 = vld [vmem:[%s1809_s1 + $0x98] sm:$0xff]  ;;  %v54_v26 = vld [vmem:[%s1809_s1 + $0x80] sm:$0xff] }
   0x9   :  { %110 = vmatpush1.msra.mxu0 %v74_v8  ;;  %872 = vmatprep.subr.mxu1 %v82_v17  ;;  %v56_v24 = vld [vmem:[%s1809_s1 + $0x90] sm:$0xff]  ;;  %v73_v25 = vld [vmem:[%s1809_s1 + $0x118] sm:$0xff]  ;;  %v70_v28 = vld [vmem:[%s1809_s1 + $0x100] sm:$0xff] }
   0xa   :  { %111 = vmatprep.subr.mxu0 %v72_v9  ;;  %873 = vmatpush3.msra.mxu1 %v82_v17  ;;  %v53_v27 = vld [vmem:[%s1809_s1 + $0x78] sm:$0xff]  ;;  %v51_v29 = vld [vmem:[%s1809_s1 + $0x68] sm:$0xff]  ;;  %v50_v30 = vld [vmem:[%s1809_s1 + $0x60] sm:$0xff] }
   0xb   :  { %112 = vmatpush1.msra.mxu0 %v71_v10  ;;  %874 = vmatprep.subr.mxu1 %v79_v19  ;;  %v67_v31 = vld [vmem:[%s1809_s1 + $0xe8] sm:$0xff]  ;;  %v48_v32 = vld [vmem:[%s1809_s1 + $0x50] sm:$0xff]  ;;  %v45_v35 = vld [vmem:[%s1809_s1 + $0x38] sm:$0xff] }
   0xc   :  { %113 = vmatprep.subr.mxu0 %v69_v11  ;;  %875 = vmatpush3.msra.mxu1 %v79_v19  ;;  %v47_v33 = vld [vmem:[%s1809_s1 + $0x48] sm:$0xff]  ;;  %v64_v34 = vld [vmem:[%s1809_s1 + $0xd0] sm:$0xff]  ;;  %v61_v37 = vld [vmem:[%s1809_s1 + $0xb8] sm:$0xff] }
   0xd   :  { %114 = vmatpush1.msra.mxu0 %v68_v12  ;;  %876 = vmatprep.subr.mxu1 %v76_v22  ;;  %v44_v36 = vld [vmem:[%s1809_s1 + $0x30] sm:$0xff]  ;;  %v42_v38 = vld [vmem:[%s1809_s1 + $0x20] sm:$0xff]  ;;  %v41_v40 = vld [vmem:[%s1809_s1 + $0x18] sm:$0xff] }
   0xe   :  { %115 = vmatprep.subr.mxu0 %v66_v13  ;;  %877 = vmatpush3.msra.mxu1 %v76_v22  ;;  %v1244_v39 = vld [vmem:[%s1808_s0] sm:$0xff]   ;;  %v39_v42 = vld [vmem:[%s1809_s1 + $0x8] sm:$0xff]  ;;  %v1265_v46 = vld [vmem:[%s1810_s2 + $0x170] sm:$0xff] }
   0xf   :  { %116 = vmatpush1.msra.mxu0 %v65_v14  ;;  %878 = vmatprep.subr.mxu1 %v73_v25  ;;  %v58_v41 = vld [vmem:[%s1809_s1 + $0xa0] sm:$0xff]  ;;  %v816_v44 = vunpack.c.l.bf16 %v1244_v39  ;;  %v55_v45 = vld [vmem:[%s1809_s1 + $0x88] sm:$0xff]  ;;  %v1275_v48 = vld [vmem:[%s1810_s2 + $0x158] sm:$0xff] }
  0x10   :  { %117 = vmatprep.subr.mxu0 %v63_v16  ;;  %879 = vmatpush3.msra.mxu1 %v73_v25  ;;  %v38_v43 = vld [vmem:[%s1809_s1] sm:$0xff]  ;;  %v1270_v47 = vld [vmem:[%s1810_s2 + $0x168] sm:$0xff]  ;;  %v52_v49 = vld [vmem:[%s1809_s1 + $0x70] sm:$0xff] }
  0x11   :  { %118 = vmatpush1.msra.mxu0 %v62_v18  ;;  %880 = vmatprep.subr.mxu1 %v70_v28 }
  0x12   :  { %119 = vmatprep.subr.mxu0 %v60_v20  ;;  %881 = vmatpush3.msra.mxu1 %v70_v28 }
  0x13   :  { %120 = vmatpush1.msra.mxu0 %v59_v21  ;;  %882 = vmatprep.subr.mxu1 %v67_v31 }
  0x14   :  { %121 = vmatprep.subr.mxu0 %v57_v23  ;;  %883 = vmatpush3.msra.mxu1 %v67_v31 }
  0x15   :  { %122 = vmatpush1.msra.mxu0 %v56_v24  ;;  %884 = vmatprep.subr.mxu1 %v64_v34 }
  0x16   :  { %123 = vmatprep.subr.mxu0 %v54_v26  ;;  %885 = vmatpush3.msra.mxu1 %v64_v34 }
  0x17   :  { %124 = vmatpush1.msra.mxu0 %v53_v27  ;;  %886 = vmatprep.subr.mxu1 %v61_v37 }
  0x18   :  { %125 = vmatprep.subr.mxu0 %v51_v29  ;;  %887 = vmatpush3.msra.mxu1 %v61_v37 }
  0x19   :  { %126 = vmatpush1.msra.mxu0 %v50_v30  ;;  %888 = vmatprep.subr.mxu1 %v58_v41 }
  0x1a   :  { %127 = vmatprep.subr.mxu0 %v48_v32  ;;  %889 = vmatpush3.msra.mxu1 %v58_v41 }
  0x1b   :  { %128 = vmatpush1.msra.mxu0 %v47_v33  ;;  %890 = vmatprep.subr.mxu1 %v55_v45 }
  0x1c   :  { %129 = vmatprep.subr.mxu0 %v45_v35 }
  0x1d   :  { %130 = vmatpush1.msra.mxu0 %v44_v36 }
  0x1e   :  { %131 = vmatprep.subr.mxu0 %v42_v38 }
  0x1f   :  { %132 = vmatpush1.msra.mxu0 %v41_v40 }
  0x20   :  { %133 = vmatprep.subr.mxu0 %v39_v42 }
  0x21   :  { %134 = vmatpush1.msra.mxu0 %v38_v43 }
  0x22   :  { %17 = vsyncpa [#allocation5], 0  ;;  %168 = vmatmul.mubr.f32.vlgmr.msra.gmra.mxu0 %v816_v44  ;;  %320 = vmatprep.subr.mxu0 %v1265_v46  ;;  %v1286_v50 = vld [vmem:[%s1810_s2 + $0x150] sm:$0xff]  ;;  %v1292_v51 = vld [vmem:[%s1810_s2 + $0x140] sm:$0xff]  ;;  %v817_v56 = vunpack.c.h.bf16 %v1244_v39  ;;  %vm1067_vm0 = vmmov 0   ;;  %v88_v37 = vlaneseq  ;;  %s1068_s13 = smov [#allocation4]  }
  0x23   :  { %321 = vmatpush1.msra.mxu0 %v1270_v47  ;;  %891 = vmatpush3.msra.mxu1 %v55_v45  ;;  %v49_v52 = vld [vmem:[%s1809_s1 + $0x58] sm:$0xff]  ;;  %v1307_v54 = vld [vmem:[%s1810_s2 + $0x128] sm:$0xff]  ;;  %v1313_v55 = vld [vmem:[%s1810_s2 + $0x120] sm:$0xff]  ;;  %s785_s14 = sshll.u32 %s1068_s13, 4  ;;  %vm765_vm1 = vcmask 254976   ;;  %s1069_s15 = smov [#allocation6]   ;;  %s786_s14 = int_to_ptr.vmem [resolvable:$true] %s785_s14 }
  0x24   :  { %322 = vmatprep.subr.mxu0 %v1275_v48  ;;  %v1301_v53 = vld [vmem:[%s1810_s2 + $0x138] sm:$0xff]  ;;  %892 = vmatprep.subr.mxu1 %v52_v49  ;;  %v46_v57 = vld [vmem:[%s1809_s1 + $0x40] sm:$0xff]  ;;  %v1323_v58 = vld [vmem:[%s1810_s2 + $0x110] sm:$0xff]  ;;  %v89_v38 = vshrl.u32 %v88_v37, 7  ;;  %s795_s16 = sshll.u32 %s1069_s15, 4  ;;  %s1002_s0 = scalar_lea.vmem %s786_s14, 32  ;;  %s796_s16 = int_to_ptr.vmem [resolvable:$true] %s795_s16 }
  0x25   :  { %323 = vmatpush1.msra.mxu0 %v1286_v50  ;;  %893 = vmatpush3.msra.mxu1 %v52_v49  ;;  %v1330_v59 = vld [vmem:[%s1810_s2 + $0x108] sm:$0xff]  ;;  %v1336_v60 = vld [vmem:[%s1810_s2 + $0xf8] sm:$0xff]  ;;  %v1345_v62 = vld [vmem:[%s1810_s2 + $0xf0] sm:$0xff]  ;;  %p1003_p0 = scmp.ne.s32.totalorder %s786_s14, %s1002_s0  ;;  %p1007_p1 = scmp.lt.s32.totalorder %s786_s14, %s786_s14 }
  0x26   :  { %324 = vmatprep.subr.mxu0 %v1292_v51  ;;  %894 = vmatprep.subr.mxu1 %v49_v52  ;;  %v43_v61 = vld [vmem:[%s1809_s1 + $0x28] sm:$0xff]  ;;  %v1351_v63 = vld [vmem:[%s1810_s2 + $0xe0] sm:$0xff]  ;;  %v40_v0 = vld [vmem:[%s1809_s1 + $0x10] sm:$0xff]  ;;  %v1651_v40 = vsub.s32 0, %v89_v38  ;;  %v1656_v42 = vsub.s32 1, %v89_v38  ;;  %v98_v49 = vsub.s32 2, %v89_v38  ;;  %p1008_p2 = scmp.lt.s32.totalorder %s1002_s0, %s1002_s0 }
  0x27   :  { %325 = vmatpush1.msra.mxu0 %v1301_v53  ;;  %173 = vmatprep.mubr.f32.mxu0 %v1066_v4  ;;  %v1360_v1 = vld [vmem:[%s1810_s2 + $0xd8] sm:$0xff]  ;;  %v1366_v2 = vld [vmem:[%s1810_s2 + $0xc8] sm:$0xff]  ;;  %v1372_v3 = vld [vmem:[%s1810_s2 + $0xc0] sm:$0xff] }
  0x28   :  { %326 = vmatprep.subr.mxu0 %v1307_v54  ;;  %895 = vmatpush3.msra.mxu1 %v49_v52  ;;  %v1378_v5 = vld [vmem:[%s1810_s2 + $0xb0] sm:$0xff]  ;;  %v1384_v6 = vld [vmem:[%s1810_s2 + $0xa8] sm:$0xff]  ;;  %v1391_v7 = vld [vmem:[%s1810_s2 + $0x98] sm:$0xff]  ;;  %p1009_p3 = por %p1008_p2, %p1007_p1 }
  0x29   :  { %327 = vmatpush1.msra.mxu0 %v1313_v55  ;;  %896 = vmatprep.subr.mxu1 %v46_v57  ;;  %v1398_v8 = vld [vmem:[%s1810_s2 + $0x178] sm:$0xff]  ;;  %v1404_v9 = vld [vmem:[%s1810_s2 + $0x90] sm:$0xff]  ;;  %v1411_v10 = vld [vmem:[%s1810_s2 + $0x80] sm:$0xff] }
  0x2a   :  { %328 = vmatprep.subr.mxu0 %v1323_v58  ;;  %174 = vmatmul.mubr.f32.gmra.mxu0 %v817_v56  ;;  %v1416_v11 = vld [vmem:[%s1810_s2 + $0x160] sm:$0xff]  ;;  %v1422_v12 = vld [vmem:[%s1810_s2 + $0x78] sm:$0xff]  ;;  %v1429_v13 = vld [vmem:[%s1810_s2 + $0x68] sm:$0xff]  ;;  %p1010_p4 = pnand %p1009_p3, %p1003_p0 }
  0x2b   :  { %329 = vmatpush1.msra.mxu0 %v1330_v59  ;;  %897 = vmatpush3.msra.mxu1 %v46_v57  ;;  %v1435_v14 = vld [vmem:[%s1810_s2 + $0x148] sm:$0xff]  ;;  %v1441_v15 = vld [vmem:[%s1810_s2 + $0x60] sm:$0xff]  ;;  %v1448_v16 = vld [vmem:[%s1810_s2 + $0x50] sm:$0xff] }
  0x2c   :  { %330 = vmatprep.subr.mxu0 %v1336_v60  ;;  %898 = vmatprep.subr.mxu1 %v43_v61  ;;  %v1454_v17 = vld [vmem:[%s1810_s2 + $0x130] sm:$0xff]  ;;  %v1460_v18 = vld [vmem:[%s1810_s2 + $0x48] sm:$0xff]  ;;  %v1467_v19 = vld [vmem:[%s1810_s2 + $0x38] sm:$0xff] }
  0x2d   :  { %331 = vmatpush1.msra.mxu0 %v1345_v62  ;;  %899 = vmatpush3.msra.mxu1 %v43_v61  ;;  %v1473_v20 = vld [vmem:[%s1810_s2 + $0x118] sm:$0xff]  ;;  %v1479_v21 = vld [vmem:[%s1810_s2 + $0x30] sm:$0xff]  ;;  %v1486_v22 = vld [vmem:[%s1810_s2 + $0x20] sm:$0xff] }
  0x2e   :  { %332 = vmatprep.subr.mxu0 %v1351_v63  ;;  %900 = vmatprep.subr.mxu1 %v40_v0  ;;  %v1492_v23 = vld [vmem:[%s1810_s2 + $0x100] sm:$0xff]  ;;  %v1498_v24 = vld [vmem:[%s1810_s2 + $0x18] sm:$0xff]  ;;  %v1505_v25 = vld [vmem:[%s1810_s2 + $0x8] sm:$0xff] }
  0x2f   :  { %333 = vmatpush1.msra.mxu0 %v1360_v1  ;;  %901 = vmatpush3.msra.mxu1 %v40_v0  ;;  %v1511_v26 = vld [vmem:[%s1810_s2 + $0xe8] sm:$0xff]  ;;  %v1517_v27 = vld [vmem:[%s1810_s2] sm:$0xff]  ;;  %v1525_v28 = vld [vmem:[%s1810_s2 + $0xd0] sm:$0xff] }
  0x30   :  { %334 = vmatprep.subr.mxu0 %v1366_v2  ;;  %384 = vmatprep.mubr.f32.mxu0 %v1066_v4  ;;  %v1534_v29 = vld [vmem:[%s1810_s2 + $0xb8] sm:$0xff]  ;;  %v1542_v30 = vld [vmem:[%s1810_s2 + $0xa0] sm:$0xff]  ;;  %v1552_v31 = vld [vmem:[%s1810_s2 + $0x88] sm:$0xff] }
  0x31   :  { %335 = vmatpush1.msra.mxu0 %v1372_v3  ;;  %902 = vmatprep.mubr.f32.mxu1 %v816_v44  ;;  %v1561_v32 = vld [vmem:[%s1810_s2 + $0x70] sm:$0xff]  ;;  %v1570_v33 = vld [vmem:[%s1810_s2 + $0x58] sm:$0xff]  ;;  %v1579_v34 = vld [vmem:[%s1810_s2 + $0x40] sm:$0xff] }
  0x32   :  { %336 = vmatprep.subr.mxu0 %v1378_v5  ;;  %905 = vmatprep.subr.mxu1 %v1066_v4  ;;  %v260_v35 = vld [vmem:[%s1810_s2 + $0x28] sm:$0xff]  ;;  %v257_v36 = vld [vmem:[%s1810_s2 + $0x10] sm:$0xff]  ;;  %v86_v41 = vld [vmem:[%s1811_s3] sm:$0x7] }
  0x33   :  { %337 = vmatpush1.msra.mxu0 %v1384_v6  ;;  %903 = vmatmul.mubr.f32.vlgmr.msra.gmra.mxu1 %v817_v56  ;;  %v91_v44 = vrot.slane %v86_v41, %v1651_v40  ;;  %v660_v37 = vld [vmem:[%s1813_s5 + $0x80] sm:$0xff]  ;;  %v659_v38 = vld [vmem:[%s1813_s5 + $0x78] sm:$0xff] }
  0x34   :  { %338 = vmatprep.subr.mxu0 %v1391_v7  ;;  %906 = vmatpush3.msra.mxu1 %v1398_v8 }
  0x35   :  { %339 = vmatpush1.msra.mxu0 %v1404_v9  ;;  %907 = vmatprep.subr.mxu1 %v1066_v4 }
  0x36   :  { %340 = vmatprep.subr.mxu0 %v1411_v10  ;;  %908 = vmatpush3.msra.mxu1 %v1416_v11 }
  0x37   :  { %341 = vmatpush1.msra.mxu0 %v1422_v12  ;;  %909 = vmatprep.subr.mxu1 %v1066_v4 }
  0x38   :  { %342 = vmatprep.subr.mxu0 %v1429_v13  ;;  %910 = vmatpush3.msra.mxu1 %v1435_v14 }
  0x39   :  { %343 = vmatpush1.msra.mxu0 %v1441_v15  ;;  %911 = vmatprep.subr.mxu1 %v1066_v4 }
  0x3a   :  { %344 = vmatprep.subr.mxu0 %v1448_v16  ;;  %912 = vmatpush3.msra.mxu1 %v1454_v17 }
  0x3b   :  { %345 = vmatpush1.msra.mxu0 %v1460_v18  ;;  %913 = vmatprep.subr.mxu1 %v1066_v4 }
  0x3c   :  { %346 = vmatprep.subr.mxu0 %v1467_v19  ;;  %914 = vmatpush3.msra.mxu1 %v1473_v20 }
  0x3d   :  { %347 = vmatpush1.msra.mxu0 %v1479_v21  ;;  %915 = vmatprep.subr.mxu1 %v1066_v4 }
  0x3e   :  { %348 = vmatprep.subr.mxu0 %v1486_v22  ;;  %916 = vmatpush3.msra.mxu1 %v1492_v23 }
  0x3f   :  { %349 = vmatpush1.msra.mxu0 %v1498_v24  ;;  %917 = vmatprep.subr.mxu1 %v1066_v4 }
  0x40   :  { %350 = vmatprep.subr.mxu0 %v1505_v25  ;;  %918 = vmatpush3.msra.mxu1 %v1511_v26 }
  0x41   :  { %351 = vmatpush1.msra.mxu0 %v1517_v27  ;;  %919 = vmatprep.subr.mxu1 %v1066_v4 }
  0x42   :  { %385 = vmatmul.mubr.f32.vlgmr.msra.gmra.mxu0 %v1066_v4  ;;  %920 = vmatpush3.msra.mxu1 %v1525_v28 }
  0x43   :  { %921 = vmatprep.subr.mxu1 %v1066_v4  ;;  %937 = vmatprep.mubr.msk.f32.mxu1 %vm1067_vm0, %v1066_v4 }
  0x44   :  { %922 = vmatpush3.msra.mxu1 %v1534_v29  ;;  %482 = vmatprep.subr.mxu0 %v1265_v46  ;;  %v95_v46 = vrot.slane %v86_v41, %v1656_v42 }
  0x45   :  { %923 = vmatprep.subr.mxu1 %v1066_v4  ;;  %483 = vmatpush1.msra.mxu0 %v1270_v47 }
  0x46   :  { %924 = vmatpush3.msra.mxu1 %v1542_v30  ;;  %484 = vmatprep.subr.mxu0 %v1275_v48 }
  0x47   :  { %925 = vmatprep.subr.mxu1 %v1066_v4  ;;  %485 = vmatpush1.msra.mxu0 %v1286_v50 }
  0x48   :  { %926 = vmatpush3.msra.mxu1 %v1552_v31  ;;  %486 = vmatprep.subr.mxu0 %v1292_v51  ;;  %v99_v51 = vrot.slane %v86_v41, %v98_v49  ;;  %v657_v41 = vld [vmem:[%s1813_s5 + $0x68] sm:$0xff] }
  0x49   :  { %927 = vmatprep.subr.mxu1 %v1066_v4  ;;  %487 = vmatpush1.msra.mxu0 %v1301_v53 }
  0x4a   :  { %928 = vmatpush3.msra.mxu1 %v1561_v32  ;;  %488 = vmatprep.subr.mxu0 %v1307_v54  ;;  %v303_v54 = vld [vmem:[%s1812_s4] sm:$0x7] }
  0x4b   :  { %929 = vmatprep.subr.mxu1 %v1066_v4  ;;  %489 = vmatpush1.msra.mxu0 %v1313_v55  ;;  %v1670_v55 = vrot.slane %v303_v54, %v1651_v40 }
  0x4c   :  { %930 = vmatpush3.msra.mxu1 %v1570_v33  ;;  %490 = vmatprep.subr.mxu0 %v1323_v58 }
  0x4d   :  { %931 = vmatprep.subr.mxu1 %v1066_v4  ;;  %491 = vmatpush1.msra.mxu0 %v1330_v59  ;;  %v1674_v59 = vrot.slane %v303_v54, %v1656_v42 }
  0x4e   :  { %932 = vmatpush3.msra.mxu1 %v1579_v34  ;;  %492 = vmatprep.subr.mxu0 %v1336_v60 }
  0x4f   :  { %933 = vmatprep.subr.mxu1 %v1066_v4  ;;  %493 = vmatpush1.msra.mxu0 %v1345_v62 }
  0x50   :  { %934 = vmatpush3.msra.mxu1 %v260_v35  ;;  %494 = vmatprep.subr.mxu0 %v1351_v63 }
  0x51   :  { %935 = vmatprep.subr.mxu1 %v1066_v4  ;;  %495 = vmatpush1.msra.mxu0 %v1360_v1 }
  0x52   :  { %936 = vmatpush3.msra.mxu1 %v257_v36  ;;  %496 = vmatprep.subr.mxu0 %v1366_v2 }
  0x53   :  { %938 = vmatmul.mubr.f32.vlgmr.msra.gmra.mxu1 %v1066_v4  ;;  %940 = vmatprep.subr.mxu1 %v1066_v4 }
  0x54   :  { %941 = vmatpush3.msra.mxu1 %v1398_v8  ;;  %497 = vmatpush1.msra.mxu0 %v1372_v3 }
  0x55   :  { %942 = vmatprep.subr.mxu1 %v1066_v4  ;;  %498 = vmatprep.subr.mxu0 %v1378_v5 }
  0x56   :  { %943 = vmatpush3.msra.mxu1 %v1416_v11  ;;  %499 = vmatpush1.msra.mxu0 %v1384_v6 }
  0x57   :  { %944 = vmatprep.subr.mxu1 %v1066_v4  ;;  %500 = vmatprep.subr.mxu0 %v1391_v7 }
  0x58   :  { %945 = vmatpush3.msra.mxu1 %v1435_v14  ;;  %501 = vmatpush1.msra.mxu0 %v1404_v9  ;;  %v1677_v9 = vrot.slane %v303_v54, %v98_v49  ;;  %v651_v49 = vld [vmem:[%s1813_s5 + $0x38] sm:$0xff]  ;;  %v648_v54 = vld [vmem:[%s1813_s5 + $0x20] sm:$0xff] }
  0x59   :  { %946 = vmatprep.subr.mxu1 %v1066_v4  ;;  %502 = vmatprep.subr.mxu0 %v1411_v10 }
  0x5a   :  { %947 = vmatpush3.msra.mxu1 %v1454_v17  ;;  %503 = vmatpush1.msra.mxu0 %v1422_v12 }
  0x5b   :  { %948 = vmatprep.subr.mxu1 %v1066_v4  ;;  %504 = vmatprep.subr.mxu0 %v1429_v13 }
  0x5c   :  { %949 = vmatpush3.msra.mxu1 %v1473_v20  ;;  %505 = vmatpush1.msra.mxu0 %v1441_v15 }
  0x5d   :  { %950 = vmatprep.subr.mxu1 %v1066_v4  ;;  %506 = vmatprep.subr.mxu0 %v1448_v16 }
  0x5e   :  { %951 = vmatpush3.msra.mxu1 %v1492_v23  ;;  %507 = vmatpush1.msra.mxu0 %v1460_v18  ;;  %v675_v23 = vld [vmem:[%s1813_s5 + $0xf8] sm:$0xff] }
  0x5f   :  { %952 = vmatprep.subr.mxu1 %v1066_v4  ;;  %508 = vmatprep.subr.mxu0 %v1467_v19 }
  0x60   :  { %953 = vmatpush3.msra.mxu1 %v1511_v26  ;;  %509 = vmatpush1.msra.mxu0 %v1479_v21  ;;  %v672_v26 = vld [vmem:[%s1813_s5 + $0xe0] sm:$0xff] }
  0x61   :  { %954 = vmatprep.subr.mxu1 %v1066_v4  ;;  %510 = vmatprep.subr.mxu0 %v1486_v22 }
  0x62   :  { %955 = vmatpush3.msra.mxu1 %v1525_v28  ;;  %511 = vmatpush1.msra.mxu0 %v1498_v24  ;;  %v674_v24 = vld [vmem:[%s1813_s5 + $0xf0] sm:$0xff]  ;;  %v669_v28 = vld [vmem:[%s1813_s5 + $0xc8] sm:$0xff] }
  0x63   :  { %956 = vmatprep.subr.mxu1 %v1066_v4  ;;  %512 = vmatprep.subr.mxu0 %v1505_v25  ;;  %v673_v25 = vld [vmem:[%s1813_s5 + $0xe8] sm:$0xff] }
  0x64   :  { %957 = vmatpush3.msra.mxu1 %v1534_v29  ;;  %513 = vmatpush1.msra.mxu0 %v1517_v27  ;;  %v670_v27 = vld [vmem:[%s1813_s5 + $0xd0] sm:$0xff]  ;;  %v668_v29 = vld [vmem:[%s1813_s5 + $0xc0] sm:$0xff] }
  0x65   :  { %958 = vmatprep.subr.mxu1 %v1066_v4  ;;  %546 = vmatprep.mubr.f32.mxu0 %v1066_v4 }
  0x66   :  { %959 = vmatpush3.msra.mxu1 %v1542_v30  ;;  %972 = vmatprep.mubr.msk.f32.mxu1 %vm1067_vm0, %v1066_v4  ;;  %v667_v30 = vld [vmem:[%s1813_s5 + $0xb8] sm:$0xff] }
  0x67   :  { %960 = vmatprep.subr.mxu1 %v1066_v4  ;;  %688 = vmatprep.subr.mxu0 %v675_v23 }
  0x68   :  { %961 = vmatpush3.msra.mxu1 %v1552_v31  ;;  %v666_v31 = vld [vmem:[%s1813_s5 + $0xb0] sm:$0xff] }
  0x69   :  { %962 = vmatprep.subr.mxu1 %v1066_v4 }
  0x6a   :  { %963 = vmatpush3.msra.mxu1 %v1561_v32  ;;  %v665_v32 = vld [vmem:[%s1813_s5 + $0xa8] sm:$0xff] }
  0x6b   :  { %964 = vmatprep.subr.mxu1 %v1066_v4 }
  0x6c   :  { %965 = vmatpush3.msra.mxu1 %v1570_v33  ;;  %v664_v33 = vld [vmem:[%s1813_s5 + $0xa0] sm:$0xff] }
  0x6d   :  { %966 = vmatprep.subr.mxu1 %v1066_v4 }
  0x6e   :  { %967 = vmatpush3.msra.mxu1 %v1579_v34  ;;  %v663_v34 = vld [vmem:[%s1813_s5 + $0x98] sm:$0xff] }
  0x6f   :  { %968 = vmatprep.subr.mxu1 %v1066_v4 }
  0x70   :  { %969 = vmatpush3.msra.mxu1 %v260_v35  ;;  %v662_v35 = vld [vmem:[%s1813_s5 + $0x90] sm:$0xff] }
  0x71   :  { %970 = vmatprep.subr.mxu1 %v1066_v4 }
  0x72   :  { %971 = vmatpush3.msra.mxu1 %v257_v36  ;;  %v661_v36 = vld [vmem:[%s1813_s5 + $0x88] sm:$0xff] }
  0xe2   :  { %v169_v39 = vpop.f32.mrf.mxu0 }
  0xe3   :  { %v170_v57 = vadd.f32 %v169_v39, %v91_v44  ;;  %v658_v39 = vld [vmem:[%s1813_s5 + $0x70] sm:$0xff] }
  0xe4   :  { %v171_v43 = vpop.f32.mrf.mxu0 }
  0xe5   :  { %v172_v0 = vadd.f32 %v171_v43, %v95_v46  ;;  %v656_v43 = vld [vmem:[%s1813_s5 + $0x60] sm:$0xff] }
  0xea   :  { %v175_v45 = vpop.f32.mrf.mxu0 }
  0xeb   :  { %v1660_v47 = vadd.f32 %v175_v45, %v91_v44  ;;  %v655_v44 = vld [vmem:[%s1813_s5 + $0x58] sm:$0xff]  ;;  %v654_v45 = vld [vmem:[%s1813_s5 + $0x50] sm:$0xff] }
  0xec   :  { %v177_v48 = vpop.f32.mrf.mxu0 }
  0xed   :  { %v1662_v50 = vadd.f32 %v177_v48, %v95_v46  ;;  %v653_v46 = vld [vmem:[%s1813_s5 + $0x48] sm:$0xff]  ;;  %v652_v48 = vld [vmem:[%s1813_s5 + $0x40] sm:$0xff] }
  0xf3   :  { %v904_v52 = vpop.f32.mrf.mxu1 }
  0xf4   :  { %v1664_v53 = vadd.f32 %v904_v52, %v99_v51  ;;  %v649_v52 = vld [vmem:[%s1813_s5 + $0x28] sm:$0xff] }
  0xf5   :  { %v246_v3 = vpop.f32.mrf.mxu1 }
  0xf6   :  { %v247_v14 = vadd.f32 %v246_v3, %v99_v51  ;;  %v650_v51 = vld [vmem:[%s1813_s5 + $0x30] sm:$0xff] }
 0x102   :  { %v386_v56 = vpop.f32.mrf.mxu0 }
 0x103   :  { %v387_v58 = vadd.f32 %v386_v56, %v1670_v55  ;;  %v647_v56 = vld [vmem:[%s1813_s5 + $0x18] sm:$0xff] }
 0x104   :  { %v388_v60 = vpop.f32.mrf.mxu0 }
 0x105   :  { %v461_v61 = vadd.f32 %v387_v58, %v170_v57  ;;  %v389_v63 = vadd.f32 %v388_v60, %v1674_v59  ;;  %v646_v57 = vld [vmem:[%s1813_s5 + $0x10] sm:$0xff]  ;;  %v645_v58 = vld [vmem:[%s1813_s5 + $0x8] sm:$0xff]  ;;  %v644_v60 = vld [vmem:[%s1813_s5] sm:$0xff] }
 0x107   :  { %v810_v62 = vmul.f32 -1.442695, %v461_v61  ;;  %v468_v1 = vadd.f32 %v389_v63, %v172_v0 }
 0x109   :  { %980 = vpow2.f32 %v810_v62  ;;  %v811_v2 = vmul.f32 -1.442695, %v468_v1 }
 0x10b   :  { %982 = vpow2.f32 %v811_v2 }
 0x113   :  { %v457_v5 = vpop.f32.mrf.mxu1 }
 0x114   :  { %v458_v12 = vadd.f32 %v457_v5, %v1677_v9 }
 0x115   :  { %v939_v6 = vpop.f32.mrf.mxu1 }
 0x116   :  { %v981_v7 = vpop.eup %980 }
 0x117   :  { %v465_v8 = vadd.f32 1.0, %v981_v7 }
 0x118   :  { %v983_v10 = vpop.eup %982 }
 0x119   :  { %984 = vrcp.f32 %v465_v8  ;;  %v472_v11 = vadd.f32 1.0, %v983_v10 }
 0x11b   :  { %986 = vrcp.f32 %v472_v11 }
 0x126   :  { %v985_v13 = vpop.eup %984 }
 0x127   :  { %v475_v15 = vmul.f32 %v985_v13, %v458_v12 }
 0x128   :  { %v987_v17 = vpop.eup %986 }
 0x129   :  { %v476_v16 = vadd.f32 %v475_v15, %v247_v14  ;;  %v478_v18 = vsub.f32 1.0, %v987_v17  ;;  %v480_v21 = vmul.f32 0.0, %v987_v17 }
 0x12b   :  { %988 = vtanh.f32 %v476_v16 }
 0x138   :  { %v989_v19 = vpop.eup %988 }
 0x139   :  { %v479_v20 = vmul.f32 %v989_v19, %v478_v18  ;;  %v676_v19 = vld [vmem:[%s1814_s6] sm:$0x3] }
 0x13b   :  { %v1680_v22 = vadd.f32 %v480_v21, %v479_v20  ;;  %v685_v20 = vrot.slane %v676_v19, %v1656_v42 }
 0x13d   :  { %547 = vmatmul.mubr.f32.vlgmr.msra.gmra.mxu0 %v1680_v22  ;;  %973 = vmatmul.mubr.f32.vlgmr.msra.gmra.mxu1 %v1680_v22 }
 0x13e   :  { %752 = vmatprep.mubr.f32.mxu0 %v1066_v4  ;;  %689 = vmatpush1.msra.mxu0 %v674_v24  ;;  %v671_v4 = vld [vmem:[%s1813_s5 + $0xd8] sm:$0xff] }
 0x13f   :  { %690 = vmatprep.subr.mxu0 %v673_v25 }
 0x140   :  { %691 = vmatpush1.msra.mxu0 %v672_v26 }
 0x141   :  { %692 = vmatprep.subr.mxu0 %v671_v4 }
 0x142   :  { %693 = vmatpush1.msra.mxu0 %v670_v27 }
 0x143   :  { %694 = vmatprep.subr.mxu0 %v669_v28 }
 0x144   :  { %695 = vmatpush1.msra.mxu0 %v668_v29 }
 0x145   :  { %696 = vmatprep.subr.mxu0 %v667_v30 }
 0x146   :  { %697 = vmatpush1.msra.mxu0 %v666_v31 }
 0x147   :  { %698 = vmatprep.subr.mxu0 %v665_v32 }
 0x148   :  { %699 = vmatpush1.msra.mxu0 %v664_v33 }
 0x149   :  { %700 = vmatprep.subr.mxu0 %v663_v34 }
 0x14a   :  { %701 = vmatpush1.msra.mxu0 %v662_v35 }
 0x14b   :  { %702 = vmatprep.subr.mxu0 %v661_v36 }
 0x14c   :  { %703 = vmatpush1.msra.mxu0 %v660_v37 }
 0x14d   :  { %704 = vmatprep.subr.mxu0 %v659_v38 }
 0x14e   :  { %705 = vmatpush1.msra.mxu0 %v658_v39 }
 0x14f   :  { %706 = vmatprep.subr.mxu0 %v657_v41 }
 0x150   :  { %707 = vmatpush1.msra.mxu0 %v656_v43 }
 0x151   :  { %708 = vmatprep.subr.mxu0 %v655_v44 }
 0x152   :  { %709 = vmatpush1.msra.mxu0 %v654_v45 }
 0x153   :  { %710 = vmatprep.subr.mxu0 %v653_v46 }
 0x154   :  { %711 = vmatpush1.msra.mxu0 %v652_v48 }
 0x155   :  { %712 = vmatprep.subr.mxu0 %v651_v49 }
 0x156   :  { %713 = vmatpush1.msra.mxu0 %v650_v51 }
 0x157   :  { %714 = vmatprep.subr.mxu0 %v649_v52 }
 0x158   :  { %715 = vmatpush1.msra.mxu0 %v648_v54 }
 0x159   :  { %716 = vmatprep.subr.mxu0 %v647_v56 }
 0x15a   :  { %717 = vmatpush1.msra.mxu0 %v646_v57 }
 0x15b   :  { %718 = vmatprep.subr.mxu0 %v645_v58 }
 0x15c   :  { %719 = vmatpush1.msra.mxu0 %v644_v60 }
 0x1fd   :  { %v548_v61 = vpop.f32.mrf.mxu0  ;;  %v619_v62 = vpop.f32.mrf.mxu1 }
 0x1fe   :  { %v549_v63 = vadd.f32 %v548_v61, %v1670_v55  ;;  %v620_v13 = vadd.f32 %v619_v62, %v1677_v9  ;;  %v681_v9 = vrot.slane %v676_v19, %v1651_v40 }
 0x1ff   :  { %v550_v0 = vpop.f32.mrf.mxu0  ;;  %v974_v1 = vpop.f32.mrf.mxu1 }
 0x200   :  { %v623_v2 = vadd.f32 %v549_v63, %v1660_v47  ;;  %v551_v5 = vadd.f32 %v550_v0, %v1674_v59 }
 0x202   :  { %v812_v3 = vmul.f32 -1.442695, %v623_v2  ;;  %v630_v6 = vadd.f32 %v551_v5, %v1662_v50 }
 0x204   :  { %990 = vpow2.f32 %v812_v3  ;;  %v813_v7 = vmul.f32 -1.442695, %v630_v6 }
 0x206   :  { %992 = vpow2.f32 %v813_v7 }
 0x211   :  { %v991_v8 = vpop.eup %990 }
 0x212   :  { %v627_v10 = vadd.f32 1.0, %v991_v8 }
 0x213   :  { %v993_v11 = vpop.eup %992 }
 0x214   :  { %994 = vrcp.f32 %v627_v10  ;;  %v634_v12 = vadd.f32 1.0, %v993_v11 }
 0x216   :  { %996 = vrcp.f32 %v634_v12 }
 0x221   :  { %v995_v55 = vpop.eup %994 }
 0x222   :  { %v637_v14 = vmul.f32 %v995_v55, %v620_v13 }
 0x223   :  { %v997_v15 = vpop.eup %996 }
 0x224   :  { %v638_v47 = vadd.f32 %v637_v14, %v1664_v53  ;;  %v640_v59 = vsub.f32 1.0, %v997_v15  ;;  %v642_v50 = vmul.f32 %v997_v15, %v1680_v22 }
 0x226   :  { %998 = vtanh.f32 %v638_v47 }
 0x233   :  { %v999_v16 = vpop.eup %998 }
 0x234   :  { %v641_v17 = vmul.f32 %v999_v16, %v640_v59 }
 0x236   :  { %v643_v18 = vadd.f32 %v642_v50, %v641_v17 }
 0x238   :  { %753 = vmatmul.mubr.f32.vlgmr.msra.gmra.mxu0 %v643_v18 }
 0x2f8   :  { %v754_v53 = vpop.f32.mrf.mxu0 }
 0x2f9   :  { %v755_v21 = vadd.f32 %v754_v53, %v681_v9 }
 0x2fa   :  { %v756_v23 = vpop.f32.mrf.mxu0 }
 0x2fb   :  { %v757_v22 = vadd.f32 %v756_v23, %v685_v20  ;;  %767 = vst.msk [vmem:[#allocation4] sm:$0x3] %vm765_vm1, %v755_v21 }
 0x2fc   :  { %1013 = shalt.err (!%p1010_p4)
}
 0x2fd   :  { %788 = dma.vmem_to_hbm [thread:$0]  %s786_s14, 32, %s1817_s9, [#allocation5]   ;;  %v759_v40 = vmul.f32 0.5, %v757_v22  ;;  %768 = vst.msk [vmem:[#allocation6] sm:$0x3] %vm765_vm1, %v757_v22 }
 0x2fe   :  { %s1022_s2 = scalar_lea.vmem %s796_s16, 32  ;;  %p1027_p6 = scmp.lt.s32.totalorder %s796_s16, %s796_s16 }
 0x2ff   :  { %p1023_p5 = scmp.ne.s32.totalorder %s796_s16, %s1022_s2  ;;  %p1028_p7 = scmp.lt.s32.totalorder %s1022_s2, %s1022_s2 }
 0x301   :  { %p1029_p8 = por %p1028_p7, %p1027_p6 }
 0x303   :  { %p1030_p9 = pnand %p1029_p8, %p1023_p5 }
 0x305   :  { %1033 = shalt.err (!%p1030_p9)
}
 0x306   :  { %798 = dma.vmem_to_hbm [thread:$0]  %s796_s16, 32, %s1818_s10, [#allocation5]   ;;  %v760_v42 = vmul.f32 1.442695, %v759_v40  ;;  %v762_v24 = vld [vmem:[%s1815_s7] sm:$0x3] }
 0x307   :  { %s1070_s9 = smov [#allocation2]  }
 0x308   :  { %1000 = vpow2.f32 %v760_v42  ;;  %s775_s19 = sshll.u32 %s1070_s9, 4  ;;  %s776_s19 = int_to_ptr.vmem [resolvable:$true] %s775_s19 }
 0x309   :  { %s1042_s20 = scalar_lea.vmem %s776_s19, 32  ;;  %p1047_p11 = scmp.lt.s32.totalorder %s776_s19, %s776_s19 }
 0x30a   :  { %p1043_p10 = scmp.ne.s32.totalorder %s776_s19, %s1042_s20  ;;  %p1048_p12 = scmp.lt.s32.totalorder %s1042_s20, %s1042_s20 }
 0x30c   :  { %p1049_p13 = por %p1048_p12, %p1047_p11 }
 0x30e   :  { %p1050_p0 = pnand %p1049_p13, %p1043_p10 }
 0x315   :  { %v1001_v25 = vpop.eup %1000 }
 0x316   :  { %v763_v26 = vmul.f32 %v1001_v25, %v762_v24 }
 0x318   :  { %v764_v4 = vadd.f32 %v763_v26, %v755_v21 }
 0x31a   :  { %766 = vst.msk [vmem:[#allocation2] sm:$0x3] %vm765_vm1, %v764_v4 }
 0x31b   :  { %1053 = shalt.err (!%p1050_p0)
}
 0x31c   :  { %778 = dma.vmem_to_hbm [thread:$0]  %s776_s19, 32, %s1816_s8, [#allocation3]  }
 0x31d   :  { %1062 = dma.done.wait [#allocation3], 32  }
 0x31e   :  { %1063 = vsyncadd [#allocation3], 4294967264 }
 0x31f   :  { %1064 = dma.done.wait [#allocation5], 64  }
 0x320   :  { %1065 = vsyncadd [#allocation5], 4294967232 }
 0x321   :  { %808 = vsyncpa [#allocation3], 1 }
 0x322   :  { %809 = vsyncpa [#allocation5], 1 }

</bundles_post_ra>
